<compile_context>
chip_gen: v7x
topology: tpu7x:2x2x1
jax: 0.10.0
libtpu: 0.0.40
codegen_flags: <defaults>
</compile_context>

<pallas_src>
import functools

import jax
import jax.numpy as jnp
from jax import lax
from jax.experimental import pallas as pl
from jax.experimental.pallas import tpu as pltpu

_VMEM_SPEC = pl.BlockSpec(memory_space=pltpu.MemorySpace.VMEM)


def _round_up(x, m):
    return (x + m - 1) // m * m


def _pick_tile(size, align, max_tile):
    """Return (padded_size, tile): tile % align == 0 and tile | padded_size."""
    p = _round_up(size, align)
    if p <= max_tile:
        return p, p
    for t in range(max_tile, 0, -align):
        if p % t == 0:
            return p, t
    return _round_up(size, max_tile), max_tile


# ----------------------- tiled, pipelined MXU matmul ------------------------

def _matmul_kernel(a_ref, b_ref, o_ref, acc_ref):
    @pl.when(pl.program_id(2) == 0)
    def _():
        acc_ref[...] = jnp.zeros_like(acc_ref)

    acc_ref[...] += jnp.dot(a_ref[...], b_ref[...],
                            preferred_element_type=jnp.float32)

    @pl.when(pl.program_id(2) == pl.num_programs(2) - 1)
    def _():
        o_ref[...] = acc_ref[...].astype(o_ref.dtype)


def pallas_matmul(a, b):
    """bf16 x bf16 -> f32, tiled over (M, N, K) with f32 VMEM accumulator."""
    m, k = a.shape
    _, n = b.shape
    a = a.astype(jnp.bfloat16)
    b = b.astype(jnp.bfloat16)

    mp, tm = _pick_tile(m, 8, 256)
    np_, tn = _pick_tile(n, 128, 256)
    kp, tk = _pick_tile(k, 128, 512)

    if (mp, kp) != (m, k):
        a = jnp.pad(a, ((0, mp - m), (0, kp - k)))
    if (kp, np_) != (k, n):
        b = jnp.pad(b, ((0, kp - k), (0, np_ - n)))

    out = pl.pallas_call(
        _matmul_kernel,
        out_shape=jax.ShapeDtypeStruct((mp, np_), jnp.float32),
        grid_spec=pltpu.PrefetchScalarGridSpec(
            num_scalar_prefetch=0,
            grid=(mp // tm, np_ // tn, kp // tk),
            in_specs=[pl.BlockSpec((tm, tk), lambda i, j, kk: (i, kk)),
                      pl.BlockSpec((tk, tn), lambda i, j, kk: (kk, j))],
            out_specs=pl.BlockSpec((tm, tn), lambda i, j, kk: (i, j)),
            scratch_shapes=[pltpu.VMEM((tm, tn), jnp.float32)]),
        compiler_params=pltpu.CompilerParams(
            dimension_semantics=("parallel", "parallel", "arbitrary")),
    )(a, b)

    if (mp, np_) != (m, n):
        out = out[:m, :n]
    return out


# ------------------------ BatchNorm (training mode) -------------------------

def _bn_stats_kernel(x_ref, s_ref):
    @pl.when(pl.program_id(0) == 0)
    def _():
        s_ref[...] = jnp.zeros_like(s_ref)
    x = x_ref[...]
    ssum = jnp.sum(x, axis=0, keepdims=True)
    ssq = jnp.sum(x * x, axis=0, keepdims=True)
    s_ref[...] += jnp.concatenate([ssum, ssq], axis=0)


def _bn_apply_kernel(x_ref, scale_ref, shift_ref, o_ref, *, relu):
    y = x_ref[...] * scale_ref[...] + shift_ref[...]
    if relu:
        y = jnp.maximum(y, 0.0)
    o_ref[...] = y


def _bn_apply_res_kernel(x_ref, scale_ref, shift_ref, res_ref, o_ref):
    # BN affine + residual add + ReLU (fused BasicBlock epilogue).
    y = x_ref[...] * scale_ref[...] + shift_ref[...] + res_ref[...]
    o_ref[...] = jnp.maximum(y, 0.0)


def pallas_batchnorm(x2d, gamma, beta, relu=False, residual=None, eps=1e-5):
    """Training-mode BatchNorm over rows of (M, C), tiled/pipelined over M."""
    m, c = x2d.shape
    mp, tm = _pick_tile(m, 8, 512)
    xp = jnp.pad(x2d, ((0, mp - m), (0, 0))) if mp != m else x2d

    stats = pl.pallas_call(
        _bn_stats_kernel,
        out_shape=jax.ShapeDtypeStruct((2, c), jnp.float32),
        grid_spec=pltpu.PrefetchScalarGridSpec(
            num_scalar_prefetch=0,
            grid=(mp // tm,),
            in_specs=[pl.BlockSpec((tm, c), lambda i: (i, 0))],
            out_specs=pl.BlockSpec((2, c), lambda i: (0, 0))),
        compiler_params=pltpu.CompilerParams(
            dimension_semantics=("arbitrary",)),
    )(xp)

    # Tiny per-channel (C-length) derivation of the affine parameters.
    mean = stats[0] / m
    var = stats[1] / m - mean * mean          # biased variance (PyTorch fwd)
    scale = gamma * lax.rsqrt(var + eps)
    shift = beta - mean * scale
    scale = scale.reshape(1, c)
    shift = shift.reshape(1, c)

    row_spec = pl.BlockSpec((tm, c), lambda i: (i, 0))
    vec_spec = pl.BlockSpec((1, c), lambda i: (0, 0))

    if residual is not None:
        resp = (jnp.pad(residual, ((0, mp - m), (0, 0)))
                if mp != m else residual)
        kern = _bn_apply_res_kernel
        inputs = (xp, scale, shift, resp)
        in_specs = [row_spec, vec_spec, vec_spec, row_spec]
    else:
        kern = functools.partial(_bn_apply_kernel, relu=relu)
        inputs = (xp, scale, shift)
        in_specs = [row_spec, vec_spec, vec_spec]

    out = pl.pallas_call(
        kern,
        out_shape=jax.ShapeDtypeStruct((mp, c), jnp.float32),
        grid_spec=pltpu.PrefetchScalarGridSpec(
            num_scalar_prefetch=0,
            grid=(mp // tm,),
            in_specs=in_specs,
            out_specs=row_spec),
        compiler_params=pltpu.CompilerParams(
            dimension_semantics=("parallel",)),
    )(*inputs)

    return out[:m] if mp != m else out


# ----------------------------- pooling kernels ------------------------------

def _maxpool_kernel(x_ref, o_ref):
    o_ref[...] = jnp.max(x_ref[...], axis=0)


def _mean_reduce_kernel(x_ref, o_ref):
    o_ref[...] = jnp.mean(x_ref[...], axis=1)


def maxpool2d(x_nhwc, k=3, stride=2, pad=1):
    n, h, wd, c = x_nhwc.shape
    neg = jnp.finfo(x_nhwc.dtype).min
    xp = jnp.pad(x_nhwc, ((0, 0), (pad, pad), (pad, pad), (0, 0)),
                 constant_values=neg)
    ho = (h + 2 * pad - k) // stride + 1
    wo = (wd + 2 * pad - k) // stride + 1
    views = [xp[:, i:i + stride * ho:stride, j:j + stride * wo:stride, :]
             for i in range(k) for j in range(k)]
    m = n * ho * wo
    stacked = jnp.stack(views, axis=0).reshape(k * k, m, c)

    mp, tm = _pick_tile(m, 8, 512)
    if mp != m:
        stacked = jnp.pad(stacked, ((0, 0), (0, mp - m), (0, 0)))

    out = pl.pallas_call(
        _maxpool_kernel,
        out_shape=jax.ShapeDtypeStruct((mp, c), jnp.float32),
        grid_spec=pltpu.PrefetchScalarGridSpec(
            num_scalar_prefetch=0,
            grid=(mp // tm,),
            in_specs=[pl.BlockSpec((k * k, tm, c), lambda i: (0, i, 0))],
            out_specs=pl.BlockSpec((tm, c), lambda i: (i, 0))),
        compiler_params=pltpu.CompilerParams(
            dimension_semantics=("parallel",)),
    )(stacked)
    out = out[:m] if mp != m else out
    return out.reshape(n, ho, wo, c)


def global_avgpool(x_nhwc):
    n, h, wd, c = x_nhwc.shape
    x = x_nhwc.reshape(n, h * wd, c)
    return pl.pallas_call(
        _mean_reduce_kernel,
        out_shape=jax.ShapeDtypeStruct((n, c), jnp.float32),
        in_specs=[_VMEM_SPEC],
        out_specs=_VMEM_SPEC,
    )(x)


# --------------------------- fused projection head --------------------------

def _mlp_head_kernel(x_ref, w1_ref, b1_ref, w2_ref, b2_ref, o_ref):
    h = jnp.dot(x_ref[...], w1_ref[...], preferred_element_type=jnp.float32)
    h = jnp.maximum(h + b1_ref[...], 0.0)
    o_ref[...] = (jnp.dot(h.astype(w2_ref.dtype), w2_ref[...],
                          preferred_element_type=jnp.float32) + b2_ref[...])


def pallas_mlp_head(feat, w1, b1, w2, b2):
    m, d = feat.shape
    out_dim = w2.shape[1]
    mp = _round_up(m, 8)          # pad tiny batch to 8 sublanes
    xp = jnp.pad(feat, ((0, mp - m), (0, 0))) if mp != m else feat
    out = pl.pallas_call(
        _mlp_head_kernel,
        out_shape=jax.ShapeDtypeStruct((mp, out_dim), jnp.float32),
        in_specs=[_VMEM_SPEC] * 5,
        out_specs=_VMEM_SPEC,
    )(xp.astype(jnp.bfloat16),
      w1.astype(jnp.bfloat16), b1.reshape(1, -1),
      w2.astype(jnp.bfloat16), b2.reshape(1, -1))
    return out[:m] if mp != m else out


# ------------------------------- JAX glue -----------------------------------

def conv2d(x_nhwc, w_oihw, stride, pad):
    """Conv (bias-free, PyTorch OIHW weights) via bf16 im2col + tiled GEMM."""
    n, h, wd, c = x_nhwc.shape
    c_out, c_in, kh, kw = w_oihw.shape
    xb = x_nhwc.astype(jnp.bfloat16)
    xp = jnp.pad(xb, ((0, 0), (pad, pad), (pad, pad), (0, 0)))
    ho = (h + 2 * pad - kh) // stride + 1
    wo = (wd + 2 * pad - kw) // stride + 1
    cols = [xp[:, i:i + stride * ho:stride, j:j + stride * wo:stride, :]
            for i in range(kh) for j in range(kw)]
    col = jnp.stack(cols, axis=3).reshape(n * ho * wo, kh * kw * c)
    wmat = jnp.transpose(w_oihw, (2, 3, 1, 0)).reshape(
        kh * kw * c_in, c_out).astype(jnp.bfloat16)
    out = pallas_matmul(col, wmat)                    # f32 output
    return out.reshape(n, ho, wo, c_out)


def basic_block(x, p, stride):
    out = conv2d(x, p['conv1'], stride, 1)
    n, h, w, c = out.shape
    out = pallas_batchnorm(out.reshape(-1, c), p['bn1_g'], p['bn1_b'],
                           relu=True).reshape(n, h, w, c)
    out = conv2d(out, p['conv2'], 1, 1)
    if 'down_conv' in p:
        idt = conv2d(x, p['down_conv'], stride, 0)
        idt2d = pallas_batchnorm(idt.reshape(-1, c), p['down_bn_g'],
                                 p['down_bn_b'], relu=False)
    else:
        idt2d = x.reshape(-1, c)
    # BN2 + residual add + ReLU fused in one tiled kernel.
    out2d = pallas_batchnorm(out.reshape(-1, c), p['bn2_g'], p['bn2_b'],
                             residual=idt2d)
    return out2d.reshape(n, h, w, c)


def resnet_simclr_forward(params, x_nchw):
    # NCHW (PyTorch) -> NHWC (kernel layout)
    x = jnp.transpose(x_nchw, (0, 2, 3, 1)).astype(jnp.float32)
    x = conv2d(x, params['conv1'], stride=2, pad=3)
    n, h, w, c = x.shape
    x = pallas_batchnorm(x.reshape(-1, c), params['bn1_g'], params['bn1_b'],
                         relu=True).reshape(n, h, w, c)
    x = maxpool2d(x, k=3, stride=2, pad=1)
    for li, layer in enumerate(params['layers']):
        for bi, blk in enumerate(layer):
            stride = 2 if (li > 0 and bi == 0) else 1
            x = basic_block(x, blk, stride)
    feat = global_avgpool(x)                                  # (N, 512)
    # projection head: Linear(512,512) -> ReLU -> Linear(512,out_dim), fused.
    z = pallas_mlp_head(feat, params['fc1_w'], params['fc1_b'],
                        params['fc2_w'], params['fc2_b'])
    # entropy=False by default -> no softmax branch is taken.
    return z


# ----------------------------- parameter init -------------------------------

def _conv_init(key, c_out, c_in, kh, kw):
    fan_in = c_in * kh * kw
    return (jax.random.normal(key, (c_out, c_in, kh, kw), jnp.float32)
            * jnp.sqrt(2.0 / fan_in))


def init_params(key, out_dim=128):
    keys = iter(jax.random.split(key, 64))
    p = {}
    p['conv1'] = _conv_init(next(keys), 64, 3, 7, 7)
    p['bn1_g'] = jnp.ones((64,), jnp.float32)
    p['bn1_b'] = jnp.zeros((64,), jnp.float32)

    widths = [64, 128, 256, 512]   # resnet18: 2 BasicBlocks per stage
    in_c = 64
    layers = []
    for li, c_out in enumerate(widths):
        blocks = []
        for bi in range(2):
            stride = 2 if (li > 0 and bi == 0) else 1
            blk = {
                'conv1': _conv_init(next(keys), c_out, in_c, 3, 3),
                'bn1_g': jnp.ones((c_out,), jnp.float32),
                'bn1_b': jnp.zeros((c_out,), jnp.float32),
                'conv2': _conv_init(next(keys), c_out, c_out, 3, 3),
                'bn2_g': jnp.ones((c_out,), jnp.float32),
                'bn2_b': jnp.zeros((c_out,), jnp.float32),
            }
            if stride != 1 or in_c != c_out:
                blk['down_conv'] = _conv_init(next(keys), c_out, in_c, 1, 1)
                blk['down_bn_g'] = jnp.ones((c_out,), jnp.float32)
                blk['down_bn_b'] = jnp.zeros((c_out,), jnp.float32)
            blocks.append(blk)
            in_c = c_out
        layers.append(blocks)
    p['layers'] = layers

    dim_mlp = 512  # backbone.fc.in_features for resnet18
    p['fc1_w'] = (jax.random.normal(next(keys), (dim_mlp, dim_mlp), jnp.float32)
                  * jnp.sqrt(1.0 / dim_mlp))
    p['fc1_b'] = jnp.zeros((dim_mlp,), jnp.float32)
    p['fc2_w'] = (jax.random.normal(next(keys), (dim_mlp, out_dim), jnp.float32)
                  * jnp.sqrt(1.0 / dim_mlp))
    p['fc2_b'] = jnp.zeros((out_dim,), jnp.float32)
    return p


# ---------------------------------- main -------------------------------------

if __name__ == "__main__":
    key = jax.random.PRNGKey(0)
    pkey, xkey = jax.random.split(key)

    out_dim = 128
    params = init_params(pkey, out_dim=out_dim)

    # Small PyTorch-style NCHW input (batch=2, RGB, 32x32).
    x = jax.random.normal(xkey, (2, 3, 32, 32), jnp.float32)

    fwd = jax.jit(resnet_simclr_forward)
    z = fwd(params, x)
    z = jax.block_until_ready(z)

    assert z.shape == (2, out_dim), z.shape
    assert z.dtype == jnp.float32
    assert bool(jnp.all(jnp.isfinite(z)))
    print("KERNEL_OK")
</pallas_src>

<mosaic_0001>
module attributes {stable_mosaic.version = 11 : i64} {
  func.func @_bn_apply_kernel(%arg0: i32, %arg1: memref<512x64xf32, #tpu.memory_space<vmem>>, %arg2: memref<1x64xf32, #tpu.memory_space<vmem>>, %arg3: memref<1x64xf32, #tpu.memory_space<vmem>>, %arg4: memref<512x64xf32, #tpu.memory_space<vmem>>) attributes {dimension_semantics = [#tpu.dimension_semantics<parallel>], iteration_bounds = array<i64: 1>, scalar_prefetch = 0 : i64, scratch_operands = 0 : i64, tpu.core_type = #tpu.core_type<tc>, window_params = [{transform_indices = @transform_0, window_bounds = array<i64: 512, 64>}, {pipeline_mode = #tpu.pipeline_mode<synchronous>, transform_indices = @transform_1, window_bounds = array<i64: 1, 64>}, {pipeline_mode = #tpu.pipeline_mode<synchronous>, transform_indices = @transform_2, window_bounds = array<i64: 1, 64>}, {transform_indices = @transform_3, window_bounds = array<i64: 512, 64>}]} {
    %c0 = arith.constant 0 : index
    %c0_0 = arith.constant 0 : index
    %0 = vector.load %arg1[%c0, %c0_0] : memref<512x64xf32, #tpu.memory_space<vmem>>, vector<512x64xf32>
    %c0_1 = arith.constant 0 : index
    %c0_2 = arith.constant 0 : index
    %1 = vector.load %arg2[%c0_1, %c0_2] : memref<1x64xf32, #tpu.memory_space<vmem>>, vector<1x64xf32>
    %2 = vector.broadcast %1 : vector<1x64xf32> to vector<512x64xf32>
    %3 = arith.mulf %0, %2 : vector<512x64xf32>
    %c0_3 = arith.constant 0 : index
    %c0_4 = arith.constant 0 : index
    %4 = vector.load %arg3[%c0_3, %c0_4] : memref<1x64xf32, #tpu.memory_space<vmem>>, vector<1x64xf32>
    %5 = vector.broadcast %4 : vector<1x64xf32> to vector<512x64xf32>
    %6 = arith.addf %3, %5 : vector<512x64xf32>
    %cst = arith.constant 0.000000e+00 : f32
    %7 = vector.broadcast %cst : f32 to vector<512x64xf32>
    %8 = arith.maximumf %6, %7 : vector<512x64xf32>
    %c0_5 = arith.constant 0 : index
    %c0_6 = arith.constant 0 : index
    %9 = vector.load %arg4[%c0_5, %c0_6] : memref<512x64xf32, #tpu.memory_space<vmem>>, vector<512x64xf32>
    tpu.vector_store %arg4[%c0_5, %c0_6], %8 {strides = array<i32>} : memref<512x64xf32, #tpu.memory_space<vmem>>, vector<512x64xf32>,
    return
  }
  func.func @transform_0(%arg0: i32) -> (i32, i32) {
    %c0_i32 = arith.constant 0 : i32
    %c0_i32_0 = arith.constant 0 : i32
    return %arg0, %c0_i32 : i32, i32
  }
  func.func @transform_1(%arg0: i32) -> (i32, i32) {
    %c0_i32 = arith.constant 0 : i32
    %c0_i32_0 = arith.constant 0 : i32
    %c0_i32_1 = arith.constant 0 : i32
    return %c0_i32, %c0_i32_0 : i32, i32
  }
  func.func @transform_2(%arg0: i32) -> (i32, i32) {
    %c0_i32 = arith.constant 0 : i32
    %c0_i32_0 = arith.constant 0 : i32
    %c0_i32_1 = arith.constant 0 : i32
    return %c0_i32, %c0_i32_0 : i32, i32
  }
  func.func @transform_3(%arg0: i32) -> (i32, i32) {
    %c0_i32 = arith.constant 0 : i32
    %c0_i32_0 = arith.constant 0 : i32
    return %arg0, %c0_i32 : i32, i32
  }
}

module attributes {stable_mosaic.version = 11 : i64} {
  func.func @_bn_stats_kernel(%arg0: i32, %arg1: memref<512x64xf32, #tpu.memory_space<vmem>>, %arg2: memref<2x64xf32, #tpu.memory_space<vmem>>) attributes {dimension_semantics = [#tpu.dimension_semantics<arbitrary>], iteration_bounds = array<i64: 1>, scalar_prefetch = 0 : i64, scratch_operands = 0 : i64, tpu.core_type = #tpu.core_type<tc>, window_params = [{transform_indices = @transform_0, window_bounds = array<i64: 512, 64>}, {pipeline_mode = #tpu.pipeline_mode<synchronous>, transform_indices = @transform_1, window_bounds = array<i64: 2, 64>}]} {
    %c0_i32 = arith.constant 0 : i32
    %0 = arith.cmpi eq, %arg0, %c0_i32 : i32
    %1 = arith.extui %0 : i1 to i32
    %c0_i32_0 = arith.constant 0 : i32
    %2 = arith.cmpi ne, %1, %c0_i32_0 : i32
    scf.if %2 {
      %cst_7 = arith.constant 0.000000e+00 : f32
      %13 = vector.broadcast %cst_7 : f32 to vector<2x64xf32>
      %c0_8 = arith.constant 0 : index
      %c0_9 = arith.constant 0 : index
      %14 = vector.load %arg2[%c0_8, %c0_9] : memref<2x64xf32, #tpu.memory_space<vmem>>, vector<2x64xf32>
      tpu.vector_store %arg2[%c0_8, %c0_9], %13 {strides = array<i32>} : memref<2x64xf32, #tpu.memory_space<vmem>>, vector<2x64xf32>,
    } else {
    }
    %c0 = arith.constant 0 : index
    %c0_1 = arith.constant 0 : index
    %3 = vector.load %arg1[%c0, %c0_1] : memref<512x64xf32, #tpu.memory_space<vmem>>, vector<512x64xf32>
    %cst = arith.constant dense<0.000000e+00> : vector<64xf32>
    %4 = vector.multi_reduction <add>, %3, %cst [0] : vector<512x64xf32> to vector<64xf32>
    %5 = vector.shape_cast %4 : vector<64xf32> to vector<1x64xf32>
    %6 = arith.mulf %3, %3 : vector<512x64xf32>
    %cst_2 = arith.constant dense<0.000000e+00> : vector<64xf32>
    %7 = vector.multi_reduction <add>, %6, %cst_2 [0] : vector<512x64xf32> to vector<64xf32>
    %8 = vector.shape_cast %7 : vector<64xf32> to vector<1x64xf32>
    %c0_3 = arith.constant 0 : index
    %c0_4 = arith.constant 0 : index
    %9 = vector.load %arg2[%c0_3, %c0_4] : memref<2x64xf32, #tpu.memory_space<vmem>>, vector<2x64xf32>
    %10 = tpu.concatenate %5, %8 in 0 : vector<1x64xf32>, vector<1x64xf32> -> vector<2x64xf32>
    %11 = arith.addf %9, %10 : vector<2x64xf32>
    %c0_5 = arith.constant 0 : index
    %c0_6 = arith.constant 0 : index
    %12 = vector.load %arg2[%c0_5, %c0_6] : memref<2x64xf32, #tpu.memory_space<vmem>>, vector<2x64xf32>
    tpu.vector_store %arg2[%c0_5, %c0_6], %11 {strides = array<i32>} : memref<2x64xf32, #tpu.memory_space<vmem>>, vector<2x64xf32>,
    return
  }
  func.func @transform_0(%arg0: i32) -> (i32, i32) {
    %c0_i32 = arith.constant 0 : i32
    %c0_i32_0 = arith.constant 0 : i32
    return %arg0, %c0_i32 : i32, i32
  }
  func.func @transform_1(%arg0: i32) -> (i32, i32) {
    %c0_i32 = arith.constant 0 : i32
    %c0_i32_0 = arith.constant 0 : i32
    %c0_i32_1 = arith.constant 0 : i32
    return %c0_i32, %c0_i32_0 : i32, i32
  }
}

module attributes {stable_mosaic.version = 11 : i64} {
  func.func @_matmul_kernel(%arg0: i32, %arg1: i32, %arg2: i32, %arg3: memref<256x256xbf16, #tpu.memory_space<vmem>>, %arg4: memref<256x128xbf16, #tpu.memory_space<vmem>>, %arg5: memref<256x128xf32, #tpu.memory_space<vmem>>, %arg6: memref<256x128xf32, #tpu.memory_space<vmem>>) attributes {dimension_semantics = [#tpu.dimension_semantics<parallel>, #tpu.dimension_semantics<parallel>, #tpu.dimension_semantics<arbitrary>], iteration_bounds = array<i64: 2, 1, 1>, scalar_prefetch = 0 : i64, scratch_operands = 1 : i64, tpu.core_type = #tpu.core_type<tc>, window_params = [{transform_indices = @transform_0, window_bounds = array<i64: 256, 256>}, {transform_indices = @transform_1, window_bounds = array<i64: 256, 128>}, {transform_indices = @transform_2, window_bounds = array<i64: 256, 128>}]} {
    %c0_i32 = arith.constant 0 : i32
    %0 = arith.cmpi eq, %arg2, %c0_i32 : i32
    %1 = arith.extui %0 : i1 to i32
    %c0_i32_0 = arith.constant 0 : i32
    %2 = arith.cmpi ne, %1, %c0_i32_0 : i32
    scf.if %2 {
      %cst_10 = arith.constant 0.000000e+00 : f32
      %12 = vector.broadcast %cst_10 : f32 to vector<256x128xf32>
      %c0_11 = arith.constant 0 : index
      %c0_12 = arith.constant 0 : index
      %13 = vector.load %arg6[%c0_11, %c0_12] : memref<256x128xf32, #tpu.memory_space<vmem>>, vector<256x128xf32>
      tpu.vector_store %arg6[%c0_11, %c0_12], %12 {strides = array<i32>} : memref<256x128xf32, #tpu.memory_space<vmem>>, vector<256x128xf32>,
    } else {
    }
    %c0 = arith.constant 0 : index
    %c0_1 = arith.constant 0 : index
    %3 = vector.load %arg6[%c0, %c0_1] : memref<256x128xf32, #tpu.memory_space<vmem>>, vector<256x128xf32>
    %c0_2 = arith.constant 0 : index
    %c0_3 = arith.constant 0 : index
    %4 = vector.load %arg3[%c0_2, %c0_3] : memref<256x256xbf16, #tpu.memory_space<vmem>>, vector<256x256xbf16>
    %c0_4 = arith.constant 0 : index
    %c0_5 = arith.constant 0 : index
    %5 = vector.load %arg4[%c0_4, %c0_5] : memref<256x128xbf16, #tpu.memory_space<vmem>>, vector<256x128xbf16>
    %cst = arith.constant dense<0.000000e+00> : vector<256x128xf32>
    %6 = tpu.matmul %4, %5, %cst {dimension_numbers = #tpu.dot_dimension_numbers<[1], [0], [0], [1], [0, 0, 1, 1], [], []>} : vector<256x256xbf16>, vector<256x128xbf16>, vector<256x128xf32> -> vector<256x128xf32>
    %7 = arith.addf %3, %6 : vector<256x128xf32>
    %c0_6 = arith.constant 0 : index
    %c0_7 = arith.constant 0 : index
    %8 = vector.load %arg6[%c0_6, %c0_7] : memref<256x128xf32, #tpu.memory_space<vmem>>, vector<256x128xf32>
    tpu.vector_store %arg6[%c0_6, %c0_7], %7 {strides = array<i32>} : memref<256x128xf32, #tpu.memory_space<vmem>>, vector<256x128xf32>,
    %c0_i32_8 = arith.constant 0 : i32
    %9 = arith.cmpi eq, %arg2, %c0_i32_8 : i32
    %10 = arith.extui %9 : i1 to i32
    %c0_i32_9 = arith.constant 0 : i32
    %11 = arith.cmpi ne, %10, %c0_i32_9 : i32
    scf.if %11 {
      %c0_10 = arith.constant 0 : index
      %c0_11 = arith.constant 0 : index
      %12 = vector.load %arg6[%c0_10, %c0_11] : memref<256x128xf32, #tpu.memory_space<vmem>>, vector<256x128xf32>
      %c0_12 = arith.constant 0 : index
      %c0_13 = arith.constant 0 : index
      %13 = vector.load %arg5[%c0_12, %c0_13] : memref<256x128xf32, #tpu.memory_space<vmem>>, vector<256x128xf32>
      tpu.vector_store %arg5[%c0_12, %c0_13], %12 {strides = array<i32>} : memref<256x128xf32, #tpu.memory_space<vmem>>, vector<256x128xf32>,
    } else {
    }
    return
  }
  func.func @transform_0(%arg0: i32, %arg1: i32, %arg2: i32) -> (i32, i32) {
    %c0_i32 = arith.constant 0 : i32
    return %arg0, %arg2 : i32, i32
  }
  func.func @transform_1(%arg0: i32, %arg1: i32, %arg2: i32) -> (i32, i32) {
    %c0_i32 = arith.constant 0 : i32
    return %arg2, %arg1 : i32, i32
  }
  func.func @transform_2(%arg0: i32, %arg1: i32, %arg2: i32) -> (i32, i32) {
    %c0_i32 = arith.constant 0 : i32
    return %arg0, %arg1 : i32, i32
  }
}

module attributes {stable_mosaic.version = 11 : i64} {
  func.func @_maxpool_kernel(%arg0: i32, %arg1: memref<9x128x64xf32, #tpu.memory_space<vmem>>, %arg2: memref<128x64xf32, #tpu.memory_space<vmem>>) attributes {dimension_semantics = [#tpu.dimension_semantics<parallel>], iteration_bounds = array<i64: 1>, scalar_prefetch = 0 : i64, scratch_operands = 0 : i64, tpu.core_type = #tpu.core_type<tc>, window_params = [{transform_indices = @transform_0, window_bounds = array<i64: 9, 128, 64>}, {transform_indices = @transform_1, window_bounds = array<i64: 128, 64>}]} {
    %c0 = arith.constant 0 : index
    %c0_0 = arith.constant 0 : index
    %c0_1 = arith.constant 0 : index
    %0 = vector.load %arg1[%c0, %c0_0, %c0_1] : memref<9x128x64xf32, #tpu.memory_space<vmem>>, vector<9x128x64xf32>
    %cst = arith.constant dense<0xFF800000> : vector<128x64xf32>
    %1 = vector.multi_reduction <maximumf>, %0, %cst [0] : vector<9x128x64xf32> to vector<128x64xf32>
    %c0_2 = arith.constant 0 : index
    %c0_3 = arith.constant 0 : index
    %2 = vector.load %arg2[%c0_2, %c0_3] : memref<128x64xf32, #tpu.memory_space<vmem>>, vector<128x64xf32>
    tpu.vector_store %arg2[%c0_2, %c0_3], %1 {strides = array<i32>} : memref<128x64xf32, #tpu.memory_space<vmem>>, vector<128x64xf32>,
    return
  }
  func.func @transform_0(%arg0: i32) -> (i32, i32, i32) {
    %c0_i32 = arith.constant 0 : i32
    %c0_i32_0 = arith.constant 0 : i32
    %c0_i32_1 = arith.constant 0 : i32
    return %c0_i32, %arg0, %c0_i32_0 : i32, i32, i32
  }
  func.func @transform_1(%arg0: i32) -> (i32, i32) {
    %c0_i32 = arith.constant 0 : i32
    %c0_i32_0 = arith.constant 0 : i32
    return %arg0, %c0_i32 : i32, i32
  }
}

module attributes {stable_mosaic.version = 11 : i64} {
  func.func @_matmul_kernel(%arg0: i32, %arg1: i32, %arg2: i32, %arg3: memref<128x128xbf16, #tpu.memory_space<vmem>>, %arg4: memref<128x128xbf16, #tpu.memory_space<vmem>>, %arg5: memref<128x128xf32, #tpu.memory_space<vmem>>, %arg6: memref<128x128xf32, #tpu.memory_space<vmem>>) attributes {dimension_semantics = [#tpu.dimension_semantics<parallel>, #tpu.dimension_semantics<parallel>, #tpu.dimension_semantics<arbitrary>], iteration_bounds = array<i64: 1, 1, 5>, scalar_prefetch = 0 : i64, scratch_operands = 1 : i64, tpu.core_type = #tpu.core_type<tc>, window_params = [{transform_indices = @transform_0, window_bounds = array<i64: 128, 128>}, {transform_indices = @transform_1, window_bounds = array<i64: 128, 128>}, {transform_indices = @transform_2, window_bounds = array<i64: 128, 128>}]} {
    %c0_i32 = arith.constant 0 : i32
    %0 = arith.cmpi eq, %arg2, %c0_i32 : i32
    %1 = arith.extui %0 : i1 to i32
    %c0_i32_0 = arith.constant 0 : i32
    %2 = arith.cmpi ne, %1, %c0_i32_0 : i32
    scf.if %2 {
      %cst_9 = arith.constant 0.000000e+00 : f32
      %12 = vector.broadcast %cst_9 : f32 to vector<128x128xf32>
      %c0_10 = arith.constant 0 : index
      %c0_11 = arith.constant 0 : index
      %13 = vector.load %arg6[%c0_10, %c0_11] : memref<128x128xf32, #tpu.memory_space<vmem>>, vector<128x128xf32>
      tpu.vector_store %arg6[%c0_10, %c0_11], %12 {strides = array<i32>} : memref<128x128xf32, #tpu.memory_space<vmem>>, vector<128x128xf32>,
    } else {
    }
    %c0 = arith.constant 0 : index
    %c0_1 = arith.constant 0 : index
    %3 = vector.load %arg6[%c0, %c0_1] : memref<128x128xf32, #tpu.memory_space<vmem>>, vector<128x128xf32>
    %c0_2 = arith.constant 0 : index
    %c0_3 = arith.constant 0 : index
    %4 = vector.load %arg3[%c0_2, %c0_3] : memref<128x128xbf16, #tpu.memory_space<vmem>>, vector<128x128xbf16>
    %c0_4 = arith.constant 0 : index
    %c0_5 = arith.constant 0 : index
    %5 = vector.load %arg4[%c0_4, %c0_5] : memref<128x128xbf16, #tpu.memory_space<vmem>>, vector<128x128xbf16>
    %cst = arith.constant dense<0.000000e+00> : vector<128x128xf32>
    %6 = tpu.matmul %4, %5, %cst {dimension_numbers = #tpu.dot_dimension_numbers<[1], [0], [0], [1], [0, 0, 1, 1], [], []>} : vector<128x128xbf16>, vector<128x128xbf16>, vector<128x128xf32> -> vector<128x128xf32>
    %7 = arith.addf %3, %6 : vector<128x128xf32>
    %c0_6 = arith.constant 0 : index
    %c0_7 = arith.constant 0 : index
    %8 = vector.load %arg6[%c0_6, %c0_7] : memref<128x128xf32, #tpu.memory_space<vmem>>, vector<128x128xf32>
    tpu.vector_store %arg6[%c0_6, %c0_7], %7 {strides = array<i32>} : memref<128x128xf32, #tpu.memory_space<vmem>>, vector<128x128xf32>,
    %c4_i32 = arith.constant 4 : i32
    %9 = arith.cmpi eq, %arg2, %c4_i32 : i32
    %10 = arith.extui %9 : i1 to i32
    %c0_i32_8 = arith.constant 0 : i32
    %11 = arith.cmpi ne, %10, %c0_i32_8 : i32
    scf.if %11 {
      %c0_9 = arith.constant 0 : index
      %c0_10 = arith.constant 0 : index
      %12 = vector.load %arg6[%c0_9, %c0_10] : memref<128x128xf32, #tpu.memory_space<vmem>>, vector<128x128xf32>
      %c0_11 = arith.constant 0 : index
      %c0_12 = arith.constant 0 : index
      %13 = vector.load %arg5[%c0_11, %c0_12] : memref<128x128xf32, #tpu.memory_space<vmem>>, vector<128x128xf32>
      tpu.vector_store %arg5[%c0_11, %c0_12], %12 {strides = array<i32>} : memref<128x128xf32, #tpu.memory_space<vmem>>, vector<128x128xf32>,
    } else {
    }
    return
  }
  func.func @transform_0(%arg0: i32, %arg1: i32, %arg2: i32) -> (i32, i32) {
    %c0_i32 = arith.constant 0 : i32
    return %arg0, %arg2 : i32, i32
  }
  func.func @transform_1(%arg0: i32, %arg1: i32, %arg2: i32) -> (i32, i32) {
    %c0_i32 = arith.constant 0 : i32
    return %arg2, %arg1 : i32, i32
  }
  func.func @transform_2(%arg0: i32, %arg1: i32, %arg2: i32) -> (i32, i32) {
    %c0_i32 = arith.constant 0 : i32
    return %arg0, %arg1 : i32, i32
  }
}

module attributes {stable_mosaic.version = 11 : i64} {
  func.func @_bn_stats_kernel(%arg0: i32, %arg1: memref<128x64xf32, #tpu.memory_space<vmem>>, %arg2: memref<2x64xf32, #tpu.memory_space<vmem>>) attributes {dimension_semantics = [#tpu.dimension_semantics<arbitrary>], iteration_bounds = array<i64: 1>, scalar_prefetch = 0 : i64, scratch_operands = 0 : i64, tpu.core_type = #tpu.core_type<tc>, window_params = [{transform_indices = @transform_0, window_bounds = array<i64: 128, 64>}, {pipeline_mode = #tpu.pipeline_mode<synchronous>, transform_indices = @transform_1, window_bounds = array<i64: 2, 64>}]} {
    %c0_i32 = arith.constant 0 : i32
    %0 = arith.cmpi eq, %arg0, %c0_i32 : i32
    %1 = arith.extui %0 : i1 to i32
    %c0_i32_0 = arith.constant 0 : i32
    %2 = arith.cmpi ne, %1, %c0_i32_0 : i32
    scf.if %2 {
      %cst_7 = arith.constant 0.000000e+00 : f32
      %13 = vector.broadcast %cst_7 : f32 to vector<2x64xf32>
      %c0_8 = arith.constant 0 : index
      %c0_9 = arith.constant 0 : index
      %14 = vector.load %arg2[%c0_8, %c0_9] : memref<2x64xf32, #tpu.memory_space<vmem>>, vector<2x64xf32>
      tpu.vector_store %arg2[%c0_8, %c0_9], %13 {strides = array<i32>} : memref<2x64xf32, #tpu.memory_space<vmem>>, vector<2x64xf32>,
    } else {
    }
    %c0 = arith.constant 0 : index
    %c0_1 = arith.constant 0 : index
    %3 = vector.load %arg1[%c0, %c0_1] : memref<128x64xf32, #tpu.memory_space<vmem>>, vector<128x64xf32>
    %cst = arith.constant dense<0.000000e+00> : vector<64xf32>
    %4 = vector.multi_reduction <add>, %3, %cst [0] : vector<128x64xf32> to vector<64xf32>
    %5 = vector.shape_cast %4 : vector<64xf32> to vector<1x64xf32>
    %6 = arith.mulf %3, %3 : vector<128x64xf32>
    %cst_2 = arith.constant dense<0.000000e+00> : vector<64xf32>
    %7 = vector.multi_reduction <add>, %6, %cst_2 [0] : vector<128x64xf32> to vector<64xf32>
    %8 = vector.shape_cast %7 : vector<64xf32> to vector<1x64xf32>
    %c0_3 = arith.constant 0 : index
    %c0_4 = arith.constant 0 : index
    %9 = vector.load %arg2[%c0_3, %c0_4] : memref<2x64xf32, #tpu.memory_space<vmem>>, vector<2x64xf32>
    %10 = tpu.concatenate %5, %8 in 0 : vector<1x64xf32>, vector<1x64xf32> -> vector<2x64xf32>
    %11 = arith.addf %9, %10 : vector<2x64xf32>
    %c0_5 = arith.constant 0 : index
    %c0_6 = arith.constant 0 : index
    %12 = vector.load %arg2[%c0_5, %c0_6] : memref<2x64xf32, #tpu.memory_space<vmem>>, vector<2x64xf32>
    tpu.vector_store %arg2[%c0_5, %c0_6], %11 {strides = array<i32>} : memref<2x64xf32, #tpu.memory_space<vmem>>, vector<2x64xf32>,
    return
  }
  func.func @transform_0(%arg0: i32) -> (i32, i32) {
    %c0_i32 = arith.constant 0 : i32
    %c0_i32_0 = arith.constant 0 : i32
    return %arg0, %c0_i32 : i32, i32
  }
  func.func @transform_1(%arg0: i32) -> (i32, i32) {
    %c0_i32 = arith.constant 0 : i32
    %c0_i32_0 = arith.constant 0 : i32
    %c0_i32_1 = arith.constant 0 : i32
    return %c0_i32, %c0_i32_0 : i32, i32
  }
}

module attributes {stable_mosaic.version = 11 : i64} {
  func.func @_bn_apply_kernel(%arg0: i32, %arg1: memref<128x64xf32, #tpu.memory_space<vmem>>, %arg2: memref<1x64xf32, #tpu.memory_space<vmem>>, %arg3: memref<1x64xf32, #tpu.memory_space<vmem>>, %arg4: memref<128x64xf32, #tpu.memory_space<vmem>>) attributes {dimension_semantics = [#tpu.dimension_semantics<parallel>], iteration_bounds = array<i64: 1>, scalar_prefetch = 0 : i64, scratch_operands = 0 : i64, tpu.core_type = #tpu.core_type<tc>, window_params = [{transform_indices = @transform_0, window_bounds = array<i64: 128, 64>}, {pipeline_mode = #tpu.pipeline_mode<synchronous>, transform_indices = @transform_1, window_bounds = array<i64: 1, 64>}, {pipeline_mode = #tpu.pipeline_mode<synchronous>, transform_indices = @transform_2, window_bounds = array<i64: 1, 64>}, {transform_indices = @transform_3, window_bounds = array<i64: 128, 64>}]} {
    %c0 = arith.constant 0 : index
    %c0_0 = arith.constant 0 : index
    %0 = vector.load %arg1[%c0, %c0_0] : memref<128x64xf32, #tpu.memory_space<vmem>>, vector<128x64xf32>
    %c0_1 = arith.constant 0 : index
    %c0_2 = arith.constant 0 : index
    %1 = vector.load %arg2[%c0_1, %c0_2] : memref<1x64xf32, #tpu.memory_space<vmem>>, vector<1x64xf32>
    %2 = vector.broadcast %1 : vector<1x64xf32> to vector<128x64xf32>
    %3 = arith.mulf %0, %2 : vector<128x64xf32>
    %c0_3 = arith.constant 0 : index
    %c0_4 = arith.constant 0 : index
    %4 = vector.load %arg3[%c0_3, %c0_4] : memref<1x64xf32, #tpu.memory_space<vmem>>, vector<1x64xf32>
    %5 = vector.broadcast %4 : vector<1x64xf32> to vector<128x64xf32>
    %6 = arith.addf %3, %5 : vector<128x64xf32>
    %cst = arith.constant 0.000000e+00 : f32
    %7 = vector.broadcast %cst : f32 to vector<128x64xf32>
    %8 = arith.maximumf %6, %7 : vector<128x64xf32>
    %c0_5 = arith.constant 0 : index
    %c0_6 = arith.constant 0 : index
    %9 = vector.load %arg4[%c0_5, %c0_6] : memref<128x64xf32, #tpu.memory_space<vmem>>, vector<128x64xf32>
    tpu.vector_store %arg4[%c0_5, %c0_6], %8 {strides = array<i32>} : memref<128x64xf32, #tpu.memory_space<vmem>>, vector<128x64xf32>,
    return
  }
  func.func @transform_0(%arg0: i32) -> (i32, i32) {
    %c0_i32 = arith.constant 0 : i32
    %c0_i32_0 = arith.constant 0 : i32
    return %arg0, %c0_i32 : i32, i32
  }
  func.func @transform_1(%arg0: i32) -> (i32, i32) {
    %c0_i32 = arith.constant 0 : i32
    %c0_i32_0 = arith.constant 0 : i32
    %c0_i32_1 = arith.constant 0 : i32
    return %c0_i32, %c0_i32_0 : i32, i32
  }
  func.func @transform_2(%arg0: i32) -> (i32, i32) {
    %c0_i32 = arith.constant 0 : i32
    %c0_i32_0 = arith.constant 0 : i32
    %c0_i32_1 = arith.constant 0 : i32
    return %c0_i32, %c0_i32_0 : i32, i32
  }
  func.func @transform_3(%arg0: i32) -> (i32, i32) {
    %c0_i32 = arith.constant 0 : i32
    %c0_i32_0 = arith.constant 0 : i32
    return %arg0, %c0_i32 : i32, i32
  }
}

module attributes {stable_mosaic.version = 11 : i64} {
  func.func @_bn_apply_res_kernel(%arg0: i32, %arg1: memref<128x64xf32, #tpu.memory_space<vmem>>, %arg2: memref<1x64xf32, #tpu.memory_space<vmem>>, %arg3: memref<1x64xf32, #tpu.memory_space<vmem>>, %arg4: memref<128x64xf32, #tpu.memory_space<vmem>>, %arg5: memref<128x64xf32, #tpu.memory_space<vmem>>) attributes {dimension_semantics = [#tpu.dimension_semantics<parallel>], iteration_bounds = array<i64: 1>, scalar_prefetch = 0 : i64, scratch_operands = 0 : i64, tpu.core_type = #tpu.core_type<tc>, window_params = [{transform_indices = @transform_0, window_bounds = array<i64: 128, 64>}, {pipeline_mode = #tpu.pipeline_mode<synchronous>, transform_indices = @transform_1, window_bounds = array<i64: 1, 64>}, {pipeline_mode = #tpu.pipeline_mode<synchronous>, transform_indices = @transform_2, window_bounds = array<i64: 1, 64>}, {transform_indices = @transform_3, window_bounds = array<i64: 128, 64>}, {transform_indices = @transform_4, window_bounds = array<i64: 128, 64>}]} {
    %c0 = arith.constant 0 : index
    %c0_0 = arith.constant 0 : index
    %0 = vector.load %arg1[%c0, %c0_0] : memref<128x64xf32, #tpu.memory_space<vmem>>, vector<128x64xf32>
    %c0_1 = arith.constant 0 : index
    %c0_2 = arith.constant 0 : index
    %1 = vector.load %arg2[%c0_1, %c0_2] : memref<1x64xf32, #tpu.memory_space<vmem>>, vector<1x64xf32>
    %2 = vector.broadcast %1 : vector<1x64xf32> to vector<128x64xf32>
    %3 = arith.mulf %0, %2 : vector<128x64xf32>
    %c0_3 = arith.constant 0 : index
    %c0_4 = arith.constant 0 : index
    %4 = vector.load %arg3[%c0_3, %c0_4] : memref<1x64xf32, #tpu.memory_space<vmem>>, vector<1x64xf32>
    %5 = vector.broadcast %4 : vector<1x64xf32> to vector<128x64xf32>
    %6 = arith.addf %3, %5 : vector<128x64xf32>
    %c0_5 = arith.constant 0 : index
    %c0_6 = arith.constant 0 : index
    %7 = vector.load %arg4[%c0_5, %c0_6] : memref<128x64xf32, #tpu.memory_space<vmem>>, vector<128x64xf32>
    %8 = arith.addf %6, %7 : vector<128x64xf32>
    %cst = arith.constant 0.000000e+00 : f32
    %9 = vector.broadcast %cst : f32 to vector<128x64xf32>
    %10 = arith.maximumf %8, %9 : vector<128x64xf32>
    %c0_7 = arith.constant 0 : index
    %c0_8 = arith.constant 0 : index
    %11 = vector.load %arg5[%c0_7, %c0_8] : memref<128x64xf32, #tpu.memory_space<vmem>>, vector<128x64xf32>
    tpu.vector_store %arg5[%c0_7, %c0_8], %10 {strides = array<i32>} : memref<128x64xf32, #tpu.memory_space<vmem>>, vector<128x64xf32>,
    return
  }
  func.func @transform_0(%arg0: i32) -> (i32, i32) {
    %c0_i32 = arith.constant 0 : i32
    %c0_i32_0 = arith.constant 0 : i32
    return %arg0, %c0_i32 : i32, i32
  }
  func.func @transform_1(%arg0: i32) -> (i32, i32) {
    %c0_i32 = arith.constant 0 : i32
    %c0_i32_0 = arith.constant 0 : i32
    %c0_i32_1 = arith.constant 0 : i32
    return %c0_i32, %c0_i32_0 : i32, i32
  }
  func.func @transform_2(%arg0: i32) -> (i32, i32) {
    %c0_i32 = arith.constant 0 : i32
    %c0_i32_0 = arith.constant 0 : i32
    %c0_i32_1 = arith.constant 0 : i32
    return %c0_i32, %c0_i32_0 : i32, i32
  }
  func.func @transform_3(%arg0: i32) -> (i32, i32) {
    %c0_i32 = arith.constant 0 : i32
    %c0_i32_0 = arith.constant 0 : i32
    return %arg0, %c0_i32 : i32, i32
  }
  func.func @transform_4(%arg0: i32) -> (i32, i32) {
    %c0_i32 = arith.constant 0 : i32
    %c0_i32_0 = arith.constant 0 : i32
    return %arg0, %c0_i32 : i32, i32
  }
}

module attributes {stable_mosaic.version = 11 : i64} {
  func.func @_bn_stats_kernel(%arg0: i32, %arg1: memref<32x128xf32, #tpu.memory_space<vmem>>, %arg2: memref<2x128xf32, #tpu.memory_space<vmem>>) attributes {dimension_semantics = [#tpu.dimension_semantics<arbitrary>], iteration_bounds = array<i64: 1>, scalar_prefetch = 0 : i64, scratch_operands = 0 : i64, tpu.core_type = #tpu.core_type<tc>, window_params = [{transform_indices = @transform_0, window_bounds = array<i64: 32, 128>}, {pipeline_mode = #tpu.pipeline_mode<synchronous>, transform_indices = @transform_1, window_bounds = array<i64: 2, 128>}]} {
    %c0_i32 = arith.constant 0 : i32
    %0 = arith.cmpi eq, %arg0, %c0_i32 : i32
    %1 = arith.extui %0 : i1 to i32
    %c0_i32_0 = arith.constant 0 : i32
    %2 = arith.cmpi ne, %1, %c0_i32_0 : i32
    scf.if %2 {
      %cst_7 = arith.constant 0.000000e+00 : f32
      %13 = vector.broadcast %cst_7 : f32 to vector<2x128xf32>
      %c0_8 = arith.constant 0 : index
      %c0_9 = arith.constant 0 : index
      %14 = vector.load %arg2[%c0_8, %c0_9] : memref<2x128xf32, #tpu.memory_space<vmem>>, vector<2x128xf32>
      tpu.vector_store %arg2[%c0_8, %c0_9], %13 {strides = array<i32>} : memref<2x128xf32, #tpu.memory_space<vmem>>, vector<2x128xf32>,
    } else {
    }
    %c0 = arith.constant 0 : index
    %c0_1 = arith.constant 0 : index
    %3 = vector.load %arg1[%c0, %c0_1] : memref<32x128xf32, #tpu.memory_space<vmem>>, vector<32x128xf32>
    %cst = arith.constant dense<0.000000e+00> : vector<128xf32>
    %4 = vector.multi_reduction <add>, %3, %cst [0] : vector<32x128xf32> to vector<128xf32>
    %5 = vector.shape_cast %4 : vector<128xf32> to vector<1x128xf32>
    %6 = arith.mulf %3, %3 : vector<32x128xf32>
    %cst_2 = arith.constant dense<0.000000e+00> : vector<128xf32>
    %7 = vector.multi_reduction <add>, %6, %cst_2 [0] : vector<32x128xf32> to vector<128xf32>
    %8 = vector.shape_cast %7 : vector<128xf32> to vector<1x128xf32>
    %c0_3 = arith.constant 0 : index
    %c0_4 = arith.constant 0 : index
    %9 = vector.load %arg2[%c0_3, %c0_4] : memref<2x128xf32, #tpu.memory_space<vmem>>, vector<2x128xf32>
    %10 = tpu.concatenate %5, %8 in 0 : vector<1x128xf32>, vector<1x128xf32> -> vector<2x128xf32>
    %11 = arith.addf %9, %10 : vector<2x128xf32>
    %c0_5 = arith.constant 0 : index
    %c0_6 = arith.constant 0 : index
    %12 = vector.load %arg2[%c0_5, %c0_6] : memref<2x128xf32, #tpu.memory_space<vmem>>, vector<2x128xf32>
    tpu.vector_store %arg2[%c0_5, %c0_6], %11 {strides = array<i32>} : memref<2x128xf32, #tpu.memory_space<vmem>>, vector<2x128xf32>,
    return
  }
  func.func @transform_0(%arg0: i32) -> (i32, i32) {
    %c0_i32 = arith.constant 0 : i32
    %c0_i32_0 = arith.constant 0 : i32
    return %arg0, %c0_i32 : i32, i32
  }
  func.func @transform_1(%arg0: i32) -> (i32, i32) {
    %c0_i32 = arith.constant 0 : i32
    %c0_i32_0 = arith.constant 0 : i32
    %c0_i32_1 = arith.constant 0 : i32
    return %c0_i32, %c0_i32_0 : i32, i32
  }
}

module attributes {stable_mosaic.version = 11 : i64} {
  func.func @_matmul_kernel(%arg0: i32, %arg1: i32, %arg2: i32, %arg3: memref<32x128xbf16, #tpu.memory_space<vmem>>, %arg4: memref<128x128xbf16, #tpu.memory_space<vmem>>, %arg5: memref<32x128xf32, #tpu.memory_space<vmem>>, %arg6: memref<32x128xf32, #tpu.memory_space<vmem>>) attributes {dimension_semantics = [#tpu.dimension_semantics<parallel>, #tpu.dimension_semantics<parallel>, #tpu.dimension_semantics<arbitrary>], iteration_bounds = array<i64: 1, 1, 1>, scalar_prefetch = 0 : i64, scratch_operands = 1 : i64, tpu.core_type = #tpu.core_type<tc>, window_params = [{transform_indices = @transform_0, window_bounds = array<i64: 32, 128>}, {transform_indices = @transform_1, window_bounds = array<i64: 128, 128>}, {transform_indices = @transform_2, window_bounds = array<i64: 32, 128>}]} {
    %c0_i32 = arith.constant 0 : i32
    %0 = arith.cmpi eq, %arg2, %c0_i32 : i32
    %1 = arith.extui %0 : i1 to i32
    %c0_i32_0 = arith.constant 0 : i32
    %2 = arith.cmpi ne, %1, %c0_i32_0 : i32
    scf.if %2 {
      %cst_10 = arith.constant 0.000000e+00 : f32
      %12 = vector.broadcast %cst_10 : f32 to vector<32x128xf32>
      %c0_11 = arith.constant 0 : index
      %c0_12 = arith.constant 0 : index
      %13 = vector.load %arg6[%c0_11, %c0_12] : memref<32x128xf32, #tpu.memory_space<vmem>>, vector<32x128xf32>
      tpu.vector_store %arg6[%c0_11, %c0_12], %12 {strides = array<i32>} : memref<32x128xf32, #tpu.memory_space<vmem>>, vector<32x128xf32>,
    } else {
    }
    %c0 = arith.constant 0 : index
    %c0_1 = arith.constant 0 : index
    %3 = vector.load %arg6[%c0, %c0_1] : memref<32x128xf32, #tpu.memory_space<vmem>>, vector<32x128xf32>
    %c0_2 = arith.constant 0 : index
    %c0_3 = arith.constant 0 : index
    %4 = vector.load %arg3[%c0_2, %c0_3] : memref<32x128xbf16, #tpu.memory_space<vmem>>, vector<32x128xbf16>
    %c0_4 = arith.constant 0 : index
    %c0_5 = arith.constant 0 : index
    %5 = vector.load %arg4[%c0_4, %c0_5] : memref<128x128xbf16, #tpu.memory_space<vmem>>, vector<128x128xbf16>
    %cst = arith.constant dense<0.000000e+00> : vector<32x128xf32>
    %6 = tpu.matmul %4, %5, %cst {dimension_numbers = #tpu.dot_dimension_numbers<[1], [0], [0], [1], [0, 0, 1, 1], [], []>} : vector<32x128xbf16>, vector<128x128xbf16>, vector<32x128xf32> -> vector<32x128xf32>
    %7 = arith.addf %3, %6 : vector<32x128xf32>
    %c0_6 = arith.constant 0 : index
    %c0_7 = arith.constant 0 : index
    %8 = vector.load %arg6[%c0_6, %c0_7] : memref<32x128xf32, #tpu.memory_space<vmem>>, vector<32x128xf32>
    tpu.vector_store %arg6[%c0_6, %c0_7], %7 {strides = array<i32>} : memref<32x128xf32, #tpu.memory_space<vmem>>, vector<32x128xf32>,
    %c0_i32_8 = arith.constant 0 : i32
    %9 = arith.cmpi eq, %arg2, %c0_i32_8 : i32
    %10 = arith.extui %9 : i1 to i32
    %c0_i32_9 = arith.constant 0 : i32
    %11 = arith.cmpi ne, %10, %c0_i32_9 : i32
    scf.if %11 {
      %c0_10 = arith.constant 0 : index
      %c0_11 = arith.constant 0 : index
      %12 = vector.load %arg6[%c0_10, %c0_11] : memref<32x128xf32, #tpu.memory_space<vmem>>, vector<32x128xf32>
      %c0_12 = arith.constant 0 : index
      %c0_13 = arith.constant 0 : index
      %13 = vector.load %arg5[%c0_12, %c0_13] : memref<32x128xf32, #tpu.memory_space<vmem>>, vector<32x128xf32>
      tpu.vector_store %arg5[%c0_12, %c0_13], %12 {strides = array<i32>} : memref<32x128xf32, #tpu.memory_space<vmem>>, vector<32x128xf32>,
    } else {
    }
    return
  }
  func.func @transform_0(%arg0: i32, %arg1: i32, %arg2: i32) -> (i32, i32) {
    %c0_i32 = arith.constant 0 : i32
    return %arg0, %arg2 : i32, i32
  }
  func.func @transform_1(%arg0: i32, %arg1: i32, %arg2: i32) -> (i32, i32) {
    %c0_i32 = arith.constant 0 : i32
    return %arg2, %arg1 : i32, i32
  }
  func.func @transform_2(%arg0: i32, %arg1: i32, %arg2: i32) -> (i32, i32) {
    %c0_i32 = arith.constant 0 : i32
    return %arg0, %arg1 : i32, i32
  }
}

module attributes {stable_mosaic.version = 11 : i64} {
  func.func @_bn_apply_kernel(%arg0: i32, %arg1: memref<32x128xf32, #tpu.memory_space<vmem>>, %arg2: memref<1x128xf32, #tpu.memory_space<vmem>>, %arg3: memref<1x128xf32, #tpu.memory_space<vmem>>, %arg4: memref<32x128xf32, #tpu.memory_space<vmem>>) attributes {dimension_semantics = [#tpu.dimension_semantics<parallel>], iteration_bounds = array<i64: 1>, scalar_prefetch = 0 : i64, scratch_operands = 0 : i64, tpu.core_type = #tpu.core_type<tc>, window_params = [{transform_indices = @transform_0, window_bounds = array<i64: 32, 128>}, {pipeline_mode = #tpu.pipeline_mode<synchronous>, transform_indices = @transform_1, window_bounds = array<i64: 1, 128>}, {pipeline_mode = #tpu.pipeline_mode<synchronous>, transform_indices = @transform_2, window_bounds = array<i64: 1, 128>}, {transform_indices = @transform_3, window_bounds = array<i64: 32, 128>}]} {
    %c0 = arith.constant 0 : index
    %c0_0 = arith.constant 0 : index
    %0 = vector.load %arg1[%c0, %c0_0] : memref<32x128xf32, #tpu.memory_space<vmem>>, vector<32x128xf32>
    %c0_1 = arith.constant 0 : index
    %c0_2 = arith.constant 0 : index
    %1 = vector.load %arg2[%c0_1, %c0_2] : memref<1x128xf32, #tpu.memory_space<vmem>>, vector<1x128xf32>
    %2 = vector.broadcast %1 : vector<1x128xf32> to vector<32x128xf32>
    %3 = arith.mulf %0, %2 : vector<32x128xf32>
    %c0_3 = arith.constant 0 : index
    %c0_4 = arith.constant 0 : index
    %4 = vector.load %arg3[%c0_3, %c0_4] : memref<1x128xf32, #tpu.memory_space<vmem>>, vector<1x128xf32>
    %5 = vector.broadcast %4 : vector<1x128xf32> to vector<32x128xf32>
    %6 = arith.addf %3, %5 : vector<32x128xf32>
    %c0_5 = arith.constant 0 : index
    %c0_6 = arith.constant 0 : index
    %7 = vector.load %arg4[%c0_5, %c0_6] : memref<32x128xf32, #tpu.memory_space<vmem>>, vector<32x128xf32>
    tpu.vector_store %arg4[%c0_5, %c0_6], %6 {strides = array<i32>} : memref<32x128xf32, #tpu.memory_space<vmem>>, vector<32x128xf32>,
    return
  }
  func.func @transform_0(%arg0: i32) -> (i32, i32) {
    %c0_i32 = arith.constant 0 : i32
    %c0_i32_0 = arith.constant 0 : i32
    return %arg0, %c0_i32 : i32, i32
  }
  func.func @transform_1(%arg0: i32) -> (i32, i32) {
    %c0_i32 = arith.constant 0 : i32
    %c0_i32_0 = arith.constant 0 : i32
    %c0_i32_1 = arith.constant 0 : i32
    return %c0_i32, %c0_i32_0 : i32, i32
  }
  func.func @transform_2(%arg0: i32) -> (i32, i32) {
    %c0_i32 = arith.constant 0 : i32
    %c0_i32_0 = arith.constant 0 : i32
    %c0_i32_1 = arith.constant 0 : i32
    return %c0_i32, %c0_i32_0 : i32, i32
  }
  func.func @transform_3(%arg0: i32) -> (i32, i32) {
    %c0_i32 = arith.constant 0 : i32
    %c0_i32_0 = arith.constant 0 : i32
    return %arg0, %c0_i32 : i32, i32
  }
}

module attributes {stable_mosaic.version = 11 : i64} {
  func.func @_bn_apply_kernel(%arg0: i32, %arg1: memref<32x128xf32, #tpu.memory_space<vmem>>, %arg2: memref<1x128xf32, #tpu.memory_space<vmem>>, %arg3: memref<1x128xf32, #tpu.memory_space<vmem>>, %arg4: memref<32x128xf32, #tpu.memory_space<vmem>>) attributes {dimension_semantics = [#tpu.dimension_semantics<parallel>], iteration_bounds = array<i64: 1>, scalar_prefetch = 0 : i64, scratch_operands = 0 : i64, tpu.core_type = #tpu.core_type<tc>, window_params = [{transform_indices = @transform_0, window_bounds = array<i64: 32, 128>}, {pipeline_mode = #tpu.pipeline_mode<synchronous>, transform_indices = @transform_1, window_bounds = array<i64: 1, 128>}, {pipeline_mode = #tpu.pipeline_mode<synchronous>, transform_indices = @transform_2, window_bounds = array<i64: 1, 128>}, {transform_indices = @transform_3, window_bounds = array<i64: 32, 128>}]} {
    %c0 = arith.constant 0 : index
    %c0_0 = arith.constant 0 : index
    %0 = vector.load %arg1[%c0, %c0_0] : memref<32x128xf32, #tpu.memory_space<vmem>>, vector<32x128xf32>
    %c0_1 = arith.constant 0 : index
    %c0_2 = arith.constant 0 : index
    %1 = vector.load %arg2[%c0_1, %c0_2] : memref<1x128xf32, #tpu.memory_space<vmem>>, vector<1x128xf32>
    %2 = vector.broadcast %1 : vector<1x128xf32> to vector<32x128xf32>
    %3 = arith.mulf %0, %2 : vector<32x128xf32>
    %c0_3 = arith.constant 0 : index
    %c0_4 = arith.constant 0 : index
    %4 = vector.load %arg3[%c0_3, %c0_4] : memref<1x128xf32, #tpu.memory_space<vmem>>, vector<1x128xf32>
    %5 = vector.broadcast %4 : vector<1x128xf32> to vector<32x128xf32>
    %6 = arith.addf %3, %5 : vector<32x128xf32>
    %cst = arith.constant 0.000000e+00 : f32
    %7 = vector.broadcast %cst : f32 to vector<32x128xf32>
    %8 = arith.maximumf %6, %7 : vector<32x128xf32>
    %c0_5 = arith.constant 0 : index
    %c0_6 = arith.constant 0 : index
    %9 = vector.load %arg4[%c0_5, %c0_6] : memref<32x128xf32, #tpu.memory_space<vmem>>, vector<32x128xf32>
    tpu.vector_store %arg4[%c0_5, %c0_6], %8 {strides = array<i32>} : memref<32x128xf32, #tpu.memory_space<vmem>>, vector<32x128xf32>,
    return
  }
  func.func @transform_0(%arg0: i32) -> (i32, i32) {
    %c0_i32 = arith.constant 0 : i32
    %c0_i32_0 = arith.constant 0 : i32
    return %arg0, %c0_i32 : i32, i32
  }
  func.func @transform_1(%arg0: i32) -> (i32, i32) {
    %c0_i32 = arith.constant 0 : i32
    %c0_i32_0 = arith.constant 0 : i32
    %c0_i32_1 = arith.constant 0 : i32
    return %c0_i32, %c0_i32_0 : i32, i32
  }
  func.func @transform_2(%arg0: i32) -> (i32, i32) {
    %c0_i32 = arith.constant 0 : i32
    %c0_i32_0 = arith.constant 0 : i32
    %c0_i32_1 = arith.constant 0 : i32
    return %c0_i32, %c0_i32_0 : i32, i32
  }
  func.func @transform_3(%arg0: i32) -> (i32, i32) {
    %c0_i32 = arith.constant 0 : i32
    %c0_i32_0 = arith.constant 0 : i32
    return %arg0, %c0_i32 : i32, i32
  }
}

module attributes {stable_mosaic.version = 11 : i64} {
  func.func @_matmul_kernel(%arg0: i32, %arg1: i32, %arg2: i32, %arg3: memref<32x128xbf16, #tpu.memory_space<vmem>>, %arg4: memref<128x128xbf16, #tpu.memory_space<vmem>>, %arg5: memref<32x128xf32, #tpu.memory_space<vmem>>, %arg6: memref<32x128xf32, #tpu.memory_space<vmem>>) attributes {dimension_semantics = [#tpu.dimension_semantics<parallel>, #tpu.dimension_semantics<parallel>, #tpu.dimension_semantics<arbitrary>], iteration_bounds = array<i64: 1, 1, 5>, scalar_prefetch = 0 : i64, scratch_operands = 1 : i64, tpu.core_type = #tpu.core_type<tc>, window_params = [{transform_indices = @transform_0, window_bounds = array<i64: 32, 128>}, {transform_indices = @transform_1, window_bounds = array<i64: 128, 128>}, {transform_indices = @transform_2, window_bounds = array<i64: 32, 128>}]} {
    %c0_i32 = arith.constant 0 : i32
    %0 = arith.cmpi eq, %arg2, %c0_i32 : i32
    %1 = arith.extui %0 : i1 to i32
    %c0_i32_0 = arith.constant 0 : i32
    %2 = arith.cmpi ne, %1, %c0_i32_0 : i32
    scf.if %2 {
      %cst_9 = arith.constant 0.000000e+00 : f32
      %12 = vector.broadcast %cst_9 : f32 to vector<32x128xf32>
      %c0_10 = arith.constant 0 : index
      %c0_11 = arith.constant 0 : index
      %13 = vector.load %arg6[%c0_10, %c0_11] : memref<32x128xf32, #tpu.memory_space<vmem>>, vector<32x128xf32>
      tpu.vector_store %arg6[%c0_10, %c0_11], %12 {strides = array<i32>} : memref<32x128xf32, #tpu.memory_space<vmem>>, vector<32x128xf32>,
    } else {
    }
    %c0 = arith.constant 0 : index
    %c0_1 = arith.constant 0 : index
    %3 = vector.load %arg6[%c0, %c0_1] : memref<32x128xf32, #tpu.memory_space<vmem>>, vector<32x128xf32>
    %c0_2 = arith.constant 0 : index
    %c0_3 = arith.constant 0 : index
    %4 = vector.load %arg3[%c0_2, %c0_3] : memref<32x128xbf16, #tpu.memory_space<vmem>>, vector<32x128xbf16>
    %c0_4 = arith.constant 0 : index
    %c0_5 = arith.constant 0 : index
    %5 = vector.load %arg4[%c0_4, %c0_5] : memref<128x128xbf16, #tpu.memory_space<vmem>>, vector<128x128xbf16>
    %cst = arith.constant dense<0.000000e+00> : vector<32x128xf32>
    %6 = tpu.matmul %4, %5, %cst {dimension_numbers = #tpu.dot_dimension_numbers<[1], [0], [0], [1], [0, 0, 1, 1], [], []>} : vector<32x128xbf16>, vector<128x128xbf16>, vector<32x128xf32> -> vector<32x128xf32>
    %7 = arith.addf %3, %6 : vector<32x128xf32>
    %c0_6 = arith.constant 0 : index
    %c0_7 = arith.constant 0 : index
    %8 = vector.load %arg6[%c0_6, %c0_7] : memref<32x128xf32, #tpu.memory_space<vmem>>, vector<32x128xf32>
    tpu.vector_store %arg6[%c0_6, %c0_7], %7 {strides = array<i32>} : memref<32x128xf32, #tpu.memory_space<vmem>>, vector<32x128xf32>,
    %c4_i32 = arith.constant 4 : i32
    %9 = arith.cmpi eq, %arg2, %c4_i32 : i32
    %10 = arith.extui %9 : i1 to i32
    %c0_i32_8 = arith.constant 0 : i32
    %11 = arith.cmpi ne, %10, %c0_i32_8 : i32
    scf.if %11 {
      %c0_9 = arith.constant 0 : index
      %c0_10 = arith.constant 0 : index
      %12 = vector.load %arg6[%c0_9, %c0_10] : memref<32x128xf32, #tpu.memory_space<vmem>>, vector<32x128xf32>
      %c0_11 = arith.constant 0 : index
      %c0_12 = arith.constant 0 : index
      %13 = vector.load %arg5[%c0_11, %c0_12] : memref<32x128xf32, #tpu.memory_space<vmem>>, vector<32x128xf32>
      tpu.vector_store %arg5[%c0_11, %c0_12], %12 {strides = array<i32>} : memref<32x128xf32, #tpu.memory_space<vmem>>, vector<32x128xf32>,
    } else {
    }
    return
  }
  func.func @transform_0(%arg0: i32, %arg1: i32, %arg2: i32) -> (i32, i32) {
    %c0_i32 = arith.constant 0 : i32
    return %arg0, %arg2 : i32, i32
  }
  func.func @transform_1(%arg0: i32, %arg1: i32, %arg2: i32) -> (i32, i32) {
    %c0_i32 = arith.constant 0 : i32
    return %arg2, %arg1 : i32, i32
  }
  func.func @transform_2(%arg0: i32, %arg1: i32, %arg2: i32) -> (i32, i32) {
    %c0_i32 = arith.constant 0 : i32
    return %arg0, %arg1 : i32, i32
  }
}

module attributes {stable_mosaic.version = 11 : i64} {
  func.func @_matmul_kernel(%arg0: i32, %arg1: i32, %arg2: i32, %arg3: memref<32x384xbf16, #tpu.memory_space<vmem>>, %arg4: memref<384x128xbf16, #tpu.memory_space<vmem>>, %arg5: memref<32x128xf32, #tpu.memory_space<vmem>>, %arg6: memref<32x128xf32, #tpu.memory_space<vmem>>) attributes {dimension_semantics = [#tpu.dimension_semantics<parallel>, #tpu.dimension_semantics<parallel>, #tpu.dimension_semantics<arbitrary>], iteration_bounds = array<i64: 1, 1, 3>, scalar_prefetch = 0 : i64, scratch_operands = 1 : i64, tpu.core_type = #tpu.core_type<tc>, window_params = [{transform_indices = @transform_0, window_bounds = array<i64: 32, 384>}, {transform_indices = @transform_1, window_bounds = array<i64: 384, 128>}, {transform_indices = @transform_2, window_bounds = array<i64: 32, 128>}]} {
    %c0_i32 = arith.constant 0 : i32
    %0 = arith.cmpi eq, %arg2, %c0_i32 : i32
    %1 = arith.extui %0 : i1 to i32
    %c0_i32_0 = arith.constant 0 : i32
    %2 = arith.cmpi ne, %1, %c0_i32_0 : i32
    scf.if %2 {
      %cst_9 = arith.constant 0.000000e+00 : f32
      %12 = vector.broadcast %cst_9 : f32 to vector<32x128xf32>
      %c0_10 = arith.constant 0 : index
      %c0_11 = arith.constant 0 : index
      %13 = vector.load %arg6[%c0_10, %c0_11] : memref<32x128xf32, #tpu.memory_space<vmem>>, vector<32x128xf32>
      tpu.vector_store %arg6[%c0_10, %c0_11], %12 {strides = array<i32>} : memref<32x128xf32, #tpu.memory_space<vmem>>, vector<32x128xf32>,
    } else {
    }
    %c0 = arith.constant 0 : index
    %c0_1 = arith.constant 0 : index
    %3 = vector.load %arg6[%c0, %c0_1] : memref<32x128xf32, #tpu.memory_space<vmem>>, vector<32x128xf32>
    %c0_2 = arith.constant 0 : index
    %c0_3 = arith.constant 0 : index
    %4 = vector.load %arg3[%c0_2, %c0_3] : memref<32x384xbf16, #tpu.memory_space<vmem>>, vector<32x384xbf16>
    %c0_4 = arith.constant 0 : index
    %c0_5 = arith.constant 0 : index
    %5 = vector.load %arg4[%c0_4, %c0_5] : memref<384x128xbf16, #tpu.memory_space<vmem>>, vector<384x128xbf16>
    %cst = arith.constant dense<0.000000e+00> : vector<32x128xf32>
    %6 = tpu.matmul %4, %5, %cst {dimension_numbers = #tpu.dot_dimension_numbers<[1], [0], [0], [1], [0, 0, 1, 1], [], []>} : vector<32x384xbf16>, vector<384x128xbf16>, vector<32x128xf32> -> vector<32x128xf32>
    %7 = arith.addf %3, %6 : vector<32x128xf32>
    %c0_6 = arith.constant 0 : index
    %c0_7 = arith.constant 0 : index
    %8 = vector.load %arg6[%c0_6, %c0_7] : memref<32x128xf32, #tpu.memory_space<vmem>>, vector<32x128xf32>
    tpu.vector_store %arg6[%c0_6, %c0_7], %7 {strides = array<i32>} : memref<32x128xf32, #tpu.memory_space<vmem>>, vector<32x128xf32>,
    %c2_i32 = arith.constant 2 : i32
    %9 = arith.cmpi eq, %arg2, %c2_i32 : i32
    %10 = arith.extui %9 : i1 to i32
    %c0_i32_8 = arith.constant 0 : i32
    %11 = arith.cmpi ne, %10, %c0_i32_8 : i32
    scf.if %11 {
      %c0_9 = arith.constant 0 : index
      %c0_10 = arith.constant 0 : index
      %12 = vector.load %arg6[%c0_9, %c0_10] : memref<32x128xf32, #tpu.memory_space<vmem>>, vector<32x128xf32>
      %c0_11 = arith.constant 0 : index
      %c0_12 = arith.constant 0 : index
      %13 = vector.load %arg5[%c0_11, %c0_12] : memref<32x128xf32, #tpu.memory_space<vmem>>, vector<32x128xf32>
      tpu.vector_store %arg5[%c0_11, %c0_12], %12 {strides = array<i32>} : memref<32x128xf32, #tpu.memory_space<vmem>>, vector<32x128xf32>,
    } else {
    }
    return
  }
  func.func @transform_0(%arg0: i32, %arg1: i32, %arg2: i32) -> (i32, i32) {
    %c0_i32 = arith.constant 0 : i32
    return %arg0, %arg2 : i32, i32
  }
  func.func @transform_1(%arg0: i32, %arg1: i32, %arg2: i32) -> (i32, i32) {
    %c0_i32 = arith.constant 0 : i32
    return %arg2, %arg1 : i32, i32
  }
  func.func @transform_2(%arg0: i32, %arg1: i32, %arg2: i32) -> (i32, i32) {
    %c0_i32 = arith.constant 0 : i32
    return %arg0, %arg1 : i32, i32
  }
}

module attributes {stable_mosaic.version = 11 : i64} {
  func.func @_bn_apply_res_kernel(%arg0: i32, %arg1: memref<32x128xf32, #tpu.memory_space<vmem>>, %arg2: memref<1x128xf32, #tpu.memory_space<vmem>>, %arg3: memref<1x128xf32, #tpu.memory_space<vmem>>, %arg4: memref<32x128xf32, #tpu.memory_space<vmem>>, %arg5: memref<32x128xf32, #tpu.memory_space<vmem>>) attributes {dimension_semantics = [#tpu.dimension_semantics<parallel>], iteration_bounds = array<i64: 1>, scalar_prefetch = 0 : i64, scratch_operands = 0 : i64, tpu.core_type = #tpu.core_type<tc>, window_params = [{transform_indices = @transform_0, window_bounds = array<i64: 32, 128>}, {pipeline_mode = #tpu.pipeline_mode<synchronous>, transform_indices = @transform_1, window_bounds = array<i64: 1, 128>}, {pipeline_mode = #tpu.pipeline_mode<synchronous>, transform_indices = @transform_2, window_bounds = array<i64: 1, 128>}, {transform_indices = @transform_3, window_bounds = array<i64: 32, 128>}, {transform_indices = @transform_4, window_bounds = array<i64: 32, 128>}]} {
    %c0 = arith.constant 0 : index
    %c0_0 = arith.constant 0 : index
    %0 = vector.load %arg1[%c0, %c0_0] : memref<32x128xf32, #tpu.memory_space<vmem>>, vector<32x128xf32>
    %c0_1 = arith.constant 0 : index
    %c0_2 = arith.constant 0 : index
    %1 = vector.load %arg2[%c0_1, %c0_2] : memref<1x128xf32, #tpu.memory_space<vmem>>, vector<1x128xf32>
    %2 = vector.broadcast %1 : vector<1x128xf32> to vector<32x128xf32>
    %3 = arith.mulf %0, %2 : vector<32x128xf32>
    %c0_3 = arith.constant 0 : index
    %c0_4 = arith.constant 0 : index
    %4 = vector.load %arg3[%c0_3, %c0_4] : memref<1x128xf32, #tpu.memory_space<vmem>>, vector<1x128xf32>
    %5 = vector.broadcast %4 : vector<1x128xf32> to vector<32x128xf32>
    %6 = arith.addf %3, %5 : vector<32x128xf32>
    %c0_5 = arith.constant 0 : index
    %c0_6 = arith.constant 0 : index
    %7 = vector.load %arg4[%c0_5, %c0_6] : memref<32x128xf32, #tpu.memory_space<vmem>>, vector<32x128xf32>
    %8 = arith.addf %6, %7 : vector<32x128xf32>
    %cst = arith.constant 0.000000e+00 : f32
    %9 = vector.broadcast %cst : f32 to vector<32x128xf32>
    %10 = arith.maximumf %8, %9 : vector<32x128xf32>
    %c0_7 = arith.constant 0 : index
    %c0_8 = arith.constant 0 : index
    %11 = vector.load %arg5[%c0_7, %c0_8] : memref<32x128xf32, #tpu.memory_space<vmem>>, vector<32x128xf32>
    tpu.vector_store %arg5[%c0_7, %c0_8], %10 {strides = array<i32>} : memref<32x128xf32, #tpu.memory_space<vmem>>, vector<32x128xf32>,
    return
  }
  func.func @transform_0(%arg0: i32) -> (i32, i32) {
    %c0_i32 = arith.constant 0 : i32
    %c0_i32_0 = arith.constant 0 : i32
    return %arg0, %c0_i32 : i32, i32
  }
  func.func @transform_1(%arg0: i32) -> (i32, i32) {
    %c0_i32 = arith.constant 0 : i32
    %c0_i32_0 = arith.constant 0 : i32
    %c0_i32_1 = arith.constant 0 : i32
    return %c0_i32, %c0_i32_0 : i32, i32
  }
  func.func @transform_2(%arg0: i32) -> (i32, i32) {
    %c0_i32 = arith.constant 0 : i32
    %c0_i32_0 = arith.constant 0 : i32
    %c0_i32_1 = arith.constant 0 : i32
    return %c0_i32, %c0_i32_0 : i32, i32
  }
  func.func @transform_3(%arg0: i32) -> (i32, i32) {
    %c0_i32 = arith.constant 0 : i32
    %c0_i32_0 = arith.constant 0 : i32
    return %arg0, %c0_i32 : i32, i32
  }
  func.func @transform_4(%arg0: i32) -> (i32, i32) {
    %c0_i32 = arith.constant 0 : i32
    %c0_i32_0 = arith.constant 0 : i32
    return %arg0, %c0_i32 : i32, i32
  }
}

module attributes {stable_mosaic.version = 11 : i64} {
  func.func @_matmul_kernel(%arg0: i32, %arg1: i32, %arg2: i32, %arg3: memref<8x128xbf16, #tpu.memory_space<vmem>>, %arg4: memref<128x256xbf16, #tpu.memory_space<vmem>>, %arg5: memref<8x256xf32, #tpu.memory_space<vmem>>, %arg6: memref<8x256xf32, #tpu.memory_space<vmem>>) attributes {dimension_semantics = [#tpu.dimension_semantics<parallel>, #tpu.dimension_semantics<parallel>, #tpu.dimension_semantics<arbitrary>], iteration_bounds = array<i64: 1, 1, 1>, scalar_prefetch = 0 : i64, scratch_operands = 1 : i64, tpu.core_type = #tpu.core_type<tc>, window_params = [{transform_indices = @transform_0, window_bounds = array<i64: 8, 128>}, {transform_indices = @transform_1, window_bounds = array<i64: 128, 256>}, {transform_indices = @transform_2, window_bounds = array<i64: 8, 256>}]} {
    %c0_i32 = arith.constant 0 : i32
    %0 = arith.cmpi eq, %arg2, %c0_i32 : i32
    %1 = arith.extui %0 : i1 to i32
    %c0_i32_0 = arith.constant 0 : i32
    %2 = arith.cmpi ne, %1, %c0_i32_0 : i32
    scf.if %2 {
      %cst_10 = arith.constant 0.000000e+00 : f32
      %12 = vector.broadcast %cst_10 : f32 to vector<8x256xf32>
      %c0_11 = arith.constant 0 : index
      %c0_12 = arith.constant 0 : index
      %13 = vector.load %arg6[%c0_11, %c0_12] : memref<8x256xf32, #tpu.memory_space<vmem>>, vector<8x256xf32>
      tpu.vector_store %arg6[%c0_11, %c0_12], %12 {strides = array<i32>} : memref<8x256xf32, #tpu.memory_space<vmem>>, vector<8x256xf32>,
    } else {
    }
    %c0 = arith.constant 0 : index
    %c0_1 = arith.constant 0 : index
    %3 = vector.load %arg6[%c0, %c0_1] : memref<8x256xf32, #tpu.memory_space<vmem>>, vector<8x256xf32>
    %c0_2 = arith.constant 0 : index
    %c0_3 = arith.constant 0 : index
    %4 = vector.load %arg3[%c0_2, %c0_3] : memref<8x128xbf16, #tpu.memory_space<vmem>>, vector<8x128xbf16>
    %c0_4 = arith.constant 0 : index
    %c0_5 = arith.constant 0 : index
    %5 = vector.load %arg4[%c0_4, %c0_5] : memref<128x256xbf16, #tpu.memory_space<vmem>>, vector<128x256xbf16>
    %cst = arith.constant dense<0.000000e+00> : vector<8x256xf32>
    %6 = tpu.matmul %4, %5, %cst {dimension_numbers = #tpu.dot_dimension_numbers<[1], [0], [0], [1], [0, 0, 1, 1], [], []>} : vector<8x128xbf16>, vector<128x256xbf16>, vector<8x256xf32> -> vector<8x256xf32>
    %7 = arith.addf %3, %6 : vector<8x256xf32>
    %c0_6 = arith.constant 0 : index
    %c0_7 = arith.constant 0 : index
    %8 = vector.load %arg6[%c0_6, %c0_7] : memref<8x256xf32, #tpu.memory_space<vmem>>, vector<8x256xf32>
    tpu.vector_store %arg6[%c0_6, %c0_7], %7 {strides = array<i32>} : memref<8x256xf32, #tpu.memory_space<vmem>>, vector<8x256xf32>,
    %c0_i32_8 = arith.constant 0 : i32
    %9 = arith.cmpi eq, %arg2, %c0_i32_8 : i32
    %10 = arith.extui %9 : i1 to i32
    %c0_i32_9 = arith.constant 0 : i32
    %11 = arith.cmpi ne, %10, %c0_i32_9 : i32
    scf.if %11 {
      %c0_10 = arith.constant 0 : index
      %c0_11 = arith.constant 0 : index
      %12 = vector.load %arg6[%c0_10, %c0_11] : memref<8x256xf32, #tpu.memory_space<vmem>>, vector<8x256xf32>
      %c0_12 = arith.constant 0 : index
      %c0_13 = arith.constant 0 : index
      %13 = vector.load %arg5[%c0_12, %c0_13] : memref<8x256xf32, #tpu.memory_space<vmem>>, vector<8x256xf32>
      tpu.vector_store %arg5[%c0_12, %c0_13], %12 {strides = array<i32>} : memref<8x256xf32, #tpu.memory_space<vmem>>, vector<8x256xf32>,
    } else {
    }
    return
  }
  func.func @transform_0(%arg0: i32, %arg1: i32, %arg2: i32) -> (i32, i32) {
    %c0_i32 = arith.constant 0 : i32
    return %arg0, %arg2 : i32, i32
  }
  func.func @transform_1(%arg0: i32, %arg1: i32, %arg2: i32) -> (i32, i32) {
    %c0_i32 = arith.constant 0 : i32
    return %arg2, %arg1 : i32, i32
  }
  func.func @transform_2(%arg0: i32, %arg1: i32, %arg2: i32) -> (i32, i32) {
    %c0_i32 = arith.constant 0 : i32
    return %arg0, %arg1 : i32, i32
  }
}

module attributes {stable_mosaic.version = 11 : i64} {
  func.func @_bn_stats_kernel(%arg0: i32, %arg1: memref<8x256xf32, #tpu.memory_space<vmem>>, %arg2: memref<2x256xf32, #tpu.memory_space<vmem>>) attributes {dimension_semantics = [#tpu.dimension_semantics<arbitrary>], iteration_bounds = array<i64: 1>, scalar_prefetch = 0 : i64, scratch_operands = 0 : i64, tpu.core_type = #tpu.core_type<tc>, window_params = [{transform_indices = @transform_0, window_bounds = array<i64: 8, 256>}, {pipeline_mode = #tpu.pipeline_mode<synchronous>, transform_indices = @transform_1, window_bounds = array<i64: 2, 256>}]} {
    %c0_i32 = arith.constant 0 : i32
    %0 = arith.cmpi eq, %arg0, %c0_i32 : i32
    %1 = arith.extui %0 : i1 to i32
    %c0_i32_0 = arith.constant 0 : i32
    %2 = arith.cmpi ne, %1, %c0_i32_0 : i32
    scf.if %2 {
      %cst_7 = arith.constant 0.000000e+00 : f32
      %13 = vector.broadcast %cst_7 : f32 to vector<2x256xf32>
      %c0_8 = arith.constant 0 : index
      %c0_9 = arith.constant 0 : index
      %14 = vector.load %arg2[%c0_8, %c0_9] : memref<2x256xf32, #tpu.memory_space<vmem>>, vector<2x256xf32>
      tpu.vector_store %arg2[%c0_8, %c0_9], %13 {strides = array<i32>} : memref<2x256xf32, #tpu.memory_space<vmem>>, vector<2x256xf32>,
    } else {
    }
    %c0 = arith.constant 0 : index
    %c0_1 = arith.constant 0 : index
    %3 = vector.load %arg1[%c0, %c0_1] : memref<8x256xf32, #tpu.memory_space<vmem>>, vector<8x256xf32>
    %cst = arith.constant dense<0.000000e+00> : vector<256xf32>
    %4 = vector.multi_reduction <add>, %3, %cst [0] : vector<8x256xf32> to vector<256xf32>
    %5 = vector.shape_cast %4 : vector<256xf32> to vector<1x256xf32>
    %6 = arith.mulf %3, %3 : vector<8x256xf32>
    %cst_2 = arith.constant dense<0.000000e+00> : vector<256xf32>
    %7 = vector.multi_reduction <add>, %6, %cst_2 [0] : vector<8x256xf32> to vector<256xf32>
    %8 = vector.shape_cast %7 : vector<256xf32> to vector<1x256xf32>
    %c0_3 = arith.constant 0 : index
    %c0_4 = arith.constant 0 : index
    %9 = vector.load %arg2[%c0_3, %c0_4] : memref<2x256xf32, #tpu.memory_space<vmem>>, vector<2x256xf32>
    %10 = tpu.concatenate %5, %8 in 0 : vector<1x256xf32>, vector<1x256xf32> -> vector<2x256xf32>
    %11 = arith.addf %9, %10 : vector<2x256xf32>
    %c0_5 = arith.constant 0 : index
    %c0_6 = arith.constant 0 : index
    %12 = vector.load %arg2[%c0_5, %c0_6] : memref<2x256xf32, #tpu.memory_space<vmem>>, vector<2x256xf32>
    tpu.vector_store %arg2[%c0_5, %c0_6], %11 {strides = array<i32>} : memref<2x256xf32, #tpu.memory_space<vmem>>, vector<2x256xf32>,
    return
  }
  func.func @transform_0(%arg0: i32) -> (i32, i32) {
    %c0_i32 = arith.constant 0 : i32
    %c0_i32_0 = arith.constant 0 : i32
    return %arg0, %c0_i32 : i32, i32
  }
  func.func @transform_1(%arg0: i32) -> (i32, i32) {
    %c0_i32 = arith.constant 0 : i32
    %c0_i32_0 = arith.constant 0 : i32
    %c0_i32_1 = arith.constant 0 : i32
    return %c0_i32, %c0_i32_0 : i32, i32
  }
}

module attributes {stable_mosaic.version = 11 : i64} {
  func.func @_bn_apply_kernel(%arg0: i32, %arg1: memref<8x256xf32, #tpu.memory_space<vmem>>, %arg2: memref<1x256xf32, #tpu.memory_space<vmem>>, %arg3: memref<1x256xf32, #tpu.memory_space<vmem>>, %arg4: memref<8x256xf32, #tpu.memory_space<vmem>>) attributes {dimension_semantics = [#tpu.dimension_semantics<parallel>], iteration_bounds = array<i64: 1>, scalar_prefetch = 0 : i64, scratch_operands = 0 : i64, tpu.core_type = #tpu.core_type<tc>, window_params = [{transform_indices = @transform_0, window_bounds = array<i64: 8, 256>}, {pipeline_mode = #tpu.pipeline_mode<synchronous>, transform_indices = @transform_1, window_bounds = array<i64: 1, 256>}, {pipeline_mode = #tpu.pipeline_mode<synchronous>, transform_indices = @transform_2, window_bounds = array<i64: 1, 256>}, {transform_indices = @transform_3, window_bounds = array<i64: 8, 256>}]} {
    %c0 = arith.constant 0 : index
    %c0_0 = arith.constant 0 : index
    %0 = vector.load %arg1[%c0, %c0_0] : memref<8x256xf32, #tpu.memory_space<vmem>>, vector<8x256xf32>
    %c0_1 = arith.constant 0 : index
    %c0_2 = arith.constant 0 : index
    %1 = vector.load %arg2[%c0_1, %c0_2] : memref<1x256xf32, #tpu.memory_space<vmem>>, vector<1x256xf32>
    %2 = vector.broadcast %1 : vector<1x256xf32> to vector<8x256xf32>
    %3 = arith.mulf %0, %2 : vector<8x256xf32>
    %c0_3 = arith.constant 0 : index
    %c0_4 = arith.constant 0 : index
    %4 = vector.load %arg3[%c0_3, %c0_4] : memref<1x256xf32, #tpu.memory_space<vmem>>, vector<1x256xf32>
    %5 = vector.broadcast %4 : vector<1x256xf32> to vector<8x256xf32>
    %6 = arith.addf %3, %5 : vector<8x256xf32>
    %c0_5 = arith.constant 0 : index
    %c0_6 = arith.constant 0 : index
    %7 = vector.load %arg4[%c0_5, %c0_6] : memref<8x256xf32, #tpu.memory_space<vmem>>, vector<8x256xf32>
    tpu.vector_store %arg4[%c0_5, %c0_6], %6 {strides = array<i32>} : memref<8x256xf32, #tpu.memory_space<vmem>>, vector<8x256xf32>,
    return
  }
  func.func @transform_0(%arg0: i32) -> (i32, i32) {
    %c0_i32 = arith.constant 0 : i32
    %c0_i32_0 = arith.constant 0 : i32
    return %arg0, %c0_i32 : i32, i32
  }
  func.func @transform_1(%arg0: i32) -> (i32, i32) {
    %c0_i32 = arith.constant 0 : i32
    %c0_i32_0 = arith.constant 0 : i32
    %c0_i32_1 = arith.constant 0 : i32
    return %c0_i32, %c0_i32_0 : i32, i32
  }
  func.func @transform_2(%arg0: i32) -> (i32, i32) {
    %c0_i32 = arith.constant 0 : i32
    %c0_i32_0 = arith.constant 0 : i32
    %c0_i32_1 = arith.constant 0 : i32
    return %c0_i32, %c0_i32_0 : i32, i32
  }
  func.func @transform_3(%arg0: i32) -> (i32, i32) {
    %c0_i32 = arith.constant 0 : i32
    %c0_i32_0 = arith.constant 0 : i32
    return %arg0, %c0_i32 : i32, i32
  }
}

module attributes {stable_mosaic.version = 11 : i64} {
  func.func @_matmul_kernel(%arg0: i32, %arg1: i32, %arg2: i32, %arg3: memref<8x384xbf16, #tpu.memory_space<vmem>>, %arg4: memref<384x256xbf16, #tpu.memory_space<vmem>>, %arg5: memref<8x256xf32, #tpu.memory_space<vmem>>, %arg6: memref<8x256xf32, #tpu.memory_space<vmem>>) attributes {dimension_semantics = [#tpu.dimension_semantics<parallel>, #tpu.dimension_semantics<parallel>, #tpu.dimension_semantics<arbitrary>], iteration_bounds = array<i64: 1, 1, 3>, scalar_prefetch = 0 : i64, scratch_operands = 1 : i64, tpu.core_type = #tpu.core_type<tc>, window_params = [{transform_indices = @transform_0, window_bounds = array<i64: 8, 384>}, {transform_indices = @transform_1, window_bounds = array<i64: 384, 256>}, {transform_indices = @transform_2, window_bounds = array<i64: 8, 256>}]} {
    %c0_i32 = arith.constant 0 : i32
    %0 = arith.cmpi eq, %arg2, %c0_i32 : i32
    %1 = arith.extui %0 : i1 to i32
    %c0_i32_0 = arith.constant 0 : i32
    %2 = arith.cmpi ne, %1, %c0_i32_0 : i32
    scf.if %2 {
      %cst_9 = arith.constant 0.000000e+00 : f32
      %12 = vector.broadcast %cst_9 : f32 to vector<8x256xf32>
      %c0_10 = arith.constant 0 : index
      %c0_11 = arith.constant 0 : index
      %13 = vector.load %arg6[%c0_10, %c0_11] : memref<8x256xf32, #tpu.memory_space<vmem>>, vector<8x256xf32>
      tpu.vector_store %arg6[%c0_10, %c0_11], %12 {strides = array<i32>} : memref<8x256xf32, #tpu.memory_space<vmem>>, vector<8x256xf32>,
    } else {
    }
    %c0 = arith.constant 0 : index
    %c0_1 = arith.constant 0 : index
    %3 = vector.load %arg6[%c0, %c0_1] : memref<8x256xf32, #tpu.memory_space<vmem>>, vector<8x256xf32>
    %c0_2 = arith.constant 0 : index
    %c0_3 = arith.constant 0 : index
    %4 = vector.load %arg3[%c0_2, %c0_3] : memref<8x384xbf16, #tpu.memory_space<vmem>>, vector<8x384xbf16>
    %c0_4 = arith.constant 0 : index
    %c0_5 = arith.constant 0 : index
    %5 = vector.load %arg4[%c0_4, %c0_5] : memref<384x256xbf16, #tpu.memory_space<vmem>>, vector<384x256xbf16>
    %cst = arith.constant dense<0.000000e+00> : vector<8x256xf32>
    %6 = tpu.matmul %4, %5, %cst {dimension_numbers = #tpu.dot_dimension_numbers<[1], [0], [0], [1], [0, 0, 1, 1], [], []>} : vector<8x384xbf16>, vector<384x256xbf16>, vector<8x256xf32> -> vector<8x256xf32>
    %7 = arith.addf %3, %6 : vector<8x256xf32>
    %c0_6 = arith.constant 0 : index
    %c0_7 = arith.constant 0 : index
    %8 = vector.load %arg6[%c0_6, %c0_7] : memref<8x256xf32, #tpu.memory_space<vmem>>, vector<8x256xf32>
    tpu.vector_store %arg6[%c0_6, %c0_7], %7 {strides = array<i32>} : memref<8x256xf32, #tpu.memory_space<vmem>>, vector<8x256xf32>,
    %c2_i32 = arith.constant 2 : i32
    %9 = arith.cmpi eq, %arg2, %c2_i32 : i32
    %10 = arith.extui %9 : i1 to i32
    %c0_i32_8 = arith.constant 0 : i32
    %11 = arith.cmpi ne, %10, %c0_i32_8 : i32
    scf.if %11 {
      %c0_9 = arith.constant 0 : index
      %c0_10 = arith.constant 0 : index
      %12 = vector.load %arg6[%c0_9, %c0_10] : memref<8x256xf32, #tpu.memory_space<vmem>>, vector<8x256xf32>
      %c0_11 = arith.constant 0 : index
      %c0_12 = arith.constant 0 : index
      %13 = vector.load %arg5[%c0_11, %c0_12] : memref<8x256xf32, #tpu.memory_space<vmem>>, vector<8x256xf32>
      tpu.vector_store %arg5[%c0_11, %c0_12], %12 {strides = array<i32>} : memref<8x256xf32, #tpu.memory_space<vmem>>, vector<8x256xf32>,
    } else {
    }
    return
  }
  func.func @transform_0(%arg0: i32, %arg1: i32, %arg2: i32) -> (i32, i32) {
    %c0_i32 = arith.constant 0 : i32
    return %arg0, %arg2 : i32, i32
  }
  func.func @transform_1(%arg0: i32, %arg1: i32, %arg2: i32) -> (i32, i32) {
    %c0_i32 = arith.constant 0 : i32
    return %arg2, %arg1 : i32, i32
  }
  func.func @transform_2(%arg0: i32, %arg1: i32, %arg2: i32) -> (i32, i32) {
    %c0_i32 = arith.constant 0 : i32
    return %arg0, %arg1 : i32, i32
  }
}

module attributes {stable_mosaic.version = 11 : i64} {
  func.func @_bn_apply_kernel(%arg0: i32, %arg1: memref<8x256xf32, #tpu.memory_space<vmem>>, %arg2: memref<1x256xf32, #tpu.memory_space<vmem>>, %arg3: memref<1x256xf32, #tpu.memory_space<vmem>>, %arg4: memref<8x256xf32, #tpu.memory_space<vmem>>) attributes {dimension_semantics = [#tpu.dimension_semantics<parallel>], iteration_bounds = array<i64: 1>, scalar_prefetch = 0 : i64, scratch_operands = 0 : i64, tpu.core_type = #tpu.core_type<tc>, window_params = [{transform_indices = @transform_0, window_bounds = array<i64: 8, 256>}, {pipeline_mode = #tpu.pipeline_mode<synchronous>, transform_indices = @transform_1, window_bounds = array<i64: 1, 256>}, {pipeline_mode = #tpu.pipeline_mode<synchronous>, transform_indices = @transform_2, window_bounds = array<i64: 1, 256>}, {transform_indices = @transform_3, window_bounds = array<i64: 8, 256>}]} {
    %c0 = arith.constant 0 : index
    %c0_0 = arith.constant 0 : index
    %0 = vector.load %arg1[%c0, %c0_0] : memref<8x256xf32, #tpu.memory_space<vmem>>, vector<8x256xf32>
    %c0_1 = arith.constant 0 : index
    %c0_2 = arith.constant 0 : index
    %1 = vector.load %arg2[%c0_1, %c0_2] : memref<1x256xf32, #tpu.memory_space<vmem>>, vector<1x256xf32>
    %2 = vector.broadcast %1 : vector<1x256xf32> to vector<8x256xf32>
    %3 = arith.mulf %0, %2 : vector<8x256xf32>
    %c0_3 = arith.constant 0 : index
    %c0_4 = arith.constant 0 : index
    %4 = vector.load %arg3[%c0_3, %c0_4] : memref<1x256xf32, #tpu.memory_space<vmem>>, vector<1x256xf32>
    %5 = vector.broadcast %4 : vector<1x256xf32> to vector<8x256xf32>
    %6 = arith.addf %3, %5 : vector<8x256xf32>
    %cst = arith.constant 0.000000e+00 : f32
    %7 = vector.broadcast %cst : f32 to vector<8x256xf32>
    %8 = arith.maximumf %6, %7 : vector<8x256xf32>
    %c0_5 = arith.constant 0 : index
    %c0_6 = arith.constant 0 : index
    %9 = vector.load %arg4[%c0_5, %c0_6] : memref<8x256xf32, #tpu.memory_space<vmem>>, vector<8x256xf32>
    tpu.vector_store %arg4[%c0_5, %c0_6], %8 {strides = array<i32>} : memref<8x256xf32, #tpu.memory_space<vmem>>, vector<8x256xf32>,
    return
  }
  func.func @transform_0(%arg0: i32) -> (i32, i32) {
    %c0_i32 = arith.constant 0 : i32
    %c0_i32_0 = arith.constant 0 : i32
    return %arg0, %c0_i32 : i32, i32
  }
  func.func @transform_1(%arg0: i32) -> (i32, i32) {
    %c0_i32 = arith.constant 0 : i32
    %c0_i32_0 = arith.constant 0 : i32
    %c0_i32_1 = arith.constant 0 : i32
    return %c0_i32, %c0_i32_0 : i32, i32
  }
  func.func @transform_2(%arg0: i32) -> (i32, i32) {
    %c0_i32 = arith.constant 0 : i32
    %c0_i32_0 = arith.constant 0 : i32
    %c0_i32_1 = arith.constant 0 : i32
    return %c0_i32, %c0_i32_0 : i32, i32
  }
  func.func @transform_3(%arg0: i32) -> (i32, i32) {
    %c0_i32 = arith.constant 0 : i32
    %c0_i32_0 = arith.constant 0 : i32
    return %arg0, %c0_i32 : i32, i32
  }
}

module attributes {stable_mosaic.version = 11 : i64} {
  func.func @_matmul_kernel(%arg0: i32, %arg1: i32, %arg2: i32, %arg3: memref<8x384xbf16, #tpu.memory_space<vmem>>, %arg4: memref<384x256xbf16, #tpu.memory_space<vmem>>, %arg5: memref<8x256xf32, #tpu.memory_space<vmem>>, %arg6: memref<8x256xf32, #tpu.memory_space<vmem>>) attributes {dimension_semantics = [#tpu.dimension_semantics<parallel>, #tpu.dimension_semantics<parallel>, #tpu.dimension_semantics<arbitrary>], iteration_bounds = array<i64: 1, 1, 6>, scalar_prefetch = 0 : i64, scratch_operands = 1 : i64, tpu.core_type = #tpu.core_type<tc>, window_params = [{transform_indices = @transform_0, window_bounds = array<i64: 8, 384>}, {transform_indices = @transform_1, window_bounds = array<i64: 384, 256>}, {transform_indices = @transform_2, window_bounds = array<i64: 8, 256>}]} {
    %c0_i32 = arith.constant 0 : i32
    %0 = arith.cmpi eq, %arg2, %c0_i32 : i32
    %1 = arith.extui %0 : i1 to i32
    %c0_i32_0 = arith.constant 0 : i32
    %2 = arith.cmpi ne, %1, %c0_i32_0 : i32
    scf.if %2 {
      %cst_9 = arith.constant 0.000000e+00 : f32
      %12 = vector.broadcast %cst_9 : f32 to vector<8x256xf32>
      %c0_10 = arith.constant 0 : index
      %c0_11 = arith.constant 0 : index
      %13 = vector.load %arg6[%c0_10, %c0_11] : memref<8x256xf32, #tpu.memory_space<vmem>>, vector<8x256xf32>
      tpu.vector_store %arg6[%c0_10, %c0_11], %12 {strides = array<i32>} : memref<8x256xf32, #tpu.memory_space<vmem>>, vector<8x256xf32>,
    } else {
    }
    %c0 = arith.constant 0 : index
    %c0_1 = arith.constant 0 : index
    %3 = vector.load %arg6[%c0, %c0_1] : memref<8x256xf32, #tpu.memory_space<vmem>>, vector<8x256xf32>
    %c0_2 = arith.constant 0 : index
    %c0_3 = arith.constant 0 : index
    %4 = vector.load %arg3[%c0_2, %c0_3] : memref<8x384xbf16, #tpu.memory_space<vmem>>, vector<8x384xbf16>
    %c0_4 = arith.constant 0 : index
    %c0_5 = arith.constant 0 : index
    %5 = vector.load %arg4[%c0_4, %c0_5] : memref<384x256xbf16, #tpu.memory_space<vmem>>, vector<384x256xbf16>
    %cst = arith.constant dense<0.000000e+00> : vector<8x256xf32>
    %6 = tpu.matmul %4, %5, %cst {dimension_numbers = #tpu.dot_dimension_numbers<[1], [0], [0], [1], [0, 0, 1, 1], [], []>} : vector<8x384xbf16>, vector<384x256xbf16>, vector<8x256xf32> -> vector<8x256xf32>
    %7 = arith.addf %3, %6 : vector<8x256xf32>
    %c0_6 = arith.constant 0 : index
    %c0_7 = arith.constant 0 : index
    %8 = vector.load %arg6[%c0_6, %c0_7] : memref<8x256xf32, #tpu.memory_space<vmem>>, vector<8x256xf32>
    tpu.vector_store %arg6[%c0_6, %c0_7], %7 {strides = array<i32>} : memref<8x256xf32, #tpu.memory_space<vmem>>, vector<8x256xf32>,
    %c5_i32 = arith.constant 5 : i32
    %9 = arith.cmpi eq, %arg2, %c5_i32 : i32
    %10 = arith.extui %9 : i1 to i32
    %c0_i32_8 = arith.constant 0 : i32
    %11 = arith.cmpi ne, %10, %c0_i32_8 : i32
    scf.if %11 {
      %c0_9 = arith.constant 0 : index
      %c0_10 = arith.constant 0 : index
      %12 = vector.load %arg6[%c0_9, %c0_10] : memref<8x256xf32, #tpu.memory_space<vmem>>, vector<8x256xf32>
      %c0_11 = arith.constant 0 : index
      %c0_12 = arith.constant 0 : index
      %13 = vector.load %arg5[%c0_11, %c0_12] : memref<8x256xf32, #tpu.memory_space<vmem>>, vector<8x256xf32>
      tpu.vector_store %arg5[%c0_11, %c0_12], %12 {strides = array<i32>} : memref<8x256xf32, #tpu.memory_space<vmem>>, vector<8x256xf32>,
    } else {
    }
    return
  }
  func.func @transform_0(%arg0: i32, %arg1: i32, %arg2: i32) -> (i32, i32) {
    %c0_i32 = arith.constant 0 : i32
    return %arg0, %arg2 : i32, i32
  }
  func.func @transform_1(%arg0: i32, %arg1: i32, %arg2: i32) -> (i32, i32) {
    %c0_i32 = arith.constant 0 : i32
    return %arg2, %arg1 : i32, i32
  }
  func.func @transform_2(%arg0: i32, %arg1: i32, %arg2: i32) -> (i32, i32) {
    %c0_i32 = arith.constant 0 : i32
    return %arg0, %arg1 : i32, i32
  }
}

module attributes {stable_mosaic.version = 11 : i64} {
  func.func @_bn_apply_res_kernel(%arg0: i32, %arg1: memref<8x256xf32, #tpu.memory_space<vmem>>, %arg2: memref<1x256xf32, #tpu.memory_space<vmem>>, %arg3: memref<1x256xf32, #tpu.memory_space<vmem>>, %arg4: memref<8x256xf32, #tpu.memory_space<vmem>>, %arg5: memref<8x256xf32, #tpu.memory_space<vmem>>) attributes {dimension_semantics = [#tpu.dimension_semantics<parallel>], iteration_bounds = array<i64: 1>, scalar_prefetch = 0 : i64, scratch_operands = 0 : i64, tpu.core_type = #tpu.core_type<tc>, window_params = [{transform_indices = @transform_0, window_bounds = array<i64: 8, 256>}, {pipeline_mode = #tpu.pipeline_mode<synchronous>, transform_indices = @transform_1, window_bounds = array<i64: 1, 256>}, {pipeline_mode = #tpu.pipeline_mode<synchronous>, transform_indices = @transform_2, window_bounds = array<i64: 1, 256>}, {transform_indices = @transform_3, window_bounds = array<i64: 8, 256>}, {transform_indices = @transform_4, window_bounds = array<i64: 8, 256>}]} {
    %c0 = arith.constant 0 : index
    %c0_0 = arith.constant 0 : index
    %0 = vector.load %arg1[%c0, %c0_0] : memref<8x256xf32, #tpu.memory_space<vmem>>, vector<8x256xf32>
    %c0_1 = arith.constant 0 : index
    %c0_2 = arith.constant 0 : index
    %1 = vector.load %arg2[%c0_1, %c0_2] : memref<1x256xf32, #tpu.memory_space<vmem>>, vector<1x256xf32>
    %2 = vector.broadcast %1 : vector<1x256xf32> to vector<8x256xf32>
    %3 = arith.mulf %0, %2 : vector<8x256xf32>
    %c0_3 = arith.constant 0 : index
    %c0_4 = arith.constant 0 : index
    %4 = vector.load %arg3[%c0_3, %c0_4] : memref<1x256xf32, #tpu.memory_space<vmem>>, vector<1x256xf32>
    %5 = vector.broadcast %4 : vector<1x256xf32> to vector<8x256xf32>
    %6 = arith.addf %3, %5 : vector<8x256xf32>
    %c0_5 = arith.constant 0 : index
    %c0_6 = arith.constant 0 : index
    %7 = vector.load %arg4[%c0_5, %c0_6] : memref<8x256xf32, #tpu.memory_space<vmem>>, vector<8x256xf32>
    %8 = arith.addf %6, %7 : vector<8x256xf32>
    %cst = arith.constant 0.000000e+00 : f32
    %9 = vector.broadcast %cst : f32 to vector<8x256xf32>
    %10 = arith.maximumf %8, %9 : vector<8x256xf32>
    %c0_7 = arith.constant 0 : index
    %c0_8 = arith.constant 0 : index
    %11 = vector.load %arg5[%c0_7, %c0_8] : memref<8x256xf32, #tpu.memory_space<vmem>>, vector<8x256xf32>
    tpu.vector_store %arg5[%c0_7, %c0_8], %10 {strides = array<i32>} : memref<8x256xf32, #tpu.memory_space<vmem>>, vector<8x256xf32>,
    return
  }
  func.func @transform_0(%arg0: i32) -> (i32, i32) {
    %c0_i32 = arith.constant 0 : i32
    %c0_i32_0 = arith.constant 0 : i32
    return %arg0, %c0_i32 : i32, i32
  }
  func.func @transform_1(%arg0: i32) -> (i32, i32) {
    %c0_i32 = arith.constant 0 : i32
    %c0_i32_0 = arith.constant 0 : i32
    %c0_i32_1 = arith.constant 0 : i32
    return %c0_i32, %c0_i32_0 : i32, i32
  }
  func.func @transform_2(%arg0: i32) -> (i32, i32) {
    %c0_i32 = arith.constant 0 : i32
    %c0_i32_0 = arith.constant 0 : i32
    %c0_i32_1 = arith.constant 0 : i32
    return %c0_i32, %c0_i32_0 : i32, i32
  }
  func.func @transform_3(%arg0: i32) -> (i32, i32) {
    %c0_i32 = arith.constant 0 : i32
    %c0_i32_0 = arith.constant 0 : i32
    return %arg0, %c0_i32 : i32, i32
  }
  func.func @transform_4(%arg0: i32) -> (i32, i32) {
    %c0_i32 = arith.constant 0 : i32
    %c0_i32_0 = arith.constant 0 : i32
    return %arg0, %c0_i32 : i32, i32
  }
}

module attributes {stable_mosaic.version = 11 : i64} {
  func.func @_matmul_kernel(%arg0: i32, %arg1: i32, %arg2: i32, %arg3: memref<8x384xbf16, #tpu.memory_space<vmem>>, %arg4: memref<384x256xbf16, #tpu.memory_space<vmem>>, %arg5: memref<8x256xf32, #tpu.memory_space<vmem>>, %arg6: memref<8x256xf32, #tpu.memory_space<vmem>>) attributes {dimension_semantics = [#tpu.dimension_semantics<parallel>, #tpu.dimension_semantics<parallel>, #tpu.dimension_semantics<arbitrary>], iteration_bounds = array<i64: 1, 2, 6>, scalar_prefetch = 0 : i64, scratch_operands = 1 : i64, tpu.core_type = #tpu.core_type<tc>, window_params = [{transform_indices = @transform_0, window_bounds = array<i64: 8, 384>}, {transform_indices = @transform_1, window_bounds = array<i64: 384, 256>}, {transform_indices = @transform_2, window_bounds = array<i64: 8, 256>}]} {
    %c0_i32 = arith.constant 0 : i32
    %0 = arith.cmpi eq, %arg2, %c0_i32 : i32
    %1 = arith.extui %0 : i1 to i32
    %c0_i32_0 = arith.constant 0 : i32
    %2 = arith.cmpi ne, %1, %c0_i32_0 : i32
    scf.if %2 {
      %cst_9 = arith.constant 0.000000e+00 : f32
      %12 = vector.broadcast %cst_9 : f32 to vector<8x256xf32>
      %c0_10 = arith.constant 0 : index
      %c0_11 = arith.constant 0 : index
      %13 = vector.load %arg6[%c0_10, %c0_11] : memref<8x256xf32, #tpu.memory_space<vmem>>, vector<8x256xf32>
      tpu.vector_store %arg6[%c0_10, %c0_11], %12 {strides = array<i32>} : memref<8x256xf32, #tpu.memory_space<vmem>>, vector<8x256xf32>,
    } else {
    }
    %c0 = arith.constant 0 : index
    %c0_1 = arith.constant 0 : index
    %3 = vector.load %arg6[%c0, %c0_1] : memref<8x256xf32, #tpu.memory_space<vmem>>, vector<8x256xf32>
    %c0_2 = arith.constant 0 : index
    %c0_3 = arith.constant 0 : index
    %4 = vector.load %arg3[%c0_2, %c0_3] : memref<8x384xbf16, #tpu.memory_space<vmem>>, vector<8x384xbf16>
    %c0_4 = arith.constant 0 : index
    %c0_5 = arith.constant 0 : index
    %5 = vector.load %arg4[%c0_4, %c0_5] : memref<384x256xbf16, #tpu.memory_space<vmem>>, vector<384x256xbf16>
    %cst = arith.constant dense<0.000000e+00> : vector<8x256xf32>
    %6 = tpu.matmul %4, %5, %cst {dimension_numbers = #tpu.dot_dimension_numbers<[1], [0], [0], [1], [0, 0, 1, 1], [], []>} : vector<8x384xbf16>, vector<384x256xbf16>, vector<8x256xf32> -> vector<8x256xf32>
    %7 = arith.addf %3, %6 : vector<8x256xf32>
    %c0_6 = arith.constant 0 : index
    %c0_7 = arith.constant 0 : index
    %8 = vector.load %arg6[%c0_6, %c0_7] : memref<8x256xf32, #tpu.memory_space<vmem>>, vector<8x256xf32>
    tpu.vector_store %arg6[%c0_6, %c0_7], %7 {strides = array<i32>} : memref<8x256xf32, #tpu.memory_space<vmem>>, vector<8x256xf32>,
    %c5_i32 = arith.constant 5 : i32
    %9 = arith.cmpi eq, %arg2, %c5_i32 : i32
    %10 = arith.extui %9 : i1 to i32
    %c0_i32_8 = arith.constant 0 : i32
    %11 = arith.cmpi ne, %10, %c0_i32_8 : i32
    scf.if %11 {
      %c0_9 = arith.constant 0 : index
      %c0_10 = arith.constant 0 : index
      %12 = vector.load %arg6[%c0_9, %c0_10] : memref<8x256xf32, #tpu.memory_space<vmem>>, vector<8x256xf32>
      %c0_11 = arith.constant 0 : index
      %c0_12 = arith.constant 0 : index
      %13 = vector.load %arg5[%c0_11, %c0_12] : memref<8x256xf32, #tpu.memory_space<vmem>>, vector<8x256xf32>
      tpu.vector_store %arg5[%c0_11, %c0_12], %12 {strides = array<i32>} : memref<8x256xf32, #tpu.memory_space<vmem>>, vector<8x256xf32>,
    } else {
    }
    return
  }
  func.func @transform_0(%arg0: i32, %arg1: i32, %arg2: i32) -> (i32, i32) {
    %c0_i32 = arith.constant 0 : i32
    return %arg0, %arg2 : i32, i32
  }
  func.func @transform_1(%arg0: i32, %arg1: i32, %arg2: i32) -> (i32, i32) {
    %c0_i32 = arith.constant 0 : i32
    return %arg2, %arg1 : i32, i32
  }
  func.func @transform_2(%arg0: i32, %arg1: i32, %arg2: i32) -> (i32, i32) {
    %c0_i32 = arith.constant 0 : i32
    return %arg0, %arg1 : i32, i32
  }
}

module attributes {stable_mosaic.version = 11 : i64} {
  func.func @_matmul_kernel(%arg0: i32, %arg1: i32, %arg2: i32, %arg3: memref<8x256xbf16, #tpu.memory_space<vmem>>, %arg4: memref<256x256xbf16, #tpu.memory_space<vmem>>, %arg5: memref<8x256xf32, #tpu.memory_space<vmem>>, %arg6: memref<8x256xf32, #tpu.memory_space<vmem>>) attributes {dimension_semantics = [#tpu.dimension_semantics<parallel>, #tpu.dimension_semantics<parallel>, #tpu.dimension_semantics<arbitrary>], iteration_bounds = array<i64: 1, 2, 1>, scalar_prefetch = 0 : i64, scratch_operands = 1 : i64, tpu.core_type = #tpu.core_type<tc>, window_params = [{transform_indices = @transform_0, window_bounds = array<i64: 8, 256>}, {transform_indices = @transform_1, window_bounds = array<i64: 256, 256>}, {transform_indices = @transform_2, window_bounds = array<i64: 8, 256>}]} {
    %c0_i32 = arith.constant 0 : i32
    %0 = arith.cmpi eq, %arg2, %c0_i32 : i32
    %1 = arith.extui %0 : i1 to i32
    %c0_i32_0 = arith.constant 0 : i32
    %2 = arith.cmpi ne, %1, %c0_i32_0 : i32
    scf.if %2 {
      %cst_10 = arith.constant 0.000000e+00 : f32
      %12 = vector.broadcast %cst_10 : f32 to vector<8x256xf32>
      %c0_11 = arith.constant 0 : index
      %c0_12 = arith.constant 0 : index
      %13 = vector.load %arg6[%c0_11, %c0_12] : memref<8x256xf32, #tpu.memory_space<vmem>>, vector<8x256xf32>
      tpu.vector_store %arg6[%c0_11, %c0_12], %12 {strides = array<i32>} : memref<8x256xf32, #tpu.memory_space<vmem>>, vector<8x256xf32>,
    } else {
    }
    %c0 = arith.constant 0 : index
    %c0_1 = arith.constant 0 : index
    %3 = vector.load %arg6[%c0, %c0_1] : memref<8x256xf32, #tpu.memory_space<vmem>>, vector<8x256xf32>
    %c0_2 = arith.constant 0 : index
    %c0_3 = arith.constant 0 : index
    %4 = vector.load %arg3[%c0_2, %c0_3] : memref<8x256xbf16, #tpu.memory_space<vmem>>, vector<8x256xbf16>
    %c0_4 = arith.constant 0 : index
    %c0_5 = arith.constant 0 : index
    %5 = vector.load %arg4[%c0_4, %c0_5] : memref<256x256xbf16, #tpu.memory_space<vmem>>, vector<256x256xbf16>
    %cst = arith.constant dense<0.000000e+00> : vector<8x256xf32>
    %6 = tpu.matmul %4, %5, %cst {dimension_numbers = #tpu.dot_dimension_numbers<[1], [0], [0], [1], [0, 0, 1, 1], [], []>} : vector<8x256xbf16>, vector<256x256xbf16>, vector<8x256xf32> -> vector<8x256xf32>
    %7 = arith.addf %3, %6 : vector<8x256xf32>
    %c0_6 = arith.constant 0 : index
    %c0_7 = arith.constant 0 : index
    %8 = vector.load %arg6[%c0_6, %c0_7] : memref<8x256xf32, #tpu.memory_space<vmem>>, vector<8x256xf32>
    tpu.vector_store %arg6[%c0_6, %c0_7], %7 {strides = array<i32>} : memref<8x256xf32, #tpu.memory_space<vmem>>, vector<8x256xf32>,
    %c0_i32_8 = arith.constant 0 : i32
    %9 = arith.cmpi eq, %arg2, %c0_i32_8 : i32
    %10 = arith.extui %9 : i1 to i32
    %c0_i32_9 = arith.constant 0 : i32
    %11 = arith.cmpi ne, %10, %c0_i32_9 : i32
    scf.if %11 {
      %c0_10 = arith.constant 0 : index
      %c0_11 = arith.constant 0 : index
      %12 = vector.load %arg6[%c0_10, %c0_11] : memref<8x256xf32, #tpu.memory_space<vmem>>, vector<8x256xf32>
      %c0_12 = arith.constant 0 : index
      %c0_13 = arith.constant 0 : index
      %13 = vector.load %arg5[%c0_12, %c0_13] : memref<8x256xf32, #tpu.memory_space<vmem>>, vector<8x256xf32>
      tpu.vector_store %arg5[%c0_12, %c0_13], %12 {strides = array<i32>} : memref<8x256xf32, #tpu.memory_space<vmem>>, vector<8x256xf32>,
    } else {
    }
    return
  }
  func.func @transform_0(%arg0: i32, %arg1: i32, %arg2: i32) -> (i32, i32) {
    %c0_i32 = arith.constant 0 : i32
    return %arg0, %arg2 : i32, i32
  }
  func.func @transform_1(%arg0: i32, %arg1: i32, %arg2: i32) -> (i32, i32) {
    %c0_i32 = arith.constant 0 : i32
    return %arg2, %arg1 : i32, i32
  }
  func.func @transform_2(%arg0: i32, %arg1: i32, %arg2: i32) -> (i32, i32) {
    %c0_i32 = arith.constant 0 : i32
    return %arg0, %arg1 : i32, i32
  }
}

module attributes {stable_mosaic.version = 11 : i64} {
  func.func @_bn_stats_kernel(%arg0: i32, %arg1: memref<8x512xf32, #tpu.memory_space<vmem>>, %arg2: memref<2x512xf32, #tpu.memory_space<vmem>>) attributes {dimension_semantics = [#tpu.dimension_semantics<arbitrary>], iteration_bounds = array<i64: 1>, scalar_prefetch = 0 : i64, scratch_operands = 0 : i64, tpu.core_type = #tpu.core_type<tc>, window_params = [{transform_indices = @transform_0, window_bounds = array<i64: 8, 512>}, {pipeline_mode = #tpu.pipeline_mode<synchronous>, transform_indices = @transform_1, window_bounds = array<i64: 2, 512>}]} {
    %c0_i32 = arith.constant 0 : i32
    %0 = arith.cmpi eq, %arg0, %c0_i32 : i32
    %1 = arith.extui %0 : i1 to i32
    %c0_i32_0 = arith.constant 0 : i32
    %2 = arith.cmpi ne, %1, %c0_i32_0 : i32
    scf.if %2 {
      %cst_7 = arith.constant 0.000000e+00 : f32
      %13 = vector.broadcast %cst_7 : f32 to vector<2x512xf32>
      %c0_8 = arith.constant 0 : index
      %c0_9 = arith.constant 0 : index
      %14 = vector.load %arg2[%c0_8, %c0_9] : memref<2x512xf32, #tpu.memory_space<vmem>>, vector<2x512xf32>
      tpu.vector_store %arg2[%c0_8, %c0_9], %13 {strides = array<i32>} : memref<2x512xf32, #tpu.memory_space<vmem>>, vector<2x512xf32>,
    } else {
    }
    %c0 = arith.constant 0 : index
    %c0_1 = arith.constant 0 : index
    %3 = vector.load %arg1[%c0, %c0_1] : memref<8x512xf32, #tpu.memory_space<vmem>>, vector<8x512xf32>
    %cst = arith.constant dense<0.000000e+00> : vector<512xf32>
    %4 = vector.multi_reduction <add>, %3, %cst [0] : vector<8x512xf32> to vector<512xf32>
    %5 = vector.shape_cast %4 : vector<512xf32> to vector<1x512xf32>
    %6 = arith.mulf %3, %3 : vector<8x512xf32>
    %cst_2 = arith.constant dense<0.000000e+00> : vector<512xf32>
    %7 = vector.multi_reduction <add>, %6, %cst_2 [0] : vector<8x512xf32> to vector<512xf32>
    %8 = vector.shape_cast %7 : vector<512xf32> to vector<1x512xf32>
    %c0_3 = arith.constant 0 : index
    %c0_4 = arith.constant 0 : index
    %9 = vector.load %arg2[%c0_3, %c0_4] : memref<2x512xf32, #tpu.memory_space<vmem>>, vector<2x512xf32>
    %10 = tpu.concatenate %5, %8 in 0 : vector<1x512xf32>, vector<1x512xf32> -> vector<2x512xf32>
    %11 = arith.addf %9, %10 : vector<2x512xf32>
    %c0_5 = arith.constant 0 : index
    %c0_6 = arith.constant 0 : index
    %12 = vector.load %arg2[%c0_5, %c0_6] : memref<2x512xf32, #tpu.memory_space<vmem>>, vector<2x512xf32>
    tpu.vector_store %arg2[%c0_5, %c0_6], %11 {strides = array<i32>} : memref<2x512xf32, #tpu.memory_space<vmem>>, vector<2x512xf32>,
    return
  }
  func.func @transform_0(%arg0: i32) -> (i32, i32) {
    %c0_i32 = arith.constant 0 : i32
    %c0_i32_0 = arith.constant 0 : i32
    return %arg0, %c0_i32 : i32, i32
  }
  func.func @transform_1(%arg0: i32) -> (i32, i32) {
    %c0_i32 = arith.constant 0 : i32
    %c0_i32_0 = arith.constant 0 : i32
    %c0_i32_1 = arith.constant 0 : i32
    return %c0_i32, %c0_i32_0 : i32, i32
  }
}

module attributes {stable_mosaic.version = 11 : i64} {
  func.func @_bn_apply_kernel(%arg0: i32, %arg1: memref<8x512xf32, #tpu.memory_space<vmem>>, %arg2: memref<1x512xf32, #tpu.memory_space<vmem>>, %arg3: memref<1x512xf32, #tpu.memory_space<vmem>>, %arg4: memref<8x512xf32, #tpu.memory_space<vmem>>) attributes {dimension_semantics = [#tpu.dimension_semantics<parallel>], iteration_bounds = array<i64: 1>, scalar_prefetch = 0 : i64, scratch_operands = 0 : i64, tpu.core_type = #tpu.core_type<tc>, window_params = [{transform_indices = @transform_0, window_bounds = array<i64: 8, 512>}, {pipeline_mode = #tpu.pipeline_mode<synchronous>, transform_indices = @transform_1, window_bounds = array<i64: 1, 512>}, {pipeline_mode = #tpu.pipeline_mode<synchronous>, transform_indices = @transform_2, window_bounds = array<i64: 1, 512>}, {transform_indices = @transform_3, window_bounds = array<i64: 8, 512>}]} {
    %c0 = arith.constant 0 : index
    %c0_0 = arith.constant 0 : index
    %0 = vector.load %arg1[%c0, %c0_0] : memref<8x512xf32, #tpu.memory_space<vmem>>, vector<8x512xf32>
    %c0_1 = arith.constant 0 : index
    %c0_2 = arith.constant 0 : index
    %1 = vector.load %arg2[%c0_1, %c0_2] : memref<1x512xf32, #tpu.memory_space<vmem>>, vector<1x512xf32>
    %2 = vector.broadcast %1 : vector<1x512xf32> to vector<8x512xf32>
    %3 = arith.mulf %0, %2 : vector<8x512xf32>
    %c0_3 = arith.constant 0 : index
    %c0_4 = arith.constant 0 : index
    %4 = vector.load %arg3[%c0_3, %c0_4] : memref<1x512xf32, #tpu.memory_space<vmem>>, vector<1x512xf32>
    %5 = vector.broadcast %4 : vector<1x512xf32> to vector<8x512xf32>
    %6 = arith.addf %3, %5 : vector<8x512xf32>
    %cst = arith.constant 0.000000e+00 : f32
    %7 = vector.broadcast %cst : f32 to vector<8x512xf32>
    %8 = arith.maximumf %6, %7 : vector<8x512xf32>
    %c0_5 = arith.constant 0 : index
    %c0_6 = arith.constant 0 : index
    %9 = vector.load %arg4[%c0_5, %c0_6] : memref<8x512xf32, #tpu.memory_space<vmem>>, vector<8x512xf32>
    tpu.vector_store %arg4[%c0_5, %c0_6], %8 {strides = array<i32>} : memref<8x512xf32, #tpu.memory_space<vmem>>, vector<8x512xf32>,
    return
  }
  func.func @transform_0(%arg0: i32) -> (i32, i32) {
    %c0_i32 = arith.constant 0 : i32
    %c0_i32_0 = arith.constant 0 : i32
    return %arg0, %c0_i32 : i32, i32
  }
  func.func @transform_1(%arg0: i32) -> (i32, i32) {
    %c0_i32 = arith.constant 0 : i32
    %c0_i32_0 = arith.constant 0 : i32
    %c0_i32_1 = arith.constant 0 : i32
    return %c0_i32, %c0_i32_0 : i32, i32
  }
  func.func @transform_2(%arg0: i32) -> (i32, i32) {
    %c0_i32 = arith.constant 0 : i32
    %c0_i32_0 = arith.constant 0 : i32
    %c0_i32_1 = arith.constant 0 : i32
    return %c0_i32, %c0_i32_0 : i32, i32
  }
  func.func @transform_3(%arg0: i32) -> (i32, i32) {
    %c0_i32 = arith.constant 0 : i32
    %c0_i32_0 = arith.constant 0 : i32
    return %arg0, %c0_i32 : i32, i32
  }
}

module attributes {stable_mosaic.version = 11 : i64} {
  func.func @_matmul_kernel(%arg0: i32, %arg1: i32, %arg2: i32, %arg3: memref<8x512xbf16, #tpu.memory_space<vmem>>, %arg4: memref<512x256xbf16, #tpu.memory_space<vmem>>, %arg5: memref<8x256xf32, #tpu.memory_space<vmem>>, %arg6: memref<8x256xf32, #tpu.memory_space<vmem>>) attributes {dimension_semantics = [#tpu.dimension_semantics<parallel>, #tpu.dimension_semantics<parallel>, #tpu.dimension_semantics<arbitrary>], iteration_bounds = array<i64: 1, 2, 9>, scalar_prefetch = 0 : i64, scratch_operands = 1 : i64, tpu.core_type = #tpu.core_type<tc>, window_params = [{transform_indices = @transform_0, window_bounds = array<i64: 8, 512>}, {transform_indices = @transform_1, window_bounds = array<i64: 512, 256>}, {transform_indices = @transform_2, window_bounds = array<i64: 8, 256>}]} {
    %c0_i32 = arith.constant 0 : i32
    %0 = arith.cmpi eq, %arg2, %c0_i32 : i32
    %1 = arith.extui %0 : i1 to i32
    %c0_i32_0 = arith.constant 0 : i32
    %2 = arith.cmpi ne, %1, %c0_i32_0 : i32
    scf.if %2 {
      %cst_9 = arith.constant 0.000000e+00 : f32
      %12 = vector.broadcast %cst_9 : f32 to vector<8x256xf32>
      %c0_10 = arith.constant 0 : index
      %c0_11 = arith.constant 0 : index
      %13 = vector.load %arg6[%c0_10, %c0_11] : memref<8x256xf32, #tpu.memory_space<vmem>>, vector<8x256xf32>
      tpu.vector_store %arg6[%c0_10, %c0_11], %12 {strides = array<i32>} : memref<8x256xf32, #tpu.memory_space<vmem>>, vector<8x256xf32>,
    } else {
    }
    %c0 = arith.constant 0 : index
    %c0_1 = arith.constant 0 : index
    %3 = vector.load %arg6[%c0, %c0_1] : memref<8x256xf32, #tpu.memory_space<vmem>>, vector<8x256xf32>
    %c0_2 = arith.constant 0 : index
    %c0_3 = arith.constant 0 : index
    %4 = vector.load %arg3[%c0_2, %c0_3] : memref<8x512xbf16, #tpu.memory_space<vmem>>, vector<8x512xbf16>
    %c0_4 = arith.constant 0 : index
    %c0_5 = arith.constant 0 : index
    %5 = vector.load %arg4[%c0_4, %c0_5] : memref<512x256xbf16, #tpu.memory_space<vmem>>, vector<512x256xbf16>
    %cst = arith.constant dense<0.000000e+00> : vector<8x256xf32>
    %6 = tpu.matmul %4, %5, %cst {dimension_numbers = #tpu.dot_dimension_numbers<[1], [0], [0], [1], [0, 0, 1, 1], [], []>} : vector<8x512xbf16>, vector<512x256xbf16>, vector<8x256xf32> -> vector<8x256xf32>
    %7 = arith.addf %3, %6 : vector<8x256xf32>
    %c0_6 = arith.constant 0 : index
    %c0_7 = arith.constant 0 : index
    %8 = vector.load %arg6[%c0_6, %c0_7] : memref<8x256xf32, #tpu.memory_space<vmem>>, vector<8x256xf32>
    tpu.vector_store %arg6[%c0_6, %c0_7], %7 {strides = array<i32>} : memref<8x256xf32, #tpu.memory_space<vmem>>, vector<8x256xf32>,
    %c8_i32 = arith.constant 8 : i32
    %9 = arith.cmpi eq, %arg2, %c8_i32 : i32
    %10 = arith.extui %9 : i1 to i32
    %c0_i32_8 = arith.constant 0 : i32
    %11 = arith.cmpi ne, %10, %c0_i32_8 : i32
    scf.if %11 {
      %c0_9 = arith.constant 0 : index
      %c0_10 = arith.constant 0 : index
      %12 = vector.load %arg6[%c0_9, %c0_10] : memref<8x256xf32, #tpu.memory_space<vmem>>, vector<8x256xf32>
      %c0_11 = arith.constant 0 : index
      %c0_12 = arith.constant 0 : index
      %13 = vector.load %arg5[%c0_11, %c0_12] : memref<8x256xf32, #tpu.memory_space<vmem>>, vector<8x256xf32>
      tpu.vector_store %arg5[%c0_11, %c0_12], %12 {strides = array<i32>} : memref<8x256xf32, #tpu.memory_space<vmem>>, vector<8x256xf32>,
    } else {
    }
    return
  }
  func.func @transform_0(%arg0: i32, %arg1: i32, %arg2: i32) -> (i32, i32) {
    %c0_i32 = arith.constant 0 : i32
    return %arg0, %arg2 : i32, i32
  }
  func.func @transform_1(%arg0: i32, %arg1: i32, %arg2: i32) -> (i32, i32) {
    %c0_i32 = arith.constant 0 : i32
    return %arg2, %arg1 : i32, i32
  }
  func.func @transform_2(%arg0: i32, %arg1: i32, %arg2: i32) -> (i32, i32) {
    %c0_i32 = arith.constant 0 : i32
    return %arg0, %arg1 : i32, i32
  }
}

module attributes {stable_mosaic.version = 11 : i64} {
  func.func @_bn_apply_kernel(%arg0: i32, %arg1: memref<8x512xf32, #tpu.memory_space<vmem>>, %arg2: memref<1x512xf32, #tpu.memory_space<vmem>>, %arg3: memref<1x512xf32, #tpu.memory_space<vmem>>, %arg4: memref<8x512xf32, #tpu.memory_space<vmem>>) attributes {dimension_semantics = [#tpu.dimension_semantics<parallel>], iteration_bounds = array<i64: 1>, scalar_prefetch = 0 : i64, scratch_operands = 0 : i64, tpu.core_type = #tpu.core_type<tc>, window_params = [{transform_indices = @transform_0, window_bounds = array<i64: 8, 512>}, {pipeline_mode = #tpu.pipeline_mode<synchronous>, transform_indices = @transform_1, window_bounds = array<i64: 1, 512>}, {pipeline_mode = #tpu.pipeline_mode<synchronous>, transform_indices = @transform_2, window_bounds = array<i64: 1, 512>}, {transform_indices = @transform_3, window_bounds = array<i64: 8, 512>}]} {
    %c0 = arith.constant 0 : index
    %c0_0 = arith.constant 0 : index
    %0 = vector.load %arg1[%c0, %c0_0] : memref<8x512xf32, #tpu.memory_space<vmem>>, vector<8x512xf32>
    %c0_1 = arith.constant 0 : index
    %c0_2 = arith.constant 0 : index
    %1 = vector.load %arg2[%c0_1, %c0_2] : memref<1x512xf32, #tpu.memory_space<vmem>>, vector<1x512xf32>
    %2 = vector.broadcast %1 : vector<1x512xf32> to vector<8x512xf32>
    %3 = arith.mulf %0, %2 : vector<8x512xf32>
    %c0_3 = arith.constant 0 : index
    %c0_4 = arith.constant 0 : index
    %4 = vector.load %arg3[%c0_3, %c0_4] : memref<1x512xf32, #tpu.memory_space<vmem>>, vector<1x512xf32>
    %5 = vector.broadcast %4 : vector<1x512xf32> to vector<8x512xf32>
    %6 = arith.addf %3, %5 : vector<8x512xf32>
    %c0_5 = arith.constant 0 : index
    %c0_6 = arith.constant 0 : index
    %7 = vector.load %arg4[%c0_5, %c0_6] : memref<8x512xf32, #tpu.memory_space<vmem>>, vector<8x512xf32>
    tpu.vector_store %arg4[%c0_5, %c0_6], %6 {strides = array<i32>} : memref<8x512xf32, #tpu.memory_space<vmem>>, vector<8x512xf32>,
    return
  }
  func.func @transform_0(%arg0: i32) -> (i32, i32) {
    %c0_i32 = arith.constant 0 : i32
    %c0_i32_0 = arith.constant 0 : i32
    return %arg0, %c0_i32 : i32, i32
  }
  func.func @transform_1(%arg0: i32) -> (i32, i32) {
    %c0_i32 = arith.constant 0 : i32
    %c0_i32_0 = arith.constant 0 : i32
    %c0_i32_1 = arith.constant 0 : i32
    return %c0_i32, %c0_i32_0 : i32, i32
  }
  func.func @transform_2(%arg0: i32) -> (i32, i32) {
    %c0_i32 = arith.constant 0 : i32
    %c0_i32_0 = arith.constant 0 : i32
    %c0_i32_1 = arith.constant 0 : i32
    return %c0_i32, %c0_i32_0 : i32, i32
  }
  func.func @transform_3(%arg0: i32) -> (i32, i32) {
    %c0_i32 = arith.constant 0 : i32
    %c0_i32_0 = arith.constant 0 : i32
    return %arg0, %c0_i32 : i32, i32
  }
}

module attributes {stable_mosaic.version = 11 : i64} {
  func.func @_bn_apply_res_kernel(%arg0: i32, %arg1: memref<8x512xf32, #tpu.memory_space<vmem>>, %arg2: memref<1x512xf32, #tpu.memory_space<vmem>>, %arg3: memref<1x512xf32, #tpu.memory_space<vmem>>, %arg4: memref<8x512xf32, #tpu.memory_space<vmem>>, %arg5: memref<8x512xf32, #tpu.memory_space<vmem>>) attributes {dimension_semantics = [#tpu.dimension_semantics<parallel>], iteration_bounds = array<i64: 1>, scalar_prefetch = 0 : i64, scratch_operands = 0 : i64, tpu.core_type = #tpu.core_type<tc>, window_params = [{transform_indices = @transform_0, window_bounds = array<i64: 8, 512>}, {pipeline_mode = #tpu.pipeline_mode<synchronous>, transform_indices = @transform_1, window_bounds = array<i64: 1, 512>}, {pipeline_mode = #tpu.pipeline_mode<synchronous>, transform_indices = @transform_2, window_bounds = array<i64: 1, 512>}, {transform_indices = @transform_3, window_bounds = array<i64: 8, 512>}, {transform_indices = @transform_4, window_bounds = array<i64: 8, 512>}]} {
    %c0 = arith.constant 0 : index
    %c0_0 = arith.constant 0 : index
    %0 = vector.load %arg1[%c0, %c0_0] : memref<8x512xf32, #tpu.memory_space<vmem>>, vector<8x512xf32>
    %c0_1 = arith.constant 0 : index
    %c0_2 = arith.constant 0 : index
    %1 = vector.load %arg2[%c0_1, %c0_2] : memref<1x512xf32, #tpu.memory_space<vmem>>, vector<1x512xf32>
    %2 = vector.broadcast %1 : vector<1x512xf32> to vector<8x512xf32>
    %3 = arith.mulf %0, %2 : vector<8x512xf32>
    %c0_3 = arith.constant 0 : index
    %c0_4 = arith.constant 0 : index
    %4 = vector.load %arg3[%c0_3, %c0_4] : memref<1x512xf32, #tpu.memory_space<vmem>>, vector<1x512xf32>
    %5 = vector.broadcast %4 : vector<1x512xf32> to vector<8x512xf32>
    %6 = arith.addf %3, %5 : vector<8x512xf32>
    %c0_5 = arith.constant 0 : index
    %c0_6 = arith.constant 0 : index
    %7 = vector.load %arg4[%c0_5, %c0_6] : memref<8x512xf32, #tpu.memory_space<vmem>>, vector<8x512xf32>
    %8 = arith.addf %6, %7 : vector<8x512xf32>
    %cst = arith.constant 0.000000e+00 : f32
    %9 = vector.broadcast %cst : f32 to vector<8x512xf32>
    %10 = arith.maximumf %8, %9 : vector<8x512xf32>
    %c0_7 = arith.constant 0 : index
    %c0_8 = arith.constant 0 : index
    %11 = vector.load %arg5[%c0_7, %c0_8] : memref<8x512xf32, #tpu.memory_space<vmem>>, vector<8x512xf32>
    tpu.vector_store %arg5[%c0_7, %c0_8], %10 {strides = array<i32>} : memref<8x512xf32, #tpu.memory_space<vmem>>, vector<8x512xf32>,
    return
  }
  func.func @transform_0(%arg0: i32) -> (i32, i32) {
    %c0_i32 = arith.constant 0 : i32
    %c0_i32_0 = arith.constant 0 : i32
    return %arg0, %c0_i32 : i32, i32
  }
  func.func @transform_1(%arg0: i32) -> (i32, i32) {
    %c0_i32 = arith.constant 0 : i32
    %c0_i32_0 = arith.constant 0 : i32
    %c0_i32_1 = arith.constant 0 : i32
    return %c0_i32, %c0_i32_0 : i32, i32
  }
  func.func @transform_2(%arg0: i32) -> (i32, i32) {
    %c0_i32 = arith.constant 0 : i32
    %c0_i32_0 = arith.constant 0 : i32
    %c0_i32_1 = arith.constant 0 : i32
    return %c0_i32, %c0_i32_0 : i32, i32
  }
  func.func @transform_3(%arg0: i32) -> (i32, i32) {
    %c0_i32 = arith.constant 0 : i32
    %c0_i32_0 = arith.constant 0 : i32
    return %arg0, %c0_i32 : i32, i32
  }
  func.func @transform_4(%arg0: i32) -> (i32, i32) {
    %c0_i32 = arith.constant 0 : i32
    %c0_i32_0 = arith.constant 0 : i32
    return %arg0, %c0_i32 : i32, i32
  }
}

module attributes {stable_mosaic.version = 11 : i64} {
  func.func @_mean_reduce_kernel(%arg0: memref<2x1x512xf32, #tpu.memory_space<vmem>>, %arg1: memref<2x512xf32, #tpu.memory_space<vmem>>) attributes {dimension_semantics = [], scalar_prefetch = 0 : i64, scratch_operands = 0 : i64, tpu.core_type = #tpu.core_type<tc>} {
    %c0 = arith.constant 0 : index
    %c0_0 = arith.constant 0 : index
    %c0_1 = arith.constant 0 : index
    %0 = vector.load %arg0[%c0, %c0_0, %c0_1] : memref<2x1x512xf32, #tpu.memory_space<vmem>>, vector<2x1x512xf32>
    %cst = arith.constant dense<0.000000e+00> : vector<2x512xf32>
    %1 = vector.multi_reduction <add>, %0, %cst [1] : vector<2x1x512xf32> to vector<2x512xf32>
    %cst_2 = arith.constant 1.000000e+00 : f32
    %2 = vector.broadcast %cst_2 : f32 to vector<2x512xf32>
    %3 = arith.divf %1, %2 : vector<2x512xf32>
    %c0_3 = arith.constant 0 : index
    %c0_4 = arith.constant 0 : index
    %4 = vector.load %arg1[%c0_3, %c0_4] : memref<2x512xf32, #tpu.memory_space<vmem>>, vector<2x512xf32>
    tpu.vector_store %arg1[%c0_3, %c0_4], %3 {strides = array<i32>} : memref<2x512xf32, #tpu.memory_space<vmem>>, vector<2x512xf32>,
    return
  }
}

module attributes {stable_mosaic.version = 11 : i64} {
  func.func @_mlp_head_kernel(%arg0: memref<8x512xbf16, #tpu.memory_space<vmem>>, %arg1: memref<512x512xbf16, #tpu.memory_space<vmem>>, %arg2: memref<1x512xf32, #tpu.memory_space<vmem>>, %arg3: memref<512x128xbf16, #tpu.memory_space<vmem>>, %arg4: memref<1x128xf32, #tpu.memory_space<vmem>>, %arg5: memref<8x128xf32, #tpu.memory_space<vmem>>) attributes {dimension_semantics = [], scalar_prefetch = 0 : i64, scratch_operands = 0 : i64, tpu.core_type = #tpu.core_type<tc>} {
    %c0 = arith.constant 0 : index
    %c0_0 = arith.constant 0 : index
    %0 = vector.load %arg0[%c0, %c0_0] : memref<8x512xbf16, #tpu.memory_space<vmem>>, vector<8x512xbf16>
    %c0_1 = arith.constant 0 : index
    %c0_2 = arith.constant 0 : index
    %1 = vector.load %arg1[%c0_1, %c0_2] : memref<512x512xbf16, #tpu.memory_space<vmem>>, vector<512x512xbf16>
    %cst = arith.constant dense<0.000000e+00> : vector<8x512xf32>
    %2 = tpu.matmul %0, %1, %cst {dimension_numbers = #tpu.dot_dimension_numbers<[1], [0], [0], [1], [0, 0, 1, 1], [], []>} : vector<8x512xbf16>, vector<512x512xbf16>, vector<8x512xf32> -> vector<8x512xf32>
    %c0_3 = arith.constant 0 : index
    %c0_4 = arith.constant 0 : index
    %3 = vector.load %arg2[%c0_3, %c0_4] : memref<1x512xf32, #tpu.memory_space<vmem>>, vector<1x512xf32>
    %4 = vector.broadcast %3 : vector<1x512xf32> to vector<8x512xf32>
    %5 = arith.addf %2, %4 : vector<8x512xf32>
    %cst_5 = arith.constant 0.000000e+00 : f32
    %6 = vector.broadcast %cst_5 : f32 to vector<8x512xf32>
    %7 = arith.maximumf %5, %6 : vector<8x512xf32>
    %8 = arith.truncf %7 : vector<8x512xf32> to vector<8x512xbf16>
    %c0_6 = arith.constant 0 : index
    %c0_7 = arith.constant 0 : index
    %9 = vector.load %arg3[%c0_6, %c0_7] : memref<512x128xbf16, #tpu.memory_space<vmem>>, vector<512x128xbf16>
    %cst_8 = arith.constant dense<0.000000e+00> : vector<8x128xf32>
    %10 = tpu.matmul %8, %9, %cst_8 {dimension_numbers = #tpu.dot_dimension_numbers<[1], [0], [0], [1], [0, 0, 1, 1], [], []>} : vector<8x512xbf16>, vector<512x128xbf16>, vector<8x128xf32> -> vector<8x128xf32>
    %c0_9 = arith.constant 0 : index
    %c0_10 = arith.constant 0 : index
    %11 = vector.load %arg4[%c0_9, %c0_10] : memref<1x128xf32, #tpu.memory_space<vmem>>, vector<1x128xf32>
    %12 = vector.broadcast %11 : vector<1x128xf32> to vector<8x128xf32>
    %13 = arith.addf %10, %12 : vector<8x128xf32>
    %c0_11 = arith.constant 0 : index
    %c0_12 = arith.constant 0 : index
    %14 = vector.load %arg5[%c0_11, %c0_12] : memref<8x128xf32, #tpu.memory_space<vmem>>, vector<8x128xf32>
    tpu.vector_store %arg5[%c0_11, %c0_12], %13 {strides = array<i32>} : memref<8x128xf32, #tpu.memory_space<vmem>>, vector<8x128xf32>,
    return
  }
}

</mosaic_0001>

<bundles_post_ra>
// kernel: resnet_simclr_forward.65
= control target key start
LH: loop header
LB: loop body
LE: loop exit
PB: predicated region body
PF: predicated region fallthrough
CT: control target
= control target key end

     0   :  { %vm284_vm0 = vcmask 523264   ;;  %s961_s0 = inlined_call_operand.vmem [shape: f32[512,64], index: 0, kind: input, shape index: {}]   ;;  %s962_s1 = inlined_call_operand.vmem [shape: f32[1,64], index: 1, kind: input, shape index: {}]   ;;  %s963_s2 = inlined_call_operand.vmem [shape: f32[1,64], index: 2, kind: input, shape index: {}]   ;;  %s964_s3 = inlined_call_operand.vmem [shape: f32[512,64], index: 3, kind: output, shape index: {}]  }
   0x1   :  { %v14_v0 = vld [vmem:[%s961_s0] sm:$0xff]  ;;  %v15_v4 = vld [vmem:[%s961_s0 + $0x8] sm:$0xff]  ;;  %v16_v5 = vld [vmem:[%s961_s0 + $0x10] sm:$0xff] }
   0x2   :  { %v381_v1 = vld [vmem:[%s962_s1] ss:$0 sm:$0xff]  ;;  %v17_v6 = vld [vmem:[%s961_s0 + $0x18] sm:$0xff]  ;;  %v19_v11 = vld [vmem:[%s961_s0 + $0x28] sm:$0xff] }
   0x3   :  { %v386_v2 = vld [vmem:[%s963_s2] ss:$0 sm:$0xff]  ;;  %v85_v3 = vmul.f32 %v381_v1, %v14_v0  ;;  %v86_v7 = vmul.f32 %v381_v1, %v15_v4  ;;  %v87_v8 = vmul.f32 %v381_v1, %v16_v5  ;;  %v88_v9 = vmul.f32 %v381_v1, %v17_v6  ;;  %v20_v12 = vld [vmem:[%s961_s0 + $0x30] sm:$0xff]  ;;  %v21_v17 = vld [vmem:[%s961_s0 + $0x38] sm:$0xff] }
   0x4   :  { %v18_v10 = vld [vmem:[%s961_s0 + $0x20] sm:$0xff]  ;;  %v90_v15 = vmul.f32 %v381_v1, %v19_v11  ;;  %v91_v16 = vmul.f32 %v381_v1, %v20_v12  ;;  %v92_v21 = vmul.f32 %v381_v1, %v21_v17  ;;  %v23_v27 = vld [vmem:[%s961_s0 + $0x48] sm:$0xff]  ;;  %v24_v28 = vld [vmem:[%s961_s0 + $0x50] sm:$0xff] }
   0x5   :  { %v156_v13 = vadd.f32 %v386_v2, %v85_v3  ;;  %v89_v14 = vmul.f32 %v381_v1, %v18_v10  ;;  %v157_v18 = vadd.f32 %v386_v2, %v86_v7  ;;  %v158_v19 = vadd.f32 %v386_v2, %v87_v8  ;;  %v22_v22 = vld [vmem:[%s961_s0 + $0x40] sm:$0xff]  ;;  %v25_v29 = vld [vmem:[%s961_s0 + $0x58] sm:$0xff]  ;;  %v27_v35 = vld [vmem:[%s961_s0 + $0x68] sm:$0xff] }
   0x6   :  { %v159_v20 = vadd.f32 %v386_v2, %v88_v9  ;;  %v161_v25 = vadd.f32 %v386_v2, %v90_v15  ;;  %v162_v26 = vadd.f32 %v386_v2, %v91_v16  ;;  %v163_v33 = vadd.f32 %v386_v2, %v92_v21  ;;  %v26_v34 = vld [vmem:[%s961_s0 + $0x60] sm:$0xff]  ;;  %v28_v36 = vld [vmem:[%s961_s0 + $0x70] sm:$0xff]  ;;  %v29_v41 = vld [vmem:[%s961_s0 + $0x78] sm:$0xff] }
   0x7   :  { %v220_v23 = vmax.f32 %v156_v13, 0.0  ;;  %v160_v24 = vadd.f32 %v386_v2, %v89_v14  ;;  %v221_v30 = vmax.f32 %v157_v18, 0.0  ;;  %v222_v31 = vmax.f32 %v158_v19, 0.0  ;;  %v30_v54 = vld [vmem:[%s961_s0 + $0x80] sm:$0xff]  ;;  %v31_v59 = vld [vmem:[%s961_s0 + $0x88] sm:$0xff]  ;;  %v32_v60 = vld [vmem:[%s961_s0 + $0x90] sm:$0xff] }
   0x8   :  { %v223_v32 = vmax.f32 %v159_v20, 0.0  ;;  %v225_v38 = vmax.f32 %v161_v25, 0.0  ;;  %v226_v39 = vmax.f32 %v162_v26, 0.0  ;;  %v93_v40 = vmul.f32 %v381_v1, %v22_v22  ;;  %v33_v61 = vld [vmem:[%s961_s0 + $0x98] sm:$0xff]  ;;  %v34_v4 = vld [vmem:[%s961_s0 + $0xa0] sm:$0xff]  ;;  %v35_v5 = vld [vmem:[%s961_s0 + $0xa8] sm:$0xff] }
   0x9   :  { %285 = vst.msk [vmem:[%s964_s3] sm:$0xff] %vm284_vm0, %v220_v23  ;;  %v224_v37 = vmax.f32 %v160_v24, 0.0  ;;  %286 = vst.msk [vmem:[%s964_s3 + $0x8] sm:$0xff] %vm284_vm0, %v221_v30  ;;  %v227_v42 = vmax.f32 %v163_v33, 0.0  ;;  %v94_v43 = vmul.f32 %v381_v1, %v23_v27  ;;  %v95_v44 = vmul.f32 %v381_v1, %v24_v28  ;;  %v36_v6 = vld [vmem:[%s961_s0 + $0xb0] sm:$0xff]  ;;  %v37_v11 = vld [vmem:[%s961_s0 + $0xb8] sm:$0xff] }
   0xa   :  { %287 = vst.msk [vmem:[%s964_s3 + $0x10] sm:$0xff] %vm284_vm0, %v222_v31  ;;  %288 = vst.msk [vmem:[%s964_s3 + $0x18] sm:$0xff] %vm284_vm0, %v223_v32  ;;  %v96_v45 = vmul.f32 %v381_v1, %v25_v29  ;;  %v164_v46 = vadd.f32 %v386_v2, %v93_v40  ;;  %v97_v47 = vmul.f32 %v381_v1, %v26_v34  ;;  %v38_v24 = vld [vmem:[%s961_s0 + $0xc0] sm:$0xff]  ;;  %v39_v29 = vld [vmem:[%s961_s0 + $0xc8] sm:$0xff] }
   0xb   :  { %289 = vst.msk [vmem:[%s964_s3 + $0x20] sm:$0xff] %vm284_vm0, %v224_v37  ;;  %290 = vst.msk [vmem:[%s964_s3 + $0x28] sm:$0xff] %vm284_vm0, %v225_v38  ;;  %v98_v48 = vmul.f32 %v381_v1, %v27_v35  ;;  %v99_v49 = vmul.f32 %v381_v1, %v28_v36  ;;  %v165_v50 = vadd.f32 %v386_v2, %v94_v43  ;;  %v40_v30 = vld [vmem:[%s961_s0 + $0xd0] sm:$0xff]  ;;  %v41_v31 = vld [vmem:[%s961_s0 + $0xd8] sm:$0xff] }
   0xc   :  { %291 = vst.msk [vmem:[%s964_s3 + $0x30] sm:$0xff] %vm284_vm0, %v226_v39  ;;  %292 = vst.msk [vmem:[%s964_s3 + $0x38] sm:$0xff] %vm284_vm0, %v227_v42  ;;  %v166_v51 = vadd.f32 %v386_v2, %v95_v44  ;;  %v167_v52 = vadd.f32 %v386_v2, %v96_v45  ;;  %v100_v53 = vmul.f32 %v381_v1, %v29_v41  ;;  %v228_v55 = vmax.f32 %v164_v46, 0.0  ;;  %v42_v36 = vld [vmem:[%s961_s0 + $0xe0] sm:$0xff]  ;;  %v43_v37 = vld [vmem:[%s961_s0 + $0xe8] sm:$0xff] }
   0xd   :  { %v168_v56 = vadd.f32 %v386_v2, %v97_v47  ;;  %v169_v57 = vadd.f32 %v386_v2, %v98_v48  ;;  %v170_v58 = vadd.f32 %v386_v2, %v99_v49  ;;  %v229_v62 = vmax.f32 %v165_v50, 0.0  ;;  %v44_v38 = vld [vmem:[%s961_s0 + $0xf0] sm:$0xff]  ;;  %v45_v43 = vld [vmem:[%s961_s0 + $0xf8] sm:$0xff] }
   0xe   :  { %v230_v63 = vmax.f32 %v166_v51, 0.0  ;;  %v231_v0 = vmax.f32 %v167_v52, 0.0  ;;  %v171_v3 = vadd.f32 %v386_v2, %v100_v53  ;;  %293 = vst.msk [vmem:[%s964_s3 + $0x40] sm:$0xff] %vm284_vm0, %v228_v55  ;;  %v101_v10 = vmul.f32 %v381_v1, %v30_v54 }
   0xf   :  { %v232_v7 = vmax.f32 %v168_v56, 0.0  ;;  %v233_v8 = vmax.f32 %v169_v57, 0.0  ;;  %v234_v9 = vmax.f32 %v170_v58, 0.0  ;;  %294 = vst.msk [vmem:[%s964_s3 + $0x48] sm:$0xff] %vm284_vm0, %v229_v62  ;;  %v102_v13 = vmul.f32 %v381_v1, %v31_v59  ;;  %v46_v56 = vld [vmem:[%s961_s0 + $0x100] sm:$0xff]  ;;  %v48_v62 = vld [vmem:[%s961_s0 + $0x110] sm:$0xff] }
  0x10   :  { %295 = vst.msk [vmem:[%s964_s3 + $0x50] sm:$0xff] %vm284_vm0, %v230_v63  ;;  %296 = vst.msk [vmem:[%s964_s3 + $0x58] sm:$0xff] %vm284_vm0, %v231_v0  ;;  %v235_v12 = vmax.f32 %v171_v3, 0.0  ;;  %v103_v14 = vmul.f32 %v381_v1, %v32_v60  ;;  %v104_v15 = vmul.f32 %v381_v1, %v33_v61  ;;  %v172_v16 = vadd.f32 %v386_v2, %v101_v10  ;;  %v47_v61 = vld [vmem:[%s961_s0 + $0x108] sm:$0xff]  ;;  %v49_v63 = vld [vmem:[%s961_s0 + $0x118] sm:$0xff] }
  0x11   :  { %297 = vst.msk [vmem:[%s964_s3 + $0x60] sm:$0xff] %vm284_vm0, %v232_v7  ;;  %298 = vst.msk [vmem:[%s964_s3 + $0x68] sm:$0xff] %vm284_vm0, %v233_v8  ;;  %v105_v17 = vmul.f32 %v381_v1, %v34_v4  ;;  %v106_v18 = vmul.f32 %v381_v1, %v35_v5  ;;  %v107_v19 = vmul.f32 %v381_v1, %v36_v6  ;;  %v50_v6 = vld [vmem:[%s961_s0 + $0x120] sm:$0xff]  ;;  %v51_v7 = vld [vmem:[%s961_s0 + $0x128] sm:$0xff] }
  0x12   :  { %299 = vst.msk [vmem:[%s964_s3 + $0x70] sm:$0xff] %vm284_vm0, %v234_v9  ;;  %300 = vst.msk [vmem:[%s964_s3 + $0x78] sm:$0xff] %vm284_vm0, %v235_v12  ;;  %v173_v20 = vadd.f32 %v386_v2, %v102_v13  ;;  %v174_v21 = vadd.f32 %v386_v2, %v103_v14  ;;  %v175_v22 = vadd.f32 %v386_v2, %v104_v15  ;;  %v236_v25 = vmax.f32 %v172_v16, 0.0  ;;  %v52_v8 = vld [vmem:[%s961_s0 + $0x130] sm:$0xff]  ;;  %v53_v13 = vld [vmem:[%s961_s0 + $0x138] sm:$0xff] }
  0x13   :  { %v108_v23 = vmul.f32 %v381_v1, %v37_v11  ;;  %v176_v26 = vadd.f32 %v386_v2, %v105_v17  ;;  %v177_v27 = vadd.f32 %v386_v2, %v106_v18  ;;  %v178_v28 = vadd.f32 %v386_v2, %v107_v19 }
  0x14   :  { %v237_v32 = vmax.f32 %v173_v20, 0.0  ;;  %v238_v33 = vmax.f32 %v174_v21, 0.0  ;;  %v239_v34 = vmax.f32 %v175_v22, 0.0  ;;  %301 = vst.msk [vmem:[%s964_s3 + $0x80] sm:$0xff] %vm284_vm0, %v236_v25  ;;  %v109_v42 = vmul.f32 %v381_v1, %v38_v24 }
  0x15   :  { %v179_v35 = vadd.f32 %v386_v2, %v108_v23  ;;  %v240_v39 = vmax.f32 %v176_v26, 0.0  ;;  %v241_v40 = vmax.f32 %v177_v27, 0.0  ;;  %v242_v41 = vmax.f32 %v178_v28, 0.0  ;;  %v54_v26 = vld [vmem:[%s961_s0 + $0x140] sm:$0xff] }
  0x16   :  { %302 = vst.msk [vmem:[%s964_s3 + $0x88] sm:$0xff] %vm284_vm0, %v237_v32  ;;  %303 = vst.msk [vmem:[%s964_s3 + $0x90] sm:$0xff] %vm284_vm0, %v238_v33  ;;  %v110_v45 = vmul.f32 %v381_v1, %v39_v29  ;;  %v111_v46 = vmul.f32 %v381_v1, %v40_v30  ;;  %v112_v47 = vmul.f32 %v381_v1, %v41_v31  ;;  %v55_v31 = vld [vmem:[%s961_s0 + $0x148] sm:$0xff]  ;;  %v56_v32 = vld [vmem:[%s961_s0 + $0x150] sm:$0xff] }
  0x17   :  { %304 = vst.msk [vmem:[%s964_s3 + $0x98] sm:$0xff] %vm284_vm0, %v239_v34  ;;  %v243_v44 = vmax.f32 %v179_v35, 0.0  ;;  %305 = vst.msk [vmem:[%s964_s3 + $0xa0] sm:$0xff] %vm284_vm0, %v240_v39  ;;  %v180_v48 = vadd.f32 %v386_v2, %v109_v42  ;;  %v113_v49 = vmul.f32 %v381_v1, %v42_v36  ;;  %v114_v50 = vmul.f32 %v381_v1, %v43_v37  ;;  %v57_v33 = vld [vmem:[%s961_s0 + $0x158] sm:$0xff]  ;;  %v59_v39 = vld [vmem:[%s961_s0 + $0x168] sm:$0xff] }
  0x18   :  { %306 = vst.msk [vmem:[%s964_s3 + $0xa8] sm:$0xff] %vm284_vm0, %v241_v40  ;;  %307 = vst.msk [vmem:[%s964_s3 + $0xb0] sm:$0xff] %vm284_vm0, %v242_v41  ;;  %v115_v51 = vmul.f32 %v381_v1, %v44_v38  ;;  %v181_v52 = vadd.f32 %v386_v2, %v110_v45  ;;  %v182_v53 = vadd.f32 %v386_v2, %v111_v46  ;;  %v58_v38 = vld [vmem:[%s961_s0 + $0x160] sm:$0xff]  ;;  %v60_v40 = vld [vmem:[%s961_s0 + $0x170] sm:$0xff] }
  0x19   :  { %308 = vst.msk [vmem:[%s964_s3 + $0xb8] sm:$0xff] %vm284_vm0, %v243_v44  ;;  %v183_v54 = vadd.f32 %v386_v2, %v112_v47  ;;  %v116_v55 = vmul.f32 %v381_v1, %v45_v43  ;;  %v244_v57 = vmax.f32 %v180_v48, 0.0  ;;  %v184_v58 = vadd.f32 %v386_v2, %v113_v49  ;;  %v61_v45 = vld [vmem:[%s961_s0 + $0x178] sm:$0xff] }
  0x1a   :  { %v185_v59 = vadd.f32 %v386_v2, %v114_v50  ;;  %v186_v60 = vadd.f32 %v386_v2, %v115_v51  ;;  %v245_v0 = vmax.f32 %v181_v52, 0.0  ;;  %v246_v3 = vmax.f32 %v182_v53, 0.0 }
  0x1b   :  { %v247_v4 = vmax.f32 %v183_v54, 0.0  ;;  %v187_v5 = vadd.f32 %v386_v2, %v116_v55  ;;  %309 = vst.msk [vmem:[%s964_s3 + $0xc0] sm:$0xff] %vm284_vm0, %v244_v57  ;;  %v248_v9 = vmax.f32 %v184_v58, 0.0  ;;  %v117_v12 = vmul.f32 %v381_v1, %v46_v56  ;;  %v62_v58 = vld [vmem:[%s961_s0 + $0x180] sm:$0xff] }
  0x1c   :  { %v249_v10 = vmax.f32 %v185_v59, 0.0  ;;  %v250_v11 = vmax.f32 %v186_v60, 0.0  ;;  %310 = vst.msk [vmem:[%s964_s3 + $0xc8] sm:$0xff] %vm284_vm0, %v245_v0  ;;  %311 = vst.msk [vmem:[%s964_s3 + $0xd0] sm:$0xff] %vm284_vm0, %v246_v3  ;;  %v118_v15 = vmul.f32 %v381_v1, %v47_v61  ;;  %v119_v16 = vmul.f32 %v381_v1, %v48_v62  ;;  %v64_v0 = vld [vmem:[%s961_s0 + $0x190] sm:$0xff]  ;;  %v65_v3 = vld [vmem:[%s961_s0 + $0x198] sm:$0xff] }
  0x1d   :  { %312 = vst.msk [vmem:[%s964_s3 + $0xd8] sm:$0xff] %vm284_vm0, %v247_v4  ;;  %v251_v14 = vmax.f32 %v187_v5, 0.0  ;;  %v120_v17 = vmul.f32 %v381_v1, %v49_v63  ;;  %313 = vst.msk [vmem:[%s964_s3 + $0xe0] sm:$0xff] %vm284_vm0, %v248_v9  ;;  %v188_v18 = vadd.f32 %v386_v2, %v117_v12  ;;  %v121_v19 = vmul.f32 %v381_v1, %v50_v6  ;;  %v63_v63 = vld [vmem:[%s961_s0 + $0x188] sm:$0xff] }
  0x1e   :  { %314 = vst.msk [vmem:[%s964_s3 + $0xe8] sm:$0xff] %vm284_vm0, %v249_v10  ;;  %315 = vst.msk [vmem:[%s964_s3 + $0xf0] sm:$0xff] %vm284_vm0, %v250_v11  ;;  %v122_v20 = vmul.f32 %v381_v1, %v51_v7  ;;  %v123_v21 = vmul.f32 %v381_v1, %v52_v8  ;;  %v189_v22 = vadd.f32 %v386_v2, %v118_v15  ;;  %v66_v8 = vld [vmem:[%s961_s0 + $0x1a0] sm:$0xff]  ;;  %v67_v9 = vld [vmem:[%s961_s0 + $0x1a8] sm:$0xff] }
  0x1f   :  { %316 = vst.msk [vmem:[%s964_s3 + $0xf8] sm:$0xff] %vm284_vm0, %v251_v14  ;;  %v190_v23 = vadd.f32 %v386_v2, %v119_v16  ;;  %v191_v24 = vadd.f32 %v386_v2, %v120_v17  ;;  %v124_v25 = vmul.f32 %v381_v1, %v53_v13  ;;  %v252_v27 = vmax.f32 %v188_v18, 0.0  ;;  %v68_v10 = vld [vmem:[%s961_s0 + $0x1b0] sm:$0xff]  ;;  %v69_v15 = vld [vmem:[%s961_s0 + $0x1b8] sm:$0xff] }
  0x20   :  { %v192_v28 = vadd.f32 %v386_v2, %v121_v19  ;;  %v193_v29 = vadd.f32 %v386_v2, %v122_v20  ;;  %v194_v30 = vadd.f32 %v386_v2, %v123_v21  ;;  %v253_v34 = vmax.f32 %v189_v22, 0.0 }
  0x21   :  { %v254_v35 = vmax.f32 %v190_v23, 0.0  ;;  %v255_v36 = vmax.f32 %v191_v24, 0.0  ;;  %v195_v37 = vadd.f32 %v386_v2, %v124_v25  ;;  %317 = vst.msk [vmem:[%s964_s3 + $0x100] sm:$0xff] %vm284_vm0, %v252_v27  ;;  %v125_v44 = vmul.f32 %v381_v1, %v54_v26 }
  0x22   :  { %v256_v41 = vmax.f32 %v192_v28, 0.0  ;;  %v257_v42 = vmax.f32 %v193_v29, 0.0  ;;  %v258_v43 = vmax.f32 %v194_v30, 0.0  ;;  %318 = vst.msk [vmem:[%s964_s3 + $0x108] sm:$0xff] %vm284_vm0, %v253_v34  ;;  %v126_v47 = vmul.f32 %v381_v1, %v55_v31  ;;  %v70_v28 = vld [vmem:[%s961_s0 + $0x1c0] sm:$0xff]  ;;  %v72_v34 = vld [vmem:[%s961_s0 + $0x1d0] sm:$0xff] }
  0x23   :  { %319 = vst.msk [vmem:[%s964_s3 + $0x110] sm:$0xff] %vm284_vm0, %v254_v35  ;;  %320 = vst.msk [vmem:[%s964_s3 + $0x118] sm:$0xff] %vm284_vm0, %v255_v36  ;;  %v259_v46 = vmax.f32 %v195_v37, 0.0  ;;  %v127_v48 = vmul.f32 %v381_v1, %v56_v32  ;;  %v128_v49 = vmul.f32 %v381_v1, %v57_v33  ;;  %v196_v50 = vadd.f32 %v386_v2, %v125_v44  ;;  %v71_v33 = vld [vmem:[%s961_s0 + $0x1c8] sm:$0xff]  ;;  %v73_v35 = vld [vmem:[%s961_s0 + $0x1d8] sm:$0xff] }
  0x24   :  { %321 = vst.msk [vmem:[%s964_s3 + $0x120] sm:$0xff] %vm284_vm0, %v256_v41  ;;  %322 = vst.msk [vmem:[%s964_s3 + $0x128] sm:$0xff] %vm284_vm0, %v257_v42  ;;  %v129_v51 = vmul.f32 %v381_v1, %v58_v38  ;;  %v130_v52 = vmul.f32 %v381_v1, %v59_v39  ;;  %v131_v53 = vmul.f32 %v381_v1, %v60_v40  ;;  %v74_v40 = vld [vmem:[%s961_s0 + $0x1e0] sm:$0xff]  ;;  %v75_v41 = vld [vmem:[%s961_s0 + $0x1e8] sm:$0xff] }
  0x25   :  { %323 = vst.msk [vmem:[%s964_s3 + $0x130] sm:$0xff] %vm284_vm0, %v258_v43  ;;  %324 = vst.msk [vmem:[%s964_s3 + $0x138] sm:$0xff] %vm284_vm0, %v259_v46  ;;  %v197_v54 = vadd.f32 %v386_v2, %v126_v47  ;;  %v198_v55 = vadd.f32 %v386_v2, %v127_v48  ;;  %v199_v56 = vadd.f32 %v386_v2, %v128_v49  ;;  %v260_v59 = vmax.f32 %v196_v50, 0.0  ;;  %v76_v42 = vld [vmem:[%s961_s0 + $0x1f0] sm:$0xff]  ;;  %v77_v47 = vld [vmem:[%s961_s0 + $0x1f8] sm:$0xff] }
  0x26   :  { %v132_v57 = vmul.f32 %v381_v1, %v61_v45  ;;  %v200_v60 = vadd.f32 %v386_v2, %v129_v51  ;;  %v201_v61 = vadd.f32 %v386_v2, %v130_v52  ;;  %v202_v62 = vadd.f32 %v386_v2, %v131_v53 }
  0x27   :  { %v261_v4 = vmax.f32 %v197_v54, 0.0  ;;  %v262_v5 = vmax.f32 %v198_v55, 0.0  ;;  %v263_v6 = vmax.f32 %v199_v56, 0.0  ;;  %325 = vst.msk [vmem:[%s964_s3 + $0x140] sm:$0xff] %vm284_vm0, %v260_v59  ;;  %v133_v14 = vmul.f32 %v381_v1, %v62_v58 }
  0x28   :  { %v203_v7 = vadd.f32 %v386_v2, %v132_v57  ;;  %v264_v11 = vmax.f32 %v200_v60, 0.0  ;;  %v265_v12 = vmax.f32 %v201_v61, 0.0  ;;  %v266_v13 = vmax.f32 %v202_v62, 0.0 }
  0x29   :  { %326 = vst.msk [vmem:[%s964_s3 + $0x148] sm:$0xff] %vm284_vm0, %v261_v4  ;;  %327 = vst.msk [vmem:[%s964_s3 + $0x150] sm:$0xff] %vm284_vm0, %v262_v5  ;;  %v134_v17 = vmul.f32 %v381_v1, %v63_v63  ;;  %v135_v18 = vmul.f32 %v381_v1, %v64_v0  ;;  %v136_v19 = vmul.f32 %v381_v1, %v65_v3 }
  0x2a   :  { %328 = vst.msk [vmem:[%s964_s3 + $0x158] sm:$0xff] %vm284_vm0, %v263_v6  ;;  %v267_v16 = vmax.f32 %v203_v7, 0.0  ;;  %329 = vst.msk [vmem:[%s964_s3 + $0x160] sm:$0xff] %vm284_vm0, %v264_v11  ;;  %v204_v20 = vadd.f32 %v386_v2, %v133_v14  ;;  %v137_v21 = vmul.f32 %v381_v1, %v66_v8  ;;  %v138_v22 = vmul.f32 %v381_v1, %v67_v9 }
  0x2b   :  { %330 = vst.msk [vmem:[%s964_s3 + $0x168] sm:$0xff] %vm284_vm0, %v265_v12  ;;  %331 = vst.msk [vmem:[%s964_s3 + $0x170] sm:$0xff] %vm284_vm0, %v266_v13  ;;  %v139_v23 = vmul.f32 %v381_v1, %v68_v10  ;;  %v205_v24 = vadd.f32 %v386_v2, %v134_v17  ;;  %v206_v25 = vadd.f32 %v386_v2, %v135_v18 }
  0x2c   :  { %332 = vst.msk [vmem:[%s964_s3 + $0x178] sm:$0xff] %vm284_vm0, %v267_v16  ;;  %v207_v26 = vadd.f32 %v386_v2, %v136_v19  ;;  %v140_v27 = vmul.f32 %v381_v1, %v69_v15  ;;  %v268_v29 = vmax.f32 %v204_v20, 0.0  ;;  %v208_v30 = vadd.f32 %v386_v2, %v137_v21 }
  0x2d   :  { %v209_v31 = vadd.f32 %v386_v2, %v138_v22  ;;  %v210_v32 = vadd.f32 %v386_v2, %v139_v23  ;;  %v269_v36 = vmax.f32 %v205_v24, 0.0  ;;  %v270_v37 = vmax.f32 %v206_v25, 0.0 }
  0x2e   :  { %v271_v38 = vmax.f32 %v207_v26, 0.0  ;;  %v211_v39 = vadd.f32 %v386_v2, %v140_v27  ;;  %333 = vst.msk [vmem:[%s964_s3 + $0x180] sm:$0xff] %vm284_vm0, %v268_v29  ;;  %v272_v43 = vmax.f32 %v208_v30, 0.0  ;;  %v141_v46 = vmul.f32 %v381_v1, %v70_v28 }
  0x2f   :  { %v273_v44 = vmax.f32 %v209_v31, 0.0  ;;  %v274_v45 = vmax.f32 %v210_v32, 0.0  ;;  %334 = vst.msk [vmem:[%s964_s3 + $0x188] sm:$0xff] %vm284_vm0, %v269_v36  ;;  %335 = vst.msk [vmem:[%s964_s3 + $0x190] sm:$0xff] %vm284_vm0, %v270_v37  ;;  %v142_v49 = vmul.f32 %v381_v1, %v71_v33  ;;  %v143_v50 = vmul.f32 %v381_v1, %v72_v34 }
  0x30   :  { %336 = vst.msk [vmem:[%s964_s3 + $0x198] sm:$0xff] %vm284_vm0, %v271_v38  ;;  %v275_v48 = vmax.f32 %v211_v39, 0.0  ;;  %v144_v51 = vmul.f32 %v381_v1, %v73_v35  ;;  %337 = vst.msk [vmem:[%s964_s3 + $0x1a0] sm:$0xff] %vm284_vm0, %v272_v43  ;;  %v212_v52 = vadd.f32 %v386_v2, %v141_v46  ;;  %v145_v53 = vmul.f32 %v381_v1, %v74_v40 }
  0x31   :  { %338 = vst.msk [vmem:[%s964_s3 + $0x1a8] sm:$0xff] %vm284_vm0, %v273_v44  ;;  %339 = vst.msk [vmem:[%s964_s3 + $0x1b0] sm:$0xff] %vm284_vm0, %v274_v45  ;;  %v146_v54 = vmul.f32 %v381_v1, %v75_v41  ;;  %v147_v55 = vmul.f32 %v381_v1, %v76_v42  ;;  %v213_v56 = vadd.f32 %v386_v2, %v142_v49 }
  0x32   :  { %340 = vst.msk [vmem:[%s964_s3 + $0x1b8] sm:$0xff] %vm284_vm0, %v275_v48  ;;  %v214_v57 = vadd.f32 %v386_v2, %v143_v50  ;;  %v215_v58 = vadd.f32 %v386_v2, %v144_v51  ;;  %v148_v59 = vmul.f32 %v381_v1, %v77_v47  ;;  %v276_v60 = vmax.f32 %v212_v52, 0.0 }
  0x33   :  { %v216_v61 = vadd.f32 %v386_v2, %v145_v53  ;;  %v217_v62 = vadd.f32 %v386_v2, %v146_v54  ;;  %v218_v63 = vadd.f32 %v386_v2, %v147_v55  ;;  %v277_v0 = vmax.f32 %v213_v56, 0.0 }
  0x34   :  { %v278_v3 = vmax.f32 %v214_v57, 0.0  ;;  %v279_v4 = vmax.f32 %v215_v58, 0.0  ;;  %v219_v5 = vadd.f32 %v386_v2, %v148_v59  ;;  %341 = vst.msk [vmem:[%s964_s3 + $0x1c0] sm:$0xff] %vm284_vm0, %v276_v60 }
  0x35   :  { %v280_v6 = vmax.f32 %v216_v61, 0.0  ;;  %v281_v7 = vmax.f32 %v217_v62, 0.0  ;;  %v282_v1 = vmax.f32 %v218_v63, 0.0  ;;  %342 = vst.msk [vmem:[%s964_s3 + $0x1c8] sm:$0xff] %vm284_vm0, %v277_v0 }
  0x36   :  { %343 = vst.msk [vmem:[%s964_s3 + $0x1d0] sm:$0xff] %vm284_vm0, %v278_v3  ;;  %344 = vst.msk [vmem:[%s964_s3 + $0x1d8] sm:$0xff] %vm284_vm0, %v279_v4  ;;  %v283_v2 = vmax.f32 %v219_v5, 0.0 }
  0x37   :  { %345 = vst.msk [vmem:[%s964_s3 + $0x1e0] sm:$0xff] %vm284_vm0, %v280_v6  ;;  %346 = vst.msk [vmem:[%s964_s3 + $0x1e8] sm:$0xff] %vm284_vm0, %v281_v7 }
  0x38   :  { %347 = vst.msk [vmem:[%s964_s3 + $0x1f0] sm:$0xff] %vm284_vm0, %v282_v1  ;;  %348 = vst.msk [vmem:[%s964_s3 + $0x1f8] sm:$0xff] %vm284_vm0, %v283_v2 }

// kernel: resnet_simclr_forward.64
= control target key start
LH: loop header
LB: loop body
LE: loop exit
PB: predicated region body
PF: predicated region fallthrough
CT: control target
= control target key end

     0   :  { %vm12_vm0 = vcmask 517120   ;;  %vm78_vm1 = vcmask 523264   ;;  %v420_v0 = vmov 0.0   ;;  %vm410_vm2 = vcmask 1040384   ;;  %s1294_s0 = inlined_call_operand.vmem [shape: f32[512,64], index: 0, kind: input, shape index: {}]   ;;  %s1295_s1 = inlined_call_operand.vmem [shape: f32[2,64], index: 1, kind: output, shape index: {}]  }
   0x1   :  { %13 = vst.msk [vmem:[%s1295_s1] sm:$0x3] %vm12_vm0, %v420_v0  ;;  %v438_v1 = vld [vmem:[%s1294_s0] sm:$0xff]  ;;  %v443_v2 = vld [vmem:[%s1294_s0 + $0x8] sm:$0xff]  ;;  %v448_v3 = vld [vmem:[%s1294_s0 + $0x10] sm:$0xff] }
   0x2   :  { %v79_v4 = vsel %vm78_vm1, %v438_v1, 0.0  ;;  %v80_v5 = vsel %vm78_vm1, %v443_v2, 0.0  ;;  %v82_v6 = vsel %vm78_vm1, %v448_v3, 0.0  ;;  %v459_v7 = vld [vmem:[%s1294_s0 + $0x18] sm:$0xff]  ;;  %v466_v10 = vld [vmem:[%s1294_s0 + $0x20] sm:$0xff]  ;;  %v473_v13 = vld [vmem:[%s1294_s0 + $0x28] sm:$0xff] }
   0x3   :  { %v81_v8 = vadd.f32 %v80_v5, %v79_v4  ;;  %v84_v9 = vsel %vm78_vm1, %v459_v7, 0.0  ;;  %v86_v12 = vsel %vm78_vm1, %v466_v10, 0.0  ;;  %v88_v15 = vsel %vm78_vm1, %v473_v13, 0.0  ;;  %v480_v16 = vld [vmem:[%s1294_s0 + $0x30] sm:$0xff]  ;;  %v485_v18 = vld [vmem:[%s1294_s0 + $0x38] sm:$0xff]  ;;  %v490_v19 = vld [vmem:[%s1294_s0 + $0x40] sm:$0xff] }
   0x4   :  { %v90_v20 = vsel %vm78_vm1, %v480_v16, 0.0  ;;  %v497_v21 = vld [vmem:[%s1294_s0 + $0x48] sm:$0xff]  ;;  %v502_v22 = vld [vmem:[%s1294_s0 + $0x50] sm:$0xff]  ;;  %v507_v23 = vld [vmem:[%s1294_s0 + $0x58] sm:$0xff]  ;;  %v92_v25 = vsel %vm78_vm1, %v485_v18, 0.0  ;;  %v94_v26 = vsel %vm78_vm1, %v490_v19, 0.0 }
   0x5   :  { %v83_v11 = vadd.f32 %v82_v6, %v81_v8  ;;  %v516_v27 = vld [vmem:[%s1294_s0 + $0x108] sm:$0xff]  ;;  %v521_v28 = vld [vmem:[%s1294_s0 + $0x110] sm:$0xff]  ;;  %v526_v29 = vld [vmem:[%s1294_s0 + $0x118] sm:$0xff]  ;;  %v96_v30 = vsel %vm78_vm1, %v497_v21, 0.0  ;;  %v98_v31 = vsel %vm78_vm1, %v502_v22, 0.0  ;;  %v534_v32 = vsel %vm78_vm1, %v507_v23, 0.0 }
   0x6   :  { %v539_v33 = vld [vmem:[%s1294_s0 + $0x120] sm:$0xff]  ;;  %v544_v34 = vld [vmem:[%s1294_s0 + $0x128] sm:$0xff]  ;;  %v549_v35 = vld [vmem:[%s1294_s0 + $0x130] sm:$0xff]  ;;  %v553_v37 = vsel %vm78_vm1, %v516_v27, 0.0  ;;  %v557_v38 = vsel %vm78_vm1, %v521_v28, 0.0  ;;  %v561_v39 = vsel %vm78_vm1, %v526_v29, 0.0 }
   0x7   :  { %v85_v14 = vadd.f32 %v84_v9, %v83_v11  ;;  %1314 = vst [vmem:[#allocation2_spill] sm:$0xff] %v553_v37  ;;  %1315 = vst [vmem:[#allocation3_spill] sm:$0xff] %v557_v38  ;;  %v566_v40 = vld [vmem:[%s1294_s0 + $0x138] sm:$0xff]  ;;  %v571_v41 = vld [vmem:[%s1294_s0 + $0x140] sm:$0xff]  ;;  %v580_v43 = vsel %vm78_vm1, %v539_v33, 0.0  ;;  %v584_v44 = vsel %vm78_vm1, %v544_v34, 0.0  ;;  %v214_v37 = vmul.f32 %v448_v3, %v448_v3 }
   0x8   :  { %1316 = vst [vmem:[#allocation4_spill] sm:$0xff] %v561_v39  ;;  %v576_v42 = vld [vmem:[%s1294_s0 + $0x148] sm:$0xff]  ;;  %1317 = vst [vmem:[#allocation5_spill] sm:$0xff] %v580_v43  ;;  %v588_v45 = vsel %vm78_vm1, %v549_v35, 0.0  ;;  %v593_v46 = vld [vmem:[%s1294_s0 + $0x150] sm:$0xff]  ;;  %v607_v50 = vsel %vm78_vm1, %v566_v40, 0.0 }
   0x9   :  { %v87_v17 = vadd.f32 %v86_v12, %v85_v14  ;;  %1318 = vst [vmem:[#allocation6_spill] sm:$0xff] %v584_v44  ;;  %1319 = vst [vmem:[#allocation7_spill] sm:$0xff] %v588_v45  ;;  %v598_v47 = vld [vmem:[%s1294_s0 + $0x158] sm:$0xff]  ;;  %v603_v48 = vld [vmem:[%s1294_s0 + $0x160] sm:$0xff]  ;;  %v611_v51 = vsel %vm78_vm1, %v571_v41, 0.0  ;;  %v615_v52 = vsel %vm78_vm1, %v576_v42, 0.0 }
   0xa   :  { %1320 = vst [vmem:[#allocation8_spill] sm:$0xff] %v607_v50  ;;  %1321 = vst [vmem:[#allocation9_spill] sm:$0xff] %v611_v51  ;;  %v620_v53 = vld [vmem:[%s1294_s0 + $0x168] sm:$0xff]  ;;  %v625_v54 = vld [vmem:[%s1294_s0 + $0x170] sm:$0xff]  ;;  %v634_v56 = vsel %vm78_vm1, %v593_v46, 0.0  ;;  %v638_v57 = vsel %vm78_vm1, %v598_v47, 0.0 }
   0xb   :  { %v89_v24 = vadd.f32 %v88_v15, %v87_v17  ;;  %1322 = vst [vmem:[#allocation10_spill] sm:$0xff] %v615_v52  ;;  %v630_v55 = vld [vmem:[%s1294_s0 + $0x178] sm:$0xff]  ;;  %1323 = vst [vmem:[#allocation11_spill] sm:$0xff] %v634_v56  ;;  %v642_v58 = vsel %vm78_vm1, %v603_v48, 0.0  ;;  %v647_v59 = vld [vmem:[%s1294_s0 + $0x180] sm:$0xff]  ;;  %v661_v63 = vsel %vm78_vm1, %v620_v53, 0.0 }
   0xc   :  { %1324 = vst [vmem:[#allocation12_spill] sm:$0xff] %v638_v57  ;;  %1325 = vst [vmem:[#allocation13_spill] sm:$0xff] %v642_v58  ;;  %v652_v60 = vld [vmem:[%s1294_s0 + $0x188] sm:$0xff]  ;;  %v657_v61 = vld [vmem:[%s1294_s0 + $0x190] sm:$0xff]  ;;  %v665_v0 = vsel %vm78_vm1, %v625_v54, 0.0  ;;  %v669_v4 = vsel %vm78_vm1, %v630_v55, 0.0 }
   0xd   :  { %v91_v36 = vadd.f32 %v90_v20, %v89_v24  ;;  %1326 = vst [vmem:[#allocation14_spill] sm:$0xff] %v661_v63  ;;  %1327 = vst [vmem:[#allocation15_spill] sm:$0xff] %v665_v0  ;;  %v674_v5 = vld [vmem:[%s1294_s0 + $0x198] sm:$0xff]  ;;  %v679_v6 = vld [vmem:[%s1294_s0 + $0x1a0] sm:$0xff]  ;;  %v688_v9 = vsel %vm78_vm1, %v647_v59, 0.0  ;;  %v692_v11 = vsel %vm78_vm1, %v652_v60, 0.0 }
   0xe   :  { %1328 = vst [vmem:[#allocation16_spill] sm:$0xff] %v669_v4  ;;  %v684_v8 = vld [vmem:[%s1294_s0 + $0x1a8] sm:$0xff]  ;;  %1329 = vst [vmem:[#allocation17_spill] sm:$0xff] %v688_v9  ;;  %v696_v12 = vsel %vm78_vm1, %v657_v61, 0.0  ;;  %v701_v14 = vld [vmem:[%s1294_s0 + $0x60] sm:$0xff] }
   0xf   :  { %v93_v49 = vadd.f32 %v92_v25, %v91_v36  ;;  %1330 = vst [vmem:[#allocation18_spill] sm:$0xff] %v692_v11  ;;  %1331 = vst [vmem:[#allocation19_spill] sm:$0xff] %v696_v12  ;;  %v706_v15 = vld [vmem:[%s1294_s0 + $0x1b0] sm:$0xff]  ;;  %v711_v17 = vld [vmem:[%s1294_s0 + $0x1b8] sm:$0xff]  ;;  %v720_v25 = vsel %vm78_vm1, %v674_v5, 0.0  ;;  %v728_v36 = vsel %vm78_vm1, %v684_v8, 0.0 }
  0x10   :  { %v716_v20 = vld [vmem:[%s1294_s0 + $0x1c0] sm:$0xff]  ;;  %1332 = vst [vmem:[#allocation20_spill] sm:$0xff] %v720_v25  ;;  %1334 = vst [vmem:[#allocation22_spill] sm:$0xff] %v728_v36  ;;  %v751_v36 = vsel %vm78_vm1, %v711_v17, 0.0  ;;  %v765_v11 = vld [vmem:[%s1294_s0 + $0x1e8] sm:$0xff] }
  0x11   :  { %v95_v62 = vadd.f32 %v94_v26, %v93_v49  ;;  %v724_v26 = vsel %vm78_vm1, %v679_v6, 0.0  ;;  %v733_v49 = vld [vmem:[%s1294_s0 + $0x1c8] sm:$0xff]  ;;  %1336 = vst [vmem:[#allocation24_spill] sm:$0xff] %v751_v36  ;;  %v755_v25 = vsel %vm78_vm1, %v716_v20, 0.0  ;;  %v760_v12 = vld [vmem:[%s1294_s0 + $0x1e0] sm:$0xff]  ;;  %v787_v0 = vld [vmem:[%s1294_s0 + $0x1f8] sm:$0xff] }
  0x12   :  { %1333 = vst [vmem:[#allocation21_spill] sm:$0xff] %v724_v26  ;;  %v747_v26 = vsel %vm78_vm1, %v706_v15, 0.0  ;;  %1337 = vst [vmem:[#allocation25_spill] sm:$0xff] %v755_v25  ;;  %v774_v9 = vsel %vm78_vm1, %v733_v49, 0.0  ;;  %v809_v58 = vsel %vm78_vm1, %v787_v0, 0.0  ;;  %v838_v56 = vld [vmem:[%s1294_s0 + $0x90] sm:$0xff] }
  0x13   :  { %v97_v24 = vadd.f32 %v96_v30, %v95_v62  ;;  %v738_v30 = vld [vmem:[%s1294_s0 + $0x1d0] sm:$0xff]  ;;  %v743_v62 = vld [vmem:[%s1294_s0 + $0x1d8] sm:$0xff]  ;;  %1335 = vst [vmem:[#allocation23_spill] sm:$0xff] %v747_v26  ;;  %1339 = vst [vmem:[#allocation27_spill] sm:$0xff] %v774_v9  ;;  %v797_v9 = vsel %vm78_vm1, %v765_v11, 0.0 }
  0x14   :  { %v770_v26 = vld [vmem:[%s1294_s0 + $0x1f0] sm:$0xff]  ;;  %v778_v25 = vsel %vm78_vm1, %v738_v30, 0.0  ;;  %v782_v4 = vsel %vm78_vm1, %v743_v62, 0.0  ;;  %1342 = vst [vmem:[#allocation30_spill] sm:$0xff] %v787_v0  ;;  %1344 = vst [vmem:[#allocation32_spill] sm:$0xff] %v797_v9  ;;  %v843_v52 = vld [vmem:[%s1294_s0 + $0x98] sm:$0xff] }
  0x15   :  { %1338 = vst [vmem:[#allocation26_spill] sm:$0xff] %v770_v26  ;;  %v99_v36 = vadd.f32 %v98_v31, %v97_v24  ;;  %1340 = vst [vmem:[#allocation28_spill] sm:$0xff] %v778_v25  ;;  %v102_v31 = vsel %vm78_vm1, %v701_v14, 0.0  ;;  %v793_v24 = vsel %vm78_vm1, %v760_v12, 0.0  ;;  %v801_v25 = vsel %vm78_vm1, %v770_v26, 0.0  ;;  %v28_v9 = vld [vmem:[%s1294_s0 + $0x70] sm:$0xff] }
  0x16   :  { %1341 = vst [vmem:[#allocation29_spill] sm:$0xff] %v782_v4  ;;  %1343 = vst [vmem:[#allocation31_spill] sm:$0xff] %v793_v24  ;;  %v27_v4 = vld [vmem:[%s1294_s0 + $0x68] sm:$0xff]  ;;  %v848_v51 = vld [vmem:[%s1294_s0 + $0xa0] sm:$0xff]  ;;  %v116_v39 = vsel %vm78_vm1, %v843_v52, 0.0 }
  0x17   :  { %1345 = vst [vmem:[#allocation33_spill] sm:$0xff] %v801_v25  ;;  %v101_v63 = vadd.f32 %v534_v32, %v99_v36  ;;  %1346 = vst [vmem:[#allocation34_spill] sm:$0xff] %v809_v58  ;;  %v104_v24 = vsel %vm78_vm1, %v27_v4, 0.0  ;;  %v818_v25 = vld [vmem:[%s1294_s0 + $0x78] sm:$0xff]  ;;  %v823_v32 = vld [vmem:[%s1294_s0 + $0x80] sm:$0xff]  ;;  %v106_v58 = vsel %vm78_vm1, %v28_v9, 0.0 }
  0x18   :  { %1347 = vst [vmem:[#allocation35_spill] sm:$0xff] %v818_v25  ;;  %1348 = vst [vmem:[#allocation36_spill] sm:$0xff] %v823_v32  ;;  %v828_v36 = vld [vmem:[%s1294_s0 + $0x88] sm:$0xff]  ;;  %v864_v43 = vld [vmem:[%s1294_s0 + $0xb0] sm:$0xff]  ;;  %v118_v38 = vsel %vm78_vm1, %v848_v51, 0.0 }
  0x19   :  { %v103_v57 = vadd.f32 %v102_v31, %v101_v63  ;;  %1349 = vst [vmem:[#allocation37_spill] sm:$0xff] %v828_v36  ;;  %v212_v63 = vmul.f32 %v438_v1, %v438_v1  ;;  %v213_v31 = vmul.f32 %v443_v2, %v443_v2  ;;  %1350 = vst [vmem:[#allocation38_spill] sm:$0xff] %v838_v56  ;;  %v108_v1 = vsel %vm78_vm1, %v818_v25, 0.0  ;;  %v859_v44 = vld [vmem:[%s1294_s0 + $0xa8] sm:$0xff]  ;;  %v905_v0 = vld [vmem:[%s1294_s0 + $0xd8] sm:$0xff] }
  0x1a   :  { %1351 = vst [vmem:[#allocation39_spill] sm:$0xff] %v843_v52  ;;  %1352 = vst [vmem:[#allocation40_spill] sm:$0xff] %v848_v51  ;;  %v110_v2 = vsel %vm78_vm1, %v823_v32, 0.0  ;;  %v112_v45 = vsel %vm78_vm1, %v828_v36, 0.0  ;;  %v882_v36 = vld [vmem:[%s1294_s0 + $0xc0] sm:$0xff]  ;;  %v887_v32 = vld [vmem:[%s1294_s0 + $0xc8] sm:$0xff]  ;;  %v215_v25 = vmul.f32 %v459_v7, %v459_v7 }
  0x1b   :  { %v105_v50 = vadd.f32 %v104_v24, %v103_v57  ;;  %1353 = vst [vmem:[#allocation41_spill] sm:$0xff] %v859_v44  ;;  %1354 = vst [vmem:[#allocation42_spill] sm:$0xff] %v864_v43  ;;  %v869_v57 = vld [vmem:[%s1294_s0 + $0xb8] sm:$0xff]  ;;  %v114_v24 = vsel %vm78_vm1, %v838_v56, 0.0  ;;  %v892_v52 = vld [vmem:[%s1294_s0 + $0xd0] sm:$0xff]  ;;  %v120_v51 = vsel %vm78_vm1, %v859_v44, 0.0 }
  0x1c   :  { %1355 = vst [vmem:[#allocation43_spill] sm:$0xff] %v869_v57  ;;  %1356 = vst [vmem:[#allocation44_spill] sm:$0xff] %v882_v36  ;;  %v898_v3 = vsel %vm78_vm1, %v864_v43, 0.0  ;;  %v910_v26 = vld [vmem:[%s1294_s0 + $0xe0] sm:$0xff]  ;;  %v922_v7 = vsel %vm78_vm1, %v887_v32, 0.0  ;;  %v926_v43 = vsel %vm78_vm1, %v892_v52, 0.0 }
  0x1d   :  { %1357 = vst [vmem:[#allocation45_spill] sm:$0xff] %v887_v32  ;;  %1358 = vst [vmem:[#allocation46_spill] sm:$0xff] %v892_v52  ;;  %v107_v56 = vadd.f32 %v106_v58, %v105_v50  ;;  %v914_v50 = vsel %vm78_vm1, %v869_v57, 0.0  ;;  %v918_v58 = vsel %vm78_vm1, %v882_v36, 0.0  ;;  %v931_v44 = vld [vmem:[%s1294_s0 + $0xe8] sm:$0xff]  ;;  %v936_v57 = vld [vmem:[%s1294_s0 + $0xf0] sm:$0xff]  ;;  %v216_v52 = vmul.f32 %v466_v10, %v466_v10 }
  0x1e   :  { %1359 = vst [vmem:[#allocation47_spill] sm:$0xff] %v905_v0  ;;  %1360 = vst [vmem:[#allocation48_spill] sm:$0xff] %v910_v26  ;;  %v944_v32 = vsel %vm78_vm1, %v910_v26, 0.0  ;;  %v219_v26 = vmul.f32 %v485_v18, %v485_v18  ;;  %v220_v10 = vmul.f32 %v490_v19, %v490_v19  ;;  %v245_v18 = vmul.f32 %v516_v27, %v516_v27 }
  0x1f   :  { %1361 = vst [vmem:[#allocation49_spill] sm:$0xff] %v918_v58  ;;  %1362 = vst [vmem:[#allocation50_spill] sm:$0xff] %v922_v7  ;;  %v109_v36 = vadd.f32 %v108_v1, %v107_v56  ;;  %v940_v58 = vsel %vm78_vm1, %v905_v0, 0.0  ;;  %v954_v7 = vsel %vm78_vm1, %v936_v57, 0.0  ;;  %v217_v56 = vmul.f32 %v473_v13, %v473_v13 }
  0x20   :  { %1363 = vst [vmem:[#allocation51_spill] sm:$0xff] %v926_v43  ;;  %1364 = vst [vmem:[#allocation52_spill] sm:$0xff] %v931_v44  ;;  %v950_v43 = vsel %vm78_vm1, %v931_v44, 0.0  ;;  %v218_v1 = vmul.f32 %v480_v16, %v480_v16  ;;  %v221_v44 = vmul.f32 %v497_v21, %v497_v21  ;;  %v224_v13 = vmul.f32 %v701_v14, %v701_v14 }
  0x21   :  { %1365 = vst [vmem:[#allocation53_spill] sm:$0xff] %v936_v57  ;;  %1366 = vst [vmem:[#allocation54_spill] sm:$0xff] %v954_v7  ;;  %v111_v0 = vadd.f32 %v110_v2, %v109_v36  ;;  %v222_v57 = vmul.f32 %v502_v22, %v502_v22  ;;  %v223_v7 = vmul.f32 %v507_v23, %v507_v23 }
  0x22   :  { %v972_v16 = vmul.f32 %v27_v4, %v27_v4  ;;  %v974_v2 = vmul.f32 %v28_v9, %v28_v9  ;;  %v246_v19 = vmul.f32 %v521_v28, %v521_v28  ;;  %v247_v21 = vmul.f32 %v526_v29, %v526_v29 }
  0x23   :  { %v113_v36 = vadd.f32 %v112_v45, %v111_v0  ;;  %v248_v22 = vmul.f32 %v539_v33, %v539_v33  ;;  %v249_v23 = vmul.f32 %v544_v34, %v544_v34  ;;  %v250_v45 = vmul.f32 %v549_v35, %v549_v35 }
  0x24   :  { %v251_v4 = vmul.f32 %v566_v40, %v566_v40  ;;  %v252_v27 = vmul.f32 %v571_v41, %v571_v41  ;;  %v253_v28 = vmul.f32 %v576_v42, %v576_v42  ;;  %v254_v29 = vmul.f32 %v593_v46, %v593_v46 }
  0x25   :  { %v115_v0 = vadd.f32 %v114_v24, %v113_v36  ;;  %v255_v33 = vmul.f32 %v598_v47, %v598_v47  ;;  %v276_v34 = vsel %vm78_vm1, %v212_v63, 0.0  ;;  %v277_v35 = vsel %vm78_vm1, %v213_v31, 0.0 }
  0x26   :  { %v256_v40 = vmul.f32 %v603_v48, %v603_v48  ;;  %v278_v14 = vadd.f32 %v277_v35, %v276_v34  ;;  %v279_v41 = vsel %vm78_vm1, %v214_v37, 0.0  ;;  %v257_v42 = vmul.f32 %v620_v53, %v620_v53  ;;  %v1368_v34 = vld [vmem:[#allocation30_spill] sm:$0xff] }
  0x27   :  { %v117_v9 = vadd.f32 %v116_v39, %v115_v0  ;;  %v258_v46 = vmul.f32 %v625_v54, %v625_v54  ;;  %v259_v47 = vmul.f32 %v630_v55, %v630_v55  ;;  %v281_v63 = vsel %vm78_vm1, %v215_v25, 0.0  ;;  %v1367_v0 = vld [vmem:[#allocation26_spill] sm:$0xff] }
  0x28   :  { %v260_v39 = vmul.f32 %v647_v59, %v647_v59  ;;  %v261_v48 = vmul.f32 %v652_v60, %v652_v60  ;;  %v280_v31 = vadd.f32 %v279_v41, %v278_v14  ;;  %v262_v37 = vmul.f32 %v657_v61, %v657_v61  ;;  %v1369_v41 = vld [vmem:[#allocation49_spill] sm:$0xff] }
  0x29   :  { %v119_v24 = vadd.f32 %v118_v38, %v117_v9  ;;  %v263_v53 = vmul.f32 %v674_v5, %v674_v5  ;;  %v264_v54 = vmul.f32 %v679_v6, %v679_v6  ;;  %v283_v55 = vsel %vm78_vm1, %v216_v52, 0.0 }
  0x2a   :  { %v265_v38 = vmul.f32 %v684_v8, %v684_v8  ;;  %v266_v59 = vmul.f32 %v706_v15, %v706_v15  ;;  %v282_v60 = vadd.f32 %v281_v63, %v280_v31  ;;  %v267_v36 = vmul.f32 %v711_v17, %v711_v17 }
  0x2b   :  { %v121_v25 = vadd.f32 %v120_v51, %v119_v24  ;;  %v268_v61 = vmul.f32 %v716_v20, %v716_v20  ;;  %v269_v5 = vmul.f32 %v733_v49, %v733_v49  ;;  %v285_v6 = vsel %vm78_vm1, %v217_v56, 0.0 }
  0x2c   :  { %v270_v52 = vmul.f32 %v738_v30, %v738_v30  ;;  %v271_v8 = vmul.f32 %v743_v62, %v743_v62  ;;  %v284_v15 = vadd.f32 %v283_v55, %v282_v60  ;;  %v272_v17 = vmul.f32 %v760_v12, %v760_v12 }
  0x2d   :  { %v123_v51 = vadd.f32 %v898_v3, %v121_v25  ;;  %v273_v20 = vmul.f32 %v765_v11, %v765_v11  ;;  %v274_v49 = vmul.f32 %v1367_v0, %v1367_v0  ;;  %v287_v56 = vsel %vm78_vm1, %v218_v1, 0.0  ;;  %v1371_v25 = vld [vmem:[#allocation51_spill] sm:$0xff] }
  0x2e   :  { %v275_v30 = vmul.f32 %v1368_v34, %v1368_v34  ;;  %v286_v35 = vadd.f32 %v285_v6, %v284_v15  ;;  %v289_v62 = vsel %vm78_vm1, %v219_v26, 0.0  ;;  %v291_v9 = vsel %vm78_vm1, %v220_v10, 0.0  ;;  %v1373_v34 = vld [vmem:[#allocation54_spill] sm:$0xff] }
  0x2f   :  { %v125_v3 = vadd.f32 %v914_v50, %v123_v51  ;;  %v293_v12 = vsel %vm78_vm1, %v221_v44, 0.0  ;;  %v295_v14 = vsel %vm78_vm1, %v222_v57, 0.0  ;;  %v297_v11 = vsel %vm78_vm1, %v223_v7, 0.0  ;;  %v1370_v7 = vld [vmem:[#allocation50_spill] sm:$0xff] }
  0x30   :  { %v288_v24 = vadd.f32 %v287_v56, %v286_v35  ;;  %v299_v1 = vsel %vm78_vm1, %v224_v13, 0.0  ;;  %v1055_v50 = vsel %vm78_vm1, %v245_v18, 0.0  ;;  %v1058_v31 = vsel %vm78_vm1, %v246_v19, 0.0  ;;  %v1372_v56 = vld [vmem:[#allocation35_spill] sm:$0xff] }
  0x31   :  { %v127_v63 = vadd.f32 %v1369_v41, %v125_v3  ;;  %v1061_v26 = vsel %vm78_vm1, %v247_v21, 0.0  ;;  %v1064_v44 = vsel %vm78_vm1, %v248_v22, 0.0  ;;  %v1067_v57 = vsel %vm78_vm1, %v249_v23, 0.0 }
  0x32   :  { %v290_v55 = vadd.f32 %v289_v62, %v288_v24  ;;  %v1071_v13 = vsel %vm78_vm1, %v250_v45, 0.0  ;;  %v1074_v18 = vsel %vm78_vm1, %v251_v4, 0.0  ;;  %v1077_v19 = vsel %vm78_vm1, %v252_v27, 0.0  ;;  %v1374_v62 = vld [vmem:[#allocation36_spill] sm:$0xff] }
  0x33   :  { %v129_v10 = vadd.f32 %v1370_v7, %v127_v63  ;;  %v1080_v21 = vsel %vm78_vm1, %v253_v28, 0.0  ;;  %v1083_v22 = vsel %vm78_vm1, %v254_v29, 0.0  ;;  %v1086_v23 = vsel %vm78_vm1, %v255_v33, 0.0 }
  0x34   :  { %v292_v6 = vadd.f32 %v291_v9, %v290_v55  ;;  %v1090_v45 = vsel %vm78_vm1, %v256_v40, 0.0  ;;  %v1093_v4 = vsel %vm78_vm1, %v257_v42, 0.0  ;;  %v1096_v27 = vsel %vm78_vm1, %v258_v46, 0.0 }
  0x35   :  { %v131_v60 = vadd.f32 %v1371_v25, %v129_v10  ;;  %v1099_v28 = vsel %vm78_vm1, %v259_v47, 0.0  ;;  %v1102_v29 = vsel %vm78_vm1, %v260_v39, 0.0  ;;  %v1105_v33 = vsel %vm78_vm1, %v261_v48, 0.0  ;;  %v1376_v10 = vld [vmem:[#allocation38_spill] sm:$0xff] }
  0x36   :  { %v294_v15 = vadd.f32 %v293_v12, %v292_v6  ;;  %v1109_v40 = vsel %vm78_vm1, %v262_v37, 0.0  ;;  %v1112_v42 = vsel %vm78_vm1, %v263_v53, 0.0  ;;  %v1115_v46 = vsel %vm78_vm1, %v264_v54, 0.0  ;;  %v1377_v25 = vld [vmem:[#allocation2_spill] sm:$0xff] }
  0x37   :  { %v133_v51 = vadd.f32 %v940_v58, %v131_v60  ;;  %v1118_v47 = vsel %vm78_vm1, %v265_v38, 0.0  ;;  %v1121_v39 = vsel %vm78_vm1, %v266_v59, 0.0  ;;  %v1124_v48 = vsel %vm78_vm1, %v267_v36, 0.0 }
  0x38   :  { %v296_v0 = vadd.f32 %v295_v14, %v294_v15  ;;  %v1128_v37 = vsel %vm78_vm1, %v268_v61, 0.0  ;;  %v1131_v53 = vsel %vm78_vm1, %v269_v5, 0.0  ;;  %v1134_v54 = vsel %vm78_vm1, %v270_v52, 0.0 }
  0x39   :  { %v135_v58 = vadd.f32 %v944_v32, %v133_v51  ;;  %v1137_v38 = vsel %vm78_vm1, %v271_v8, 0.0  ;;  %v1140_v59 = vsel %vm78_vm1, %v272_v17, 0.0  ;;  %v1143_v36 = vsel %vm78_vm1, %v273_v20, 0.0  ;;  %v1148_v32 = vld [vmem:[%s1294_s0 + $0xf8] sm:$0xff]  ;;  %v1378_v51 = vld [vmem:[#allocation39_spill] sm:$0xff] }
  0x3a   :  { %v298_v5 = vadd.f32 %v297_v11, %v296_v0  ;;  %v1152_v52 = vsel %vm78_vm1, %v274_v49, 0.0  ;;  %v1155_v8 = vsel %vm78_vm1, %v275_v30, 0.0  ;;  %v140_v17 = vsel %vm78_vm1, %v1148_v32, 0.0 }
  0x3b   :  { %v137_v61 = vadd.f32 %v950_v43, %v135_v58  ;;  %v227_v20 = vmul.f32 %v1372_v56, %v1372_v56  ;;  %v301_v3 = vsel %vm78_vm1, %v972_v16, 0.0  ;;  %v1166_v43 = vld [vmem:[%s1294_s0 + $0x100] sm:$0xff]  ;;  %v228_v9 = vmul.f32 %v1374_v62, %v1374_v62  ;;  %v1375_v16 = vld [vmem:[#allocation37_spill] sm:$0xff]  ;;  %v1379_v58 = vld [vmem:[#allocation3_spill] sm:$0xff] }
  0x3c   :  { %v300_v35 = vadd.f32 %v299_v1, %v298_v5  ;;  %v142_v30 = vsel %vm78_vm1, %v1166_v43, 0.0  ;;  %v303_v12 = vsel %vm78_vm1, %v974_v2, 0.0  ;;  %v229_v41 = vmul.f32 %v1375_v16, %v1375_v16  ;;  %v1380_v5 = vld [vmem:[#allocation40_spill] sm:$0xff]  ;;  %v1383_v62 = vld [vmem:[#allocation5_spill] sm:$0xff] }
  0x3d   :  { %v139_v49 = vadd.f32 %v1373_v34, %v137_v61  ;;  %v305_v63 = vsel %vm78_vm1, %v227_v20, 0.0  ;;  %v230_v1 = vmul.f32 %v1376_v10, %v1376_v10  ;;  %v307_v55 = vsel %vm78_vm1, %v228_v9, 0.0  ;;  %v1381_v20 = vld [vmem:[#allocation4_spill] sm:$0xff] }
  0x3e   :  { %v302_v11 = vadd.f32 %v301_v3, %v300_v35  ;;  %v231_v2 = vmul.f32 %v1378_v51, %v1378_v51  ;;  %v309_v15 = vsel %vm78_vm1, %v229_v41, 0.0  ;;  %v1385_v41 = vld [vmem:[#allocation6_spill] sm:$0xff] }
  0x3f   :  { %v141_v14 = vadd.f32 %v140_v17, %v139_v49  ;;  %v232_v17 = vmul.f32 %v1380_v5, %v1380_v5  ;;  %v311_v56 = vsel %vm78_vm1, %v230_v1, 0.0  ;;  %v1382_v49 = vld [vmem:[#allocation41_spill] sm:$0xff] }
  0x40   :  { %v304_v7 = vadd.f32 %v303_v12, %v302_v11  ;;  %v233_v35 = vmul.f32 %v1382_v49, %v1382_v49 }
  0x41   :  { %v143_v24 = vadd.f32 %v142_v30, %v141_v14  ;;  %v313_v30 = vsel %vm78_vm1, %v231_v2, 0.0  ;;  %v1384_v14 = vld [vmem:[#allocation42_spill] sm:$0xff]  ;;  %v315_v16 = vsel %vm78_vm1, %v232_v17, 0.0 }
  0x42   :  { %v306_v6 = vadd.f32 %v305_v63, %v304_v7  ;;  %v234_v11 = vmul.f32 %v1384_v14, %v1384_v14  ;;  %v1386_v7 = vld [vmem:[#allocation43_spill] sm:$0xff]  ;;  %v317_v1 = vsel %vm78_vm1, %v233_v35, 0.0 }
  0x43   :  { %v145_v60 = vadd.f32 %v1377_v25, %v143_v24  ;;  %v235_v10 = vmul.f32 %v1386_v7, %v1386_v7 }
  0x44   :  { %v308_v61 = vadd.f32 %v307_v55, %v306_v6  ;;  %v1387_v55 = vld [vmem:[#allocation7_spill] sm:$0xff]  ;;  %v1388_v6 = vld [vmem:[#allocation44_spill] sm:$0xff]  ;;  %v319_v2 = vsel %vm78_vm1, %v234_v11, 0.0 }
  0x45   :  { %v147_v0 = vadd.f32 %v1379_v58, %v145_v60  ;;  %v236_v51 = vmul.f32 %v1388_v6, %v1388_v6  ;;  %v321_v17 = vsel %vm78_vm1, %v235_v10, 0.0 }
  0x46   :  { %v310_v34 = vadd.f32 %v309_v15, %v308_v61  ;;  %v1389_v15 = vld [vmem:[#allocation8_spill] sm:$0xff]  ;;  %v1390_v61 = vld [vmem:[#allocation45_spill] sm:$0xff] }
  0x47   :  { %v149_v3 = vadd.f32 %v1381_v20, %v147_v0  ;;  %v237_v5 = vmul.f32 %v1390_v61, %v1390_v61  ;;  %v323_v35 = vsel %vm78_vm1, %v236_v51, 0.0 }
  0x48   :  { %v312_v12 = vadd.f32 %v311_v56, %v310_v34  ;;  %v1391_v56 = vld [vmem:[#allocation9_spill] sm:$0xff]  ;;  %v1392_v34 = vld [vmem:[#allocation46_spill] sm:$0xff] }
  0x49   :  { %v151_v9 = vadd.f32 %v1383_v62, %v149_v3  ;;  %v238_v49 = vmul.f32 %v1392_v34, %v1392_v34  ;;  %v325_v11 = vsel %vm78_vm1, %v237_v5, 0.0 }
  0x4a   :  { %v314_v24 = vadd.f32 %v313_v30, %v312_v12  ;;  %v1393_v30 = vld [vmem:[#allocation10_spill] sm:$0xff]  ;;  %v1394_v12 = vld [vmem:[#allocation47_spill] sm:$0xff] }
  0x4b   :  { %v153_v63 = vadd.f32 %v1385_v41, %v151_v9  ;;  %v239_v14 = vmul.f32 %v1394_v12, %v1394_v12  ;;  %v327_v10 = vsel %vm78_vm1, %v238_v49, 0.0  ;;  %v1402_v49 = vld [vmem:[#allocation15_spill] sm:$0xff]  ;;  %v1403_v12 = vld [vmem:[#allocation16_spill] sm:$0xff] }
  0x4c   :  { %v316_v60 = vadd.f32 %v315_v16, %v314_v24  ;;  %v1395_v16 = vld [vmem:[#allocation11_spill] sm:$0xff]  ;;  %v1396_v24 = vld [vmem:[#allocation48_spill] sm:$0xff] }
  0x4d   :  { %v155_v25 = vadd.f32 %v1387_v55, %v153_v63  ;;  %v240_v7 = vmul.f32 %v1396_v24, %v1396_v24  ;;  %v329_v51 = vsel %vm78_vm1, %v239_v14, 0.0 }
  0x4e   :  { %v318_v0 = vadd.f32 %v317_v1, %v316_v60  ;;  %v1397_v1 = vld [vmem:[#allocation12_spill] sm:$0xff] }
  0x4f   :  { %v157_v58 = vadd.f32 %v1389_v15, %v155_v25  ;;  %v1398_v60 = vld [vmem:[#allocation52_spill] sm:$0xff]  ;;  %v331_v5 = vsel %vm78_vm1, %v240_v7, 0.0  ;;  %v1405_v7 = vld [vmem:[#allocation18_spill] sm:$0xff] }
  0x50   :  { %v320_v3 = vadd.f32 %v319_v2, %v318_v0  ;;  %v241_v6 = vmul.f32 %v1398_v60, %v1398_v60  ;;  %v1399_v2 = vld [vmem:[#allocation13_spill] sm:$0xff] }
  0x51   :  { %v159_v20 = vadd.f32 %v1391_v56, %v157_v58  ;;  %v1400_v0 = vld [vmem:[#allocation53_spill] sm:$0xff] }
  0x52   :  { %v322_v9 = vadd.f32 %v321_v17, %v320_v3  ;;  %v242_v61 = vmul.f32 %v1400_v0, %v1400_v0  ;;  %v1401_v17 = vld [vmem:[#allocation14_spill] sm:$0xff]  ;;  %v243_v3 = vmul.f32 %v1148_v32, %v1148_v32  ;;  %v333_v34 = vsel %vm78_vm1, %v241_v6, 0.0  ;;  %v1407_v6 = vld [vmem:[#allocation20_spill] sm:$0xff] }
  0x53   :  { %v161_v62 = vadd.f32 %v1393_v30, %v159_v20  ;;  %v1409_v0 = vld [vmem:[#allocation22_spill] sm:$0xff] }
  0x54   :  { %v324_v63 = vadd.f32 %v323_v35, %v322_v9  ;;  %v335_v9 = vsel %vm78_vm1, %v242_v61, 0.0 }
  0x55   :  { %v163_v41 = vadd.f32 %v1395_v16, %v161_v62  ;;  %v244_v62 = vmul.f32 %v1166_v43, %v1166_v43  ;;  %v337_v16 = vsel %vm78_vm1, %v243_v3, 0.0  ;;  %v1411_v3 = vld [vmem:[#allocation24_spill] sm:$0xff] }
  0x56   :  { %v326_v25 = vadd.f32 %v325_v11, %v324_v63 }
  0x57   :  { %v165_v55 = vadd.f32 %v1397_v1, %v163_v41  ;;  %v1404_v41 = vld [vmem:[#allocation17_spill] sm:$0xff]  ;;  %v339_v32 = vsel %vm78_vm1, %v244_v62, 0.0  ;;  %v1413_v62 = vld [vmem:[#allocation27_spill] sm:$0xff] }
  0x58   :  { %v328_v58 = vadd.f32 %v327_v10, %v326_v25 }
  0x59   :  { %v167_v15 = vadd.f32 %v1399_v2, %v165_v55  ;;  %v1406_v55 = vld [vmem:[#allocation19_spill] sm:$0xff]  ;;  %v1408_v2 = vld [vmem:[#allocation21_spill] sm:$0xff] }
  0x5a   :  { %v330_v20 = vadd.f32 %v329_v51, %v328_v58 }
  0x5b   :  { %v169_v56 = vadd.f32 %v1401_v17, %v167_v15  ;;  %v1410_v17 = vld [vmem:[#allocation23_spill] sm:$0xff] }
  0x5c   :  { %v332_v30 = vadd.f32 %v331_v5, %v330_v20 }
  0x5d   :  { %v171_v35 = vadd.f32 %v1402_v49, %v169_v56 }
  0x5e   :  { %v334_v11 = vadd.f32 %v333_v34, %v332_v30 }
  0x5f   :  { %v173_v14 = vadd.f32 %v1403_v12, %v171_v35  ;;  %v1412_v35 = vld [vmem:[#allocation25_spill] sm:$0xff]  ;;  %v1414_v12 = vld [vmem:[#allocation28_spill] sm:$0xff] }
  0x60   :  { %v336_v24 = vadd.f32 %v335_v9, %v334_v11  ;;  %v1415_v11 = vld [vmem:[#allocation29_spill] sm:$0xff] }
  0x61   :  { %v175_v63 = vadd.f32 %v1404_v41, %v173_v14  ;;  %v1416_v41 = vld [vmem:[#allocation31_spill] sm:$0xff] }
  0x62   :  { %v338_v1 = vadd.f32 %v337_v16, %v336_v24  ;;  %v1417_v24 = vld [vmem:[#allocation32_spill] sm:$0xff] }
  0x63   :  { %v177_v10 = vadd.f32 %v1405_v7, %v175_v63  ;;  %v1418_v7 = vld [vmem:[#allocation33_spill] sm:$0xff] }
  0x64   :  { %v340_v60 = vadd.f32 %v339_v32, %v338_v1  ;;  %v1419_v1 = vld [vmem:[#allocation34_spill] sm:$0xff] }
  0x65   :  { %v179_v25 = vadd.f32 %v1406_v55, %v177_v10 }
  0x66   :  { %v342_v51 = vadd.f32 %v1055_v50, %v340_v60 }
  0x67   :  { %v181_v43 = vadd.f32 %v1407_v6, %v179_v25 }
  0x68   :  { %v344_v58 = vadd.f32 %v1058_v31, %v342_v51 }
  0x69   :  { %v183_v15 = vadd.f32 %v1408_v2, %v181_v43 }
  0x6a   :  { %v346_v5 = vadd.f32 %v1061_v26, %v344_v58 }
  0x6b   :  { %v185_v61 = vadd.f32 %v1409_v0, %v183_v15 }
  0x6c   :  { %v348_v20 = vadd.f32 %v1064_v44, %v346_v5 }
  0x6d   :  { %v187_v56 = vadd.f32 %v1410_v17, %v185_v61 }
  0x6e   :  { %v350_v49 = vadd.f32 %v1067_v57, %v348_v20 }
  0x6f   :  { %v189_v34 = vadd.f32 %v1411_v3, %v187_v56 }
  0x70   :  { %v352_v50 = vadd.f32 %v1071_v13, %v350_v49 }
  0x71   :  { %v191_v30 = vadd.f32 %v1412_v35, %v189_v34 }
  0x72   :  { %v354_v31 = vadd.f32 %v1074_v18, %v352_v50 }
  0x73   :  { %v193_v9 = vadd.f32 %v1413_v62, %v191_v30 }
  0x74   :  { %v356_v26 = vadd.f32 %v1077_v19, %v354_v31 }
  0x75   :  { %v195_v14 = vadd.f32 %v1414_v12, %v193_v9 }
  0x76   :  { %v358_v44 = vadd.f32 %v1080_v21, %v356_v26 }
  0x77   :  { %v197_v16 = vadd.f32 %v1415_v11, %v195_v14 }
  0x78   :  { %v360_v57 = vadd.f32 %v1083_v22, %v358_v44 }
  0x79   :  { %v199_v63 = vadd.f32 %v1416_v41, %v197_v16 }
  0x7a   :  { %v362_v13 = vadd.f32 %v1086_v23, %v360_v57 }
  0x7b   :  { %v201_v32 = vadd.f32 %v1417_v24, %v199_v63 }
  0x7c   :  { %v364_v18 = vadd.f32 %v1090_v45, %v362_v13 }
  0x7d   :  { %v203_v10 = vadd.f32 %v1418_v7, %v201_v32 }
  0x7e   :  { %v366_v19 = vadd.f32 %v1093_v4, %v364_v18 }
  0x7f   :  { %v205_v55 = vadd.f32 %v1419_v1, %v203_v10 }
  0x80   :  { %v368_v25 = vadd.f32 %v1096_v27, %v366_v19 }
  0x81   :  { %v206_v2 = vrot.slane %v205_v55, 4 }
  0x82   :  { %v370_v21 = vadd.f32 %v1099_v28, %v368_v25 }
  0x84   :  { %v372_v60 = vadd.f32 %v1102_v29, %v370_v21 }
  0x86   :  { %v374_v22 = vadd.f32 %v1105_v33, %v372_v60 }
  0x88   :  { %v376_v6 = vadd.f32 %v1109_v40, %v374_v22  ;;  %v207_v40 = vadd.f32 %v206_v2, %v205_v55 }
  0x8a   :  { %v378_v23 = vadd.f32 %v1112_v42, %v376_v6  ;;  %v208_v15 = vrot.slane %v207_v40, 2 }
  0x8c   :  { %v380_v43 = vadd.f32 %v1115_v46, %v378_v23 }
  0x8e   :  { %v382_v45 = vadd.f32 %v1118_v47, %v380_v43 }
  0x90   :  { %v384_v51 = vadd.f32 %v1121_v39, %v382_v45 }
  0x92   :  { %v386_v4 = vadd.f32 %v1124_v48, %v384_v51  ;;  %v209_v48 = vadd.f32 %v208_v15, %v207_v40 }
  0x94   :  { %v388_v27 = vadd.f32 %v1128_v37, %v386_v4  ;;  %v210_v0 = vrot.slane %v209_v48, 1 }
  0x96   :  { %v390_v28 = vadd.f32 %v1131_v53, %v388_v27  ;;  %v211_v5 = vadd.f32 %v210_v0, %v209_v48 }
  0x98   :  { %v392_v29 = vadd.f32 %v1134_v54, %v390_v28 }
  0x9a   :  { %v394_v33 = vadd.f32 %v1137_v38, %v392_v29 }
  0x9c   :  { %v396_v42 = vadd.f32 %v1140_v59, %v394_v33  ;;  %v409_v59 = vld [vmem:[%s1295_s1] sm:$0x3] }
  0x9e   :  { %v398_v46 = vadd.f32 %v1143_v36, %v396_v42 }
  0xa0   :  { %v400_v47 = vadd.f32 %v1152_v52, %v398_v46 }
  0xa2   :  { %v402_v39 = vadd.f32 %v1155_v8, %v400_v47 }
  0xa4   :  { %v403_v58 = vrot.slane %v402_v39, 4 }
  0xa6   :  { %v404_v37 = vadd.f32 %v403_v58, %v402_v39 }
  0xa8   :  { %v405_v53 = vrot.slane %v404_v37, 2 }
  0xaa   :  { %v406_v61 = vadd.f32 %v405_v53, %v404_v37 }
  0xac   :  { %v407_v54 = vrot.slane %v406_v61, 1 }
  0xae   :  { %v408_v38 = vadd.f32 %v407_v54, %v406_v61 }
  0xb0   :  { %v411_v36 = vsel %vm410_vm2, %v211_v5, %v408_v38 }
  0xb1   :  { %v412_v17 = vadd.f32 %v411_v36, %v409_v59 }
  0xb3   :  { %414 = vst.msk [vmem:[%s1295_s1] sm:$0x3] %vm12_vm0, %v412_v17 }

// kernel: resnet_simclr_forward.63
= control target key start
LH: loop header
LB: loop body
LE: loop exit
PB: predicated region body
PF: predicated region fallthrough
CT: control target
= control target key end

     0   :  { %s1326_s9 = smov 0   ;;  %s1328_s10 = smov 0   ;;  %s1482_s0 = inlined_call_operand.vmem [shape: bf16[512,256], index: 0, kind: input, shape index: {}]   ;;  %s1483_s1 = inlined_call_operand.vmem [shape: bf16[256,128], index: 1, kind: input, shape index: {}]   ;;  %s1484_s2 = inlined_call_operand.vmem [shape: f32[512,128], index: 2, kind: output, shape index: {}]  }
   0x1   :  { %s1330_s11 = smov 0  }
   0x2 LB: > { %s31_s12 = sadd.s32 1, %s1305_s10  ;;  %p1014_p0 = scmp.ge.s32.totalorder %s1309_s11, 1  ;;  %s1309_s11 = sphi %s1330_s11, %s12_s11   ;;  %s1305_s10 = sphi %s1328_s10, %s1486_s10   ;;  %s1301_s9 = sphi %s1326_s9, %s1485_s9  }
   0x3   : > { %p33_p1 = scmp.ge.s32.totalorder %s31_s12, 2  ;;  %p158_p2 = scmp.lt.s32.totalorder %s1309_s11, 3 }
   0x5   : > { %s1488_s12 = smov (%p33_p1, %s31_s12), 0  ;;  %p159_p3 = pnand %p1014_p0, %p158_p2 }
   0x6   : > { %v1223_v0 = vld [vmem:[%s1483_s1 + $0x40] sm:$0xff] (!%p159_p3)   ;;  %s1015_s15 = sshll.u32 (!%p159_p3), %s1301_s9, 5  ;;  %v1225_v2 = vld [vmem:[%s1483_s1 + $0x48] sm:$0xff] (!%p159_p3)   ;;  %v1227_v4 = vld [vmem:[%s1483_s1 + $0x50] sm:$0xff] (!%p159_p3)  }
   0x7   : > { %162 = sbr.rel (%p159_p3) target bundleno = 313 (0x139), region = 28  ;;  %v1224_v1 = vld [vmem:[%s1483_s1] sm:$0xff] (!%p159_p3)   ;;  %1071 = vmatprep.subr.bf16.mxu0 (!%p159_p3), %v1223_v0  ;;  %1183 = vmatprep.subr.bf16.mxu1 (!%p159_p3), %v1223_v0  ;;  %v1226_v3 = vld [vmem:[%s1483_s1 + $0x8] sm:$0xff] (!%p159_p3)   ;;  %p198_p4 = scmp.lt.s32.totalorder (!%p159_p3), %s1015_s15, 63  ;;  %v1228_v5 = vld [vmem:[%s1483_s1 + $0x10] sm:$0xff] (!%p159_p3)  }
   0x8   : > { %1072 = vmatpush3.bf16.msra.mxu0 (!%p159_p3), %v1224_v1  ;;  %1191 = vmatpush3.bf16.msra.mxu1 (!%p159_p3), %v1224_v1  ;;  %v1229_v6 = vld [vmem:[%s1483_s1 + $0x58] sm:$0xff] (!%p159_p3)   ;;  %v1231_v8 = vld [vmem:[%s1483_s1 + $0x60] sm:$0xff] (!%p159_p3)   ;;  %v1233_v10 = vld [vmem:[%s1483_s1 + $0x68] sm:$0xff] (!%p159_p3)  }
   0x9   : > { %1073 = vmatprep.subr.bf16.mxu0 (!%p159_p3), %v1225_v2  ;;  %1184 = vmatprep.subr.bf16.mxu1 (!%p159_p3), %v1225_v2  ;;  %v1230_v7 = vld [vmem:[%s1483_s1 + $0x18] sm:$0xff] (!%p159_p3)   ;;  %v1232_v9 = vld [vmem:[%s1483_s1 + $0x20] sm:$0xff] (!%p159_p3)   ;;  %v1234_v13 = vld [vmem:[%s1483_s1 + $0x28] sm:$0xff] (!%p159_p3)  }
   0xa   : > { %v1235_v14 = vld [vmem:[%s1483_s1 + $0x70] sm:$0xff] (!%p159_p3)   ;;  %v1237_v16 = vld [vmem:[%s1483_s1 + $0x78] sm:$0xff] (!%p159_p3)  }
   0xb   : > { %v1236_v15 = vld [vmem:[%s1483_s1 + $0x30] sm:$0xff] (!%p159_p3)   ;;  %v1238_v17 = vld [vmem:[%s1483_s1 + $0x38] sm:$0xff] (!%p159_p3)  }
   0xc   : > { %1074 = vmatpush3.bf16.msra.mxu0 (!%p159_p3), %v1226_v3  ;;  %1192 = vmatpush3.bf16.msra.mxu1 (!%p159_p3), %v1226_v3 }
   0xd   : > { %1075 = vmatprep.subr.bf16.mxu0 (!%p159_p3), %v1227_v4  ;;  %1185 = vmatprep.subr.bf16.mxu1 (!%p159_p3), %v1227_v4 }
   0xe   : > { %s1490_s15 = smov (!%p198_p4, %s1015_s15), 63 }
   0xf   : > { %s1070_s30 = sshll.u32 %s1490_s15, 3 }
  0x10   : > { %1076 = vmatpush3.bf16.msra.mxu0 %v1228_v5  ;;  %1193 = vmatpush3.bf16.msra.mxu1 %v1228_v5  ;;  %s1379_s7 = scalar_lea.vmem %s1482_s0, %s1070_s30  ;;  %s1439_s28 = scalar_lea.vmem %s1484_s2, %s1070_s30 }
  0x11   : > { %1077 = vmatprep.subr.bf16.mxu0 %v1229_v6  ;;  %1186 = vmatprep.subr.bf16.mxu1 %v1229_v6  ;;  %v1241_v11 = vld [vmem:[%s1379_s7 + $0x4] ss:$8 sps:$4 sm:$0xff]   ;;  %v1239_v18 = vld [vmem:[%s1379_s7] ss:$8 sps:$4 sm:$0xff]   ;;  %v1245_v20 = vld [vmem:[%s1379_s7 + $0x14] ss:$8 sps:$4 sm:$0xff]  }
  0x12   : > { %v1244_v12 = vld [vmem:[%s1379_s7 + $0x84] ss:$8 sps:$4 sm:$0xff]   ;;  %647 = vmatprep.mubr.bf16.mxu0 %v1241_v11  ;;  %v1242_v19 = vld [vmem:[%s1379_s7 + $0x80] ss:$8 sps:$4 sm:$0xff]   ;;  %v1247_v21 = vld [vmem:[%s1379_s7 + $0x94] ss:$8 sps:$4 sm:$0xff]  }
  0x13   : > { %711 = vmatprep.mubr.bf16.mxu1 %v1244_v12  ;;  %v1249_v22 = vld [vmem:[%s1379_s7 + $0x10] ss:$8 sps:$4 sm:$0xff]   ;;  %v1251_v24 = vld [vmem:[%s1379_s7 + $0x24] ss:$8 sps:$4 sm:$0xff]   ;;  %v1255_v26 = vld [vmem:[%s1379_s7 + $0x20] ss:$8 sps:$4 sm:$0xff]  }
  0x14   : > { %1078 = vmatpush3.bf16.msra.mxu0 %v1230_v7  ;;  %1194 = vmatpush3.bf16.msra.mxu1 %v1230_v7  ;;  %v1250_v23 = vld [vmem:[%s1379_s7 + $0x90] ss:$8 sps:$4 sm:$0xff]   ;;  %v1253_v25 = vld [vmem:[%s1379_s7 + $0xa4] ss:$8 sps:$4 sm:$0xff]   ;;  %v1256_v27 = vld [vmem:[%s1379_s7 + $0xa0] ss:$8 sps:$4 sm:$0xff]  }
  0x15   : > { %1079 = vmatprep.subr.bf16.mxu0 %v1231_v8  ;;  %1187 = vmatprep.subr.bf16.mxu1 %v1231_v8  ;;  %v1257_v28 = vld [vmem:[%s1379_s7 + $0x34] ss:$8 sps:$4 sm:$0xff]   ;;  %v1261_v30 = vld [vmem:[%s1379_s7 + $0x30] ss:$8 sps:$4 sm:$0xff]   ;;  %v1263_v32 = vld [vmem:[%s1379_s7 + $0x44] ss:$8 sps:$4 sm:$0xff]  }
  0x16   : > { %v1259_v29 = vld [vmem:[%s1379_s7 + $0xb4] ss:$8 sps:$4 sm:$0xff]   ;;  %v1262_v31 = vld [vmem:[%s1379_s7 + $0xb0] ss:$8 sps:$4 sm:$0xff]   ;;  %v1265_v33 = vld [vmem:[%s1379_s7 + $0xc4] ss:$8 sps:$4 sm:$0xff]  }
  0x17   : > { %v1267_v34 = vld [vmem:[%s1379_s7 + $0x40] ss:$8 sps:$4 sm:$0xff]   ;;  %v1269_v36 = vld [vmem:[%s1379_s7 + $0x54] ss:$8 sps:$4 sm:$0xff]   ;;  %v1273_v38 = vld [vmem:[%s1379_s7 + $0x50] ss:$8 sps:$4 sm:$0xff]  }
  0x18   : > { %1080 = vmatpush3.bf16.msra.mxu0 %v1232_v9  ;;  %1195 = vmatpush3.bf16.msra.mxu1 %v1232_v9  ;;  %v1268_v35 = vld [vmem:[%s1379_s7 + $0xc0] ss:$8 sps:$4 sm:$0xff]   ;;  %v1271_v37 = vld [vmem:[%s1379_s7 + $0xd4] ss:$8 sps:$4 sm:$0xff]   ;;  %v1274_v39 = vld [vmem:[%s1379_s7 + $0xd0] ss:$8 sps:$4 sm:$0xff]  }
  0x19   : > { %1081 = vmatprep.subr.bf16.mxu0 %v1233_v10  ;;  %1188 = vmatprep.subr.bf16.mxu1 %v1233_v10  ;;  %v1275_v40 = vld [vmem:[%s1379_s7 + $0x64] ss:$8 sps:$4 sm:$0xff]   ;;  %v1279_v42 = vld [vmem:[%s1379_s7 + $0x60] ss:$8 sps:$4 sm:$0xff]   ;;  %v1281_v44 = vld [vmem:[%s1379_s7 + $0x74] ss:$8 sps:$4 sm:$0xff]  }
  0x1a   : > { %v1277_v41 = vld [vmem:[%s1379_s7 + $0xe4] ss:$8 sps:$4 sm:$0xff]   ;;  %v1280_v43 = vld [vmem:[%s1379_s7 + $0xe0] ss:$8 sps:$4 sm:$0xff]   ;;  %v1283_v45 = vld [vmem:[%s1379_s7 + $0xf4] ss:$8 sps:$4 sm:$0xff]  }
  0x1b   : > { %v1285_v46 = vld [vmem:[%s1379_s7 + $0x70] ss:$8 sps:$4 sm:$0xff]  }
  0x1c   : > { %1082 = vmatpush3.bf16.msra.mxu0 %v1234_v13  ;;  %1196 = vmatpush3.bf16.msra.mxu1 %v1234_v13  ;;  %v1286_v47 = vld [vmem:[%s1379_s7 + $0xf0] ss:$8 sps:$4 sm:$0xff]  }
  0x1d   : > { %1083 = vmatprep.subr.bf16.mxu0 %v1235_v14  ;;  %1189 = vmatprep.subr.bf16.mxu1 %v1235_v14 }
  0x20   : > { %1084 = vmatpush3.bf16.msra.mxu0 %v1236_v15  ;;  %1197 = vmatpush3.bf16.msra.mxu1 %v1236_v15 }
  0x21   : > { %1085 = vmatprep.subr.bf16.mxu0 %v1237_v16  ;;  %1190 = vmatprep.subr.bf16.mxu1 %v1237_v16 }
  0x24   : > { %1086 = vmatpush3.bf16.msra.mxu0 %v1238_v17  ;;  %1198 = vmatpush3.bf16.msra.mxu1 %v1238_v17 }
  0x27   : > { %648 = vmatmul.mubr.bf16.vlgmr.msra.gmra.mrb[0].mxu0 %v1239_v18  ;;  %712 = vmatmul.mubr.bf16.vlgmr.msra.gmra.mrb[0].mxu1 %v1242_v19 }
  0x28   : > { %655 = vmatprep.mubr.bf16.mxu0 %v1245_v20  ;;  %719 = vmatprep.mubr.bf16.mxu1 %v1247_v21 }
  0x2f   : > { %656 = vmatmul.mubr.bf16.gmra.mrb[4].mxu0 %v1249_v22  ;;  %720 = vmatmul.mubr.bf16.gmra.mrb[4].mxu1 %v1250_v23 }
  0x30   : > { %663 = vmatprep.mubr.bf16.mxu0 %v1251_v24  ;;  %727 = vmatprep.mubr.bf16.mxu1 %v1253_v25 }
  0x37   : > { %664 = vmatmul.mubr.bf16.gmra.mrb[8].mxu0 %v1255_v26  ;;  %728 = vmatmul.mubr.bf16.gmra.mrb[8].mxu1 %v1256_v27 }
  0x38   : > { %671 = vmatprep.mubr.bf16.mxu0 %v1257_v28  ;;  %735 = vmatprep.mubr.bf16.mxu1 %v1259_v29 }
  0x3f   : > { %672 = vmatmul.mubr.bf16.gmra.mrb[12].mxu0 %v1261_v30  ;;  %736 = vmatmul.mubr.bf16.gmra.mrb[12].mxu1 %v1262_v31 }
  0x40   : > { %679 = vmatprep.mubr.bf16.mxu0 %v1263_v32  ;;  %743 = vmatprep.mubr.bf16.mxu1 %v1265_v33 }
  0x47   : > { %680 = vmatmul.mubr.bf16.gmra.mrb[16].mxu0 %v1267_v34  ;;  %744 = vmatmul.mubr.bf16.gmra.mrb[16].mxu1 %v1268_v35 }
  0x48   : > { %687 = vmatprep.mubr.bf16.mxu0 %v1269_v36  ;;  %751 = vmatprep.mubr.bf16.mxu1 %v1271_v37 }
  0x4f   : > { %688 = vmatmul.mubr.bf16.gmra.mrb[20].mxu0 %v1273_v38  ;;  %752 = vmatmul.mubr.bf16.gmra.mrb[20].mxu1 %v1274_v39 }
  0x50   : > { %695 = vmatprep.mubr.bf16.mxu0 %v1275_v40  ;;  %759 = vmatprep.mubr.bf16.mxu1 %v1277_v41 }
  0x57   : > { %696 = vmatmul.mubr.bf16.gmra.mrb[24].mxu0 %v1279_v42  ;;  %760 = vmatmul.mubr.bf16.gmra.mrb[24].mxu1 %v1280_v43 }
  0x58   : > { %703 = vmatprep.mubr.bf16.mxu0 %v1281_v44  ;;  %767 = vmatprep.mubr.bf16.mxu1 %v1283_v45 }
  0x5f   : > { %704 = vmatmul.mubr.bf16.gmra.mrb[28].mxu0 %v1285_v46  ;;  %768 = vmatmul.mubr.bf16.gmra.mrb[28].mxu1 %v1286_v47 }
  0xfa   : > { %v1087_v48 = vpop.f32.mrb[0].mxu0  ;;  %v1135_v49 = vpop.f32.mrb[0].mxu1 }
  0xfb   : > { %v1088_v50 = vpop.f32.mrb[1].mxu0  ;;  %v1136_v51 = vpop.f32.mrb[1].mxu1 }
  0xfc   : > { %v1089_v52 = vadd.f32 %v1088_v50, %v1087_v48  ;;  %v1137_v53 = vadd.f32 %v1136_v51, %v1135_v49  ;;  %v1090_v54 = vpop.f32.mrb[2].mxu0  ;;  %v1138_v55 = vpop.f32.mrb[2].mxu1 }
  0xfd   : > { %v1091_v56 = vpop.f32.mrb[3].mxu0  ;;  %v1139_v57 = vpop.f32.mrb[3].mxu1 }
  0xfe   : > { %875 = vst [vmem:[%s1439_s28] sm:$0xff] %v1089_v52  ;;  %891 = vst [vmem:[%s1439_s28 + $0x80] sm:$0xff] %v1137_v53  ;;  %v1092_v58 = vadd.f32 %v1091_v56, %v1090_v54  ;;  %v1140_v59 = vadd.f32 %v1139_v57, %v1138_v55 }
 0x100   : > { %876 = vst [vmem:[%s1439_s28 + $0x8] sm:$0xff] %v1092_v58  ;;  %892 = vst [vmem:[%s1439_s28 + $0x88] sm:$0xff] %v1140_v59 }
 0x102   : > { %v1093_v60 = vpop.f32.mrb[4].mxu0  ;;  %v1141_v61 = vpop.f32.mrb[4].mxu1 }
 0x103   : > { %v1094_v62 = vpop.f32.mrb[5].mxu0  ;;  %v1142_v63 = vpop.f32.mrb[5].mxu1 }
 0x104   : > { %v1095_v0 = vadd.f32 %v1094_v62, %v1093_v60  ;;  %v1143_v1 = vadd.f32 %v1142_v63, %v1141_v61  ;;  %v1096_v2 = vpop.f32.mrb[6].mxu0  ;;  %v1144_v3 = vpop.f32.mrb[6].mxu1 }
 0x105   : > { %v1097_v4 = vpop.f32.mrb[7].mxu0  ;;  %v1145_v5 = vpop.f32.mrb[7].mxu1 }
 0x106   : > { %877 = vst [vmem:[%s1439_s28 + $0x10] sm:$0xff] %v1095_v0  ;;  %893 = vst [vmem:[%s1439_s28 + $0x90] sm:$0xff] %v1143_v1  ;;  %v1098_v6 = vadd.f32 %v1097_v4, %v1096_v2  ;;  %v1146_v7 = vadd.f32 %v1145_v5, %v1144_v3 }
 0x108   : > { %878 = vst [vmem:[%s1439_s28 + $0x18] sm:$0xff] %v1098_v6  ;;  %894 = vst [vmem:[%s1439_s28 + $0x98] sm:$0xff] %v1146_v7 }
 0x10a   : > { %v1099_v8 = vpop.f32.mrb[8].mxu0  ;;  %v1147_v9 = vpop.f32.mrb[8].mxu1 }
 0x10b   : > { %v1100_v10 = vpop.f32.mrb[9].mxu0  ;;  %v1148_v11 = vpop.f32.mrb[9].mxu1 }
 0x10c   : > { %v1101_v12 = vadd.f32 %v1100_v10, %v1099_v8  ;;  %v1149_v13 = vadd.f32 %v1148_v11, %v1147_v9  ;;  %v1102_v14 = vpop.f32.mrb[10].mxu0  ;;  %v1150_v15 = vpop.f32.mrb[10].mxu1 }
 0x10d   : > { %v1103_v16 = vpop.f32.mrb[11].mxu0  ;;  %v1151_v17 = vpop.f32.mrb[11].mxu1 }
 0x10e   : > { %879 = vst [vmem:[%s1439_s28 + $0x20] sm:$0xff] %v1101_v12  ;;  %895 = vst [vmem:[%s1439_s28 + $0xa0] sm:$0xff] %v1149_v13  ;;  %v1104_v18 = vadd.f32 %v1103_v16, %v1102_v14  ;;  %v1152_v19 = vadd.f32 %v1151_v17, %v1150_v15 }
 0x110   : > { %880 = vst [vmem:[%s1439_s28 + $0x28] sm:$0xff] %v1104_v18  ;;  %896 = vst [vmem:[%s1439_s28 + $0xa8] sm:$0xff] %v1152_v19 }
 0x112   : > { %v1105_v20 = vpop.f32.mrb[12].mxu0  ;;  %v1153_v21 = vpop.f32.mrb[12].mxu1 }
 0x113   : > { %v1106_v22 = vpop.f32.mrb[13].mxu0  ;;  %v1154_v23 = vpop.f32.mrb[13].mxu1 }
 0x114   : > { %v1107_v24 = vadd.f32 %v1106_v22, %v1105_v20  ;;  %v1155_v25 = vadd.f32 %v1154_v23, %v1153_v21  ;;  %v1108_v26 = vpop.f32.mrb[14].mxu0  ;;  %v1156_v27 = vpop.f32.mrb[14].mxu1 }
 0x115   : > { %v1109_v28 = vpop.f32.mrb[15].mxu0  ;;  %v1157_v29 = vpop.f32.mrb[15].mxu1 }
 0x116   : > { %881 = vst [vmem:[%s1439_s28 + $0x30] sm:$0xff] %v1107_v24  ;;  %897 = vst [vmem:[%s1439_s28 + $0xb0] sm:$0xff] %v1155_v25  ;;  %v1110_v30 = vadd.f32 %v1109_v28, %v1108_v26  ;;  %v1158_v31 = vadd.f32 %v1157_v29, %v1156_v27 }
 0x118   : > { %882 = vst [vmem:[%s1439_s28 + $0x38] sm:$0xff] %v1110_v30  ;;  %898 = vst [vmem:[%s1439_s28 + $0xb8] sm:$0xff] %v1158_v31 }
 0x11a   : > { %v1111_v32 = vpop.f32.mrb[16].mxu0  ;;  %v1159_v33 = vpop.f32.mrb[16].mxu1 }
 0x11b   : > { %v1112_v34 = vpop.f32.mrb[17].mxu0  ;;  %v1160_v35 = vpop.f32.mrb[17].mxu1 }
 0x11c   : > { %v1113_v36 = vadd.f32 %v1112_v34, %v1111_v32  ;;  %v1161_v37 = vadd.f32 %v1160_v35, %v1159_v33  ;;  %v1114_v38 = vpop.f32.mrb[18].mxu0  ;;  %v1162_v39 = vpop.f32.mrb[18].mxu1 }
 0x11d   : > { %v1115_v40 = vpop.f32.mrb[19].mxu0  ;;  %v1163_v41 = vpop.f32.mrb[19].mxu1 }
 0x11e   : > { %883 = vst [vmem:[%s1439_s28 + $0x40] sm:$0xff] %v1113_v36  ;;  %899 = vst [vmem:[%s1439_s28 + $0xc0] sm:$0xff] %v1161_v37  ;;  %v1116_v42 = vadd.f32 %v1115_v40, %v1114_v38  ;;  %v1164_v43 = vadd.f32 %v1163_v41, %v1162_v39 }
 0x120   : > { %884 = vst [vmem:[%s1439_s28 + $0x48] sm:$0xff] %v1116_v42  ;;  %900 = vst [vmem:[%s1439_s28 + $0xc8] sm:$0xff] %v1164_v43 }
 0x122   : > { %v1117_v44 = vpop.f32.mrb[20].mxu0  ;;  %v1165_v45 = vpop.f32.mrb[20].mxu1 }
 0x123   : > { %v1118_v46 = vpop.f32.mrb[21].mxu0  ;;  %v1166_v47 = vpop.f32.mrb[21].mxu1 }
 0x124   : > { %v1119_v48 = vadd.f32 %v1118_v46, %v1117_v44  ;;  %v1167_v49 = vadd.f32 %v1166_v47, %v1165_v45  ;;  %v1120_v50 = vpop.f32.mrb[22].mxu0  ;;  %v1168_v51 = vpop.f32.mrb[22].mxu1 }
 0x125   : > { %v1121_v52 = vpop.f32.mrb[23].mxu0  ;;  %v1169_v53 = vpop.f32.mrb[23].mxu1 }
 0x126   : > { %885 = vst [vmem:[%s1439_s28 + $0x50] sm:$0xff] %v1119_v48  ;;  %901 = vst [vmem:[%s1439_s28 + $0xd0] sm:$0xff] %v1167_v49  ;;  %v1122_v54 = vadd.f32 %v1121_v52, %v1120_v50  ;;  %v1170_v55 = vadd.f32 %v1169_v53, %v1168_v51 }
 0x128   : > { %886 = vst [vmem:[%s1439_s28 + $0x58] sm:$0xff] %v1122_v54  ;;  %902 = vst [vmem:[%s1439_s28 + $0xd8] sm:$0xff] %v1170_v55 }
 0x12a   : > { %v1123_v56 = vpop.f32.mrb[24].mxu0  ;;  %v1171_v57 = vpop.f32.mrb[24].mxu1 }
 0x12b   : > { %v1124_v58 = vpop.f32.mrb[25].mxu0  ;;  %v1172_v59 = vpop.f32.mrb[25].mxu1 }
 0x12c   : > { %v1125_v60 = vadd.f32 %v1124_v58, %v1123_v56  ;;  %v1173_v61 = vadd.f32 %v1172_v59, %v1171_v57  ;;  %v1126_v62 = vpop.f32.mrb[26].mxu0  ;;  %v1174_v63 = vpop.f32.mrb[26].mxu1 }
 0x12d   : > { %v1127_v0 = vpop.f32.mrb[27].mxu0  ;;  %v1175_v1 = vpop.f32.mrb[27].mxu1 }
 0x12e   : > { %887 = vst [vmem:[%s1439_s28 + $0x60] sm:$0xff] %v1125_v60  ;;  %903 = vst [vmem:[%s1439_s28 + $0xe0] sm:$0xff] %v1173_v61  ;;  %v1128_v2 = vadd.f32 %v1127_v0, %v1126_v62  ;;  %v1176_v3 = vadd.f32 %v1175_v1, %v1174_v63 }
 0x130   : > { %888 = vst [vmem:[%s1439_s28 + $0x68] sm:$0xff] %v1128_v2  ;;  %904 = vst [vmem:[%s1439_s28 + $0xe8] sm:$0xff] %v1176_v3 }
 0x132   : > { %v1129_v4 = vpop.f32.mrb[28].mxu0  ;;  %v1177_v5 = vpop.f32.mrb[28].mxu1 }
 0x133   : > { %v1130_v6 = vpop.f32.mrb[29].mxu0  ;;  %v1178_v7 = vpop.f32.mrb[29].mxu1 }
 0x134   : > { %v1131_v8 = vadd.f32 %v1130_v6, %v1129_v4  ;;  %v1179_v9 = vadd.f32 %v1178_v7, %v1177_v5  ;;  %v1132_v10 = vpop.f32.mrb[30].mxu0  ;;  %v1180_v11 = vpop.f32.mrb[30].mxu1 }
 0x135   : > { %v1133_v12 = vpop.f32.mrb[31].mxu0  ;;  %v1181_v13 = vpop.f32.mrb[31].mxu1 }
 0x136   : > { %889 = vst [vmem:[%s1439_s28 + $0x70] sm:$0xff] %v1131_v8  ;;  %905 = vst [vmem:[%s1439_s28 + $0xf0] sm:$0xff] %v1179_v9  ;;  %v1134_v14 = vadd.f32 %v1133_v12, %v1132_v10  ;;  %v1182_v15 = vadd.f32 %v1181_v13, %v1180_v11 }
 0x138   : > { %890 = vst [vmem:[%s1439_s28 + $0x78] sm:$0xff] %v1134_v14  ;;  %906 = vst [vmem:[%s1439_s28 + $0xf8] sm:$0xff] %v1182_v15 }
 0x139 PF: > { %s12_s11 = sadd.s32 1, %s1309_s11   ;;  %s1485_s9 = smov %s1305_s10 }
 0x13a   : > { %p9_p5 = scmp.ge.s32.totalorder %s12_s11, 4   ;;  %s1486_s10 = smov %s1488_s12 }
 0x13c   :  { %11 = sbr.rel (!%p9_p5) target bundleno = 2 (0x2), region = 69 }

// kernel: resnet_simclr_forward.66
= control target key start
LH: loop header
LB: loop body
LE: loop exit
PB: predicated region body
PF: predicated region fallthrough
CT: control target
= control target key end

     0   :  { %vm152_vm0 = vcmask 523264   ;;  %s1095_s0 = inlined_call_operand.vmem [shape: f32[9,128,64], index: 0, kind: input, shape index: {}]   ;;  %s1096_s1 = inlined_call_operand.vmem [shape: f32[128,64], index: 1, kind: output, shape index: {}]  }
   0x1   :  { %v8_v0 = vld [vmem:[%s1095_s0] sm:$0xff]  ;;  %v9_v13 = vld [vmem:[%s1095_s0 + $0x8] sm:$0xff]  ;;  %v10_v32 = vld [vmem:[%s1095_s0 + $0x10] sm:$0xff] }
   0x2   :  { %v24_v1 = vld [vmem:[%s1095_s0 + $0x80] sm:$0xff]  ;;  %v153_v5 = vsel %vm152_vm0, %v8_v0, -inf  ;;  %v25_v14 = vld [vmem:[%s1095_s0 + $0x88] sm:$0xff]  ;;  %v170_v19 = vsel %vm152_vm0, %v9_v13, -inf  ;;  %v26_v33 = vld [vmem:[%s1095_s0 + $0x90] sm:$0xff]  ;;  %v187_v38 = vsel %vm152_vm0, %v10_v32, -inf }
   0x3   :  { %v40_v2 = vld [vmem:[%s1095_s0 + $0x100] sm:$0xff]  ;;  %v154_v6 = vsel %vm152_vm0, %v24_v1, -inf  ;;  %v41_v15 = vld [vmem:[%s1095_s0 + $0x108] sm:$0xff]  ;;  %v171_v20 = vsel %vm152_vm0, %v25_v14, -inf  ;;  %v42_v34 = vld [vmem:[%s1095_s0 + $0x110] sm:$0xff]  ;;  %v188_v39 = vsel %vm152_vm0, %v26_v33, -inf }
   0x4   :  { %v56_v3 = vld [vmem:[%s1095_s0 + $0x180] sm:$0xff]  ;;  %v156_v7 = vsel %vm152_vm0, %v40_v2, -inf  ;;  %v155_v11 = vmax.f32 %v153_v5, %v154_v6  ;;  %v57_v18 = vld [vmem:[%s1095_s0 + $0x188] sm:$0xff]  ;;  %v173_v21 = vsel %vm152_vm0, %v41_v15, -inf  ;;  %v172_v27 = vmax.f32 %v170_v19, %v171_v20  ;;  %v58_v37 = vld [vmem:[%s1095_s0 + $0x190] sm:$0xff] }
   0x5   :  { %v72_v4 = vld [vmem:[%s1095_s0 + $0x200] sm:$0xff]  ;;  %v158_v12 = vsel %vm152_vm0, %v56_v3, -inf  ;;  %v73_v24 = vld [vmem:[%s1095_s0 + $0x208] sm:$0xff]  ;;  %v175_v31 = vsel %vm152_vm0, %v57_v18, -inf  ;;  %v190_v40 = vsel %vm152_vm0, %v42_v34, -inf  ;;  %v74_v45 = vld [vmem:[%s1095_s0 + $0x210] sm:$0xff]  ;;  %v189_v46 = vmax.f32 %v187_v38, %v188_v39 }
   0x6   :  { %v88_v8 = vld [vmem:[%s1095_s0 + $0x280] sm:$0xff]  ;;  %v157_v17 = vmax.f32 %v155_v11, %v156_v7  ;;  %v160_v22 = vsel %vm152_vm0, %v72_v4, -inf  ;;  %v89_v25 = vld [vmem:[%s1095_s0 + $0x288] sm:$0xff]  ;;  %v174_v36 = vmax.f32 %v172_v27, %v173_v21  ;;  %v177_v44 = vsel %vm152_vm0, %v73_v24, -inf  ;;  %v11_v51 = vld [vmem:[%s1095_s0 + $0x18] sm:$0xff] }
   0x7   :  { %v104_v9 = vld [vmem:[%s1095_s0 + $0x300] sm:$0xff]  ;;  %v162_v23 = vsel %vm152_vm0, %v88_v8, -inf  ;;  %v105_v26 = vld [vmem:[%s1095_s0 + $0x308] sm:$0xff]  ;;  %v179_v48 = vsel %vm152_vm0, %v89_v25, -inf  ;;  %v192_v50 = vsel %vm152_vm0, %v58_v37, -inf  ;;  %v27_v52 = vld [vmem:[%s1095_s0 + $0x98] sm:$0xff]  ;;  %v191_v58 = vmax.f32 %v189_v46, %v190_v40 }
   0x8   :  { %v120_v10 = vld [vmem:[%s1095_s0 + $0x380] sm:$0xff]  ;;  %v159_v28 = vmax.f32 %v157_v17, %v158_v12  ;;  %v164_v29 = vsel %vm152_vm0, %v104_v9, -inf  ;;  %v121_v35 = vld [vmem:[%s1095_s0 + $0x388] sm:$0xff]  ;;  %v176_v47 = vmax.f32 %v174_v36, %v175_v31  ;;  %v181_v49 = vsel %vm152_vm0, %v105_v26, -inf  ;;  %v43_v53 = vld [vmem:[%s1095_s0 + $0x118] sm:$0xff] }
   0x9   :  { %v136_v16 = vld [vmem:[%s1095_s0 + $0x400] sm:$0xff]  ;;  %v166_v30 = vsel %vm152_vm0, %v120_v10, -inf  ;;  %v137_v43 = vld [vmem:[%s1095_s0 + $0x408] sm:$0xff]  ;;  %v183_v55 = vsel %vm152_vm0, %v121_v35, -inf  ;;  %v90_v56 = vld [vmem:[%s1095_s0 + $0x290] sm:$0xff]  ;;  %v204_v60 = vsel %vm152_vm0, %v11_v51, -inf  ;;  %v193_v4 = vmax.f32 %v191_v58, %v192_v50 }
   0xa   :  { %v161_v41 = vmax.f32 %v159_v28, %v160_v22  ;;  %v168_v42 = vsel %vm152_vm0, %v136_v16, -inf  ;;  %v106_v57 = vld [vmem:[%s1095_s0 + $0x310] sm:$0xff]  ;;  %v59_v59 = vld [vmem:[%s1095_s0 + $0x198] sm:$0xff]  ;;  %v178_v61 = vmax.f32 %v176_v47, %v177_v44  ;;  %v194_v62 = vsel %vm152_vm0, %v74_v45, -inf  ;;  %v12_v6 = vld [vmem:[%s1095_s0 + $0x20] sm:$0xff] }
   0xb   :  { %v75_v63 = vld [vmem:[%s1095_s0 + $0x218] sm:$0xff]  ;;  %v205_v0 = vsel %vm152_vm0, %v27_v52, -inf  ;;  %v207_v1 = vsel %vm152_vm0, %v43_v53, -inf  ;;  %v185_v3 = vsel %vm152_vm0, %v137_v43, -inf  ;;  %v28_v7 = vld [vmem:[%s1095_s0 + $0xa0] sm:$0xff]  ;;  %v196_v10 = vsel %vm152_vm0, %v90_v56, -inf }
   0xc   :  { %v163_v54 = vmax.f32 %v161_v41, %v162_v23  ;;  %v206_v5 = vmax.f32 %v204_v60, %v205_v0  ;;  %v44_v8 = vld [vmem:[%s1095_s0 + $0x120] sm:$0xff]  ;;  %v180_v9 = vmax.f32 %v178_v61, %v179_v48  ;;  %v198_v11 = vsel %vm152_vm0, %v106_v57, -inf  ;;  %v122_v14 = vld [vmem:[%s1095_s0 + $0x390] sm:$0xff]  ;;  %v91_v16 = vld [vmem:[%s1095_s0 + $0x298] sm:$0xff] }
   0xd   :  { %v209_v12 = vsel %vm152_vm0, %v59_v59, -inf  ;;  %v195_v15 = vmax.f32 %v193_v4, %v194_v62  ;;  %v211_v18 = vsel %vm152_vm0, %v75_v63, -inf  ;;  %v60_v19 = vld [vmem:[%s1095_s0 + $0x1a0] sm:$0xff]  ;;  %v138_v21 = vld [vmem:[%s1095_s0 + $0x410] sm:$0xff]  ;;  %v221_v22 = vsel %vm152_vm0, %v12_v6, -inf  ;;  %v107_v27 = vld [vmem:[%s1095_s0 + $0x318] sm:$0xff] }
   0xe   :  { %v165_v2 = vmax.f32 %v163_v54, %v164_v29  ;;  %v208_v17 = vmax.f32 %v206_v5, %v207_v1  ;;  %v182_v20 = vmax.f32 %v180_v9, %v181_v49  ;;  %v222_v23 = vsel %vm152_vm0, %v28_v7, -inf  ;;  %v76_v29 = vld [vmem:[%s1095_s0 + $0x220] sm:$0xff]  ;;  %v13_v31 = vld [vmem:[%s1095_s0 + $0x28] sm:$0xff]  ;;  %v123_v39 = vld [vmem:[%s1095_s0 + $0x398] sm:$0xff] }
   0xf   :  { %v224_v24 = vsel %vm152_vm0, %v44_v8, -inf  ;;  %v197_v26 = vmax.f32 %v195_v15, %v196_v10  ;;  %v200_v33 = vsel %vm152_vm0, %v122_v14, -inf  ;;  %v213_v34 = vsel %vm152_vm0, %v91_v16, -inf  ;;  %v29_v36 = vld [vmem:[%s1095_s0 + $0xa8] sm:$0xff]  ;;  %v92_v41 = vld [vmem:[%s1095_s0 + $0x2a0] sm:$0xff]  ;;  %v139_v50 = vld [vmem:[%s1095_s0 + $0x418] sm:$0xff] }
  0x10   :  { %v167_v13 = vmax.f32 %v165_v2, %v166_v30  ;;  %v210_v28 = vmax.f32 %v208_v17, %v209_v12  ;;  %v223_v30 = vmax.f32 %v221_v22, %v222_v23  ;;  %v184_v32 = vmax.f32 %v182_v20, %v183_v55  ;;  %v45_v43 = vld [vmem:[%s1095_s0 + $0x128] sm:$0xff]  ;;  %v108_v52 = vld [vmem:[%s1095_s0 + $0x320] sm:$0xff]  ;;  %v14_v60 = vld [vmem:[%s1095_s0 + $0x30] sm:$0xff] }
  0x11   :  { %v226_v35 = vsel %vm152_vm0, %v60_v19, -inf  ;;  %v199_v37 = vmax.f32 %v197_v26, %v198_v11  ;;  %v202_v38 = vsel %vm152_vm0, %v138_v21, -inf  ;;  %v215_v45 = vsel %vm152_vm0, %v107_v27, -inf  ;;  %v61_v47 = vld [vmem:[%s1095_s0 + $0x1a8] sm:$0xff]  ;;  %v30_v61 = vld [vmem:[%s1095_s0 + $0xb0] sm:$0xff]  ;;  %v124_v0 = vld [vmem:[%s1095_s0 + $0x3a0] sm:$0xff] }
  0x12   :  { %v169_v25 = vmax.f32 %v167_v13, %v168_v42  ;;  %v212_v40 = vmax.f32 %v210_v28, %v211_v18  ;;  %v225_v42 = vmax.f32 %v223_v30, %v224_v24  ;;  %v186_v44 = vmax.f32 %v184_v32, %v185_v3  ;;  %v77_v54 = vld [vmem:[%s1095_s0 + $0x228] sm:$0xff]  ;;  %v46_v3 = vld [vmem:[%s1095_s0 + $0x130] sm:$0xff]  ;;  %v140_v11 = vld [vmem:[%s1095_s0 + $0x420] sm:$0xff] }
  0x13   :  { %v228_v46 = vsel %vm152_vm0, %v76_v29, -inf  ;;  %v238_v48 = vsel %vm152_vm0, %v13_v31, -inf  ;;  %v201_v49 = vmax.f32 %v199_v37, %v200_v33  ;;  %v239_v55 = vsel %vm152_vm0, %v29_v36, -inf  ;;  %v93_v6 = vld [vmem:[%s1095_s0 + $0x2a8] sm:$0xff]  ;;  %v62_v9 = vld [vmem:[%s1095_s0 + $0x1b0] sm:$0xff]  ;;  %v15_v21 = vld [vmem:[%s1095_s0 + $0x38] sm:$0xff] }
  0x14   :  { %425 = vst.msk [vmem:[%s1096_s1] sm:$0xff] %vm152_vm0, %v169_v25  ;;  %v214_v51 = vmax.f32 %v212_v40, %v213_v34  ;;  %v227_v53 = vmax.f32 %v225_v42, %v226_v35  ;;  %426 = vst.msk [vmem:[%s1096_s1 + $0x8] sm:$0xff] %vm152_vm0, %v186_v44  ;;  %v217_v56 = vsel %vm152_vm0, %v123_v39, -inf  ;;  %v230_v57 = vsel %vm152_vm0, %v92_v41, -inf  ;;  %v109_v13 = vld [vmem:[%s1095_s0 + $0x328] sm:$0xff]  ;;  %v78_v18 = vld [vmem:[%s1095_s0 + $0x230] sm:$0xff] }
  0x15   :  { %v240_v58 = vmax.f32 %v238_v48, %v239_v55  ;;  %v241_v59 = vsel %vm152_vm0, %v45_v43, -inf  ;;  %v203_v62 = vmax.f32 %v201_v49, %v202_v38  ;;  %v243_v2 = vsel %vm152_vm0, %v61_v47, -inf  ;;  %v31_v22 = vld [vmem:[%s1095_s0 + $0xb8] sm:$0xff]  ;;  %v125_v29 = vld [vmem:[%s1095_s0 + $0x3a8] sm:$0xff]  ;;  %v94_v32 = vld [vmem:[%s1095_s0 + $0x2b0] sm:$0xff] }
  0x16   :  { %v216_v63 = vmax.f32 %v214_v51, %v215_v45  ;;  %v229_v1 = vmax.f32 %v227_v53, %v228_v46  ;;  %v219_v4 = vsel %vm152_vm0, %v139_v50, -inf  ;;  %v232_v5 = vsel %vm152_vm0, %v108_v52, -inf  ;;  %v47_v27 = vld [vmem:[%s1095_s0 + $0x138] sm:$0xff]  ;;  %v141_v36 = vld [vmem:[%s1095_s0 + $0x428] sm:$0xff]  ;;  %v110_v37 = vld [vmem:[%s1095_s0 + $0x330] sm:$0xff] }
  0x17   :  { %v242_v7 = vmax.f32 %v240_v58, %v241_v59  ;;  %v245_v8 = vsel %vm152_vm0, %v77_v54, -inf  ;;  %427 = vst.msk [vmem:[%s1096_s1 + $0x10] sm:$0xff] %vm152_vm0, %v203_v62  ;;  %v255_v14 = vsel %vm152_vm0, %v14_v60, -inf  ;;  %v256_v15 = vsel %vm152_vm0, %v30_v61, -inf  ;;  %v63_v34 = vld [vmem:[%s1095_s0 + $0x1b8] sm:$0xff]  ;;  %v16_v46 = vld [vmem:[%s1095_s0 + $0x40] sm:$0xff] }
  0x18   :  { %v218_v10 = vmax.f32 %v216_v63, %v217_v56  ;;  %v231_v12 = vmax.f32 %v229_v1, %v230_v57  ;;  %v234_v16 = vsel %vm152_vm0, %v124_v0, -inf  ;;  %v257_v19 = vmax.f32 %v255_v14, %v256_v15  ;;  %v79_v43 = vld [vmem:[%s1095_s0 + $0x238] sm:$0xff]  ;;  %v32_v47 = vld [vmem:[%s1095_s0 + $0xc0] sm:$0xff]  ;;  %v126_v50 = vld [vmem:[%s1095_s0 + $0x3b0] sm:$0xff] }
  0x19   :  { %v244_v17 = vmax.f32 %v242_v7, %v243_v2  ;;  %v258_v20 = vsel %vm152_vm0, %v46_v3, -inf  ;;  %v247_v25 = vsel %vm152_vm0, %v93_v6, -inf  ;;  %v260_v26 = vsel %vm152_vm0, %v62_v9, -inf  ;;  %v95_v56 = vld [vmem:[%s1095_s0 + $0x2b8] sm:$0xff]  ;;  %v48_v58 = vld [vmem:[%s1095_s0 + $0x140] sm:$0xff]  ;;  %v142_v60 = vld [vmem:[%s1095_s0 + $0x430] sm:$0xff] }
  0x1a   :  { %v220_v23 = vmax.f32 %v218_v10, %v219_v4  ;;  %v233_v24 = vmax.f32 %v231_v12, %v232_v5  ;;  %v236_v28 = vsel %vm152_vm0, %v140_v11, -inf  ;;  %v249_v31 = vsel %vm152_vm0, %v109_v13, -inf  ;;  %v64_v59 = vld [vmem:[%s1095_s0 + $0x1c0] sm:$0xff]  ;;  %v111_v3 = vld [vmem:[%s1095_s0 + $0x338] sm:$0xff]  ;;  %v17_v7 = vld [vmem:[%s1095_s0 + $0x48] sm:$0xff] }
  0x1b   :  { %v246_v30 = vmax.f32 %v244_v17, %v245_v8  ;;  %v259_v33 = vmax.f32 %v257_v19, %v258_v20  ;;  %v262_v38 = vsel %vm152_vm0, %v78_v18, -inf  ;;  %v272_v39 = vsel %vm152_vm0, %v15_v21, -inf  ;;  %v80_v5 = vld [vmem:[%s1095_s0 + $0x240] sm:$0xff]  ;;  %v33_v12 = vld [vmem:[%s1095_s0 + $0xc8] sm:$0xff]  ;;  %v127_v15 = vld [vmem:[%s1095_s0 + $0x3b8] sm:$0xff] }
  0x1c   :  { %428 = vst.msk [vmem:[%s1096_s1 + $0x18] sm:$0xff] %vm152_vm0, %v220_v23  ;;  %v235_v35 = vmax.f32 %v233_v24, %v234_v16  ;;  %v273_v40 = vsel %vm152_vm0, %v31_v22, -inf  ;;  %v275_v45 = vsel %vm152_vm0, %v47_v27, -inf  ;;  %v251_v49 = vsel %vm152_vm0, %v125_v29, -inf  ;;  %v96_v17 = vld [vmem:[%s1095_s0 + $0x2c0] sm:$0xff]  ;;  %v49_v19 = vld [vmem:[%s1095_s0 + $0x148] sm:$0xff] }
  0x1d   :  { %v248_v41 = vmax.f32 %v246_v30, %v247_v25  ;;  %v261_v42 = vmax.f32 %v259_v33, %v260_v26  ;;  %v274_v44 = vmax.f32 %v272_v39, %v273_v40  ;;  %v264_v51 = vsel %vm152_vm0, %v94_v32, -inf  ;;  %v65_v23 = vld [vmem:[%s1095_s0 + $0x1c8] sm:$0xff]  ;;  %v143_v26 = vld [vmem:[%s1095_s0 + $0x438] sm:$0xff]  ;;  %v128_v40 = vld [vmem:[%s1095_s0 + $0x3c0] sm:$0xff] }
  0x1e   :  { %v237_v48 = vmax.f32 %v235_v35, %v236_v28  ;;  %v277_v52 = vsel %vm152_vm0, %v63_v34, -inf  ;;  %v253_v54 = vsel %vm152_vm0, %v141_v36, -inf  ;;  %v266_v61 = vsel %vm152_vm0, %v110_v37, -inf  ;;  %v112_v28 = vld [vmem:[%s1095_s0 + $0x340] sm:$0xff]  ;;  %v81_v30 = vld [vmem:[%s1095_s0 + $0x248] sm:$0xff]  ;;  %v18_v36 = vld [vmem:[%s1095_s0 + $0x50] sm:$0xff] }
  0x1f   :  { %v250_v53 = vmax.f32 %v248_v41, %v249_v31  ;;  %v263_v55 = vmax.f32 %v261_v42, %v262_v38  ;;  %v276_v57 = vmax.f32 %v274_v44, %v275_v45  ;;  %v279_v62 = vsel %vm152_vm0, %v79_v43, -inf  ;;  %v34_v37 = vld [vmem:[%s1095_s0 + $0xd0] sm:$0xff] }
  0x20   :  { %429 = vst.msk [vmem:[%s1096_s1 + $0x20] sm:$0xff] %vm152_vm0, %v237_v48  ;;  %v289_v63 = vsel %vm152_vm0, %v16_v46, -inf  ;;  %v290_v0 = vsel %vm152_vm0, %v32_v47, -inf  ;;  %v268_v8 = vsel %vm152_vm0, %v126_v50, -inf  ;;  %v281_v9 = vsel %vm152_vm0, %v95_v56, -inf  ;;  %v50_v43 = vld [vmem:[%s1095_s0 + $0x150] sm:$0xff] }
  0x21   :  { %v252_v1 = vmax.f32 %v250_v53, %v251_v49  ;;  %v265_v2 = vmax.f32 %v263_v55, %v264_v51  ;;  %v278_v4 = vmax.f32 %v276_v57, %v277_v52  ;;  %v291_v6 = vmax.f32 %v289_v63, %v290_v0  ;;  %v97_v46 = vld [vmem:[%s1095_s0 + $0x2c8] sm:$0xff]  ;;  %v66_v49 = vld [vmem:[%s1095_s0 + $0x1d0] sm:$0xff]  ;;  %v144_v51 = vld [vmem:[%s1095_s0 + $0x440] sm:$0xff] }
  0x22   :  { %v292_v10 = vsel %vm152_vm0, %v48_v58, -inf  ;;  %v294_v11 = vsel %vm152_vm0, %v64_v59, -inf  ;;  %v270_v20 = vsel %vm152_vm0, %v142_v60, -inf  ;;  %v283_v21 = vsel %vm152_vm0, %v111_v3, -inf  ;;  %v113_v53 = vld [vmem:[%s1095_s0 + $0x348] sm:$0xff]  ;;  %v82_v58 = vld [vmem:[%s1095_s0 + $0x250] sm:$0xff] }
  0x23   :  { %v254_v13 = vmax.f32 %v252_v1, %v253_v54  ;;  %v267_v14 = vmax.f32 %v265_v2, %v266_v61  ;;  %v280_v16 = vmax.f32 %v278_v4, %v279_v62  ;;  %v293_v18 = vmax.f32 %v291_v6, %v292_v10  ;;  %v19_v61 = vld [vmem:[%s1095_s0 + $0x58] sm:$0xff] }
  0x24   :  { %v296_v22 = vsel %vm152_vm0, %v80_v5, -inf  ;;  %v306_v24 = vsel %vm152_vm0, %v17_v7, -inf  ;;  %v307_v31 = vsel %vm152_vm0, %v33_v12, -inf  ;;  %v285_v32 = vsel %vm152_vm0, %v127_v15, -inf  ;;  %v35_v62 = vld [vmem:[%s1095_s0 + $0xd8] sm:$0xff]  ;;  %v129_v5 = vld [vmem:[%s1095_s0 + $0x3c8] sm:$0xff] }
  0x25   :  { %430 = vst.msk [vmem:[%s1096_s1 + $0x28] sm:$0xff] %vm152_vm0, %v254_v13  ;;  %v269_v25 = vmax.f32 %v267_v14, %v268_v8  ;;  %v282_v27 = vmax.f32 %v280_v16, %v281_v9  ;;  %v295_v29 = vmax.f32 %v293_v18, %v294_v11  ;;  %v298_v33 = vsel %vm152_vm0, %v96_v17, -inf  ;;  %v51_v3 = vld [vmem:[%s1095_s0 + $0x158] sm:$0xff]  ;;  %v98_v8 = vld [vmem:[%s1095_s0 + $0x2d0] sm:$0xff]  ;;  %v145_v12 = vld [vmem:[%s1095_s0 + $0x448] sm:$0xff] }
  0x26   :  { %v308_v34 = vmax.f32 %v306_v24, %v307_v31  ;;  %v309_v35 = vsel %vm152_vm0, %v49_v19, -inf  ;;  %v311_v42 = vsel %vm152_vm0, %v65_v23, -inf  ;;  %v287_v44 = vsel %vm152_vm0, %v143_v26, -inf  ;;  %v67_v10 = vld [vmem:[%s1095_s0 + $0x1d8] sm:$0xff]  ;;  %v114_v13 = vld [vmem:[%s1095_s0 + $0x350] sm:$0xff]  ;;  %v36_v23 = vld [vmem:[%s1095_s0 + $0xe0] sm:$0xff] }
  0x27   :  { %v271_v38 = vmax.f32 %v269_v25, %v270_v20  ;;  %v284_v39 = vmax.f32 %v282_v27, %v283_v21  ;;  %v297_v41 = vmax.f32 %v295_v29, %v296_v22  ;;  %v300_v45 = vsel %vm152_vm0, %v112_v28, -inf  ;;  %v83_v19 = vld [vmem:[%s1095_s0 + $0x258] sm:$0xff]  ;;  %v20_v22 = vld [vmem:[%s1095_s0 + $0x60] sm:$0xff]  ;;  %v130_v26 = vld [vmem:[%s1095_s0 + $0x3d0] sm:$0xff] }
  0x28   :  { %v310_v47 = vmax.f32 %v308_v34, %v309_v35  ;;  %v313_v48 = vsel %vm152_vm0, %v81_v30, -inf  ;;  %v323_v54 = vsel %vm152_vm0, %v18_v36, -inf  ;;  %v324_v55 = vsel %vm152_vm0, %v34_v37, -inf  ;;  %v52_v34 = vld [vmem:[%s1095_s0 + $0x160] sm:$0xff]  ;;  %v146_v36 = vld [vmem:[%s1095_s0 + $0x450] sm:$0xff] }
  0x29   :  { %431 = vst.msk [vmem:[%s1096_s1 + $0x30] sm:$0xff] %vm152_vm0, %v271_v38  ;;  %v286_v50 = vmax.f32 %v284_v39, %v285_v32  ;;  %v299_v52 = vmax.f32 %v297_v41, %v298_v33  ;;  %v302_v56 = vsel %vm152_vm0, %v128_v40, -inf  ;;  %v325_v59 = vmax.f32 %v323_v54, %v324_v55  ;;  %v99_v32 = vld [vmem:[%s1095_s0 + $0x2d8] sm:$0xff]  ;;  %v68_v35 = vld [vmem:[%s1095_s0 + $0x1e0] sm:$0xff] }
  0x2a   :  { %v312_v57 = vmax.f32 %v310_v47, %v311_v42  ;;  %v326_v60 = vsel %vm152_vm0, %v50_v43, -inf  ;;  %v315_v1 = vsel %vm152_vm0, %v97_v46, -inf  ;;  %v328_v2 = vsel %vm152_vm0, %v66_v49, -inf  ;;  %v115_v43 = vld [vmem:[%s1095_s0 + $0x358] sm:$0xff]  ;;  %v21_v47 = vld [vmem:[%s1095_s0 + $0x68] sm:$0xff] }
  0x2b   :  { %v288_v63 = vmax.f32 %v286_v50, %v287_v44  ;;  %v301_v0 = vmax.f32 %v299_v52, %v300_v45  ;;  %v304_v4 = vsel %vm152_vm0, %v144_v51, -inf  ;;  %v317_v7 = vsel %vm152_vm0, %v113_v53, -inf  ;;  %v84_v45 = vld [vmem:[%s1095_s0 + $0x260] sm:$0xff]  ;;  %v37_v52 = vld [vmem:[%s1095_s0 + $0xe8] sm:$0xff]  ;;  %v131_v55 = vld [vmem:[%s1095_s0 + $0x3d8] sm:$0xff] }
  0x2c   :  { %v314_v6 = vmax.f32 %v312_v57, %v313_v48  ;;  %v327_v9 = vmax.f32 %v325_v59, %v326_v60  ;;  %v330_v14 = vsel %vm152_vm0, %v82_v58, -inf  ;;  %v340_v15 = vsel %vm152_vm0, %v19_v61, -inf  ;;  %v100_v57 = vld [vmem:[%s1095_s0 + $0x2e0] sm:$0xff]  ;;  %v53_v59 = vld [vmem:[%s1095_s0 + $0x168] sm:$0xff] }
  0x2d   :  { %432 = vst.msk [vmem:[%s1096_s1 + $0x38] sm:$0xff] %vm152_vm0, %v288_v63  ;;  %v303_v11 = vmax.f32 %v301_v0, %v302_v56  ;;  %v341_v16 = vsel %vm152_vm0, %v35_v62, -inf  ;;  %v343_v21 = vsel %vm152_vm0, %v51_v3, -inf  ;;  %v319_v25 = vsel %vm152_vm0, %v129_v5, -inf  ;;  %v69_v63 = vld [vmem:[%s1095_s0 + $0x1e8] sm:$0xff] }
  0x2e   :  { %v316_v17 = vmax.f32 %v314_v6, %v315_v1  ;;  %v329_v18 = vmax.f32 %v327_v9, %v328_v2  ;;  %v342_v20 = vmax.f32 %v340_v15, %v341_v16  ;;  %v332_v27 = vsel %vm152_vm0, %v98_v8, -inf  ;;  %v147_v2 = vld [vmem:[%s1095_s0 + $0x458] sm:$0xff]  ;;  %v85_v6 = vld [vmem:[%s1095_s0 + $0x268] sm:$0xff]  ;;  %v132_v16 = vld [vmem:[%s1095_s0 + $0x3e0] sm:$0xff] }
  0x2f   :  { %v305_v24 = vmax.f32 %v303_v11, %v304_v4  ;;  %v345_v28 = vsel %vm152_vm0, %v67_v10, -inf  ;;  %v321_v30 = vsel %vm152_vm0, %v145_v12, -inf  ;;  %v334_v37 = vsel %vm152_vm0, %v114_v13, -inf  ;;  %v116_v4 = vld [vmem:[%s1095_s0 + $0x360] sm:$0xff]  ;;  %v22_v12 = vld [vmem:[%s1095_s0 + $0x70] sm:$0xff] }
  0x30   :  { %v318_v29 = vmax.f32 %v316_v17, %v317_v7  ;;  %v331_v31 = vmax.f32 %v329_v18, %v330_v14  ;;  %v344_v33 = vmax.f32 %v342_v20, %v343_v21  ;;  %v347_v38 = vsel %vm152_vm0, %v83_v19, -inf  ;;  %v38_v13 = vld [vmem:[%s1095_s0 + $0xf0] sm:$0xff] }
  0x31   :  { %433 = vst.msk [vmem:[%s1096_s1 + $0x40] sm:$0xff] %vm152_vm0, %v305_v24  ;;  %v357_v39 = vsel %vm152_vm0, %v20_v22, -inf  ;;  %v358_v40 = vsel %vm152_vm0, %v36_v23, -inf  ;;  %v336_v48 = vsel %vm152_vm0, %v130_v26, -inf  ;;  %v349_v49 = vsel %vm152_vm0, %v99_v32, -inf  ;;  %v54_v19 = vld [vmem:[%s1095_s0 + $0x170] sm:$0xff] }
  0x32   :  { %v320_v41 = vmax.f32 %v318_v29, %v319_v25  ;;  %v333_v42 = vmax.f32 %v331_v31, %v332_v27  ;;  %v346_v44 = vmax.f32 %v344_v33, %v345_v28  ;;  %v359_v46 = vmax.f32 %v357_v39, %v358_v40  ;;  %v101_v22 = vld [vmem:[%s1095_s0 + $0x2e8] sm:$0xff]  ;;  %v70_v25 = vld [vmem:[%s1095_s0 + $0x1f0] sm:$0xff]  ;;  %v148_v27 = vld [vmem:[%s1095_s0 + $0x460] sm:$0xff] }
  0x33   :  { %v360_v50 = vsel %vm152_vm0, %v52_v34, -inf  ;;  %v362_v51 = vsel %vm152_vm0, %v68_v35, -inf  ;;  %v338_v60 = vsel %vm152_vm0, %v146_v36, -inf  ;;  %v351_v61 = vsel %vm152_vm0, %v115_v43, -inf  ;;  %v117_v29 = vld [vmem:[%s1095_s0 + $0x368] sm:$0xff]  ;;  %v86_v34 = vld [vmem:[%s1095_s0 + $0x270] sm:$0xff] }
  0x34   :  { %v322_v53 = vmax.f32 %v320_v41, %v321_v30  ;;  %v335_v54 = vmax.f32 %v333_v42, %v334_v37  ;;  %v348_v56 = vmax.f32 %v346_v44, %v347_v38  ;;  %v361_v58 = vmax.f32 %v359_v46, %v360_v50  ;;  %v23_v37 = vld [vmem:[%s1095_s0 + $0x78] sm:$0xff] }
  0x35   :  { %v364_v62 = vsel %vm152_vm0, %v84_v45, -inf  ;;  %v374_v0 = vsel %vm152_vm0, %v21_v47, -inf  ;;  %v375_v7 = vsel %vm152_vm0, %v37_v52, -inf  ;;  %v353_v8 = vsel %vm152_vm0, %v131_v55, -inf  ;;  %v39_v38 = vld [vmem:[%s1095_s0 + $0xf8] sm:$0xff]  ;;  %v133_v45 = vld [vmem:[%s1095_s0 + $0x3e8] sm:$0xff] }
  0x36   :  { %434 = vst.msk [vmem:[%s1096_s1 + $0x48] sm:$0xff] %vm152_vm0, %v322_v53  ;;  %v337_v1 = vmax.f32 %v335_v54, %v336_v48  ;;  %v350_v3 = vmax.f32 %v348_v56, %v349_v49  ;;  %v363_v5 = vmax.f32 %v361_v58, %v362_v51  ;;  %v366_v9 = vsel %vm152_vm0, %v100_v57, -inf  ;;  %v55_v43 = vld [vmem:[%s1095_s0 + $0x178] sm:$0xff]  ;;  %v102_v48 = vld [vmem:[%s1095_s0 + $0x2f0] sm:$0xff]  ;;  %v149_v55 = vld [vmem:[%s1095_s0 + $0x468] sm:$0xff] }
  0x37   :  { %v376_v10 = vmax.f32 %v374_v0, %v375_v7  ;;  %v377_v11 = vsel %vm152_vm0, %v53_v59, -inf  ;;  %v379_v18 = vsel %vm152_vm0, %v69_v63, -inf  ;;  %v355_v20 = vsel %vm152_vm0, %v147_v2, -inf  ;;  %v71_v50 = vld [vmem:[%s1095_s0 + $0x1f8] sm:$0xff]  ;;  %v118_v57 = vld [vmem:[%s1095_s0 + $0x370] sm:$0xff] }
  0x38   :  { %v339_v14 = vmax.f32 %v337_v1, %v338_v60  ;;  %v352_v15 = vmax.f32 %v350_v3, %v351_v61  ;;  %v365_v17 = vmax.f32 %v363_v5, %v364_v62  ;;  %v368_v21 = vsel %vm152_vm0, %v116_v4, -inf  ;;  %v87_v59 = vld [vmem:[%s1095_s0 + $0x278] sm:$0xff]  ;;  %v134_v3 = vld [vmem:[%s1095_s0 + $0x3f0] sm:$0xff] }
  0x39   :  { %v378_v23 = vmax.f32 %v376_v10, %v377_v11  ;;  %v381_v24 = vsel %vm152_vm0, %v85_v6, -inf  ;;  %v391_v30 = vsel %vm152_vm0, %v22_v12, -inf  ;;  %v392_v31 = vsel %vm152_vm0, %v38_v13, -inf  ;;  %v103_v5 = vld [vmem:[%s1095_s0 + $0x2f8] sm:$0xff]  ;;  %v150_v11 = vld [vmem:[%s1095_s0 + $0x470] sm:$0xff] }
  0x3a   :  { %435 = vst.msk [vmem:[%s1096_s1 + $0x50] sm:$0xff] %vm152_vm0, %v339_v14  ;;  %v354_v26 = vmax.f32 %v352_v15, %v353_v8  ;;  %v367_v28 = vmax.f32 %v365_v17, %v366_v9  ;;  %v370_v32 = vsel %vm152_vm0, %v132_v16, -inf  ;;  %v393_v35 = vmax.f32 %v391_v30, %v392_v31  ;;  %v119_v13 = vld [vmem:[%s1095_s0 + $0x378] sm:$0xff] }
  0x3b   :  { %v380_v33 = vmax.f32 %v378_v23, %v379_v18  ;;  %v394_v36 = vsel %vm152_vm0, %v54_v19, -inf  ;;  %v383_v41 = vsel %vm152_vm0, %v101_v22, -inf  ;;  %v396_v42 = vsel %vm152_vm0, %v70_v25, -inf  ;;  %v135_v19 = vld [vmem:[%s1095_s0 + $0x3f8] sm:$0xff] }
  0x3c   :  { %v356_v39 = vmax.f32 %v354_v26, %v355_v20  ;;  %v369_v40 = vmax.f32 %v367_v28, %v368_v21  ;;  %v372_v44 = vsel %vm152_vm0, %v148_v27, -inf  ;;  %v385_v47 = vsel %vm152_vm0, %v117_v29, -inf }
  0x3d   :  { %v382_v46 = vmax.f32 %v380_v33, %v381_v24  ;;  %v395_v49 = vmax.f32 %v393_v35, %v394_v36  ;;  %v398_v52 = vsel %vm152_vm0, %v86_v34, -inf  ;;  %v408_v53 = vsel %vm152_vm0, %v23_v37, -inf  ;;  %v151_v24 = vld [vmem:[%s1095_s0 + $0x478] sm:$0xff] }
  0x3e   :  { %436 = vst.msk [vmem:[%s1096_s1 + $0x58] sm:$0xff] %vm152_vm0, %v356_v39  ;;  %v371_v51 = vmax.f32 %v369_v40, %v370_v32  ;;  %v409_v54 = vsel %vm152_vm0, %v39_v38, -inf  ;;  %v411_v61 = vsel %vm152_vm0, %v55_v43, -inf  ;;  %v387_v63 = vsel %vm152_vm0, %v133_v45, -inf }
  0x3f   :  { %v384_v56 = vmax.f32 %v382_v46, %v383_v41  ;;  %v397_v58 = vmax.f32 %v395_v49, %v396_v42  ;;  %v410_v60 = vmax.f32 %v408_v53, %v409_v54  ;;  %v400_v0 = vsel %vm152_vm0, %v102_v48, -inf }
  0x40   :  { %v373_v62 = vmax.f32 %v371_v51, %v372_v44  ;;  %v413_v1 = vsel %vm152_vm0, %v71_v50, -inf  ;;  %v389_v7 = vsel %vm152_vm0, %v149_v55, -inf  ;;  %v402_v8 = vsel %vm152_vm0, %v118_v57, -inf }
  0x41   :  { %v386_v2 = vmax.f32 %v384_v56, %v385_v47  ;;  %v399_v4 = vmax.f32 %v397_v58, %v398_v52  ;;  %v412_v6 = vmax.f32 %v410_v60, %v411_v61  ;;  %v415_v9 = vsel %vm152_vm0, %v87_v59, -inf }
  0x42   :  { %437 = vst.msk [vmem:[%s1096_s1 + $0x60] sm:$0xff] %vm152_vm0, %v373_v62  ;;  %v404_v15 = vsel %vm152_vm0, %v134_v3, -inf  ;;  %v417_v16 = vsel %vm152_vm0, %v103_v5, -inf  ;;  %v406_v21 = vsel %vm152_vm0, %v150_v11, -inf  ;;  %v419_v22 = vsel %vm152_vm0, %v119_v13, -inf }
  0x43   :  { %v388_v10 = vmax.f32 %v386_v2, %v387_v63  ;;  %v401_v12 = vmax.f32 %v399_v4, %v400_v0  ;;  %v414_v14 = vmax.f32 %v412_v6, %v413_v1  ;;  %v421_v26 = vsel %vm152_vm0, %v135_v19, -inf }
  0x44   :  { %v423_v29 = vsel %vm152_vm0, %v151_v24, -inf }
  0x45   :  { %v390_v17 = vmax.f32 %v388_v10, %v389_v7  ;;  %v403_v18 = vmax.f32 %v401_v12, %v402_v8  ;;  %v416_v20 = vmax.f32 %v414_v14, %v415_v9 }
  0x47   :  { %438 = vst.msk [vmem:[%s1096_s1 + $0x68] sm:$0xff] %vm152_vm0, %v390_v17  ;;  %v405_v23 = vmax.f32 %v403_v18, %v404_v15  ;;  %v418_v25 = vmax.f32 %v416_v20, %v417_v16 }
  0x49   :  { %v407_v27 = vmax.f32 %v405_v23, %v406_v21  ;;  %v420_v28 = vmax.f32 %v418_v25, %v419_v22 }
  0x4b   :  { %439 = vst.msk [vmem:[%s1096_s1 + $0x70] sm:$0xff] %vm152_vm0, %v407_v27  ;;  %v422_v30 = vmax.f32 %v420_v28, %v421_v26 }
  0x4d   :  { %v424_v31 = vmax.f32 %v422_v30, %v423_v29 }
  0x4f   :  { %440 = vst.msk [vmem:[%s1096_s1 + $0x78] sm:$0xff] %vm152_vm0, %v424_v31 }

// kernel: resnet_simclr_forward.67
= control target key start
LH: loop header
LB: loop body
LE: loop exit
PB: predicated region body
PF: predicated region fallthrough
CT: control target
= control target key end

     0   :  { %s948_s9 = smov 0   ;;  %s950_s10 = smov 0   ;;  %s1101_s0 = inlined_call_operand.vmem [shape: bf16[128,640], index: 0, kind: input, shape index: {}]   ;;  %s1102_s1 = inlined_call_operand.vmem [shape: bf16[640,128], index: 1, kind: input, shape index: {}]   ;;  %s1103_s2 = inlined_call_operand.vmem [shape: f32[128,128], index: 2, kind: output, shape index: {}]  }
   0x1   :  { %s952_s11 = smov 0   ;;  %s954_s12 = smov 0  }
   0x2   :  { %s956_s13 = smov 0  }
   0x3 LB: > { %s24_s14 = sadd.s32 1, %s926_s12  ;;  %p47_p1 = scmp.ne.s32.totalorder %s918_s10, %s914_s9  ;;  %s930_s13 = sphi %s956_s13, %s12_s13   ;;  %s926_s12 = sphi %s954_s12, %s1107_s12   ;;  %s922_s11 = sphi %s952_s11, %s1106_s11   ;;  %s918_s10 = sphi %s950_s10, %s1105_s10   ;;  %s914_s9 = sphi %s948_s9, %s1104_s9  }
   0x4   : > { %p25_p0 = scmp.ge.s32.totalorder %s24_s14, 5  ;;  %p48_p2 = scmp.eq.s32.totalorder %s930_s13, 0 }
   0x5   : > { %s40_s16 = sadd.s32 1, %s918_s10  ;;  %p742_p5 = scmp.ge.s32.totalorder %s930_s13, 5 }
   0x6   : > { %s1109_s14 = smov (%p25_p0, %s24_s14), 0  ;;  %p49_p3 = por %p48_p2, %p47_p1 }
   0x7   : > { %s36_s15 = ssub.s32 %s926_s12, %s1109_s14  ;;  %129 = sbr.rel (%p742_p5) target bundleno = 28 (0x1c), region = 16 }
   0x8   : > { %p38_p4 = scmp.eq.s32.totalorder %s36_s15, 0 }
   0xa   : > { %s983_s17 = scalar_select %p38_p4, %s918_s10, %s40_s16  }
   0xe   : > { %132 = sbr.rel (!%p49_p3) target bundleno = 28 (0x1c), region = 20  ;;  %s134_s18 = sand.u32 (%p49_p3), 1, %s918_s10  }
   0xf   : > { %s744_s19 = sshll.u32 (%p49_p3), %s926_s12, 2  ;;  %s743_s20 = sshll.u32 (%p49_p3), %s134_s18, 6 }
  0x10   : > { %s991_s23 = scalar_lea.vmem (%p49_p3), %s1101_s0, %s744_s19  ;;  %s136_s24 = scalar_lea.vmem (%p49_p3), [#allocation3], %s743_s20 }
  0x11   : > { %v157_v0 = vld [vmem:[%s991_s23] sm:$0xf] (%p49_p3)  ;;  %v159_v1 = vld [vmem:[%s991_s23 + $0x14] sm:$0xf] (%p49_p3)  ;;  %v161_v2 = vld [vmem:[%s991_s23 + $0x28] sm:$0xf] (%p49_p3) }
  0x12   : > { %158 = vst [vmem:[%s136_s24] sm:$0xf] (%p49_p3), %v157_v0  ;;  %160 = vst [vmem:[%s136_s24 + $0x4] sm:$0xf] (%p49_p3), %v159_v1  ;;  %v163_v3 = vld [vmem:[%s991_s23 + $0x3c] sm:$0xf] (%p49_p3) }
  0x13   : > { %v165_v4 = vld [vmem:[%s991_s23 + $0x50] sm:$0xf] (%p49_p3)  ;;  %162 = vst [vmem:[%s136_s24 + $0x8] sm:$0xf] (%p49_p3), %v161_v2  ;;  %164 = vst [vmem:[%s136_s24 + $0xc] sm:$0xf] (%p49_p3), %v163_v3 }
  0x14   : > { %166 = vst [vmem:[%s136_s24 + $0x10] sm:$0xf] (%p49_p3), %v165_v4  ;;  %v167_v5 = vld [vmem:[%s991_s23 + $0x64] sm:$0xf] (%p49_p3)  ;;  %v169_v6 = vld [vmem:[%s991_s23 + $0x78] sm:$0xf] (%p49_p3) }
  0x15   : > { %v171_v7 = vld [vmem:[%s991_s23 + $0x8c] sm:$0xf]  ;;  %168 = vst [vmem:[%s136_s24 + $0x14] sm:$0xf] %v167_v5  ;;  %170 = vst [vmem:[%s136_s24 + $0x18] sm:$0xf] %v169_v6 }
  0x16   : > { %172 = vst [vmem:[%s136_s24 + $0x1c] sm:$0xf] %v171_v7  ;;  %v173_v8 = vld [vmem:[%s991_s23 + $0xa0] sm:$0xf]  ;;  %v175_v9 = vld [vmem:[%s991_s23 + $0xb4] sm:$0xf] }
  0x17   : > { %v177_v10 = vld [vmem:[%s991_s23 + $0xc8] sm:$0xf]  ;;  %174 = vst [vmem:[%s136_s24 + $0x20] sm:$0xf] %v173_v8  ;;  %176 = vst [vmem:[%s136_s24 + $0x24] sm:$0xf] %v175_v9 }
  0x18   : > { %178 = vst [vmem:[%s136_s24 + $0x28] sm:$0xf] %v177_v10  ;;  %v179_v11 = vld [vmem:[%s991_s23 + $0xdc] sm:$0xf]  ;;  %v181_v12 = vld [vmem:[%s991_s23 + $0xf0] sm:$0xf] }
  0x19   : > { %v183_v13 = vld [vmem:[%s991_s23 + $0x104] sm:$0xf]  ;;  %180 = vst [vmem:[%s136_s24 + $0x2c] sm:$0xf] %v179_v11  ;;  %182 = vst [vmem:[%s136_s24 + $0x30] sm:$0xf] %v181_v12 }
  0x1a   : > { %184 = vst [vmem:[%s136_s24 + $0x34] sm:$0xf] %v183_v13  ;;  %v185_v14 = vld [vmem:[%s991_s23 + $0x118] sm:$0xf]  ;;  %v187_v15 = vld [vmem:[%s991_s23 + $0x12c] sm:$0xf] }
  0x1b   : > { %186 = vst [vmem:[%s136_s24 + $0x38] sm:$0xf] %v185_v14  ;;  %188 = vst [vmem:[%s136_s24 + $0x3c] sm:$0xf] %v187_v15 }
  0x1c PF: > { %p745_p6 = scmp.ge.s32.totalorder %s930_s13, 1  ;;  %p254_p7 = scmp.lt.s32.totalorder %s930_s13, 6 }
  0x1e   : > { %p255_p8 = pnand %p745_p6, %p254_p7 }
  0x1f   : > { %s261_s25 = sand.u32 (!%p255_p8), 1, %s914_s9   ;;  %s747_s26 = sshll.u32 (!%p255_p8), %s922_s11, 4 }
  0x20   : > { %258 = sbr.rel (%p255_p8) target bundleno = 317 (0x13d), region = 65  ;;  %s746_s27 = sshll.u32 (!%p255_p8), %s261_s25, 6 }
  0x21   : > { %p295_p9 = scmp.lt.s32.totalorder (!%p255_p8), %s747_s26, 79  ;;  %s1018_s4 = scalar_lea.vmem (!%p255_p8), [#allocation3], %s746_s27 }
  0x22   : > { %p749_p10 = scmp.ne.s32.totalorder (!%p255_p8), %s922_s11, 0 }
  0x27   : > { %s1111_s26 = smov (!%p295_p9, %s747_s26), 79  ;;  %316 = sbr.rel (%p749_p10) target bundleno = 49 (0x31), region = 73 }
  0x28   : > { %s748_s28 = sshll.u32 %s1111_s26, 2  ;;  %v932_v16 = vmov (!%p749_p10), 0.0  }
  0x29   : > { %s1016_s3 = scalar_lea.vmem %s1102_s1, %s748_s28  ;;  %317 = vst [vmem:[#allocation2] sm:$0xff] (!%p749_p10), %v932_v16  ;;  %318 = vst [vmem:[#allocation2 + $0x8] sm:$0xff] (!%p749_p10), %v932_v16 }
  0x2a   : > { %319 = vst [vmem:[#allocation2 + $0x10] sm:$0xff] (!%p749_p10), %v932_v16  ;;  %320 = vst [vmem:[#allocation2 + $0x18] sm:$0xff] (!%p749_p10), %v932_v16 }
  0x2b   : > { %321 = vst [vmem:[#allocation2 + $0x20] sm:$0xff] (!%p749_p10), %v932_v16  ;;  %322 = vst [vmem:[#allocation2 + $0x28] sm:$0xff] (!%p749_p10), %v932_v16 }
  0x2c   : > { %323 = vst [vmem:[#allocation2 + $0x30] sm:$0xff] (!%p749_p10), %v932_v16  ;;  %324 = vst [vmem:[#allocation2 + $0x38] sm:$0xff] (!%p749_p10), %v932_v16 }
  0x2d   : > { %325 = vst [vmem:[#allocation2 + $0x40] sm:$0xff] (!%p749_p10), %v932_v16  ;;  %326 = vst [vmem:[#allocation2 + $0x48] sm:$0xff] (!%p749_p10), %v932_v16 }
  0x2e   : > { %327 = vst [vmem:[#allocation2 + $0x50] sm:$0xff] %v932_v16  ;;  %328 = vst [vmem:[#allocation2 + $0x58] sm:$0xff] %v932_v16 }
  0x2f   : > { %329 = vst [vmem:[#allocation2 + $0x60] sm:$0xff] %v932_v16  ;;  %330 = vst [vmem:[#allocation2 + $0x68] sm:$0xff] %v932_v16 }
  0x30   : > { %331 = vst [vmem:[#allocation2 + $0x70] sm:$0xff] %v932_v16  ;;  %332 = vst [vmem:[#allocation2 + $0x78] sm:$0xff] %v932_v16 }
  0x31 PF: > { %v876_v17 = vld [vmem:[%s1016_s3] sm:$0xff]   ;;  %v877_v18 = vld [vmem:[%s1016_s3 + $0x8] sm:$0xff]   ;;  %v878_v19 = vld [vmem:[%s1016_s3 + $0x10] sm:$0xff]   ;;  %p766_p11 = scmp.ne.s32.totalorder %s922_s11, 4 }
  0x32   : > { %787 = vmatprep.subr.bf16.mxu0 %v876_v17  ;;  %819 = vmatprep.subr.bf16.mxu1 %v876_v17  ;;  %v879_v20 = vld [vmem:[%s1016_s3 + $0x18] sm:$0xff]   ;;  %v884_v21 = vld [vmem:[%s1018_s4] sm:$0xff]   ;;  %v881_v24 = vld [vmem:[%s1016_s3 + $0x28] sm:$0xff]  }
  0x33   : > { %788 = vmatpush3.bf16.msra.mxu0 %v876_v17  ;;  %827 = vmatpush3.bf16.msra.mxu1 %v876_v17  ;;  %v885_v22 = vld [vmem:[%s1018_s4 + $0x20] sm:$0xff]   ;;  %v882_v25 = vld [vmem:[%s1016_s3 + $0x30] sm:$0xff]   ;;  %v883_v26 = vld [vmem:[%s1016_s3 + $0x38] sm:$0xff]  }
  0x34   : > { %789 = vmatprep.subr.bf16.mxu0 %v877_v18  ;;  %820 = vmatprep.subr.bf16.mxu1 %v877_v18  ;;  %v880_v23 = vld [vmem:[%s1016_s3 + $0x20] sm:$0xff]   ;;  %v886_v27 = vld [vmem:[%s1018_s4 + $0x8] sm:$0xff]   ;;  %v888_v29 = vld [vmem:[%s1018_s4 + $0x10] sm:$0xff]  }
  0x35   : > { %803 = vmatprep.mubr.bf16.mxu0 %v884_v21  ;;  %811 = vmatprep.mubr.bf16.mxu1 %v885_v22  ;;  %v887_v28 = vld [vmem:[%s1018_s4 + $0x28] sm:$0xff]   ;;  %v889_v30 = vld [vmem:[%s1018_s4 + $0x30] sm:$0xff]   ;;  %v890_v31 = vld [vmem:[%s1018_s4 + $0x18] sm:$0xff]  }
  0x36   : > { %v891_v32 = vld [vmem:[%s1018_s4 + $0x38] sm:$0xff]   ;;  %v335_v33 = vld [vmem:[#allocation2 + $0x10] sm:$0xff]  ;;  %v333_v35 = vld [vmem:[#allocation2] sm:$0xff] }
  0x37   : > { %790 = vmatpush3.bf16.msra.mxu0 %v877_v18  ;;  %828 = vmatpush3.bf16.msra.mxu1 %v877_v18  ;;  %v343_v34 = vld [vmem:[#allocation2 + $0x50] sm:$0xff]  ;;  %v341_v36 = vld [vmem:[#allocation2 + $0x40] sm:$0xff]  ;;  %v336_v39 = vld [vmem:[#allocation2 + $0x18] sm:$0xff] }
  0x38   : > { %791 = vmatprep.subr.bf16.mxu0 %v878_v19  ;;  %821 = vmatprep.subr.bf16.mxu1 %v878_v19  ;;  %v344_v40 = vld [vmem:[#allocation2 + $0x58] sm:$0xff]  ;;  %v334_v45 = vld [vmem:[#allocation2 + $0x8] sm:$0xff]  ;;  %v339_v57 = vld [vmem:[#allocation2 + $0x30] sm:$0xff] }
  0x39   : > { %v342_v46 = vld [vmem:[#allocation2 + $0x48] sm:$0xff]  ;;  %v347_v58 = vld [vmem:[#allocation2 + $0x70] sm:$0xff]  ;;  %v337_v59 = vld [vmem:[#allocation2 + $0x20] sm:$0xff] }
  0x3a   : > { %v345_v60 = vld [vmem:[#allocation2 + $0x60] sm:$0xff]  ;;  %v340_v63 = vld [vmem:[#allocation2 + $0x38] sm:$0xff]  ;;  %v338_v5 = vld [vmem:[#allocation2 + $0x28] sm:$0xff] }
  0x3b   : > { %792 = vmatpush3.bf16.msra.mxu0 %v878_v19  ;;  %829 = vmatpush3.bf16.msra.mxu1 %v878_v19  ;;  %v348_v0 = vld [vmem:[#allocation2 + $0x78] sm:$0xff]  ;;  %v346_v6 = vld [vmem:[#allocation2 + $0x68] sm:$0xff] }
  0x3c   : > { %793 = vmatprep.subr.bf16.mxu0 %v879_v20  ;;  %822 = vmatprep.subr.bf16.mxu1 %v879_v20 }
  0x3f   : > { %794 = vmatpush3.bf16.msra.mxu0 %v879_v20  ;;  %830 = vmatpush3.bf16.msra.mxu1 %v879_v20 }
  0x40   : > { %795 = vmatprep.subr.bf16.mxu0 %v880_v23  ;;  %823 = vmatprep.subr.bf16.mxu1 %v880_v23 }
  0x43   : > { %796 = vmatpush3.bf16.msra.mxu0 %v880_v23  ;;  %831 = vmatpush3.bf16.msra.mxu1 %v880_v23 }
  0x44   : > { %797 = vmatprep.subr.bf16.mxu0 %v881_v24  ;;  %824 = vmatprep.subr.bf16.mxu1 %v881_v24 }
  0x47   : > { %798 = vmatpush3.bf16.msra.mxu0 %v881_v24  ;;  %832 = vmatpush3.bf16.msra.mxu1 %v881_v24 }
  0x48   : > { %799 = vmatprep.subr.bf16.mxu0 %v882_v25  ;;  %825 = vmatprep.subr.bf16.mxu1 %v882_v25 }
  0x4b   : > { %800 = vmatpush3.bf16.msra.mxu0 %v882_v25  ;;  %833 = vmatpush3.bf16.msra.mxu1 %v882_v25 }
  0x4c   : > { %801 = vmatprep.subr.bf16.mxu0 %v883_v26  ;;  %826 = vmatprep.subr.bf16.mxu1 %v883_v26 }
  0x4f   : > { %802 = vmatpush3.bf16.msra.mxu0 %v883_v26  ;;  %834 = vmatpush3.bf16.msra.mxu1 %v883_v26 }
  0x52   : > { %804 = vmatmul.mubr.bf16.vlgmr.msra.gmra.mrb[0].mxu0 %v886_v27  ;;  %812 = vmatmul.mubr.bf16.vlgmr.msra.gmra.mrb[0].mxu1 %v887_v28 }
  0x53   : > { %807 = vmatprep.mubr.bf16.mxu0 %v888_v29  ;;  %815 = vmatprep.mubr.bf16.mxu1 %v889_v30 }
  0x5a   : > { %808 = vmatmul.mubr.bf16.gmra.mrb[4].mxu0 %v890_v31  ;;  %816 = vmatmul.mubr.bf16.gmra.mrb[4].mxu1 %v891_v32 }
 0x125   : > { %v805_v37 = vpop.f32.mrb[0].mxu0  ;;  %v813_v38 = vpop.f32.mrb[0].mxu1 }
 0x126   : > { %v576_v41 = vadd.f32 %v805_v37, %v335_v33  ;;  %v584_v42 = vadd.f32 %v813_v38, %v343_v34  ;;  %v511_v43 = vpop.f32.mrb[1].mxu0  ;;  %v543_v44 = vpop.f32.mrb[1].mxu1 }
 0x127   : > { %v574_v47 = vadd.f32 %v511_v43, %v333_v35  ;;  %v582_v48 = vadd.f32 %v543_v44, %v341_v36  ;;  %v806_v49 = vpop.f32.mrb[2].mxu0  ;;  %v814_v50 = vpop.f32.mrb[2].mxu1 }
 0x128   : > { %592 = vst [vmem:[#allocation2 + $0x10] sm:$0xff] %v576_v41  ;;  %600 = vst [vmem:[#allocation2 + $0x50] sm:$0xff] %v584_v42  ;;  %v577_v51 = vadd.f32 %v806_v49, %v336_v39  ;;  %v585_v52 = vadd.f32 %v814_v50, %v344_v40  ;;  %v514_v53 = vpop.f32.mrb[3].mxu0  ;;  %v546_v54 = vpop.f32.mrb[3].mxu1 }
 0x129   : > { %590 = vst [vmem:[#allocation2] sm:$0xff] %v574_v47  ;;  %598 = vst [vmem:[#allocation2 + $0x40] sm:$0xff] %v582_v48  ;;  %v575_v55 = vadd.f32 %v514_v53, %v334_v45  ;;  %v583_v56 = vadd.f32 %v546_v54, %v342_v46 }
 0x12a   : > { %593 = vst [vmem:[#allocation2 + $0x18] sm:$0xff] %v577_v51  ;;  %601 = vst [vmem:[#allocation2 + $0x58] sm:$0xff] %v585_v52 }
 0x12b   : > { %591 = vst [vmem:[#allocation2 + $0x8] sm:$0xff] %v575_v55  ;;  %599 = vst [vmem:[#allocation2 + $0x48] sm:$0xff] %v583_v56 }
 0x12d   : > { %v809_v61 = vpop.f32.mrb[4].mxu0  ;;  %v817_v62 = vpop.f32.mrb[4].mxu1  ;;  %609 = sbr.rel (%p766_p11) target bundleno = 317 (0x13d), region = 77 }
 0x12e   : > { %v580_v1 = vadd.f32 %v809_v61, %v339_v57  ;;  %v588_v2 = vadd.f32 %v817_v62, %v347_v58  ;;  %v527_v3 = vpop.f32.mrb[5].mxu0  ;;  %v559_v4 = vpop.f32.mrb[5].mxu1 }
 0x12f   : > { %v578_v7 = vadd.f32 %v527_v3, %v337_v59  ;;  %v586_v8 = vadd.f32 %v559_v4, %v345_v60  ;;  %v810_v9 = vpop.f32.mrb[6].mxu0  ;;  %v818_v10 = vpop.f32.mrb[6].mxu1  ;;  %v612_v19 = vld [vmem:[#allocation2 + $0x10] sm:$0xff] (!%p766_p11) }
 0x130   : > { %596 = vst [vmem:[#allocation2 + $0x30] sm:$0xff] %v580_v1  ;;  %604 = vst [vmem:[#allocation2 + $0x70] sm:$0xff] %v588_v2  ;;  %v581_v11 = vadd.f32 %v810_v9, %v340_v63  ;;  %v589_v12 = vadd.f32 %v818_v10, %v348_v0  ;;  %v530_v13 = vpop.f32.mrb[7].mxu0  ;;  %v562_v14 = vpop.f32.mrb[7].mxu1  ;;  %v610_v17 = vld [vmem:[#allocation2] sm:$0xff] (!%p766_p11)  ;;  %v620_v27 = vld [vmem:[#allocation2 + $0x50] sm:$0xff] (!%p766_p11) }
 0x131   : > { %594 = vst [vmem:[#allocation2 + $0x20] sm:$0xff] %v578_v7  ;;  %602 = vst [vmem:[#allocation2 + $0x60] sm:$0xff] %v586_v8  ;;  %v579_v15 = vadd.f32 %v530_v13, %v338_v5  ;;  %v587_v16 = vadd.f32 %v562_v14, %v346_v6  ;;  %v613_v20 = vld [vmem:[#allocation2 + $0x18] sm:$0xff] (!%p766_p11)  ;;  %v618_v25 = vld [vmem:[#allocation2 + $0x40] sm:$0xff] (!%p766_p11) }
 0x132   : > { %597 = vst [vmem:[#allocation2 + $0x38] sm:$0xff] %v581_v11  ;;  %605 = vst [vmem:[#allocation2 + $0x78] sm:$0xff] %v589_v12  ;;  %v611_v18 = vld [vmem:[#allocation2 + $0x8] sm:$0xff] (!%p766_p11)  ;;  %v621_v28 = vld [vmem:[#allocation2 + $0x58] sm:$0xff] (!%p766_p11) }
 0x133   : > { %595 = vst [vmem:[#allocation2 + $0x28] sm:$0xff] %v579_v15  ;;  %603 = vst [vmem:[#allocation2 + $0x68] sm:$0xff] %v587_v16  ;;  %v619_v26 = vld [vmem:[#allocation2 + $0x48] sm:$0xff] (!%p766_p11) }
 0x134   : > { %626 = vst [vmem:[%s1103_s2] sm:$0xff] %v610_v17  ;;  %627 = vst [vmem:[%s1103_s2 + $0x8] sm:$0xff] %v611_v18 }
 0x135   : > { %628 = vst [vmem:[%s1103_s2 + $0x10] sm:$0xff] %v612_v19  ;;  %629 = vst [vmem:[%s1103_s2 + $0x18] sm:$0xff] %v613_v20 }
 0x136   : > { %634 = vst [vmem:[%s1103_s2 + $0x40] sm:$0xff] %v618_v25  ;;  %635 = vst [vmem:[%s1103_s2 + $0x48] sm:$0xff] %v619_v26 }
 0x137   : > { %v616_v23 = vld [vmem:[#allocation2 + $0x30] sm:$0xff]  ;;  %636 = vst [vmem:[%s1103_s2 + $0x50] sm:$0xff] %v620_v27  ;;  %637 = vst [vmem:[%s1103_s2 + $0x58] sm:$0xff] %v621_v28 }
 0x138   : > { %v614_v21 = vld [vmem:[#allocation2 + $0x20] sm:$0xff]  ;;  %632 = vst [vmem:[%s1103_s2 + $0x30] sm:$0xff] %v616_v23  ;;  %v624_v31 = vld [vmem:[#allocation2 + $0x70] sm:$0xff] }
 0x139   : > { %630 = vst [vmem:[%s1103_s2 + $0x20] sm:$0xff] %v614_v21  ;;  %v617_v24 = vld [vmem:[#allocation2 + $0x38] sm:$0xff]  ;;  %v622_v29 = vld [vmem:[#allocation2 + $0x60] sm:$0xff]  ;;  %640 = vst [vmem:[%s1103_s2 + $0x70] sm:$0xff] %v624_v31 }
 0x13a   : > { %v615_v22 = vld [vmem:[#allocation2 + $0x28] sm:$0xff]  ;;  %633 = vst [vmem:[%s1103_s2 + $0x38] sm:$0xff] %v617_v24  ;;  %638 = vst [vmem:[%s1103_s2 + $0x60] sm:$0xff] %v622_v29  ;;  %v625_v32 = vld [vmem:[#allocation2 + $0x78] sm:$0xff] }
 0x13b   : > { %631 = vst [vmem:[%s1103_s2 + $0x28] sm:$0xff] %v615_v22  ;;  %v623_v30 = vld [vmem:[#allocation2 + $0x68] sm:$0xff]  ;;  %641 = vst [vmem:[%s1103_s2 + $0x78] sm:$0xff] %v625_v32 }
 0x13c   : > { %639 = vst [vmem:[%s1103_s2 + $0x68] sm:$0xff] %v623_v30 }
 0x13d PF: > { %s12_s13 = sadd.s32 1, %s930_s13   ;;  %s1104_s9 = smov %s918_s10 }
 0x13e   : > { %p9_p12 = scmp.ge.s32.totalorder %s12_s13, 7   ;;  %s1105_s10 = smov %s983_s17 }
 0x13f   : > { %s1106_s11 = smov %s926_s12  ;;  %s1107_s12 = smov %s1109_s14 }
 0x140   :  { %11 = sbr.rel (!%p9_p12) target bundleno = 3 (0x3), region = 115 }

// kernel: resnet_simclr_forward.68
= control target key start
LH: loop header
LB: loop body
LE: loop exit
PB: predicated region body
PF: predicated region fallthrough
CT: control target
= control target key end

     0   :  { %vm12_vm0 = vcmask 517120   ;;  %vm30_vm1 = vcmask 523264   ;;  %v132_v0 = vmov 0.0   ;;  %vm122_vm2 = vcmask 1040384   ;;  %s234_s0 = inlined_call_operand.vmem [shape: f32[128,64], index: 0, kind: input, shape index: {}]   ;;  %s235_s1 = inlined_call_operand.vmem [shape: f32[2,64], index: 1, kind: output, shape index: {}]  }
   0x1   :  { %13 = vst.msk [vmem:[%s235_s1] sm:$0x3] %vm12_vm0, %v132_v0  ;;  %v14_v1 = vld [vmem:[%s234_s0] sm:$0xff]  ;;  %v15_v2 = vld [vmem:[%s234_s0 + $0x8] sm:$0xff]  ;;  %v16_v3 = vld [vmem:[%s234_s0 + $0x10] sm:$0xff] }
   0x2   :  { %v31_v4 = vsel %vm30_vm1, %v14_v1, 0.0  ;;  %v32_v5 = vsel %vm30_vm1, %v15_v2, 0.0  ;;  %v34_v6 = vsel %vm30_vm1, %v16_v3, 0.0  ;;  %v17_v7 = vld [vmem:[%s234_s0 + $0x18] sm:$0xff]  ;;  %v18_v10 = vld [vmem:[%s234_s0 + $0x20] sm:$0xff]  ;;  %v19_v13 = vld [vmem:[%s234_s0 + $0x28] sm:$0xff]  ;;  %v68_v15 = vmul.f32 %v14_v1, %v14_v1 }
   0x3   :  { %v33_v8 = vadd.f32 %v32_v5, %v31_v4  ;;  %v36_v9 = vsel %vm30_vm1, %v17_v7, 0.0  ;;  %v38_v12 = vsel %vm30_vm1, %v18_v10, 0.0  ;;  %v69_v16 = vmul.f32 %v15_v2, %v15_v2  ;;  %v20_v19 = vld [vmem:[%s234_s0 + $0x30] sm:$0xff]  ;;  %v21_v24 = vld [vmem:[%s234_s0 + $0x38] sm:$0xff]  ;;  %v22_v31 = vld [vmem:[%s234_s0 + $0x40] sm:$0xff] }
   0x4   :  { %v70_v17 = vmul.f32 %v16_v3, %v16_v3  ;;  %v40_v18 = vsel %vm30_vm1, %v19_v13, 0.0  ;;  %v71_v21 = vmul.f32 %v17_v7, %v17_v7  ;;  %v42_v22 = vsel %vm30_vm1, %v20_v19, 0.0  ;;  %v23_v37 = vld [vmem:[%s234_s0 + $0x48] sm:$0xff]  ;;  %v24_v43 = vld [vmem:[%s234_s0 + $0x50] sm:$0xff]  ;;  %v25_v49 = vld [vmem:[%s234_s0 + $0x58] sm:$0xff] }
   0x5   :  { %v35_v11 = vadd.f32 %v34_v6, %v33_v8  ;;  %v72_v23 = vmul.f32 %v18_v10, %v18_v10  ;;  %v84_v26 = vsel %vm30_vm1, %v68_v15, 0.0  ;;  %v85_v27 = vsel %vm30_vm1, %v69_v16, 0.0  ;;  %v26_v55 = vld [vmem:[%s234_s0 + $0x60] sm:$0xff]  ;;  %v27_v61 = vld [vmem:[%s234_s0 + $0x68] sm:$0xff]  ;;  %v28_v3 = vld [vmem:[%s234_s0 + $0x70] sm:$0xff] }
   0x6   :  { %v87_v28 = vsel %vm30_vm1, %v70_v17, 0.0  ;;  %v44_v29 = vsel %vm30_vm1, %v21_v24, 0.0  ;;  %v86_v30 = vadd.f32 %v85_v27, %v84_v26  ;;  %v73_v33 = vmul.f32 %v19_v13, %v19_v13 }
   0x7   :  { %v37_v14 = vadd.f32 %v36_v9, %v35_v11  ;;  %v89_v34 = vsel %vm30_vm1, %v71_v21, 0.0  ;;  %v46_v35 = vsel %vm30_vm1, %v22_v31, 0.0  ;;  %v74_v39 = vmul.f32 %v20_v19, %v20_v19  ;;  %v29_v9 = vld [vmem:[%s234_s0 + $0x78] sm:$0xff] }
   0x8   :  { %v88_v36 = vadd.f32 %v87_v28, %v86_v30  ;;  %v91_v40 = vsel %vm30_vm1, %v72_v23, 0.0  ;;  %v48_v41 = vsel %vm30_vm1, %v23_v37, 0.0  ;;  %v75_v45 = vmul.f32 %v21_v24, %v21_v24 }
   0x9   :  { %v39_v20 = vadd.f32 %v38_v12, %v37_v14  ;;  %v93_v46 = vsel %vm30_vm1, %v73_v33, 0.0  ;;  %v50_v47 = vsel %vm30_vm1, %v24_v43, 0.0  ;;  %v76_v51 = vmul.f32 %v22_v31, %v22_v31 }
   0xa   :  { %v90_v42 = vadd.f32 %v89_v34, %v88_v36  ;;  %v95_v52 = vsel %vm30_vm1, %v74_v39, 0.0  ;;  %v52_v53 = vsel %vm30_vm1, %v25_v49, 0.0  ;;  %v77_v57 = vmul.f32 %v23_v37, %v23_v37 }
   0xb   :  { %v41_v25 = vadd.f32 %v40_v18, %v39_v20  ;;  %v97_v58 = vsel %vm30_vm1, %v75_v45, 0.0  ;;  %v54_v59 = vsel %vm30_vm1, %v26_v55, 0.0  ;;  %v78_v63 = vmul.f32 %v24_v43, %v24_v43  ;;  %v121_v43 = vld [vmem:[%s235_s1] sm:$0x3] }
   0xc   :  { %v92_v48 = vadd.f32 %v91_v40, %v90_v42  ;;  %v99_v0 = vsel %vm30_vm1, %v76_v51, 0.0  ;;  %v56_v1 = vsel %vm30_vm1, %v27_v61, 0.0  ;;  %v79_v5 = vmul.f32 %v25_v49, %v25_v49 }
   0xd   :  { %v43_v32 = vadd.f32 %v42_v22, %v41_v25  ;;  %v101_v6 = vsel %vm30_vm1, %v77_v57, 0.0  ;;  %v58_v7 = vsel %vm30_vm1, %v28_v3, 0.0  ;;  %v80_v11 = vmul.f32 %v26_v55, %v26_v55 }
   0xe   :  { %v94_v54 = vadd.f32 %v93_v46, %v92_v48  ;;  %v103_v12 = vsel %vm30_vm1, %v78_v63, 0.0  ;;  %v60_v13 = vsel %vm30_vm1, %v29_v9, 0.0  ;;  %v81_v16 = vmul.f32 %v27_v61, %v27_v61 }
   0xf   :  { %v45_v38 = vadd.f32 %v44_v29, %v43_v32  ;;  %v105_v17 = vsel %vm30_vm1, %v79_v5, 0.0  ;;  %v82_v20 = vmul.f32 %v28_v3, %v28_v3  ;;  %v107_v21 = vsel %vm30_vm1, %v80_v11, 0.0 }
  0x10   :  { %v96_v60 = vadd.f32 %v95_v52, %v94_v54  ;;  %v83_v24 = vmul.f32 %v29_v9, %v29_v9  ;;  %v109_v25 = vsel %vm30_vm1, %v81_v16, 0.0 }
  0x11   :  { %v47_v44 = vadd.f32 %v46_v35, %v45_v38  ;;  %v111_v28 = vsel %vm30_vm1, %v82_v20, 0.0 }
  0x12   :  { %v98_v2 = vadd.f32 %v97_v58, %v96_v60  ;;  %v113_v30 = vsel %vm30_vm1, %v83_v24, 0.0 }
  0x13   :  { %v49_v50 = vadd.f32 %v48_v41, %v47_v44 }
  0x14   :  { %v100_v8 = vadd.f32 %v99_v0, %v98_v2 }
  0x15   :  { %v51_v56 = vadd.f32 %v50_v47, %v49_v50 }
  0x16   :  { %v102_v14 = vadd.f32 %v101_v6, %v100_v8 }
  0x17   :  { %v53_v62 = vadd.f32 %v52_v53, %v51_v56 }
  0x18   :  { %v104_v18 = vadd.f32 %v103_v12, %v102_v14 }
  0x19   :  { %v55_v4 = vadd.f32 %v54_v59, %v53_v62 }
  0x1a   :  { %v106_v22 = vadd.f32 %v105_v17, %v104_v18 }
  0x1b   :  { %v57_v10 = vadd.f32 %v56_v1, %v55_v4 }
  0x1c   :  { %v108_v26 = vadd.f32 %v107_v21, %v106_v22 }
  0x1d   :  { %v59_v15 = vadd.f32 %v58_v7, %v57_v10 }
  0x1e   :  { %v110_v29 = vadd.f32 %v109_v25, %v108_v26 }
  0x1f   :  { %v61_v19 = vadd.f32 %v60_v13, %v59_v15 }
  0x20   :  { %v112_v32 = vadd.f32 %v111_v28, %v110_v29 }
  0x21   :  { %v62_v23 = vrot.slane %v61_v19, 4 }
  0x22   :  { %v114_v33 = vadd.f32 %v113_v30, %v112_v32 }
  0x23   :  { %v63_v27 = vadd.f32 %v62_v23, %v61_v19 }
  0x24   :  { %v115_v35 = vrot.slane %v114_v33, 4 }
  0x25   :  { %v64_v31 = vrot.slane %v63_v27, 2 }
  0x26   :  { %v116_v36 = vadd.f32 %v115_v35, %v114_v33 }
  0x27   :  { %v65_v34 = vadd.f32 %v64_v31, %v63_v27 }
  0x28   :  { %v117_v38 = vrot.slane %v116_v36, 2 }
  0x29   :  { %v66_v37 = vrot.slane %v65_v34, 1 }
  0x2a   :  { %v118_v39 = vadd.f32 %v117_v38, %v116_v36 }
  0x2b   :  { %v67_v40 = vadd.f32 %v66_v37, %v65_v34 }
  0x2c   :  { %v119_v41 = vrot.slane %v118_v39, 1 }
  0x2e   :  { %v120_v42 = vadd.f32 %v119_v41, %v118_v39 }
  0x30   :  { %v123_v44 = vsel %vm122_vm2, %v67_v40, %v120_v42 }
  0x31   :  { %v124_v45 = vadd.f32 %v123_v44, %v121_v43 }
  0x33   :  { %126 = vst.msk [vmem:[%s235_s1] sm:$0x3] %vm12_vm0, %v124_v45 }

// kernel: resnet_simclr_forward.69
= control target key start
LH: loop header
LB: loop body
LE: loop exit
PB: predicated region body
PF: predicated region fallthrough
CT: control target
= control target key end

     0   :  { %vm92_vm0 = vcmask 523264   ;;  %s271_s0 = inlined_call_operand.vmem [shape: f32[128,64], index: 0, kind: input, shape index: {}]   ;;  %s272_s1 = inlined_call_operand.vmem [shape: f32[1,64], index: 1, kind: input, shape index: {}]   ;;  %s273_s2 = inlined_call_operand.vmem [shape: f32[1,64], index: 2, kind: input, shape index: {}]   ;;  %s274_s3 = inlined_call_operand.vmem [shape: f32[128,64], index: 3, kind: output, shape index: {}]  }
   0x1   :  { %v14_v0 = vld [vmem:[%s271_s0] sm:$0xff]  ;;  %v15_v4 = vld [vmem:[%s271_s0 + $0x8] sm:$0xff]  ;;  %v16_v5 = vld [vmem:[%s271_s0 + $0x10] sm:$0xff] }
   0x2   :  { %v113_v1 = vld [vmem:[%s272_s1] ss:$0 sm:$0xff]  ;;  %v17_v6 = vld [vmem:[%s271_s0 + $0x18] sm:$0xff]  ;;  %v19_v11 = vld [vmem:[%s271_s0 + $0x28] sm:$0xff] }
   0x3   :  { %v144_v2 = vld [vmem:[%s273_s2] ss:$0 sm:$0xff]  ;;  %v37_v3 = vmul.f32 %v113_v1, %v14_v0  ;;  %v38_v7 = vmul.f32 %v113_v1, %v15_v4  ;;  %v39_v8 = vmul.f32 %v113_v1, %v16_v5  ;;  %v40_v9 = vmul.f32 %v113_v1, %v17_v6  ;;  %v20_v12 = vld [vmem:[%s271_s0 + $0x30] sm:$0xff]  ;;  %v21_v17 = vld [vmem:[%s271_s0 + $0x38] sm:$0xff] }
   0x4   :  { %v18_v10 = vld [vmem:[%s271_s0 + $0x20] sm:$0xff]  ;;  %v42_v15 = vmul.f32 %v113_v1, %v19_v11  ;;  %v43_v16 = vmul.f32 %v113_v1, %v20_v12  ;;  %v44_v21 = vmul.f32 %v113_v1, %v21_v17  ;;  %v23_v27 = vld [vmem:[%s271_s0 + $0x48] sm:$0xff]  ;;  %v24_v28 = vld [vmem:[%s271_s0 + $0x50] sm:$0xff] }
   0x5   :  { %v60_v13 = vadd.f32 %v144_v2, %v37_v3  ;;  %v41_v14 = vmul.f32 %v113_v1, %v18_v10  ;;  %v61_v18 = vadd.f32 %v144_v2, %v38_v7  ;;  %v62_v19 = vadd.f32 %v144_v2, %v39_v8  ;;  %v22_v22 = vld [vmem:[%s271_s0 + $0x40] sm:$0xff]  ;;  %v25_v29 = vld [vmem:[%s271_s0 + $0x58] sm:$0xff]  ;;  %v27_v35 = vld [vmem:[%s271_s0 + $0x68] sm:$0xff] }
   0x6   :  { %v63_v20 = vadd.f32 %v144_v2, %v40_v9  ;;  %v65_v25 = vadd.f32 %v144_v2, %v42_v15  ;;  %v66_v26 = vadd.f32 %v144_v2, %v43_v16  ;;  %v67_v33 = vadd.f32 %v144_v2, %v44_v21  ;;  %v26_v34 = vld [vmem:[%s271_s0 + $0x60] sm:$0xff]  ;;  %v28_v36 = vld [vmem:[%s271_s0 + $0x70] sm:$0xff]  ;;  %v29_v41 = vld [vmem:[%s271_s0 + $0x78] sm:$0xff] }
   0x7   :  { %v76_v23 = vmax.f32 %v60_v13, 0.0  ;;  %v64_v24 = vadd.f32 %v144_v2, %v41_v14  ;;  %v77_v30 = vmax.f32 %v61_v18, 0.0  ;;  %v78_v31 = vmax.f32 %v62_v19, 0.0 }
   0x8   :  { %v79_v32 = vmax.f32 %v63_v20, 0.0  ;;  %v81_v38 = vmax.f32 %v65_v25, 0.0  ;;  %v82_v39 = vmax.f32 %v66_v26, 0.0  ;;  %v45_v40 = vmul.f32 %v113_v1, %v22_v22 }
   0x9   :  { %93 = vst.msk [vmem:[%s274_s3] sm:$0xff] %vm92_vm0, %v76_v23  ;;  %v80_v37 = vmax.f32 %v64_v24, 0.0  ;;  %94 = vst.msk [vmem:[%s274_s3 + $0x8] sm:$0xff] %vm92_vm0, %v77_v30  ;;  %v83_v42 = vmax.f32 %v67_v33, 0.0  ;;  %v46_v43 = vmul.f32 %v113_v1, %v23_v27  ;;  %v47_v44 = vmul.f32 %v113_v1, %v24_v28 }
   0xa   :  { %95 = vst.msk [vmem:[%s274_s3 + $0x10] sm:$0xff] %vm92_vm0, %v78_v31  ;;  %96 = vst.msk [vmem:[%s274_s3 + $0x18] sm:$0xff] %vm92_vm0, %v79_v32  ;;  %v48_v45 = vmul.f32 %v113_v1, %v25_v29  ;;  %v68_v46 = vadd.f32 %v144_v2, %v45_v40  ;;  %v49_v47 = vmul.f32 %v113_v1, %v26_v34 }
   0xb   :  { %97 = vst.msk [vmem:[%s274_s3 + $0x20] sm:$0xff] %vm92_vm0, %v80_v37  ;;  %98 = vst.msk [vmem:[%s274_s3 + $0x28] sm:$0xff] %vm92_vm0, %v81_v38  ;;  %v50_v48 = vmul.f32 %v113_v1, %v27_v35  ;;  %v51_v49 = vmul.f32 %v113_v1, %v28_v36  ;;  %v69_v50 = vadd.f32 %v144_v2, %v46_v43 }
   0xc   :  { %99 = vst.msk [vmem:[%s274_s3 + $0x30] sm:$0xff] %vm92_vm0, %v82_v39  ;;  %100 = vst.msk [vmem:[%s274_s3 + $0x38] sm:$0xff] %vm92_vm0, %v83_v42  ;;  %v70_v51 = vadd.f32 %v144_v2, %v47_v44  ;;  %v71_v52 = vadd.f32 %v144_v2, %v48_v45  ;;  %v52_v53 = vmul.f32 %v113_v1, %v29_v41  ;;  %v84_v54 = vmax.f32 %v68_v46, 0.0 }
   0xd   :  { %v72_v55 = vadd.f32 %v144_v2, %v49_v47  ;;  %v73_v56 = vadd.f32 %v144_v2, %v50_v48  ;;  %v74_v57 = vadd.f32 %v144_v2, %v51_v49  ;;  %v85_v58 = vmax.f32 %v69_v50, 0.0 }
   0xe   :  { %v86_v59 = vmax.f32 %v70_v51, 0.0  ;;  %v87_v60 = vmax.f32 %v71_v52, 0.0  ;;  %v75_v61 = vadd.f32 %v144_v2, %v52_v53  ;;  %101 = vst.msk [vmem:[%s274_s3 + $0x40] sm:$0xff] %vm92_vm0, %v84_v54 }
   0xf   :  { %v88_v62 = vmax.f32 %v72_v55, 0.0  ;;  %v89_v63 = vmax.f32 %v73_v56, 0.0  ;;  %v90_v0 = vmax.f32 %v74_v57, 0.0  ;;  %102 = vst.msk [vmem:[%s274_s3 + $0x48] sm:$0xff] %vm92_vm0, %v85_v58 }
  0x10   :  { %103 = vst.msk [vmem:[%s274_s3 + $0x50] sm:$0xff] %vm92_vm0, %v86_v59  ;;  %104 = vst.msk [vmem:[%s274_s3 + $0x58] sm:$0xff] %vm92_vm0, %v87_v60  ;;  %v91_v1 = vmax.f32 %v75_v61, 0.0 }
  0x11   :  { %105 = vst.msk [vmem:[%s274_s3 + $0x60] sm:$0xff] %vm92_vm0, %v88_v62  ;;  %106 = vst.msk [vmem:[%s274_s3 + $0x68] sm:$0xff] %vm92_vm0, %v89_v63 }
  0x12   :  { %107 = vst.msk [vmem:[%s274_s3 + $0x70] sm:$0xff] %vm92_vm0, %v90_v0  ;;  %108 = vst.msk [vmem:[%s274_s3 + $0x78] sm:$0xff] %vm92_vm0, %v91_v1 }

// kernel: resnet_simclr_forward.84
= control target key start
LH: loop header
LB: loop body
LE: loop exit
PB: predicated region body
PF: predicated region fallthrough
CT: control target
= control target key end

     0   :  { %v49_v0 = vmov 0.0   ;;  %vm40_vm0 = vcmask 1040384   ;;  %s81_s1 = inlined_call_operand.vmem [shape: f32[2,128], index: 1, kind: output, shape index: {}]   ;;  %s82_s0 = inlined_call_operand.vmem [shape: f32[32,128], index: 0, kind: input, shape index: {}]  }
   0x1   :  { %12 = vst [vmem:[%s81_s1] sm:$0x3] %v49_v0  ;;  %v13_v1 = vld [vmem:[%s82_s0] sm:$0xff]  ;;  %v14_v2 = vld [vmem:[%s82_s0 + $0x8] sm:$0xff]  ;;  %v15_v3 = vld [vmem:[%s82_s0 + $0x10] sm:$0xff] }
   0x2   :  { %v16_v4 = vld [vmem:[%s82_s0 + $0x18] sm:$0xff]  ;;  %v17_v5 = vadd.f32 %v14_v2, %v13_v1  ;;  %v26_v6 = vmul.f32 %v13_v1, %v13_v1  ;;  %v27_v7 = vmul.f32 %v14_v2, %v14_v2  ;;  %v28_v8 = vmul.f32 %v15_v3, %v15_v3 }
   0x3   :  { %v29_v10 = vmul.f32 %v16_v4, %v16_v4 }
   0x4   :  { %v18_v9 = vadd.f32 %v17_v5, %v15_v3  ;;  %v30_v11 = vadd.f32 %v27_v7, %v26_v6 }
   0x6   :  { %v19_v12 = vadd.f32 %v18_v9, %v16_v4  ;;  %v31_v13 = vadd.f32 %v30_v11, %v28_v8 }
   0x8   :  { %v20_v14 = vrot.slane %v19_v12, 4  ;;  %v32_v15 = vadd.f32 %v31_v13, %v29_v10  ;;  %v39_v27 = vld [vmem:[%s81_s1] sm:$0x3] }
   0xa   :  { %v21_v16 = vadd.f32 %v20_v14, %v19_v12  ;;  %v33_v17 = vrot.slane %v32_v15, 4 }
   0xc   :  { %v22_v18 = vrot.slane %v21_v16, 2  ;;  %v34_v19 = vadd.f32 %v33_v17, %v32_v15 }
   0xe   :  { %v23_v20 = vadd.f32 %v22_v18, %v21_v16  ;;  %v35_v21 = vrot.slane %v34_v19, 2 }
  0x10   :  { %v24_v22 = vrot.slane %v23_v20, 1  ;;  %v36_v23 = vadd.f32 %v35_v21, %v34_v19 }
  0x12   :  { %v25_v24 = vadd.f32 %v24_v22, %v23_v20  ;;  %v37_v25 = vrot.slane %v36_v23, 1 }
  0x14   :  { %v38_v26 = vadd.f32 %v37_v25, %v36_v23 }
  0x16   :  { %v41_v28 = vsel %vm40_vm0, %v25_v24, %v38_v26 }
  0x17   :  { %v42_v29 = vadd.f32 %v41_v28, %v39_v27 }
  0x19   :  { %43 = vst [vmem:[%s81_s1] sm:$0x3] %v42_v29 }

// kernel: resnet_simclr_forward.72
= control target key start
LH: loop header
LB: loop body
LE: loop exit
PB: predicated region body
PF: predicated region fallthrough
CT: control target
= control target key end

     0   :  { %vm127_vm0 = vcmask 523264   ;;  %s377_s0 = inlined_call_operand.vmem [shape: f32[128,64], index: 0, kind: input, shape index: {}]   ;;  %s378_s1 = inlined_call_operand.vmem [shape: f32[1,64], index: 1, kind: input, shape index: {}]   ;;  %s379_s2 = inlined_call_operand.vmem [shape: f32[1,64], index: 2, kind: input, shape index: {}]   ;;  %s380_s3 = inlined_call_operand.vmem [shape: f32[128,64], index: 3, kind: input, shape index: {}]   ;;  %s381_s4 = inlined_call_operand.vmem [shape: f32[128,64], index: 4, kind: output, shape index: {}]  }
   0x1   :  { %v17_v0 = vld [vmem:[%s377_s0] sm:$0xff]  ;;  %v18_v4 = vld [vmem:[%s377_s0 + $0x8] sm:$0xff]  ;;  %v19_v7 = vld [vmem:[%s377_s0 + $0x10] sm:$0xff] }
   0x2   :  { %v181_v1 = vld [vmem:[%s378_s1] ss:$0 sm:$0xff]  ;;  %v20_v8 = vld [vmem:[%s377_s0 + $0x18] sm:$0xff]  ;;  %v80_v10 = vld [vmem:[%s380_s3 + $0x8] sm:$0xff] }
   0x3   :  { %v186_v2 = vld [vmem:[%s379_s2] ss:$0 sm:$0xff]  ;;  %v40_v3 = vmul.f32 %v181_v1, %v17_v0  ;;  %v41_v6 = vmul.f32 %v181_v1, %v18_v4  ;;  %v42_v11 = vmul.f32 %v181_v1, %v19_v7  ;;  %v81_v12 = vld [vmem:[%s380_s3 + $0x10] sm:$0xff]  ;;  %v43_v13 = vmul.f32 %v181_v1, %v20_v8  ;;  %v82_v16 = vld [vmem:[%s380_s3 + $0x18] sm:$0xff] }
   0x4   :  { %v79_v5 = vld [vmem:[%s380_s3] sm:$0xff]  ;;  %v22_v18 = vld [vmem:[%s377_s0 + $0x28] sm:$0xff]  ;;  %v23_v19 = vld [vmem:[%s377_s0 + $0x30] sm:$0xff] }
   0x5   :  { %v63_v9 = vadd.f32 %v186_v2, %v40_v3  ;;  %v21_v14 = vld [vmem:[%s377_s0 + $0x20] sm:$0xff]  ;;  %v64_v15 = vadd.f32 %v186_v2, %v41_v6  ;;  %v65_v21 = vadd.f32 %v186_v2, %v42_v11  ;;  %v66_v22 = vadd.f32 %v186_v2, %v43_v13  ;;  %v24_v25 = vld [vmem:[%s377_s0 + $0x38] sm:$0xff]  ;;  %v84_v28 = vld [vmem:[%s380_s3 + $0x28] sm:$0xff] }
   0x6   :  { %v44_v17 = vmul.f32 %v181_v1, %v21_v14  ;;  %v83_v23 = vld [vmem:[%s380_s3 + $0x20] sm:$0xff]  ;;  %v45_v24 = vmul.f32 %v181_v1, %v22_v18  ;;  %v46_v29 = vmul.f32 %v181_v1, %v23_v19  ;;  %v47_v30 = vmul.f32 %v181_v1, %v24_v25  ;;  %v85_v36 = vld [vmem:[%s380_s3 + $0x30] sm:$0xff]  ;;  %v86_v37 = vld [vmem:[%s380_s3 + $0x38] sm:$0xff] }
   0x7   :  { %v95_v20 = vadd.f32 %v79_v5, %v63_v9  ;;  %v96_v26 = vadd.f32 %v80_v10, %v64_v15  ;;  %v25_v31 = vld [vmem:[%s377_s0 + $0x40] sm:$0xff]  ;;  %v97_v33 = vadd.f32 %v81_v12, %v65_v21  ;;  %v98_v34 = vadd.f32 %v82_v16, %v66_v22  ;;  %v26_v38 = vld [vmem:[%s377_s0 + $0x48] sm:$0xff]  ;;  %v27_v43 = vld [vmem:[%s377_s0 + $0x50] sm:$0xff] }
   0x8   :  { %v67_v27 = vadd.f32 %v186_v2, %v44_v17  ;;  %v68_v35 = vadd.f32 %v186_v2, %v45_v24  ;;  %v69_v41 = vadd.f32 %v186_v2, %v46_v29  ;;  %v70_v42 = vadd.f32 %v186_v2, %v47_v30  ;;  %v28_v44 = vld [vmem:[%s377_s0 + $0x58] sm:$0xff]  ;;  %v29_v49 = vld [vmem:[%s377_s0 + $0x60] sm:$0xff]  ;;  %v30_v55 = vld [vmem:[%s377_s0 + $0x68] sm:$0xff] }
   0x9   :  { %v111_v32 = vmax.f32 %v95_v20, 0.0  ;;  %v112_v39 = vmax.f32 %v96_v26, 0.0  ;;  %v113_v45 = vmax.f32 %v97_v33, 0.0  ;;  %v114_v46 = vmax.f32 %v98_v34, 0.0  ;;  %v87_v53 = vld [vmem:[%s380_s3 + $0x40] sm:$0xff]  ;;  %v88_v58 = vld [vmem:[%s380_s3 + $0x48] sm:$0xff] }
   0xa   :  { %v99_v40 = vadd.f32 %v83_v23, %v67_v27  ;;  %v100_v47 = vadd.f32 %v84_v28, %v68_v35  ;;  %v48_v48 = vmul.f32 %v181_v1, %v25_v31  ;;  %v101_v51 = vadd.f32 %v85_v36, %v69_v41  ;;  %v31_v61 = vld [vmem:[%s377_s0 + $0x70] sm:$0xff]  ;;  %v32_v62 = vld [vmem:[%s377_s0 + $0x78] sm:$0xff]  ;;  %v91_v10 = vld [vmem:[%s380_s3 + $0x60] sm:$0xff] }
   0xb   :  { %128 = vst.msk [vmem:[%s381_s4] sm:$0xff] %vm127_vm0, %v111_v32  ;;  %129 = vst.msk [vmem:[%s381_s4 + $0x8] sm:$0xff] %vm127_vm0, %v112_v39  ;;  %v102_v52 = vadd.f32 %v86_v37, %v70_v42  ;;  %v49_v54 = vmul.f32 %v181_v1, %v26_v38  ;;  %v50_v59 = vmul.f32 %v181_v1, %v27_v43  ;;  %v89_v4 = vld [vmem:[%s380_s3 + $0x50] sm:$0xff]  ;;  %v90_v5 = vld [vmem:[%s380_s3 + $0x58] sm:$0xff] }
   0xc   :  { %v115_v50 = vmax.f32 %v99_v40, 0.0  ;;  %130 = vst.msk [vmem:[%s381_s4 + $0x10] sm:$0xff] %vm127_vm0, %v113_v45  ;;  %131 = vst.msk [vmem:[%s381_s4 + $0x18] sm:$0xff] %vm127_vm0, %v114_v46  ;;  %v116_v56 = vmax.f32 %v100_v47, 0.0  ;;  %v71_v57 = vadd.f32 %v186_v2, %v48_v48  ;;  %v51_v60 = vmul.f32 %v181_v1, %v28_v44  ;;  %v92_v14 = vld [vmem:[%s380_s3 + $0x68] sm:$0xff]  ;;  %v93_v21 = vld [vmem:[%s380_s3 + $0x70] sm:$0xff] }
   0xd   :  { %v117_v63 = vmax.f32 %v101_v51, 0.0  ;;  %v118_v0 = vmax.f32 %v102_v52, 0.0  ;;  %v72_v3 = vadd.f32 %v186_v2, %v49_v54  ;;  %v52_v6 = vmul.f32 %v181_v1, %v29_v49  ;;  %v94_v22 = vld [vmem:[%s380_s3 + $0x78] sm:$0xff] }
   0xe   :  { %132 = vst.msk [vmem:[%s381_s4 + $0x20] sm:$0xff] %vm127_vm0, %v115_v50  ;;  %133 = vst.msk [vmem:[%s381_s4 + $0x28] sm:$0xff] %vm127_vm0, %v116_v56  ;;  %v103_v7 = vadd.f32 %v87_v53, %v71_v57  ;;  %v73_v8 = vadd.f32 %v186_v2, %v50_v59  ;;  %v74_v9 = vadd.f32 %v186_v2, %v51_v60 }
   0xf   :  { %v53_v11 = vmul.f32 %v181_v1, %v30_v55  ;;  %134 = vst.msk [vmem:[%s381_s4 + $0x30] sm:$0xff] %vm127_vm0, %v117_v63  ;;  %135 = vst.msk [vmem:[%s381_s4 + $0x38] sm:$0xff] %vm127_vm0, %v118_v0  ;;  %v104_v12 = vadd.f32 %v88_v58, %v72_v3  ;;  %v75_v13 = vadd.f32 %v186_v2, %v52_v6 }
  0x10   :  { %v54_v15 = vmul.f32 %v181_v1, %v31_v61  ;;  %v55_v16 = vmul.f32 %v181_v1, %v32_v62  ;;  %v119_v17 = vmax.f32 %v103_v7, 0.0  ;;  %v105_v18 = vadd.f32 %v89_v4, %v73_v8 }
  0x11   :  { %v106_v19 = vadd.f32 %v90_v5, %v74_v9  ;;  %v76_v20 = vadd.f32 %v186_v2, %v53_v11  ;;  %v120_v23 = vmax.f32 %v104_v12, 0.0  ;;  %v107_v24 = vadd.f32 %v91_v10, %v75_v13 }
  0x12   :  { %v77_v25 = vadd.f32 %v186_v2, %v54_v15  ;;  %v78_v26 = vadd.f32 %v186_v2, %v55_v16  ;;  %136 = vst.msk [vmem:[%s381_s4 + $0x40] sm:$0xff] %vm127_vm0, %v119_v17  ;;  %v121_v1 = vmax.f32 %v105_v18, 0.0 }
  0x13   :  { %v122_v27 = vmax.f32 %v106_v19, 0.0  ;;  %v108_v28 = vadd.f32 %v92_v14, %v76_v20  ;;  %137 = vst.msk [vmem:[%s381_s4 + $0x48] sm:$0xff] %vm127_vm0, %v120_v23  ;;  %v123_v29 = vmax.f32 %v107_v24, 0.0 }
  0x14   :  { %v109_v30 = vadd.f32 %v93_v21, %v77_v25  ;;  %v110_v31 = vadd.f32 %v94_v22, %v78_v26  ;;  %138 = vst.msk [vmem:[%s381_s4 + $0x50] sm:$0xff] %vm127_vm0, %v121_v1 }
  0x15   :  { %139 = vst.msk [vmem:[%s381_s4 + $0x58] sm:$0xff] %vm127_vm0, %v122_v27  ;;  %v124_v2 = vmax.f32 %v108_v28, 0.0  ;;  %140 = vst.msk [vmem:[%s381_s4 + $0x60] sm:$0xff] %vm127_vm0, %v123_v29 }
  0x16   :  { %v125_v32 = vmax.f32 %v109_v30, 0.0  ;;  %v126_v33 = vmax.f32 %v110_v31, 0.0 }
  0x17   :  { %141 = vst.msk [vmem:[%s381_s4 + $0x68] sm:$0xff] %vm127_vm0, %v124_v2 }
  0x18   :  { %142 = vst.msk [vmem:[%s381_s4 + $0x70] sm:$0xff] %vm127_vm0, %v125_v32  ;;  %143 = vst.msk [vmem:[%s381_s4 + $0x78] sm:$0xff] %vm127_vm0, %v126_v33 }

// kernel: resnet_simclr_forward.83
= control target key start
LH: loop header
LB: loop body
LE: loop exit
PB: predicated region body
PF: predicated region fallthrough
CT: control target
= control target key end

     0   :  { %s283_s1 = inlined_call_operand.vmem [shape: bf16[128,128], index: 1, kind: input, shape index: {}]   ;;  %s284_s0 = inlined_call_operand.vmem [shape: bf16[32,128], index: 0, kind: input, shape index: {}]   ;;  %s285_s2 = inlined_call_operand.vmem [shape: f32[32,128], index: 2, kind: output, shape index: {}]  }
   0x1   :  { %v216_v0 = vld [vmem:[%s283_s1] sm:$0xff]   ;;  %v217_v1 = vld [vmem:[%s283_s1 + $0x8] sm:$0xff]   ;;  %v218_v2 = vld [vmem:[%s283_s1 + $0x10] sm:$0xff]  }
   0x2   :  { %196 = vmatprep.subr.bf16.mxu0 %v216_v0  ;;  %v219_v3 = vld [vmem:[%s283_s1 + $0x18] sm:$0xff]   ;;  %v224_v4 = vld [vmem:[%s284_s0] sm:$0xff]   ;;  %v221_v6 = vld [vmem:[%s283_s1 + $0x28] sm:$0xff]  }
   0x3   :  { %197 = vmatpush3.bf16.msra.mxu0 %v216_v0  ;;  %212 = vmatprep.mubr.bf16.mxu0 %v224_v4  ;;  %v220_v5 = vld [vmem:[%s283_s1 + $0x20] sm:$0xff]   ;;  %v222_v7 = vld [vmem:[%s283_s1 + $0x30] sm:$0xff]   ;;  %v223_v8 = vld [vmem:[%s283_s1 + $0x38] sm:$0xff]  }
   0x4   :  { %198 = vmatprep.subr.bf16.mxu0 %v217_v1  ;;  %v225_v9 = vld [vmem:[%s284_s0 + $0x8] sm:$0xff]  }
   0x7   :  { %199 = vmatpush3.bf16.msra.mxu0 %v217_v1 }
   0x8   :  { %200 = vmatprep.subr.bf16.mxu0 %v218_v2 }
   0xb   :  { %201 = vmatpush3.bf16.msra.mxu0 %v218_v2 }
   0xc   :  { %202 = vmatprep.subr.bf16.mxu0 %v219_v3 }
   0xf   :  { %203 = vmatpush3.bf16.msra.mxu0 %v219_v3 }
  0x10   :  { %204 = vmatprep.subr.bf16.mxu0 %v220_v5 }
  0x13   :  { %205 = vmatpush3.bf16.msra.mxu0 %v220_v5 }
  0x14   :  { %206 = vmatprep.subr.bf16.mxu0 %v221_v6 }
  0x17   :  { %207 = vmatpush3.bf16.msra.mxu0 %v221_v6 }
  0x18   :  { %208 = vmatprep.subr.bf16.mxu0 %v222_v7 }
  0x1b   :  { %209 = vmatpush3.bf16.msra.mxu0 %v222_v7 }
  0x1c   :  { %210 = vmatprep.subr.bf16.mxu0 %v223_v8 }
  0x1f   :  { %211 = vmatpush3.bf16.msra.mxu0 %v223_v8 }
  0x22   :  { %213 = vmatmul.mubr.bf16.vlgmr.msra.gmra.mrb[0].mxu0 %v225_v9 }
  0xf5   :  { %v214_v10 = vpop.f32.mrb[0].mxu0 }
  0xf6   :  { %170 = vst [vmem:[%s285_s2 + $0x10] sm:$0xff] %v214_v10  ;;  %v138_v11 = vpop.f32.mrb[1].mxu0 }
  0xf7   :  { %168 = vst [vmem:[%s285_s2] sm:$0xff] %v138_v11  ;;  %v215_v12 = vpop.f32.mrb[2].mxu0 }
  0xf8   :  { %171 = vst [vmem:[%s285_s2 + $0x18] sm:$0xff] %v215_v12  ;;  %v141_v13 = vpop.f32.mrb[3].mxu0 }
  0xf9   :  { %169 = vst [vmem:[%s285_s2 + $0x8] sm:$0xff] %v141_v13 }

// kernel: resnet_simclr_forward.85
= control target key start
LH: loop header
LB: loop body
LE: loop exit
PB: predicated region body
PF: predicated region fallthrough
CT: control target
= control target key end

     0   :  { %s100_s0 = inlined_call_operand.vmem [shape: f32[32,128], index: 0, kind: input, shape index: {}]   ;;  %s101_s1 = inlined_call_operand.vmem [shape: f32[1,128], index: 1, kind: input, shape index: {}]   ;;  %s102_s2 = inlined_call_operand.vmem [shape: f32[1,128], index: 2, kind: input, shape index: {}]   ;;  %s103_s3 = inlined_call_operand.vmem [shape: f32[32,128], index: 3, kind: output, shape index: {}]  }
   0x1   :  { %v14_v0 = vld [vmem:[%s100_s0] sm:$0xff]  ;;  %v15_v4 = vld [vmem:[%s100_s0 + $0x8] sm:$0xff]  ;;  %v16_v5 = vld [vmem:[%s100_s0 + $0x10] sm:$0xff] }
   0x2   :  { %v48_v1 = vld [vmem:[%s101_s1] ss:$0 sm:$0xff]  ;;  %v17_v6 = vld [vmem:[%s100_s0 + $0x18] sm:$0xff] }
   0x3   :  { %v49_v2 = vld [vmem:[%s102_s2] ss:$0 sm:$0xff]  ;;  %v25_v3 = vmul.f32 %v48_v1, %v14_v0  ;;  %v26_v7 = vmul.f32 %v48_v1, %v15_v4  ;;  %v27_v8 = vmul.f32 %v48_v1, %v16_v5  ;;  %v28_v9 = vmul.f32 %v48_v1, %v17_v6 }
   0x5   :  { %v36_v10 = vadd.f32 %v49_v2, %v25_v3  ;;  %v37_v11 = vadd.f32 %v49_v2, %v26_v7  ;;  %v38_v12 = vadd.f32 %v49_v2, %v27_v8  ;;  %v39_v13 = vadd.f32 %v49_v2, %v28_v9 }
   0x7   :  { %40 = vst [vmem:[%s103_s3] sm:$0xff] %v36_v10  ;;  %41 = vst [vmem:[%s103_s3 + $0x8] sm:$0xff] %v37_v11 }
   0x8   :  { %42 = vst [vmem:[%s103_s3 + $0x10] sm:$0xff] %v38_v12  ;;  %43 = vst [vmem:[%s103_s3 + $0x18] sm:$0xff] %v39_v13 }

// kernel: resnet_simclr_forward.81
= control target key start
LH: loop header
LB: loop body
LE: loop exit
PB: predicated region body
PF: predicated region fallthrough
CT: control target
= control target key end

     0   :  { %s104_s0 = inlined_call_operand.vmem [shape: f32[32,128], index: 0, kind: input, shape index: {}]   ;;  %s105_s1 = inlined_call_operand.vmem [shape: f32[1,128], index: 1, kind: input, shape index: {}]   ;;  %s106_s2 = inlined_call_operand.vmem [shape: f32[1,128], index: 2, kind: input, shape index: {}]   ;;  %s107_s3 = inlined_call_operand.vmem [shape: f32[32,128], index: 3, kind: output, shape index: {}]  }
   0x1   :  { %v14_v0 = vld [vmem:[%s104_s0] sm:$0xff]  ;;  %v15_v4 = vld [vmem:[%s104_s0 + $0x8] sm:$0xff]  ;;  %v16_v5 = vld [vmem:[%s104_s0 + $0x10] sm:$0xff] }
   0x2   :  { %v52_v1 = vld [vmem:[%s105_s1] ss:$0 sm:$0xff]  ;;  %v17_v6 = vld [vmem:[%s104_s0 + $0x18] sm:$0xff] }
   0x3   :  { %v53_v2 = vld [vmem:[%s106_s2] ss:$0 sm:$0xff]  ;;  %v25_v3 = vmul.f32 %v52_v1, %v14_v0  ;;  %v26_v7 = vmul.f32 %v52_v1, %v15_v4  ;;  %v27_v8 = vmul.f32 %v52_v1, %v16_v5  ;;  %v28_v9 = vmul.f32 %v52_v1, %v17_v6 }
   0x5   :  { %v36_v10 = vadd.f32 %v53_v2, %v25_v3  ;;  %v37_v11 = vadd.f32 %v53_v2, %v26_v7  ;;  %v38_v12 = vadd.f32 %v53_v2, %v27_v8  ;;  %v39_v13 = vadd.f32 %v53_v2, %v28_v9 }
   0x7   :  { %v40_v14 = vmax.f32 %v36_v10, 0.0  ;;  %v41_v15 = vmax.f32 %v37_v11, 0.0  ;;  %v42_v16 = vmax.f32 %v38_v12, 0.0  ;;  %v43_v17 = vmax.f32 %v39_v13, 0.0 }
   0x9   :  { %44 = vst [vmem:[%s107_s3] sm:$0xff] %v40_v14  ;;  %45 = vst [vmem:[%s107_s3 + $0x8] sm:$0xff] %v41_v15 }
   0xa   :  { %46 = vst [vmem:[%s107_s3 + $0x10] sm:$0xff] %v42_v16  ;;  %47 = vst [vmem:[%s107_s3 + $0x18] sm:$0xff] %v43_v17 }

// kernel: resnet_simclr_forward.79
= control target key start
LH: loop header
LB: loop body
LE: loop exit
PB: predicated region body
PF: predicated region fallthrough
CT: control target
= control target key end

     0   :  { %s686_s9 = smov 0   ;;  %s688_s10 = smov 0   ;;  %s782_s0 = inlined_call_operand.vmem [shape: bf16[32,640], index: 0, kind: input, shape index: {}]   ;;  %s783_s1 = inlined_call_operand.vmem [shape: bf16[640,128], index: 1, kind: input, shape index: {}]   ;;  %s784_s2 = inlined_call_operand.vmem [shape: f32[32,128], index: 2, kind: output, shape index: {}]  }
   0x1   :  { %s690_s11 = smov 0   ;;  %s692_s12 = smov 0  }
   0x2   :  { %s694_s13 = smov 0  }
   0x3 LB: > { %s24_s14 = sadd.s32 1, %s664_s12  ;;  %p47_p1 = scmp.ne.s32.totalorder %s656_s10, %s652_s9  ;;  %s668_s13 = sphi %s694_s13, %s12_s13   ;;  %s664_s12 = sphi %s692_s12, %s788_s12   ;;  %s660_s11 = sphi %s690_s11, %s787_s11   ;;  %s656_s10 = sphi %s688_s10, %s786_s10   ;;  %s652_s9 = sphi %s686_s9, %s785_s9  }
   0x4   : > { %p25_p0 = scmp.ge.s32.totalorder %s24_s14, 5  ;;  %p48_p2 = scmp.eq.s32.totalorder %s668_s13, 0 }
   0x5   : > { %s40_s16 = sadd.s32 1, %s656_s10  ;;  %p526_p5 = scmp.ge.s32.totalorder %s668_s13, 5 }
   0x6   : > { %s790_s14 = smov (%p25_p0, %s24_s14), 0  ;;  %p49_p3 = por %p48_p2, %p47_p1 }
   0x7   : > { %s36_s15 = ssub.s32 %s664_s12, %s790_s14  ;;  %129 = sbr.rel (%p526_p5) target bundleno = 21 (0x15), region = 16 }
   0x8   : > { %p38_p4 = scmp.eq.s32.totalorder %s36_s15, 0 }
   0xa   : > { %s721_s17 = scalar_select %p38_p4, %s656_s10, %s40_s16  }
   0xe   : > { %132 = sbr.rel (!%p49_p3) target bundleno = 21 (0x15), region = 20  ;;  %s134_s18 = sand.u32 (%p49_p3), 1, %s656_s10  }
   0xf   : > { %s528_s19 = sshll.u32 (%p49_p3), %s664_s12, 2  ;;  %s527_s20 = sshll.u32 (%p49_p3), %s134_s18, 4 }
  0x10   : > { %s141_s23 = scalar_lea.vmem (%p49_p3), %s782_s0, %s528_s19  ;;  %s136_s24 = scalar_lea.vmem (%p49_p3), [#allocation3], %s527_s20 }
  0x11   : > { %v157_v0 = vld [vmem:[%s141_s23] sm:$0xf] (%p49_p3)  ;;  %v159_v1 = vld [vmem:[%s141_s23 + $0x14] sm:$0xf] (%p49_p3)  ;;  %v161_v2 = vld [vmem:[%s141_s23 + $0x28] sm:$0xf] (%p49_p3) }
  0x12   : > { %158 = vst [vmem:[%s136_s24] sm:$0xf] (%p49_p3), %v157_v0  ;;  %160 = vst [vmem:[%s136_s24 + $0x4] sm:$0xf] (%p49_p3), %v159_v1  ;;  %v163_v3 = vld [vmem:[%s141_s23 + $0x3c] sm:$0xf] (%p49_p3) }
  0x13   : > { %162 = vst [vmem:[%s136_s24 + $0x8] sm:$0xf] (%p49_p3), %v161_v2  ;;  %164 = vst [vmem:[%s136_s24 + $0xc] sm:$0xf] (%p49_p3), %v163_v3 }
  0x15 PF: > { %p529_p6 = scmp.ge.s32.totalorder %s668_s13, 1  ;;  %p206_p7 = scmp.lt.s32.totalorder %s668_s13, 6 }
  0x17   : > { %p207_p8 = pnand %p529_p6, %p206_p7 }
  0x18   : > { %s213_s25 = sand.u32 (!%p207_p8), 1, %s652_s9   ;;  %s531_s26 = sshll.u32 (!%p207_p8), %s660_s11, 4 }
  0x19   : > { %210 = sbr.rel (%p207_p8) target bundleno = 298 (0x12a), region = 65  ;;  %s733_s27 = sshll.u32 (!%p207_p8), %s213_s25, 4 }
  0x1a   : > { %p247_p9 = scmp.lt.s32.totalorder (!%p207_p8), %s531_s26, 79  ;;  %s215_s4 = scalar_lea.vmem (!%p207_p8), [#allocation3], %s733_s27 }
  0x1b   : > { %p533_p10 = scmp.ne.s32.totalorder (!%p207_p8), %s660_s11, 0 }
  0x20   : > { %s792_s26 = smov (!%p247_p9, %s531_s26), 79  ;;  %268 = sbr.rel (%p533_p10) target bundleno = 39 (0x27), region = 73 }
  0x21   : > { %s532_s28 = sshll.u32 %s792_s26, 2  ;;  %v670_v4 = vmov (!%p533_p10), 0.0  }
  0x22   : > { %s738_s3 = scalar_lea.vmem %s783_s1, %s532_s28  ;;  %269 = vst [vmem:[#allocation2] sm:$0xff] (!%p533_p10), %v670_v4  ;;  %270 = vst [vmem:[#allocation2 + $0x8] sm:$0xff] (!%p533_p10), %v670_v4 }
  0x23   : > { %271 = vst [vmem:[#allocation2 + $0x10] sm:$0xff] (!%p533_p10), %v670_v4  ;;  %272 = vst [vmem:[#allocation2 + $0x18] sm:$0xff] (!%p533_p10), %v670_v4 }
  0x27 PF: > { %v620_v5 = vld [vmem:[%s738_s3] sm:$0xff]   ;;  %v621_v6 = vld [vmem:[%s738_s3 + $0x8] sm:$0xff]   ;;  %v622_v7 = vld [vmem:[%s738_s3 + $0x10] sm:$0xff]   ;;  %p544_p11 = scmp.ne.s32.totalorder %s660_s11, 4 }
  0x28   : > { %559 = vmatprep.subr.bf16.mxu0 %v620_v5  ;;  %v623_v8 = vld [vmem:[%s738_s3 + $0x18] sm:$0xff]   ;;  %v628_v9 = vld [vmem:[%s215_s4] sm:$0xff]   ;;  %v625_v11 = vld [vmem:[%s738_s3 + $0x28] sm:$0xff]  }
  0x29   : > { %560 = vmatpush3.bf16.msra.mxu0 %v620_v5  ;;  %575 = vmatprep.mubr.bf16.mxu0 %v628_v9  ;;  %v624_v10 = vld [vmem:[%s738_s3 + $0x20] sm:$0xff]   ;;  %v626_v12 = vld [vmem:[%s738_s3 + $0x30] sm:$0xff]   ;;  %v627_v13 = vld [vmem:[%s738_s3 + $0x38] sm:$0xff]  }
  0x2a   : > { %561 = vmatprep.subr.bf16.mxu0 %v621_v6  ;;  %v629_v14 = vld [vmem:[%s215_s4 + $0x8] sm:$0xff]   ;;  %v275_v15 = vld [vmem:[#allocation2 + $0x10] sm:$0xff]  ;;  %v273_v16 = vld [vmem:[#allocation2] sm:$0xff] }
  0x2b   : > { %v276_v18 = vld [vmem:[#allocation2 + $0x18] sm:$0xff]  ;;  %v274_v21 = vld [vmem:[#allocation2 + $0x8] sm:$0xff] }
  0x2d   : > { %562 = vmatpush3.bf16.msra.mxu0 %v621_v6 }
  0x2e   : > { %563 = vmatprep.subr.bf16.mxu0 %v622_v7 }
  0x31   : > { %564 = vmatpush3.bf16.msra.mxu0 %v622_v7 }
  0x32   : > { %565 = vmatprep.subr.bf16.mxu0 %v623_v8 }
  0x35   : > { %566 = vmatpush3.bf16.msra.mxu0 %v623_v8 }
  0x36   : > { %567 = vmatprep.subr.bf16.mxu0 %v624_v10 }
  0x39   : > { %568 = vmatpush3.bf16.msra.mxu0 %v624_v10 }
  0x3a   : > { %569 = vmatprep.subr.bf16.mxu0 %v625_v11 }
  0x3d   : > { %570 = vmatpush3.bf16.msra.mxu0 %v625_v11 }
  0x3e   : > { %571 = vmatprep.subr.bf16.mxu0 %v626_v12 }
  0x41   : > { %572 = vmatpush3.bf16.msra.mxu0 %v626_v12 }
  0x42   : > { %573 = vmatprep.subr.bf16.mxu0 %v627_v13 }
  0x45   : > { %574 = vmatpush3.bf16.msra.mxu0 %v627_v13 }
  0x48   : > { %576 = vmatmul.mubr.bf16.vlgmr.msra.gmra.mrb[0].mxu0 %v629_v14 }
 0x11b   : > { %v577_v17 = vpop.f32.mrb[0].mxu0  ;;  %417 = sbr.rel (%p544_p11) target bundleno = 298 (0x12a), region = 77 }
 0x11c   : > { %v408_v19 = vadd.f32 %v577_v17, %v275_v15  ;;  %v391_v20 = vpop.f32.mrb[1].mxu0 }
 0x11d   : > { %v406_v22 = vadd.f32 %v391_v20, %v273_v16  ;;  %v578_v23 = vpop.f32.mrb[2].mxu0 }
 0x11e   : > { %412 = vst [vmem:[#allocation2 + $0x10] sm:$0xff] %v408_v19  ;;  %v409_v24 = vadd.f32 %v578_v23, %v276_v18  ;;  %v394_v25 = vpop.f32.mrb[3].mxu0 }
 0x11f   : > { %410 = vst [vmem:[#allocation2] sm:$0xff] %v406_v22  ;;  %v407_v26 = vadd.f32 %v394_v25, %v274_v21 }
 0x120   : > { %413 = vst [vmem:[#allocation2 + $0x18] sm:$0xff] %v409_v24 }
 0x121   : > { %411 = vst [vmem:[#allocation2 + $0x8] sm:$0xff] %v407_v26 }
 0x125   : > { %v420_v29 = vld [vmem:[#allocation2 + $0x10] sm:$0xff] }
 0x126   : > { %v418_v27 = vld [vmem:[#allocation2] sm:$0xff]  ;;  %424 = vst [vmem:[%s784_s2 + $0x10] sm:$0xff] %v420_v29 }
 0x127   : > { %422 = vst [vmem:[%s784_s2] sm:$0xff] %v418_v27  ;;  %v421_v30 = vld [vmem:[#allocation2 + $0x18] sm:$0xff] }
 0x128   : > { %v419_v28 = vld [vmem:[#allocation2 + $0x8] sm:$0xff]  ;;  %425 = vst [vmem:[%s784_s2 + $0x18] sm:$0xff] %v421_v30 }
 0x129   : > { %423 = vst [vmem:[%s784_s2 + $0x8] sm:$0xff] %v419_v28 }
 0x12a PF: > { %s12_s13 = sadd.s32 1, %s668_s13   ;;  %s785_s9 = smov %s656_s10 }
 0x12b   : > { %p9_p12 = scmp.ge.s32.totalorder %s12_s13, 7   ;;  %s786_s10 = smov %s721_s17 }
 0x12c   : > { %s787_s11 = smov %s664_s12  ;;  %s788_s12 = smov %s790_s14 }
 0x12d   :  { %11 = sbr.rel (!%p9_p12) target bundleno = 3 (0x3), region = 115 }

// kernel: resnet_simclr_forward.87
= control target key start
LH: loop header
LB: loop body
LE: loop exit
PB: predicated region body
PF: predicated region fallthrough
CT: control target
= control target key end

     0   :  { %s132_s0 = inlined_call_operand.vmem [shape: f32[32,128], index: 0, kind: input, shape index: {}]   ;;  %s133_s1 = inlined_call_operand.vmem [shape: f32[1,128], index: 1, kind: input, shape index: {}]   ;;  %s134_s2 = inlined_call_operand.vmem [shape: f32[1,128], index: 2, kind: input, shape index: {}]   ;;  %s135_s3 = inlined_call_operand.vmem [shape: f32[32,128], index: 3, kind: input, shape index: {}]   ;;  %s136_s4 = inlined_call_operand.vmem [shape: f32[32,128], index: 4, kind: output, shape index: {}]  }
   0x1   :  { %v17_v0 = vld [vmem:[%s132_s0] sm:$0xff]  ;;  %v18_v4 = vld [vmem:[%s132_s0 + $0x8] sm:$0xff]  ;;  %v19_v7 = vld [vmem:[%s132_s0 + $0x10] sm:$0xff] }
   0x2   :  { %v63_v1 = vld [vmem:[%s133_s1] ss:$0 sm:$0xff]  ;;  %v20_v8 = vld [vmem:[%s132_s0 + $0x18] sm:$0xff]  ;;  %v44_v10 = vld [vmem:[%s135_s3 + $0x8] sm:$0xff] }
   0x3   :  { %v64_v2 = vld [vmem:[%s134_s2] ss:$0 sm:$0xff]  ;;  %v28_v3 = vmul.f32 %v63_v1, %v17_v0  ;;  %v29_v6 = vmul.f32 %v63_v1, %v18_v4  ;;  %v30_v11 = vmul.f32 %v63_v1, %v19_v7  ;;  %v31_v12 = vmul.f32 %v63_v1, %v20_v8  ;;  %v45_v14 = vld [vmem:[%s135_s3 + $0x10] sm:$0xff]  ;;  %v46_v15 = vld [vmem:[%s135_s3 + $0x18] sm:$0xff] }
   0x4   :  { %v43_v5 = vld [vmem:[%s135_s3] sm:$0xff] }
   0x5   :  { %v39_v9 = vadd.f32 %v64_v2, %v28_v3  ;;  %v40_v13 = vadd.f32 %v64_v2, %v29_v6  ;;  %v41_v17 = vadd.f32 %v64_v2, %v30_v11  ;;  %v42_v18 = vadd.f32 %v64_v2, %v31_v12 }
   0x7   :  { %v47_v16 = vadd.f32 %v43_v5, %v39_v9  ;;  %v48_v19 = vadd.f32 %v44_v10, %v40_v13  ;;  %v49_v21 = vadd.f32 %v45_v14, %v41_v17  ;;  %v50_v22 = vadd.f32 %v46_v15, %v42_v18 }
   0x9   :  { %v51_v20 = vmax.f32 %v47_v16, 0.0  ;;  %v52_v23 = vmax.f32 %v48_v19, 0.0  ;;  %v53_v24 = vmax.f32 %v49_v21, 0.0  ;;  %v54_v25 = vmax.f32 %v50_v22, 0.0 }
   0xb   :  { %55 = vst [vmem:[%s136_s4] sm:$0xff] %v51_v20  ;;  %56 = vst [vmem:[%s136_s4 + $0x8] sm:$0xff] %v52_v23 }
   0xc   :  { %57 = vst [vmem:[%s136_s4 + $0x10] sm:$0xff] %v53_v24  ;;  %58 = vst [vmem:[%s136_s4 + $0x18] sm:$0xff] %v54_v25 }

// kernel: resnet_simclr_forward.82
= control target key start
LH: loop header
LB: loop body
LE: loop exit
PB: predicated region body
PF: predicated region fallthrough
CT: control target
= control target key end

     0   :  { %s961_s9 = smov 0   ;;  %s963_s10 = smov 0   ;;  %s1074_s0 = inlined_call_operand.vmem [shape: bf16[32,1152], index: 0, kind: input, shape index: {}]   ;;  %s1075_s1 = inlined_call_operand.vmem [shape: bf16[1152,128], index: 1, kind: input, shape index: {}]   ;;  %s1076_s2 = inlined_call_operand.vmem [shape: f32[32,128], index: 2, kind: output, shape index: {}]  }
   0x1   :  { %s965_s11 = smov 0   ;;  %s967_s12 = smov 0  }
   0x2   :  { %s969_s13 = smov 0  }
   0x3 LB: > { %s24_s14 = sadd.s32 1, %s939_s12  ;;  %p47_p1 = scmp.ne.s32.totalorder %s931_s10, %s927_s9  ;;  %s943_s13 = sphi %s969_s13, %s12_s13   ;;  %s939_s12 = sphi %s967_s12, %s1080_s12   ;;  %s935_s11 = sphi %s965_s11, %s1079_s11   ;;  %s931_s10 = sphi %s963_s10, %s1078_s10   ;;  %s927_s9 = sphi %s961_s9, %s1077_s9  }
   0x4   : > { %p25_p0 = scmp.ge.s32.totalorder %s24_s14, 3  ;;  %p48_p2 = scmp.eq.s32.totalorder %s943_s13, 0 }
   0x5   : > { %s40_s16 = sadd.s32 1, %s931_s10  ;;  %p723_p5 = scmp.ge.s32.totalorder %s943_s13, 3 }
   0x6   : > { %s1082_s14 = smov (%p25_p0, %s24_s14), 0  ;;  %p49_p3 = por %p48_p2, %p47_p1 }
   0x7   : > { %s36_s15 = ssub.s32 %s939_s12, %s1082_s14  ;;  %129 = sbr.rel (%p723_p5) target bundleno = 23 (0x17), region = 16 }
   0x8   : > { %p38_p4 = scmp.eq.s32.totalorder %s36_s15, 0 }
   0xa   : > { %s996_s17 = scalar_select %p38_p4, %s931_s10, %s40_s16  }
   0xe   : > { %132 = sbr.rel (!%p49_p3) target bundleno = 23 (0x17), region = 20  ;;  %s134_s18 = sand.u32 (%p49_p3), 1, %s931_s10  }
   0xf   : > { %s771_s19 = smul.u32 (%p49_p3), 12, %s939_s12 }
  0x10   : > { %s830_s20 = smul.u32 (%p49_p3), 48, %s134_s18 }
  0x11   : > { %s142_s23 = scalar_lea.vmem (%p49_p3), %s1074_s0, %s771_s19 }
  0x12   : > { %v157_v0 = vld [vmem:[%s142_s23] sm:$0xff] (%p49_p3)  ;;  %v161_v2 = vld [vmem:[%s142_s23 + $0x48] sm:$0xff] (%p49_p3)  ;;  %s136_s24 = scalar_lea.vmem (%p49_p3), [#allocation3], %s830_s20  ;;  %v729_v6 = vld [vmem:[%s142_s23 + $0x50] sm:$0xf] (%p49_p3) }
  0x13   : > { %v159_v1 = vld [vmem:[%s142_s23 + $0x24] sm:$0xff] (%p49_p3)  ;;  %158 = vst [vmem:[%s136_s24] sm:$0xff] (%p49_p3), %v157_v0  ;;  %162 = vst [vmem:[%s136_s24 + $0x18] sm:$0xff] (%p49_p3), %v161_v2  ;;  %v163_v3 = vld [vmem:[%s142_s23 + $0x6c] sm:$0xff] (%p49_p3) }
  0x14   : > { %160 = vst [vmem:[%s136_s24 + $0xc] sm:$0xff] (%p49_p3), %v159_v1  ;;  %v725_v4 = vld [vmem:[%s142_s23 + $0x8] sm:$0xf] (%p49_p3)  ;;  %v727_v5 = vld [vmem:[%s142_s23 + $0x2c] sm:$0xf] (%p49_p3)  ;;  %164 = vst [vmem:[%s136_s24 + $0x24] sm:$0xff] (%p49_p3), %v163_v3 }
  0x15   : > { %726 = vst [vmem:[%s136_s24 + $0x8] sm:$0xf] %v725_v4  ;;  %728 = vst [vmem:[%s136_s24 + $0x14] sm:$0xf] %v727_v5  ;;  %v731_v7 = vld [vmem:[%s142_s23 + $0x74] sm:$0xf] }
  0x16   : > { %730 = vst [vmem:[%s136_s24 + $0x20] sm:$0xf] %v729_v6  ;;  %732 = vst [vmem:[%s136_s24 + $0x2c] sm:$0xf] %v731_v7 }
  0x17 PF: > { %p733_p6 = scmp.ge.s32.totalorder %s943_s13, 1  ;;  %p196_p7 = scmp.lt.s32.totalorder %s943_s13, 4 }
  0x19   : > { %p197_p8 = pnand %p733_p6, %p196_p7 }
  0x1a   : > { %s203_s25 = sand.u32 (!%p197_p8), 1, %s927_s9   ;;  %s237_s26 = smul.u32 (!%p197_p8), 48, %s935_s11 }
  0x1b   : > { %200 = sbr.rel (%p197_p8) target bundleno = 312 (0x138), region = 50  ;;  %p735_p10 = scmp.ne.s32.totalorder (!%p197_p8), %s935_s11, 0 }
  0x1c   : > { %s831_s27 = smul.u32 (!%p197_p8), 48, %s203_s25  ;;  %p238_p9 = scmp.lt.s32.totalorder (!%p197_p8), %s237_s26, 143 }
  0x1e   : > { %s1013_s4 = scalar_lea.vmem (!%p197_p8), [#allocation3], %s831_s27 }
  0x22   : > { %s1084_s26 = smov (!%p238_p9, %s237_s26), 143  ;;  %259 = sbr.rel (%p735_p10) target bundleno = 41 (0x29), region = 58 }
  0x23   : > { %s734_s28 = sshll.u32 %s1084_s26, 2  ;;  %v945_v8 = vmov (!%p735_p10), 0.0  }
  0x24   : > { %s1011_s3 = scalar_lea.vmem %s1075_s1, %s734_s28  ;;  %260 = vst [vmem:[#allocation2] sm:$0xff] (!%p735_p10), %v945_v8  ;;  %261 = vst [vmem:[#allocation2 + $0x8] sm:$0xff] (!%p735_p10), %v945_v8 }
  0x25   : > { %262 = vst [vmem:[#allocation2 + $0x10] sm:$0xff] (!%p735_p10), %v945_v8  ;;  %263 = vst [vmem:[#allocation2 + $0x18] sm:$0xff] (!%p735_p10), %v945_v8 }
  0x29 PF: > { %v873_v9 = vld [vmem:[%s1011_s3 + $0x40] sm:$0xff]   ;;  %v876_v12 = vld [vmem:[%s1011_s3 + $0x48] sm:$0xff]   ;;  %v879_v15 = vld [vmem:[%s1011_s3 + $0x50] sm:$0xff]   ;;  %p766_p11 = scmp.ne.s32.totalorder %s935_s11, 2 }
  0x2a   : > { %v874_v10 = vld [vmem:[%s1011_s3] sm:$0xff]   ;;  %772 = vmatprep.subr.bf16.mxu0 %v873_v9  ;;  %v877_v13 = vld [vmem:[%s1011_s3 + $0x8] sm:$0xff]   ;;  %v880_v16 = vld [vmem:[%s1011_s3 + $0x10] sm:$0xff]  }
  0x2b   : > { %v875_v11 = vld [vmem:[%s1011_s3 + $0x80] sm:$0xff]   ;;  %773 = vmatpush3.bf16.msra.mxu0 %v874_v10  ;;  %v878_v14 = vld [vmem:[%s1011_s3 + $0x88] sm:$0xff]   ;;  %v881_v17 = vld [vmem:[%s1011_s3 + $0x90] sm:$0xff]  }
  0x2c   : > { %810 = vmatprep.subr.bf16.mxu1 %v875_v11  ;;  %774 = vmatprep.subr.bf16.mxu0 %v876_v12  ;;  %v882_v18 = vld [vmem:[%s1011_s3 + $0x58] sm:$0xff]   ;;  %v885_v21 = vld [vmem:[%s1011_s3 + $0x60] sm:$0xff]   ;;  %v888_v24 = vld [vmem:[%s1011_s3 + $0x68] sm:$0xff]  }
  0x2d   : > { %811 = vmatpush3.bf16.msra.mxu1 %v875_v11  ;;  %v883_v19 = vld [vmem:[%s1011_s3 + $0x18] sm:$0xff]   ;;  %v887_v22 = vld [vmem:[%s1011_s3 + $0xa0] sm:$0xff]   ;;  %v890_v25 = vld [vmem:[%s1011_s3 + $0xa8] sm:$0xff]  }
  0x2e   : > { %812 = vmatprep.subr.bf16.mxu1 %v878_v14  ;;  %v884_v20 = vld [vmem:[%s1011_s3 + $0x98] sm:$0xff]   ;;  %v886_v23 = vld [vmem:[%s1011_s3 + $0x20] sm:$0xff]   ;;  %v889_v26 = vld [vmem:[%s1011_s3 + $0x28] sm:$0xff]  }
  0x2f   : > { %775 = vmatpush3.bf16.msra.mxu0 %v877_v13  ;;  %v891_v27 = vld [vmem:[%s1011_s3 + $0x70] sm:$0xff]   ;;  %v894_v30 = vld [vmem:[%s1011_s3 + $0x78] sm:$0xff]   ;;  %v264_v45 = vld [vmem:[#allocation2] sm:$0xff] }
  0x30   : > { %776 = vmatprep.subr.bf16.mxu0 %v879_v15  ;;  %v892_v28 = vld [vmem:[%s1011_s3 + $0x30] sm:$0xff]   ;;  %v896_v31 = vld [vmem:[%s1011_s3 + $0xb8] sm:$0xff]   ;;  %v265_v50 = vld [vmem:[#allocation2 + $0x8] sm:$0xff] }
  0x31   : > { %813 = vmatpush3.bf16.msra.mxu1 %v878_v14  ;;  %v893_v29 = vld [vmem:[%s1011_s3 + $0xb0] sm:$0xff]   ;;  %v895_v34 = vld [vmem:[%s1011_s3 + $0x38] sm:$0xff]  }
  0x32   : > { %814 = vmatprep.subr.bf16.mxu1 %v881_v17  ;;  %v899_v32 = vld [vmem:[%s1013_s4 + $0x4] ss:$12 sps:$4 sm:$0xff]   ;;  %v900_v33 = vld [vmem:[%s1013_s4 + $0x8] ss:$12 sps:$4 sm:$0xff]   ;;  %v897_v35 = vld [vmem:[%s1013_s4] ss:$12 sps:$4 sm:$0xff]  }
  0x33   : > { %777 = vmatpush3.bf16.msra.mxu0 %v880_v16  ;;  %532 = vmatprep.mubr.bf16.mxu0 %v899_v32  ;;  %v902_v36 = vld [vmem:[%s1013_s4 + $0x1c] ss:$12 sps:$4 sm:$0xff]   ;;  %v901_v37 = vld [vmem:[%s1013_s4 + $0x20] ss:$12 sps:$4 sm:$0xff]   ;;  %v904_v38 = vld [vmem:[%s1013_s4 + $0x18] ss:$12 sps:$4 sm:$0xff]  }
  0x34   : > { %778 = vmatprep.subr.bf16.mxu0 %v882_v18  ;;  %826 = vmatprep.mubr.bf16.mxu1 %v900_v33  ;;  %v266_v59 = vld [vmem:[#allocation2 + $0x10] sm:$0xff]  ;;  %v267_v63 = vld [vmem:[#allocation2 + $0x18] sm:$0xff] }
  0x35   : > { %815 = vmatpush3.bf16.msra.mxu1 %v881_v17 }
  0x36   : > { %816 = vmatprep.subr.bf16.mxu1 %v884_v20 }
  0x37   : > { %779 = vmatpush3.bf16.msra.mxu0 %v883_v19 }
  0x38   : > { %780 = vmatprep.subr.bf16.mxu0 %v885_v21 }
  0x39   : > { %817 = vmatpush3.bf16.msra.mxu1 %v884_v20 }
  0x3a   : > { %818 = vmatprep.subr.bf16.mxu1 %v887_v22 }
  0x3b   : > { %781 = vmatpush3.bf16.msra.mxu0 %v886_v23 }
  0x3c   : > { %782 = vmatprep.subr.bf16.mxu0 %v888_v24 }
  0x3d   : > { %819 = vmatpush3.bf16.msra.mxu1 %v887_v22 }
  0x3e   : > { %820 = vmatprep.subr.bf16.mxu1 %v890_v25 }
  0x3f   : > { %783 = vmatpush3.bf16.msra.mxu0 %v889_v26 }
  0x40   : > { %784 = vmatprep.subr.bf16.mxu0 %v891_v27 }
  0x41   : > { %821 = vmatpush3.bf16.msra.mxu1 %v890_v25 }
  0x42   : > { %822 = vmatprep.subr.bf16.mxu1 %v893_v29 }
  0x43   : > { %785 = vmatpush3.bf16.msra.mxu0 %v892_v28 }
  0x44   : > { %786 = vmatprep.subr.bf16.mxu0 %v894_v30 }
  0x45   : > { %823 = vmatpush3.bf16.msra.mxu1 %v893_v29 }
  0x46   : > { %824 = vmatprep.subr.bf16.mxu1 %v896_v31 }
  0x47   : > { %787 = vmatpush3.bf16.msra.mxu0 %v895_v34 }
  0x49   : > { %825 = vmatpush3.bf16.msra.mxu1 %v896_v31 }
  0x4a   : > { %533 = vmatmul.mubr.bf16.vlgmr.msra.gmra.mrb[0].mxu0 %v897_v35 }
  0x4b   : > { %540 = vmatprep.mubr.bf16.mxu0 %v902_v36 }
  0x4c   : > { %827 = vmatmul.mubr.bf16.vlgmr.msra.gmra.mrb[0].mxu1 %v901_v37 }
  0x52   : > { %541 = vmatmul.mubr.bf16.gmra.mrb[4].mxu0 %v904_v38 }
 0x11d   : > { %v788_v39 = vpop.f32.mrb[0].mxu0 }
 0x11e   : > { %v789_v40 = vpop.f32.mrb[1].mxu0 }
 0x11f   : > { %v790_v41 = vadd.f32 %v789_v40, %v788_v39  ;;  %v791_v42 = vpop.f32.mrb[2].mxu0  ;;  %v828_v43 = vpop.f32.mrb[0].mxu1 }
 0x120   : > { %v792_v44 = vpop.f32.mrb[3].mxu0  ;;  %v583_v46 = vpop.f32.mrb[1].mxu1 }
 0x121   : > { %v793_v47 = vadd.f32 %v792_v44, %v791_v42  ;;  %v584_v48 = vadd.f32 %v790_v41, %v583_v46  ;;  %v829_v49 = vpop.f32.mrb[2].mxu1 }
 0x122   : > { %v586_v51 = vpop.f32.mrb[3].mxu1 }
 0x123   : > { %v598_v52 = vadd.f32 %v584_v48, %v264_v45  ;;  %v587_v53 = vadd.f32 %v793_v47, %v586_v51 }
 0x125   : > { %602 = vst [vmem:[#allocation2] sm:$0xff] %v598_v52  ;;  %v599_v54 = vadd.f32 %v587_v53, %v265_v50  ;;  %v794_v55 = vpop.f32.mrb[4].mxu0 }
 0x126   : > { %v795_v56 = vpop.f32.mrb[5].mxu0 }
 0x127   : > { %603 = vst [vmem:[#allocation2 + $0x8] sm:$0xff] %v599_v54  ;;  %v796_v57 = vadd.f32 %v795_v56, %v794_v55  ;;  %v797_v58 = vpop.f32.mrb[6].mxu0 }
 0x128   : > { %v798_v60 = vpop.f32.mrb[7].mxu0 }
 0x129   : > { %v592_v61 = vadd.f32 %v828_v43, %v796_v57  ;;  %v799_v62 = vadd.f32 %v798_v60, %v797_v58  ;;  %609 = sbr.rel (%p766_p11) target bundleno = 312 (0x138), region = 62 }
 0x12b   : > { %v600_v0 = vadd.f32 %v592_v61, %v266_v59  ;;  %v595_v1 = vadd.f32 %v829_v49, %v799_v62 }
 0x12c   : > { %v610_v3 = vld [vmem:[#allocation2] sm:$0xff] (!%p766_p11) }
 0x12d   : > { %604 = vst [vmem:[#allocation2 + $0x10] sm:$0xff] %v600_v0  ;;  %v601_v2 = vadd.f32 %v595_v1, %v267_v63  ;;  %614 = vst [vmem:[%s1076_s2] sm:$0xff] (!%p766_p11), %v610_v3 }
 0x12e   : > { %v611_v4 = vld [vmem:[#allocation2 + $0x8] sm:$0xff] (!%p766_p11) }
 0x12f   : > { %605 = vst [vmem:[#allocation2 + $0x18] sm:$0xff] %v601_v2  ;;  %615 = vst [vmem:[%s1076_s2 + $0x8] sm:$0xff] (!%p766_p11), %v611_v4 }
 0x134   : > { %v612_v5 = vld [vmem:[#allocation2 + $0x10] sm:$0xff] }
 0x135   : > { %616 = vst [vmem:[%s1076_s2 + $0x10] sm:$0xff] %v612_v5 }
 0x136   : > { %v613_v6 = vld [vmem:[#allocation2 + $0x18] sm:$0xff] }
 0x137   : > { %617 = vst [vmem:[%s1076_s2 + $0x18] sm:$0xff] %v613_v6 }
 0x138 PF: > { %s12_s13 = sadd.s32 1, %s943_s13   ;;  %s1077_s9 = smov %s931_s10 }
 0x139   : > { %p9_p12 = scmp.ge.s32.totalorder %s12_s13, 5   ;;  %s1078_s10 = smov %s996_s17 }
 0x13a   : > { %s1079_s11 = smov %s939_s12  ;;  %s1080_s12 = smov %s1082_s14 }
 0x13b   :  { %11 = sbr.rel (!%p9_p12) target bundleno = 3 (0x3), region = 106 }

// kernel: resnet_simclr_forward.98
= control target key start
LH: loop header
LB: loop body
LE: loop exit
PB: predicated region body
PF: predicated region fallthrough
CT: control target
= control target key end

     0   :  { %v214_v1 = vmov 0   ;;  %s287_s1 = inlined_call_operand.vmem [shape: bf16[128,256], index: 1, kind: input, shape index: {}]   ;;  %s288_s0 = inlined_call_operand.vmem [shape: bf16[8,128], index: 0, kind: input, shape index: {}]   ;;  %s289_s2 = inlined_call_operand.vmem [shape: f32[8,256], index: 2, kind: output, shape index: {}]  }
   0x1   :  { %v190_v0 = vld [vmem:[%s287_s1 + $0x4] ss:$8 sps:$4 sm:$0xff]   ;;  %149 = vmatprep.mubr.bf16.mxu0 %v214_v1  ;;  %v192_v2 = vld [vmem:[%s287_s1] ss:$8 sps:$4 sm:$0xff]   ;;  %v193_v3 = vld [vmem:[%s287_s1 + $0x14] ss:$8 sps:$4 sm:$0xff]  }
   0x2   :  { %117 = vmatprep.subr.bf16.mxu0 %v190_v0  ;;  %v195_v4 = vld [vmem:[%s287_s1 + $0x10] ss:$8 sps:$4 sm:$0xff]   ;;  %v196_v5 = vld [vmem:[%s287_s1 + $0x24] ss:$8 sps:$4 sm:$0xff]   ;;  %v198_v6 = vld [vmem:[%s287_s1 + $0x20] ss:$8 sps:$4 sm:$0xff]  }
   0x3   :  { %118 = vmatpush1.bf16.msra.mxu0 %v192_v2  ;;  %v199_v7 = vld [vmem:[%s287_s1 + $0x34] ss:$8 sps:$4 sm:$0xff]   ;;  %v201_v8 = vld [vmem:[%s287_s1 + $0x30] ss:$8 sps:$4 sm:$0xff]   ;;  %v202_v9 = vld [vmem:[%s287_s1 + $0x44] ss:$8 sps:$4 sm:$0xff]  }
   0x4   :  { %119 = vmatprep.subr.bf16.mxu0 %v193_v3  ;;  %v204_v10 = vld [vmem:[%s287_s1 + $0x40] ss:$8 sps:$4 sm:$0xff]   ;;  %v205_v11 = vld [vmem:[%s287_s1 + $0x54] ss:$8 sps:$4 sm:$0xff]   ;;  %v207_v12 = vld [vmem:[%s287_s1 + $0x50] ss:$8 sps:$4 sm:$0xff]  }
   0x5   :  { %v208_v13 = vld [vmem:[%s287_s1 + $0x64] ss:$8 sps:$4 sm:$0xff]   ;;  %v210_v14 = vld [vmem:[%s287_s1 + $0x60] ss:$8 sps:$4 sm:$0xff]   ;;  %v211_v15 = vld [vmem:[%s287_s1 + $0x74] ss:$8 sps:$4 sm:$0xff]  }
   0x6   :  { %v213_v16 = vld [vmem:[%s287_s1 + $0x70] ss:$8 sps:$4 sm:$0xff]   ;;  %v20_v17 = vld [vmem:[%s288_s0] sm:$0xf] }
   0x7   :  { %120 = vmatpush1.bf16.msra.mxu0 %v195_v4 }
   0x8   :  { %121 = vmatprep.subr.bf16.mxu0 %v196_v5 }
   0xb   :  { %122 = vmatpush1.bf16.msra.mxu0 %v198_v6 }
   0xc   :  { %123 = vmatprep.subr.bf16.mxu0 %v199_v7 }
   0xf   :  { %124 = vmatpush1.bf16.msra.mxu0 %v201_v8 }
  0x10   :  { %125 = vmatprep.subr.bf16.mxu0 %v202_v9 }
  0x13   :  { %126 = vmatpush1.bf16.msra.mxu0 %v204_v10 }
  0x14   :  { %127 = vmatprep.subr.bf16.mxu0 %v205_v11 }
  0x17   :  { %128 = vmatpush1.bf16.msra.mxu0 %v207_v12 }
  0x18   :  { %129 = vmatprep.subr.bf16.mxu0 %v208_v13 }
  0x1b   :  { %130 = vmatpush1.bf16.msra.mxu0 %v210_v14 }
  0x1c   :  { %131 = vmatprep.subr.bf16.mxu0 %v211_v15 }
  0x1f   :  { %132 = vmatpush1.bf16.msra.mxu0 %v213_v16 }
  0x22   :  { %150 = vmatmul.mubr.bf16.vlgmr.msra.gmra.mrb[0].mxu0 %v20_v17 }
  0xf5   :  { %v151_v18 = vpop.f32.mrb[0].mxu0 }
  0xf6   :  { %167 = vst [vmem:[%s289_s2] sm:$0xff] %v151_v18  ;;  %v153_v19 = vpop.f32.mrb[1].mxu0 }
  0xf7   :  { %168 = vst [vmem:[%s289_s2 + $0x8] sm:$0xff] %v153_v19  ;;  %v155_v20 = vpop.f32.mrb[2].mxu0 }
  0xf8   :  { %v156_v21 = vpop.f32.mrb[3].mxu0 }

// kernel: resnet_simclr_forward.99
= control target key start
LH: loop header
LB: loop body
LE: loop exit
PB: predicated region body
PF: predicated region fallthrough
CT: control target
= control target key end

     0   :  { %v64_v0 = vmov 0.0   ;;  %v65_v15 = vmov 1983009808   ;;  %v51_v17 = vlaneseq  ;;  %vm42_vm0 = vcmask 1040384   ;;  %s91_s1 = inlined_call_operand.vmem [shape: f32[2,256], index: 1, kind: output, shape index: {}]   ;;  %s92_s0 = inlined_call_operand.vmem [shape: f32[8,256], index: 0, kind: input, shape index: {}]  }
   0x1   :  { %12 = vst [vmem:[%s91_s1] sm:$0xf] %v64_v0  ;;  %v13_v1 = vld [vmem:[%s92_s0] sm:$0xff]  ;;  %v14_v2 = vld [vmem:[%s92_s0 + $0x8] sm:$0xff]  ;;  %v49_v16 = vunpack.c.l.s4 %v65_v15 }
   0x2   :  { %v15_v3 = vrot.slane %v13_v1, 4  ;;  %v21_v4 = vrot.slane %v14_v2, 4  ;;  %v27_v5 = vmul.f32 %v13_v1, %v13_v1  ;;  %v28_v6 = vmul.f32 %v14_v2, %v14_v2 }
   0x3   :  { %v50_v26 = vunpack.c.0.s8 %v49_v16  ;;  %v52_v27 = vshrl.u32 %v51_v17, 7 }
   0x4   :  { %v16_v7 = vadd.f32 %v15_v3, %v13_v1  ;;  %v22_v8 = vadd.f32 %v21_v4, %v14_v2  ;;  %v29_v9 = vrot.slane %v27_v5, 4  ;;  %v35_v10 = vrot.slane %v28_v6, 4 }
   0x5   :  { %v53_v34 = vsub.s32 %v50_v26, %v52_v27 }
   0x6   :  { %v17_v11 = vrot.slane %v16_v7, 2  ;;  %v23_v12 = vrot.slane %v22_v8, 2  ;;  %v30_v13 = vadd.f32 %v29_v9, %v27_v5  ;;  %v36_v14 = vadd.f32 %v35_v10, %v28_v6 }
   0x8   :  { %v18_v18 = vadd.f32 %v17_v11, %v16_v7  ;;  %v24_v19 = vadd.f32 %v23_v12, %v22_v8  ;;  %v31_v20 = vrot.slane %v30_v13, 2  ;;  %v37_v21 = vrot.slane %v36_v14, 2  ;;  %v41_v38 = vld [vmem:[%s91_s1] sm:$0xf] }
   0xa   :  { %v19_v22 = vrot.slane %v18_v18, 1  ;;  %v25_v23 = vrot.slane %v24_v19, 1  ;;  %v32_v24 = vadd.f32 %v31_v20, %v30_v13  ;;  %v38_v25 = vadd.f32 %v37_v21, %v36_v14 }
   0xc   :  { %v20_v28 = vadd.f32 %v19_v22, %v18_v18  ;;  %v26_v29 = vadd.f32 %v25_v23, %v24_v19  ;;  %v33_v30 = vrot.slane %v32_v24, 1  ;;  %v39_v31 = vrot.slane %v38_v25, 1 }
   0xe   :  { %v34_v32 = vadd.f32 %v33_v30, %v32_v24  ;;  %v40_v33 = vadd.f32 %v39_v31, %v38_v25 }
  0x10   :  { %v43_v35 = vsel %vm42_vm0, %v20_v28, %v34_v32  ;;  %v44_v36 = vsel %vm42_vm0, %v26_v29, %v40_v33 }
  0x11   :  { %v47_v37 = vcombine.low %v43_v35, %v44_v36 }
  0x13   :  { %v54_v39 = vrot.slane %v47_v37, %v53_v34 }
  0x15   :  { %v56_v40 = vadd.f32 %v54_v39, %v41_v38 }
  0x17   :  { %57 = vst [vmem:[%s91_s1] sm:$0xf] %v56_v40 }

// kernel: resnet_simclr_forward.100
= control target key start
LH: loop header
LB: loop body
LE: loop exit
PB: predicated region body
PF: predicated region fallthrough
CT: control target
= control target key end

     0   :  { %v18_v0 = vlaneseq  ;;  %s88_s1 = inlined_call_operand.vmem [shape: f32[1,256], index: 1, kind: input, shape index: {}]   ;;  %s89_s2 = inlined_call_operand.vmem [shape: f32[1,256], index: 2, kind: input, shape index: {}]   ;;  %s90_s0 = inlined_call_operand.vmem [shape: f32[8,256], index: 0, kind: input, shape index: {}]   ;;  %s91_s3 = inlined_call_operand.vmem [shape: f32[8,256], index: 3, kind: output, shape index: {}]  }
   0x1   :  { %v16_v2 = vld [vmem:[%s88_s1] sm:$0x3]  ;;  %v15_v7 = vld [vmem:[%s90_s0 + $0x8] sm:$0xff] }
   0x2   :  { %v19_v1 = vshrl.u32 %v18_v0, 7  ;;  %v30_v3 = vld [vmem:[%s89_s2] sm:$0x3] }
   0x3   :  { %v14_v6 = vld [vmem:[%s90_s0] sm:$0xff] }
   0x4   :  { %v20_v4 = vsub.s32 0, %v19_v1  ;;  %v24_v5 = vsub.s32 1, %v19_v1 }
   0x6   :  { %v21_v8 = vrot.slane %v16_v2, %v20_v4  ;;  %v35_v9 = vrot.slane %v30_v3, %v20_v4  ;;  %v25_v10 = vrot.slane %v16_v2, %v24_v5  ;;  %v39_v11 = vrot.slane %v30_v3, %v24_v5 }
   0x8   :  { %v28_v12 = vmul.f32 %v21_v8, %v14_v6  ;;  %v29_v13 = vmul.f32 %v25_v10, %v15_v7 }
   0xa   :  { %v42_v14 = vadd.f32 %v35_v9, %v28_v12  ;;  %v43_v15 = vadd.f32 %v39_v11, %v29_v13 }
   0xc   :  { %44 = vst [vmem:[%s91_s3] sm:$0xff] %v42_v14  ;;  %45 = vst [vmem:[%s91_s3 + $0x8] sm:$0xff] %v43_v15 }

// kernel: resnet_simclr_forward.94
= control target key start
LH: loop header
LB: loop body
LE: loop exit
PB: predicated region body
PF: predicated region fallthrough
CT: control target
= control target key end

     0   :  { %s947_s9 = smov 0   ;;  %s949_s10 = smov 0   ;;  %s1046_s0 = inlined_call_operand.vmem [shape: bf16[8,1152], index: 0, kind: input, shape index: {}]   ;;  %s1047_s1 = inlined_call_operand.vmem [shape: bf16[1152,256], index: 1, kind: input, shape index: {}]   ;;  %s1048_s2 = inlined_call_operand.vmem [shape: f32[8,256], index: 2, kind: output, shape index: {}]  }
   0x1   :  { %s951_s11 = smov 0  }
   0x2 LB: > { %s24_s12 = sadd.s32 1, %s924_s10  ;;  %p743_p0 = scmp.ge.s32.totalorder %s928_s11, 1  ;;  %s928_s11 = sphi %s951_s11, %s12_s11   ;;  %s924_s10 = sphi %s949_s10, %s1050_s10   ;;  %s920_s9 = sphi %s947_s9, %s1049_s9  }
   0x3   : > { %p25_p1 = scmp.ge.s32.totalorder %s24_s12, 3  ;;  %p159_p2 = scmp.lt.s32.totalorder %s928_s11, 4 }
   0x5   : > { %s1052_s12 = smov (%p25_p1, %s24_s12), 0  ;;  %p160_p3 = pnand %p743_p0, %p159_p2 }
   0x6   : > { %s199_s13 = smul.u32 (!%p160_p3), 3, %s920_s9  ;;  %p747_p6 = scmp.ne.s32.totalorder (!%p160_p3), %s920_s9, 0 }
   0x7   : > { %163 = sbr.rel (%p160_p3) target bundleno = 315 (0x13b), region = 28 }
   0x8   : > { %s209_s14 = smul.u32 (!%p160_p3), 48, %s920_s9  ;;  %p202_p4 = scmp.lt.s32.totalorder (!%p160_p3), %s199_s13, 8 }
   0xa   : > { %p211_p5 = scmp.lt.s32.totalorder (!%p160_p3), %s209_s14, 143 }
   0xe   : > { %s1054_s13 = smov (!%p202_p4, %s199_s13), 8  ;;  %s1056_s14 = smov (!%p211_p5, %s209_s14), 143 }
   0xf   : > { %s744_s15 = sshll.u32 %s1054_s13, 2  ;;  %s804_s19 = sshll.u32 %s1056_s14, 3  ;;  %v930_v0 = vmov (!%p747_p6), 0.0  }
  0x10   : > { %s972_s18 = scalar_lea.vmem %s1046_s0, %s744_s15  ;;  %s977_s22 = scalar_lea.vmem %s1047_s1, %s804_s19  ;;  %236 = vst [vmem:[#allocation2] sm:$0xff] (!%p747_p6), %v930_v0  ;;  %237 = vst [vmem:[#allocation2 + $0x8] sm:$0xff] (!%p747_p6), %v930_v0 }
  0x11   : > { %235 = sbr.rel (%p747_p6) target bundleno = 24 (0x18), region = 32 }
  0x18 PF: > { %v831_v1 = vld [vmem:[%s977_s22 + $0x4] ss:$8 sps:$4 sm:$0xff]   ;;  %v833_v2 = vld [vmem:[%s977_s22] ss:$8 sps:$4 sm:$0xff]   ;;  %v931_v3 = vmov 0   ;;  %p799_p7 = scmp.ne.s32.totalorder %s920_s9, 2 }
  0x19   : > { %614 = vmatprep.mubr.bf16.mxu1 %v931_v3  ;;  %541 = vmatprep.subr.bf16.mxu0 %v831_v1  ;;  %v834_v4 = vld [vmem:[%s977_s22 + $0x14] ss:$8 sps:$4 sm:$0xff]   ;;  %v836_v5 = vld [vmem:[%s977_s22 + $0x10] ss:$8 sps:$4 sm:$0xff]   ;;  %v837_v6 = vld [vmem:[%s977_s22 + $0x24] ss:$8 sps:$4 sm:$0xff]  }
  0x1a   : > { %542 = vmatpush1.bf16.msra.mxu0 %v833_v2  ;;  %v839_v7 = vld [vmem:[%s977_s22 + $0x20] ss:$8 sps:$4 sm:$0xff]   ;;  %v840_v8 = vld [vmem:[%s977_s22 + $0x34] ss:$8 sps:$4 sm:$0xff]   ;;  %v842_v9 = vld [vmem:[%s977_s22 + $0x30] ss:$8 sps:$4 sm:$0xff]  }
  0x1b   : > { %543 = vmatprep.subr.bf16.mxu0 %v834_v4  ;;  %v855_v10 = vld [vmem:[%s977_s22 + $0x104] ss:$8 sps:$4 sm:$0xff]   ;;  %v857_v11 = vld [vmem:[%s977_s22 + $0x100] ss:$8 sps:$4 sm:$0xff]   ;;  %v861_v13 = vld [vmem:[%s977_s22 + $0x114] ss:$8 sps:$4 sm:$0xff]  }
  0x1c   : > { %v843_v12 = vld [vmem:[%s977_s22 + $0x44] ss:$8 sps:$4 sm:$0xff]   ;;  %582 = vmatprep.subr.bf16.mxu1 %v855_v10  ;;  %v863_v14 = vld [vmem:[%s977_s22 + $0x110] ss:$8 sps:$4 sm:$0xff]   ;;  %v845_v15 = vld [vmem:[%s977_s22 + $0x40] ss:$8 sps:$4 sm:$0xff]  }
  0x1d   : > { %583 = vmatpush1.bf16.msra.mxu1 %v857_v11  ;;  %v846_v16 = vld [vmem:[%s977_s22 + $0x54] ss:$8 sps:$4 sm:$0xff]   ;;  %v867_v17 = vld [vmem:[%s977_s22 + $0x124] ss:$8 sps:$4 sm:$0xff]   ;;  %v869_v18 = vld [vmem:[%s977_s22 + $0x120] ss:$8 sps:$4 sm:$0xff]  }
  0x1e   : > { %544 = vmatpush1.bf16.msra.mxu0 %v836_v5  ;;  %584 = vmatprep.subr.bf16.mxu1 %v861_v13  ;;  %v848_v19 = vld [vmem:[%s977_s22 + $0x50] ss:$8 sps:$4 sm:$0xff]   ;;  %v873_v20 = vld [vmem:[%s977_s22 + $0x134] ss:$8 sps:$4 sm:$0xff]   ;;  %v849_v21 = vld [vmem:[%s977_s22 + $0x64] ss:$8 sps:$4 sm:$0xff]  }
  0x1f   : > { %545 = vmatprep.subr.bf16.mxu0 %v837_v6  ;;  %v875_v22 = vld [vmem:[%s977_s22 + $0x130] ss:$8 sps:$4 sm:$0xff]   ;;  %v851_v23 = vld [vmem:[%s977_s22 + $0x60] ss:$8 sps:$4 sm:$0xff]   ;;  %v879_v24 = vld [vmem:[%s977_s22 + $0x144] ss:$8 sps:$4 sm:$0xff]  }
  0x20   : > { %v852_v25 = vld [vmem:[%s977_s22 + $0x74] ss:$8 sps:$4 sm:$0xff]   ;;  %v881_v26 = vld [vmem:[%s977_s22 + $0x140] ss:$8 sps:$4 sm:$0xff]   ;;  %v854_v27 = vld [vmem:[%s977_s22 + $0x70] ss:$8 sps:$4 sm:$0xff]  }
  0x21   : > { %585 = vmatpush1.bf16.msra.mxu1 %v863_v14  ;;  %v885_v28 = vld [vmem:[%s977_s22 + $0x154] ss:$8 sps:$4 sm:$0xff]   ;;  %v858_v29 = vld [vmem:[%s977_s22 + $0x84] ss:$8 sps:$4 sm:$0xff]   ;;  %v887_v30 = vld [vmem:[%s977_s22 + $0x150] ss:$8 sps:$4 sm:$0xff]  }
  0x22   : > { %546 = vmatpush1.bf16.msra.mxu0 %v839_v7  ;;  %586 = vmatprep.subr.bf16.mxu1 %v867_v17  ;;  %v860_v31 = vld [vmem:[%s977_s22 + $0x80] ss:$8 sps:$4 sm:$0xff]   ;;  %v891_v32 = vld [vmem:[%s977_s22 + $0x164] ss:$8 sps:$4 sm:$0xff]   ;;  %v864_v33 = vld [vmem:[%s977_s22 + $0x94] ss:$8 sps:$4 sm:$0xff]  }
  0x23   : > { %547 = vmatprep.subr.bf16.mxu0 %v840_v8  ;;  %v240_v34 = vld [vmem:[%s972_s18] sm:$0xff]  ;;  %v866_v37 = vld [vmem:[%s977_s22 + $0x90] ss:$8 sps:$4 sm:$0xff]   ;;  %v897_v38 = vld [vmem:[%s977_s22 + $0x174] ss:$8 sps:$4 sm:$0xff]  }
  0x24   : > { %v749_v35 = vcombine.high %v240_v34, %v240_v34  ;;  %v893_v36 = vld [vmem:[%s977_s22 + $0x160] ss:$8 sps:$4 sm:$0xff]   ;;  %v870_v39 = vld [vmem:[%s977_s22 + $0xa4] ss:$8 sps:$4 sm:$0xff]   ;;  %v899_v40 = vld [vmem:[%s977_s22 + $0x170] ss:$8 sps:$4 sm:$0xff]   ;;  %v748_v53 = vcombine.low %v240_v34, %v240_v34 }
  0x25   : > { %587 = vmatpush1.bf16.msra.mxu1 %v869_v18  ;;  %v872_v41 = vld [vmem:[%s977_s22 + $0xa0] ss:$8 sps:$4 sm:$0xff]   ;;  %v876_v42 = vld [vmem:[%s977_s22 + $0xb4] ss:$8 sps:$4 sm:$0xff]   ;;  %v878_v44 = vld [vmem:[%s977_s22 + $0xb0] ss:$8 sps:$4 sm:$0xff]  }
  0x26   : > { %548 = vmatpush1.bf16.msra.mxu0 %v842_v9  ;;  %588 = vmatprep.subr.bf16.mxu1 %v873_v20  ;;  %v903_v43 = vld [vmem:[%s972_s18 + $0x8] ss:$0 sps:$4 sm:$0xff]   ;;  %v882_v45 = vld [vmem:[%s977_s22 + $0xc4] ss:$8 sps:$4 sm:$0xff]   ;;  %v888_v47 = vld [vmem:[%s977_s22 + $0xd4] ss:$8 sps:$4 sm:$0xff]  }
  0x27   : > { %549 = vmatprep.subr.bf16.mxu0 %v843_v12  ;;  %573 = vmatprep.mubr.bf16.mxu0 %v749_v35  ;;  %v884_v46 = vld [vmem:[%s977_s22 + $0xc0] ss:$8 sps:$4 sm:$0xff]   ;;  %v890_v48 = vld [vmem:[%s977_s22 + $0xd0] ss:$8 sps:$4 sm:$0xff]   ;;  %v894_v49 = vld [vmem:[%s977_s22 + $0xe4] ss:$8 sps:$4 sm:$0xff]  }
  0x28   : > { %v896_v50 = vld [vmem:[%s977_s22 + $0xe0] ss:$8 sps:$4 sm:$0xff]   ;;  %v900_v51 = vld [vmem:[%s977_s22 + $0xf4] ss:$8 sps:$4 sm:$0xff]   ;;  %v902_v52 = vld [vmem:[%s977_s22 + $0xf0] ss:$8 sps:$4 sm:$0xff]  }
  0x29   : > { %589 = vmatpush1.bf16.msra.mxu1 %v875_v22  ;;  %v238_v58 = vld [vmem:[#allocation2] sm:$0xff]  ;;  %v239_v61 = vld [vmem:[#allocation2 + $0x8] sm:$0xff] }
  0x2a   : > { %550 = vmatpush1.bf16.msra.mxu0 %v845_v15  ;;  %590 = vmatprep.subr.bf16.mxu1 %v879_v24 }
  0x2b   : > { %551 = vmatprep.subr.bf16.mxu0 %v846_v16 }
  0x2d   : > { %591 = vmatpush1.bf16.msra.mxu1 %v881_v26 }
  0x2e   : > { %552 = vmatpush1.bf16.msra.mxu0 %v848_v19  ;;  %592 = vmatprep.subr.bf16.mxu1 %v885_v28 }
  0x2f   : > { %553 = vmatprep.subr.bf16.mxu0 %v849_v21 }
  0x31   : > { %593 = vmatpush1.bf16.msra.mxu1 %v887_v30 }
  0x32   : > { %554 = vmatpush1.bf16.msra.mxu0 %v851_v23  ;;  %594 = vmatprep.subr.bf16.mxu1 %v891_v32 }
  0x33   : > { %555 = vmatprep.subr.bf16.mxu0 %v852_v25 }
  0x35   : > { %595 = vmatpush1.bf16.msra.mxu1 %v893_v36 }
  0x36   : > { %556 = vmatpush1.bf16.msra.mxu0 %v854_v27  ;;  %596 = vmatprep.subr.bf16.mxu1 %v897_v38 }
  0x37   : > { %557 = vmatprep.subr.bf16.mxu0 %v858_v29 }
  0x39   : > { %597 = vmatpush1.bf16.msra.mxu1 %v899_v40 }
  0x3a   : > { %558 = vmatpush1.bf16.msra.mxu0 %v860_v31 }
  0x3b   : > { %559 = vmatprep.subr.bf16.mxu0 %v864_v33 }
  0x3c   : > { %615 = vmatmul.mubr.bf16.vlgmr.msra.gmra.mrb[0].mxu1 %v903_v43 }
  0x3e   : > { %560 = vmatpush1.bf16.msra.mxu0 %v866_v37 }
  0x3f   : > { %561 = vmatprep.subr.bf16.mxu0 %v870_v39 }
  0x42   : > { %562 = vmatpush1.bf16.msra.mxu0 %v872_v41 }
  0x43   : > { %563 = vmatprep.subr.bf16.mxu0 %v876_v42 }
  0x46   : > { %564 = vmatpush1.bf16.msra.mxu0 %v878_v44 }
  0x47   : > { %565 = vmatprep.subr.bf16.mxu0 %v882_v45 }
  0x4a   : > { %566 = vmatpush1.bf16.msra.mxu0 %v884_v46 }
  0x4b   : > { %567 = vmatprep.subr.bf16.mxu0 %v888_v47 }
  0x4e   : > { %568 = vmatpush1.bf16.msra.mxu0 %v890_v48 }
  0x4f   : > { %569 = vmatprep.subr.bf16.mxu0 %v894_v49 }
  0x52   : > { %570 = vmatpush1.bf16.msra.mxu0 %v896_v50 }
  0x53   : > { %571 = vmatprep.subr.bf16.mxu0 %v900_v51 }
  0x56   : > { %572 = vmatpush1.bf16.msra.mxu0 %v902_v52 }
  0x59   : > { %574 = vmatmul.mubr.bf16.vlgmr.msra.gmra.mrb[0].mxu0 %v748_v53 }
 0x10f   : > { %v616_v54 = vpop.f32.mrb[0].mxu1 }
 0x110   : > { %v618_v55 = vpop.f32.mrb[1].mxu1 }
 0x111   : > { %v620_v56 = vpop.f32.mrb[2].mxu1 }
 0x112   : > { %v621_v57 = vpop.f32.mrb[3].mxu1 }
 0x12c   : > { %v575_v59 = vpop.f32.mrb[0].mxu0  ;;  %630 = sbr.rel (%p799_p7) target bundleno = 315 (0x13b), region = 36 }
 0x12d   : > { %v617_v60 = vadd.f32 %v616_v54, %v575_v59  ;;  %v577_v62 = vpop.f32.mrb[1].mxu0 }
 0x12e   : > { %v619_v63 = vadd.f32 %v618_v55, %v577_v62  ;;  %v579_v0 = vpop.f32.mrb[2].mxu0 }
 0x12f   : > { %v623_v1 = vadd.f32 %v617_v60, %v238_v58  ;;  %v580_v2 = vpop.f32.mrb[3].mxu0 }
 0x130   : > { %v624_v3 = vadd.f32 %v619_v63, %v239_v61 }
 0x131   : > { %625 = vst [vmem:[#allocation2] sm:$0xff] %v623_v1 }
 0x132   : > { %626 = vst [vmem:[#allocation2 + $0x8] sm:$0xff] %v624_v3 }
 0x138   : > { %v631_v4 = vld [vmem:[#allocation2] sm:$0xff] }
 0x139   : > { %v632_v5 = vld [vmem:[#allocation2 + $0x8] sm:$0xff]  ;;  %633 = vst [vmem:[%s1048_s2] sm:$0xff] %v631_v4 }
 0x13a   : > { %634 = vst [vmem:[%s1048_s2 + $0x8] sm:$0xff] %v632_v5 }
 0x13b PF: > { %s12_s11 = sadd.s32 1, %s928_s11   ;;  %s1049_s9 = smov %s924_s10 }
 0x13c   : > { %p9_p8 = scmp.ge.s32.totalorder %s12_s11, 5   ;;  %s1050_s10 = smov %s1052_s12 }
 0x13e   :  { %11 = sbr.rel (!%p9_p8) target bundleno = 2 (0x2), region = 69 }

// kernel: resnet_simclr_forward.96
= control target key start
LH: loop header
LB: loop body
LE: loop exit
PB: predicated region body
PF: predicated region fallthrough
CT: control target
= control target key end

     0   :  { %v18_v0 = vlaneseq  ;;  %s90_s1 = inlined_call_operand.vmem [shape: f32[1,256], index: 1, kind: input, shape index: {}]   ;;  %s91_s2 = inlined_call_operand.vmem [shape: f32[1,256], index: 2, kind: input, shape index: {}]   ;;  %s92_s0 = inlined_call_operand.vmem [shape: f32[8,256], index: 0, kind: input, shape index: {}]   ;;  %s93_s3 = inlined_call_operand.vmem [shape: f32[8,256], index: 3, kind: output, shape index: {}]  }
   0x1   :  { %v16_v2 = vld [vmem:[%s90_s1] sm:$0x3]  ;;  %v15_v7 = vld [vmem:[%s92_s0 + $0x8] sm:$0xff] }
   0x2   :  { %v19_v1 = vshrl.u32 %v18_v0, 7  ;;  %v30_v3 = vld [vmem:[%s91_s2] sm:$0x3] }
   0x3   :  { %v14_v6 = vld [vmem:[%s92_s0] sm:$0xff] }
   0x4   :  { %v20_v4 = vsub.s32 0, %v19_v1  ;;  %v24_v5 = vsub.s32 1, %v19_v1 }
   0x6   :  { %v21_v8 = vrot.slane %v16_v2, %v20_v4  ;;  %v35_v9 = vrot.slane %v30_v3, %v20_v4  ;;  %v25_v10 = vrot.slane %v16_v2, %v24_v5  ;;  %v39_v11 = vrot.slane %v30_v3, %v24_v5 }
   0x8   :  { %v28_v12 = vmul.f32 %v21_v8, %v14_v6  ;;  %v29_v13 = vmul.f32 %v25_v10, %v15_v7 }
   0xa   :  { %v42_v14 = vadd.f32 %v35_v9, %v28_v12  ;;  %v43_v15 = vadd.f32 %v39_v11, %v29_v13 }
   0xc   :  { %v44_v16 = vmax.f32 %v42_v14, 0.0  ;;  %v45_v17 = vmax.f32 %v43_v15, 0.0 }
   0xe   :  { %46 = vst [vmem:[%s93_s3] sm:$0xff] %v44_v16  ;;  %47 = vst [vmem:[%s93_s3 + $0x8] sm:$0xff] %v45_v17 }

// kernel: resnet_simclr_forward.102
= control target key start
LH: loop header
LB: loop body
LE: loop exit
PB: predicated region body
PF: predicated region fallthrough
CT: control target
= control target key end

     0   :  { %v21_v0 = vlaneseq  ;;  %s108_s1 = inlined_call_operand.vmem [shape: f32[1,256], index: 1, kind: input, shape index: {}]   ;;  %s109_s2 = inlined_call_operand.vmem [shape: f32[1,256], index: 2, kind: input, shape index: {}]   ;;  %s110_s0 = inlined_call_operand.vmem [shape: f32[8,256], index: 0, kind: input, shape index: {}]   ;;  %s111_s3 = inlined_call_operand.vmem [shape: f32[8,256], index: 3, kind: input, shape index: {}]   ;;  %s112_s4 = inlined_call_operand.vmem [shape: f32[8,256], index: 4, kind: output, shape index: {}]  }
   0x1   :  { %v19_v2 = vld [vmem:[%s108_s1] sm:$0x3]  ;;  %v18_v7 = vld [vmem:[%s110_s0 + $0x8] sm:$0xff] }
   0x2   :  { %v22_v1 = vshrl.u32 %v21_v0, 7  ;;  %v33_v3 = vld [vmem:[%s109_s2] sm:$0x3]  ;;  %v48_v15 = vld [vmem:[%s111_s3 + $0x8] sm:$0xff] }
   0x3   :  { %v17_v6 = vld [vmem:[%s110_s0] sm:$0xff] }
   0x4   :  { %v23_v4 = vsub.s32 0, %v22_v1  ;;  %v27_v5 = vsub.s32 1, %v22_v1  ;;  %v47_v14 = vld [vmem:[%s111_s3] sm:$0xff] }
   0x6   :  { %v24_v8 = vrot.slane %v19_v2, %v23_v4  ;;  %v38_v9 = vrot.slane %v33_v3, %v23_v4  ;;  %v28_v10 = vrot.slane %v19_v2, %v27_v5  ;;  %v42_v11 = vrot.slane %v33_v3, %v27_v5 }
   0x8   :  { %v31_v12 = vmul.f32 %v24_v8, %v17_v6  ;;  %v32_v13 = vmul.f32 %v28_v10, %v18_v7 }
   0xa   :  { %v45_v16 = vadd.f32 %v38_v9, %v31_v12  ;;  %v46_v17 = vadd.f32 %v42_v11, %v32_v13 }
   0xc   :  { %v49_v18 = vadd.f32 %v47_v14, %v45_v16  ;;  %v50_v19 = vadd.f32 %v48_v15, %v46_v17 }
   0xe   :  { %v51_v20 = vmax.f32 %v49_v18, 0.0  ;;  %v52_v21 = vmax.f32 %v50_v19, 0.0 }
  0x10   :  { %53 = vst [vmem:[%s112_s4] sm:$0xff] %v51_v20  ;;  %54 = vst [vmem:[%s112_s4 + $0x8] sm:$0xff] %v52_v21 }

// kernel: resnet_simclr_forward.97
= control target key start
LH: loop header
LB: loop body
LE: loop exit
PB: predicated region body
PF: predicated region fallthrough
CT: control target
= control target key end

     0   :  { %s947_s9 = smov 0   ;;  %s949_s10 = smov 0   ;;  %s1046_s0 = inlined_call_operand.vmem [shape: bf16[8,2304], index: 0, kind: input, shape index: {}]   ;;  %s1047_s1 = inlined_call_operand.vmem [shape: bf16[2304,256], index: 1, kind: input, shape index: {}]   ;;  %s1048_s2 = inlined_call_operand.vmem [shape: f32[8,256], index: 2, kind: output, shape index: {}]  }
   0x1   :  { %s951_s11 = smov 0  }
   0x2 LB: > { %s24_s12 = sadd.s32 1, %s924_s10  ;;  %p743_p0 = scmp.ge.s32.totalorder %s928_s11, 1  ;;  %s928_s11 = sphi %s951_s11, %s12_s11   ;;  %s924_s10 = sphi %s949_s10, %s1050_s10   ;;  %s920_s9 = sphi %s947_s9, %s1049_s9  }
   0x3   : > { %p25_p1 = scmp.ge.s32.totalorder %s24_s12, 6  ;;  %p159_p2 = scmp.lt.s32.totalorder %s928_s11, 7 }
   0x5   : > { %s1052_s12 = smov (%p25_p1, %s24_s12), 0  ;;  %p160_p3 = pnand %p743_p0, %p159_p2 }
   0x6   : > { %s199_s13 = smul.u32 (!%p160_p3), 3, %s920_s9  ;;  %p747_p6 = scmp.ne.s32.totalorder (!%p160_p3), %s920_s9, 0 }
   0x7   : > { %163 = sbr.rel (%p160_p3) target bundleno = 315 (0x13b), region = 28 }
   0x8   : > { %s209_s14 = smul.u32 (!%p160_p3), 48, %s920_s9  ;;  %p202_p4 = scmp.lt.s32.totalorder (!%p160_p3), %s199_s13, 17 }
   0xa   : > { %p211_p5 = scmp.lt.s32.totalorder (!%p160_p3), %s209_s14, 287 }
   0xe   : > { %s1054_s13 = smov (!%p202_p4, %s199_s13), 17  ;;  %s1056_s14 = smov (!%p211_p5, %s209_s14), 287 }
   0xf   : > { %s744_s15 = sshll.u32 %s1054_s13, 2  ;;  %s804_s19 = sshll.u32 %s1056_s14, 3  ;;  %v930_v0 = vmov (!%p747_p6), 0.0  }
  0x10   : > { %s972_s18 = scalar_lea.vmem %s1046_s0, %s744_s15  ;;  %s977_s22 = scalar_lea.vmem %s1047_s1, %s804_s19  ;;  %236 = vst [vmem:[#allocation2] sm:$0xff] (!%p747_p6), %v930_v0  ;;  %237 = vst [vmem:[#allocation2 + $0x8] sm:$0xff] (!%p747_p6), %v930_v0 }
  0x11   : > { %235 = sbr.rel (%p747_p6) target bundleno = 24 (0x18), region = 32 }
  0x18 PF: > { %v831_v1 = vld [vmem:[%s977_s22 + $0x4] ss:$8 sps:$4 sm:$0xff]   ;;  %v833_v2 = vld [vmem:[%s977_s22] ss:$8 sps:$4 sm:$0xff]   ;;  %v931_v3 = vmov 0   ;;  %p799_p7 = scmp.ne.s32.totalorder %s920_s9, 5 }
  0x19   : > { %614 = vmatprep.mubr.bf16.mxu1 %v931_v3  ;;  %541 = vmatprep.subr.bf16.mxu0 %v831_v1  ;;  %v834_v4 = vld [vmem:[%s977_s22 + $0x14] ss:$8 sps:$4 sm:$0xff]   ;;  %v836_v5 = vld [vmem:[%s977_s22 + $0x10] ss:$8 sps:$4 sm:$0xff]   ;;  %v837_v6 = vld [vmem:[%s977_s22 + $0x24] ss:$8 sps:$4 sm:$0xff]  }
  0x1a   : > { %542 = vmatpush1.bf16.msra.mxu0 %v833_v2  ;;  %v839_v7 = vld [vmem:[%s977_s22 + $0x20] ss:$8 sps:$4 sm:$0xff]   ;;  %v840_v8 = vld [vmem:[%s977_s22 + $0x34] ss:$8 sps:$4 sm:$0xff]   ;;  %v842_v9 = vld [vmem:[%s977_s22 + $0x30] ss:$8 sps:$4 sm:$0xff]  }
  0x1b   : > { %543 = vmatprep.subr.bf16.mxu0 %v834_v4  ;;  %v855_v10 = vld [vmem:[%s977_s22 + $0x104] ss:$8 sps:$4 sm:$0xff]   ;;  %v857_v11 = vld [vmem:[%s977_s22 + $0x100] ss:$8 sps:$4 sm:$0xff]   ;;  %v861_v13 = vld [vmem:[%s977_s22 + $0x114] ss:$8 sps:$4 sm:$0xff]  }
  0x1c   : > { %v843_v12 = vld [vmem:[%s977_s22 + $0x44] ss:$8 sps:$4 sm:$0xff]   ;;  %582 = vmatprep.subr.bf16.mxu1 %v855_v10  ;;  %v863_v14 = vld [vmem:[%s977_s22 + $0x110] ss:$8 sps:$4 sm:$0xff]   ;;  %v845_v15 = vld [vmem:[%s977_s22 + $0x40] ss:$8 sps:$4 sm:$0xff]  }
  0x1d   : > { %583 = vmatpush1.bf16.msra.mxu1 %v857_v11  ;;  %v846_v16 = vld [vmem:[%s977_s22 + $0x54] ss:$8 sps:$4 sm:$0xff]   ;;  %v867_v17 = vld [vmem:[%s977_s22 + $0x124] ss:$8 sps:$4 sm:$0xff]   ;;  %v869_v18 = vld [vmem:[%s977_s22 + $0x120] ss:$8 sps:$4 sm:$0xff]  }
  0x1e   : > { %544 = vmatpush1.bf16.msra.mxu0 %v836_v5  ;;  %584 = vmatprep.subr.bf16.mxu1 %v861_v13  ;;  %v848_v19 = vld [vmem:[%s977_s22 + $0x50] ss:$8 sps:$4 sm:$0xff]   ;;  %v873_v20 = vld [vmem:[%s977_s22 + $0x134] ss:$8 sps:$4 sm:$0xff]   ;;  %v849_v21 = vld [vmem:[%s977_s22 + $0x64] ss:$8 sps:$4 sm:$0xff]  }
  0x1f   : > { %545 = vmatprep.subr.bf16.mxu0 %v837_v6  ;;  %v875_v22 = vld [vmem:[%s977_s22 + $0x130] ss:$8 sps:$4 sm:$0xff]   ;;  %v851_v23 = vld [vmem:[%s977_s22 + $0x60] ss:$8 sps:$4 sm:$0xff]   ;;  %v879_v24 = vld [vmem:[%s977_s22 + $0x144] ss:$8 sps:$4 sm:$0xff]  }
  0x20   : > { %v852_v25 = vld [vmem:[%s977_s22 + $0x74] ss:$8 sps:$4 sm:$0xff]   ;;  %v881_v26 = vld [vmem:[%s977_s22 + $0x140] ss:$8 sps:$4 sm:$0xff]   ;;  %v854_v27 = vld [vmem:[%s977_s22 + $0x70] ss:$8 sps:$4 sm:$0xff]  }
  0x21   : > { %585 = vmatpush1.bf16.msra.mxu1 %v863_v14  ;;  %v885_v28 = vld [vmem:[%s977_s22 + $0x154] ss:$8 sps:$4 sm:$0xff]   ;;  %v858_v29 = vld [vmem:[%s977_s22 + $0x84] ss:$8 sps:$4 sm:$0xff]   ;;  %v887_v30 = vld [vmem:[%s977_s22 + $0x150] ss:$8 sps:$4 sm:$0xff]  }
  0x22   : > { %546 = vmatpush1.bf16.msra.mxu0 %v839_v7  ;;  %586 = vmatprep.subr.bf16.mxu1 %v867_v17  ;;  %v860_v31 = vld [vmem:[%s977_s22 + $0x80] ss:$8 sps:$4 sm:$0xff]   ;;  %v891_v32 = vld [vmem:[%s977_s22 + $0x164] ss:$8 sps:$4 sm:$0xff]   ;;  %v864_v33 = vld [vmem:[%s977_s22 + $0x94] ss:$8 sps:$4 sm:$0xff]  }
  0x23   : > { %547 = vmatprep.subr.bf16.mxu0 %v840_v8  ;;  %v240_v34 = vld [vmem:[%s972_s18] sm:$0xff]  ;;  %v866_v37 = vld [vmem:[%s977_s22 + $0x90] ss:$8 sps:$4 sm:$0xff]   ;;  %v897_v38 = vld [vmem:[%s977_s22 + $0x174] ss:$8 sps:$4 sm:$0xff]  }
  0x24   : > { %v749_v35 = vcombine.high %v240_v34, %v240_v34  ;;  %v893_v36 = vld [vmem:[%s977_s22 + $0x160] ss:$8 sps:$4 sm:$0xff]   ;;  %v870_v39 = vld [vmem:[%s977_s22 + $0xa4] ss:$8 sps:$4 sm:$0xff]   ;;  %v899_v40 = vld [vmem:[%s977_s22 + $0x170] ss:$8 sps:$4 sm:$0xff]   ;;  %v748_v53 = vcombine.low %v240_v34, %v240_v34 }
  0x25   : > { %587 = vmatpush1.bf16.msra.mxu1 %v869_v18  ;;  %v872_v41 = vld [vmem:[%s977_s22 + $0xa0] ss:$8 sps:$4 sm:$0xff]   ;;  %v876_v42 = vld [vmem:[%s977_s22 + $0xb4] ss:$8 sps:$4 sm:$0xff]   ;;  %v878_v44 = vld [vmem:[%s977_s22 + $0xb0] ss:$8 sps:$4 sm:$0xff]  }
  0x26   : > { %548 = vmatpush1.bf16.msra.mxu0 %v842_v9  ;;  %588 = vmatprep.subr.bf16.mxu1 %v873_v20  ;;  %v903_v43 = vld [vmem:[%s972_s18 + $0x8] ss:$0 sps:$4 sm:$0xff]   ;;  %v882_v45 = vld [vmem:[%s977_s22 + $0xc4] ss:$8 sps:$4 sm:$0xff]   ;;  %v888_v47 = vld [vmem:[%s977_s22 + $0xd4] ss:$8 sps:$4 sm:$0xff]  }
  0x27   : > { %549 = vmatprep.subr.bf16.mxu0 %v843_v12  ;;  %573 = vmatprep.mubr.bf16.mxu0 %v749_v35  ;;  %v884_v46 = vld [vmem:[%s977_s22 + $0xc0] ss:$8 sps:$4 sm:$0xff]   ;;  %v890_v48 = vld [vmem:[%s977_s22 + $0xd0] ss:$8 sps:$4 sm:$0xff]   ;;  %v894_v49 = vld [vmem:[%s977_s22 + $0xe4] ss:$8 sps:$4 sm:$0xff]  }
  0x28   : > { %v896_v50 = vld [vmem:[%s977_s22 + $0xe0] ss:$8 sps:$4 sm:$0xff]   ;;  %v900_v51 = vld [vmem:[%s977_s22 + $0xf4] ss:$8 sps:$4 sm:$0xff]   ;;  %v902_v52 = vld [vmem:[%s977_s22 + $0xf0] ss:$8 sps:$4 sm:$0xff]  }
  0x29   : > { %589 = vmatpush1.bf16.msra.mxu1 %v875_v22  ;;  %v238_v58 = vld [vmem:[#allocation2] sm:$0xff]  ;;  %v239_v61 = vld [vmem:[#allocation2 + $0x8] sm:$0xff] }
  0x2a   : > { %550 = vmatpush1.bf16.msra.mxu0 %v845_v15  ;;  %590 = vmatprep.subr.bf16.mxu1 %v879_v24 }
  0x2b   : > { %551 = vmatprep.subr.bf16.mxu0 %v846_v16 }
  0x2d   : > { %591 = vmatpush1.bf16.msra.mxu1 %v881_v26 }
  0x2e   : > { %552 = vmatpush1.bf16.msra.mxu0 %v848_v19  ;;  %592 = vmatprep.subr.bf16.mxu1 %v885_v28 }
  0x2f   : > { %553 = vmatprep.subr.bf16.mxu0 %v849_v21 }
  0x31   : > { %593 = vmatpush1.bf16.msra.mxu1 %v887_v30 }
  0x32   : > { %554 = vmatpush1.bf16.msra.mxu0 %v851_v23  ;;  %594 = vmatprep.subr.bf16.mxu1 %v891_v32 }
  0x33   : > { %555 = vmatprep.subr.bf16.mxu0 %v852_v25 }
  0x35   : > { %595 = vmatpush1.bf16.msra.mxu1 %v893_v36 }
  0x36   : > { %556 = vmatpush1.bf16.msra.mxu0 %v854_v27  ;;  %596 = vmatprep.subr.bf16.mxu1 %v897_v38 }
  0x37   : > { %557 = vmatprep.subr.bf16.mxu0 %v858_v29 }
  0x39   : > { %597 = vmatpush1.bf16.msra.mxu1 %v899_v40 }
  0x3a   : > { %558 = vmatpush1.bf16.msra.mxu0 %v860_v31 }
  0x3b   : > { %559 = vmatprep.subr.bf16.mxu0 %v864_v33 }
  0x3c   : > { %615 = vmatmul.mubr.bf16.vlgmr.msra.gmra.mrb[0].mxu1 %v903_v43 }
  0x3e   : > { %560 = vmatpush1.bf16.msra.mxu0 %v866_v37 }
  0x3f   : > { %561 = vmatprep.subr.bf16.mxu0 %v870_v39 }
  0x42   : > { %562 = vmatpush1.bf16.msra.mxu0 %v872_v41 }
  0x43   : > { %563 = vmatprep.subr.bf16.mxu0 %v876_v42 }
  0x46   : > { %564 = vmatpush1.bf16.msra.mxu0 %v878_v44 }
  0x47   : > { %565 = vmatprep.subr.bf16.mxu0 %v882_v45 }
  0x4a   : > { %566 = vmatpush1.bf16.msra.mxu0 %v884_v46 }
  0x4b   : > { %567 = vmatprep.subr.bf16.mxu0 %v888_v47 }
  0x4e   : > { %568 = vmatpush1.bf16.msra.mxu0 %v890_v48 }
  0x4f   : > { %569 = vmatprep.subr.bf16.mxu0 %v894_v49 }
  0x52   : > { %570 = vmatpush1.bf16.msra.mxu0 %v896_v50 }
  0x53   : > { %571 = vmatprep.subr.bf16.mxu0 %v900_v51 }
  0x56   : > { %572 = vmatpush1.bf16.msra.mxu0 %v902_v52 }
  0x59   : > { %574 = vmatmul.mubr.bf16.vlgmr.msra.gmra.mrb[0].mxu0 %v748_v53 }
 0x10f   : > { %v616_v54 = vpop.f32.mrb[0].mxu1 }
 0x110   : > { %v618_v55 = vpop.f32.mrb[1].mxu1 }
 0x111   : > { %v620_v56 = vpop.f32.mrb[2].mxu1 }
 0x112   : > { %v621_v57 = vpop.f32.mrb[3].mxu1 }
 0x12c   : > { %v575_v59 = vpop.f32.mrb[0].mxu0  ;;  %630 = sbr.rel (%p799_p7) target bundleno = 315 (0x13b), region = 36 }
 0x12d   : > { %v617_v60 = vadd.f32 %v616_v54, %v575_v59  ;;  %v577_v62 = vpop.f32.mrb[1].mxu0 }
 0x12e   : > { %v619_v63 = vadd.f32 %v618_v55, %v577_v62  ;;  %v579_v0 = vpop.f32.mrb[2].mxu0 }
 0x12f   : > { %v623_v1 = vadd.f32 %v617_v60, %v238_v58  ;;  %v580_v2 = vpop.f32.mrb[3].mxu0 }
 0x130   : > { %v624_v3 = vadd.f32 %v619_v63, %v239_v61 }
 0x131   : > { %625 = vst [vmem:[#allocation2] sm:$0xff] %v623_v1 }
 0x132   : > { %626 = vst [vmem:[#allocation2 + $0x8] sm:$0xff] %v624_v3 }
 0x138   : > { %v631_v4 = vld [vmem:[#allocation2] sm:$0xff] }
 0x139   : > { %v632_v5 = vld [vmem:[#allocation2 + $0x8] sm:$0xff]  ;;  %633 = vst [vmem:[%s1048_s2] sm:$0xff] %v631_v4 }
 0x13a   : > { %634 = vst [vmem:[%s1048_s2 + $0x8] sm:$0xff] %v632_v5 }
 0x13b PF: > { %s12_s11 = sadd.s32 1, %s928_s11   ;;  %s1049_s9 = smov %s924_s10 }
 0x13c   : > { %p9_p8 = scmp.ge.s32.totalorder %s12_s11, 8   ;;  %s1050_s10 = smov %s1052_s12 }
 0x13e   :  { %11 = sbr.rel (!%p9_p8) target bundleno = 2 (0x2), region = 69 }

// kernel: resnet_simclr_forward.109
= control target key start
LH: loop header
LB: loop body
LE: loop exit
PB: predicated region body
PF: predicated region fallthrough
CT: control target
= control target key end

     0   :  { %s1233_s9 = smov 0   ;;  %s1235_s10 = smov 0   ;;  %s1485_s0 = inlined_call_operand.vmem [shape: bf16[8,2304], index: 0, kind: input, shape index: {}]   ;;  %s1486_s1 = inlined_call_operand.vmem [shape: bf16[2304,512], index: 1, kind: input, shape index: {}]   ;;  %s1487_s2 = inlined_call_operand.vmem [shape: f32[8,512], index: 2, kind: output, shape index: {}]  }
   0x1   :  { %s1237_s11 = smov 0   ;;  %s1239_s12 = smov 0  }
   0x2   :  { %s1241_s13 = smov 0   ;;  %s1243_s14 = smov 0  }
   0x3   :  { %s1245_s15 = smov 0  }
   0x4 LB: > { %s24_s16 = sadd.s32 1, %s1206_s13  ;;  %s27_s17 = sadd.s32 1, %s1210_s14  ;;  %s1214_s15 = sphi %s1245_s15, %s12_s15   ;;  %s1210_s14 = sphi %s1243_s14, %s1493_s14   ;;  %s1206_s13 = sphi %s1241_s13, %s1492_s13   ;;  %s1202_s12 = sphi %s1239_s12, %s1491_s12   ;;  %s1198_s11 = sphi %s1237_s11, %s1490_s11   ;;  %s1194_s10 = sphi %s1235_s10, %s1489_s10   ;;  %s1190_s9 = sphi %s1233_s9, %s1488_s9  }
   0x5   : > { %p25_p0 = scmp.ge.s32.totalorder %s24_s16, 6  ;;  %p75_p1 = scmp.ne.s32.totalorder %s1194_s10, %s1190_s9 }
   0x6   : > { %p76_p2 = scmp.eq.s32.totalorder %s1214_s15, 0  ;;  %s68_s21 = sadd.s32 1, %s1194_s10 }
   0x7   : > { %s1495_s16 = smov (%p25_p0, %s24_s16), 0  ;;  %s1497_s17 = smov (!%p25_p0, %s27_s17), %s1210_s14 }
   0x8   : > { %p77_p3 = por %p76_p2, %p75_p1  ;;  %p29_p4 = scmp.ge.s32.totalorder %s1497_s17, 2 }
   0x9   : > { %s63_s18 = ssub.s32 %s1206_s13, %s1495_s16  ;;  %p961_p6 = scmp.ge.s32.totalorder %s1214_s15, 12 }
   0xa   : > { %s1499_s17 = smov (%p29_p4, %s1497_s17), 0 }
   0xb   : > { %s64_s19 = ssub.s32 %s1210_s14, %s1499_s17  ;;  %129 = sbr.rel (%p961_p6) target bundleno = 50 (0x32), region = 16 }
   0xc   : > { %s65_s20 = sor.u32 %s64_s19, %s63_s18 }
   0xd   : > { %p66_p5 = scmp.eq.s32.totalorder %s65_s20, 0 }
   0xf   : > { %s1284_s22 = scalar_select %p66_p5, %s1194_s10, %s68_s21  }
  0x12   : > { %145 = sbr.rel (!%p77_p3) target bundleno = 50 (0x32), region = 24  ;;  %s147_s23 = sand.u32 (%p77_p3), 1, %s1194_s10  }
  0x13   : > { %s1025_s24 = smul.u32 (%p77_p3), 384, %s147_s23  ;;  %s962_s25 = sshll.u32 (%p77_p3), %s1210_s14, 1 }
  0x14   : > { %s1024_s26 = smul.u32 (%p77_p3), 192, %s1206_s13 }
  0x15   : > { %s1298_s4 = scalar_lea.vmem (%p77_p3), [#allocation3], %s1025_s24 }
  0x16   : > { %s153_s27 = sadd.s32 (%p77_p3), %s1024_s26, %s962_s25 }
  0x17   : > { %s964_s28 = sshll.u32 (%p77_p3), %s153_s27, 2 }
  0x18   : > { %s1293_s3 = scalar_lea.vmem (%p77_p3), %s1486_s1, %s964_s28 }
  0x19   : > { %v277_v0 = vld [vmem:[%s1293_s3] sm:$0xff]  ;;  %v279_v1 = vld [vmem:[%s1293_s3 + $0x10] sm:$0xff] }
  0x1a   : > { %v281_v2 = vld [vmem:[%s1293_s3 + $0x20] sm:$0xff]  ;;  %278 = vst [vmem:[%s1298_s4] sm:$0xff] %v277_v0  ;;  %280 = vst [vmem:[%s1298_s4 + $0x8] sm:$0xff] %v279_v1  ;;  %v283_v3 = vld [vmem:[%s1293_s3 + $0x30] sm:$0xff] }
  0x1b   : > { %282 = vst [vmem:[%s1298_s4 + $0x10] sm:$0xff] %v281_v2  ;;  %v285_v4 = vld [vmem:[%s1293_s3 + $0x40] sm:$0xff]  ;;  %v287_v5 = vld [vmem:[%s1293_s3 + $0x50] sm:$0xff]  ;;  %284 = vst [vmem:[%s1298_s4 + $0x18] sm:$0xff] %v283_v3 }
  0x1c   : > { %286 = vst [vmem:[%s1298_s4 + $0x20] sm:$0xff] %v285_v4  ;;  %288 = vst [vmem:[%s1298_s4 + $0x28] sm:$0xff] %v287_v5  ;;  %v289_v6 = vld [vmem:[%s1293_s3 + $0x60] sm:$0xff]  ;;  %v291_v7 = vld [vmem:[%s1293_s3 + $0x70] sm:$0xff] }
  0x1d   : > { %v293_v8 = vld [vmem:[%s1293_s3 + $0x80] sm:$0xff]  ;;  %290 = vst [vmem:[%s1298_s4 + $0x30] sm:$0xff] %v289_v6  ;;  %292 = vst [vmem:[%s1298_s4 + $0x38] sm:$0xff] %v291_v7  ;;  %v295_v9 = vld [vmem:[%s1293_s3 + $0x90] sm:$0xff] }
  0x1e   : > { %294 = vst [vmem:[%s1298_s4 + $0x40] sm:$0xff] %v293_v8  ;;  %v297_v10 = vld [vmem:[%s1293_s3 + $0xa0] sm:$0xff]  ;;  %v299_v11 = vld [vmem:[%s1293_s3 + $0xb0] sm:$0xff]  ;;  %296 = vst [vmem:[%s1298_s4 + $0x48] sm:$0xff] %v295_v9 }
  0x1f   : > { %298 = vst [vmem:[%s1298_s4 + $0x50] sm:$0xff] %v297_v10  ;;  %300 = vst [vmem:[%s1298_s4 + $0x58] sm:$0xff] %v299_v11  ;;  %v301_v12 = vld [vmem:[%s1293_s3 + $0xc0] sm:$0xff]  ;;  %v303_v13 = vld [vmem:[%s1293_s3 + $0xd0] sm:$0xff] }
  0x20   : > { %v305_v14 = vld [vmem:[%s1293_s3 + $0xe0] sm:$0xff]  ;;  %302 = vst [vmem:[%s1298_s4 + $0x60] sm:$0xff] %v301_v12  ;;  %304 = vst [vmem:[%s1298_s4 + $0x68] sm:$0xff] %v303_v13  ;;  %v307_v15 = vld [vmem:[%s1293_s3 + $0xf0] sm:$0xff] }
  0x21   : > { %306 = vst [vmem:[%s1298_s4 + $0x70] sm:$0xff] %v305_v14  ;;  %v309_v16 = vld [vmem:[%s1293_s3 + $0x100] sm:$0xff]  ;;  %v311_v17 = vld [vmem:[%s1293_s3 + $0x110] sm:$0xff]  ;;  %308 = vst [vmem:[%s1298_s4 + $0x78] sm:$0xff] %v307_v15 }
  0x22   : > { %310 = vst [vmem:[%s1298_s4 + $0x80] sm:$0xff] %v309_v16  ;;  %312 = vst [vmem:[%s1298_s4 + $0x88] sm:$0xff] %v311_v17  ;;  %v313_v18 = vld [vmem:[%s1293_s3 + $0x120] sm:$0xff]  ;;  %v315_v19 = vld [vmem:[%s1293_s3 + $0x130] sm:$0xff] }
  0x23   : > { %v317_v20 = vld [vmem:[%s1293_s3 + $0x140] sm:$0xff]  ;;  %314 = vst [vmem:[%s1298_s4 + $0x90] sm:$0xff] %v313_v18  ;;  %316 = vst [vmem:[%s1298_s4 + $0x98] sm:$0xff] %v315_v19  ;;  %v319_v21 = vld [vmem:[%s1293_s3 + $0x150] sm:$0xff] }
  0x24   : > { %318 = vst [vmem:[%s1298_s4 + $0xa0] sm:$0xff] %v317_v20  ;;  %v321_v22 = vld [vmem:[%s1293_s3 + $0x160] sm:$0xff]  ;;  %v323_v23 = vld [vmem:[%s1293_s3 + $0x170] sm:$0xff]  ;;  %320 = vst [vmem:[%s1298_s4 + $0xa8] sm:$0xff] %v319_v21 }
  0x25   : > { %322 = vst [vmem:[%s1298_s4 + $0xb0] sm:$0xff] %v321_v22  ;;  %324 = vst [vmem:[%s1298_s4 + $0xb8] sm:$0xff] %v323_v23  ;;  %v325_v24 = vld [vmem:[%s1293_s3 + $0x180] sm:$0xff]  ;;  %v327_v25 = vld [vmem:[%s1293_s3 + $0x190] sm:$0xff] }
  0x26   : > { %v329_v26 = vld [vmem:[%s1293_s3 + $0x1a0] sm:$0xff]  ;;  %326 = vst [vmem:[%s1298_s4 + $0xc0] sm:$0xff] %v325_v24  ;;  %328 = vst [vmem:[%s1298_s4 + $0xc8] sm:$0xff] %v327_v25  ;;  %v331_v27 = vld [vmem:[%s1293_s3 + $0x1b0] sm:$0xff] }
  0x27   : > { %330 = vst [vmem:[%s1298_s4 + $0xd0] sm:$0xff] %v329_v26  ;;  %v333_v28 = vld [vmem:[%s1293_s3 + $0x1c0] sm:$0xff]  ;;  %v335_v29 = vld [vmem:[%s1293_s3 + $0x1d0] sm:$0xff]  ;;  %332 = vst [vmem:[%s1298_s4 + $0xd8] sm:$0xff] %v331_v27 }
  0x28   : > { %334 = vst [vmem:[%s1298_s4 + $0xe0] sm:$0xff] %v333_v28  ;;  %336 = vst [vmem:[%s1298_s4 + $0xe8] sm:$0xff] %v335_v29  ;;  %v337_v30 = vld [vmem:[%s1293_s3 + $0x1e0] sm:$0xff]  ;;  %v339_v31 = vld [vmem:[%s1293_s3 + $0x1f0] sm:$0xff] }
  0x29   : > { %v341_v32 = vld [vmem:[%s1293_s3 + $0x200] sm:$0xff]  ;;  %338 = vst [vmem:[%s1298_s4 + $0xf0] sm:$0xff] %v337_v30  ;;  %340 = vst [vmem:[%s1298_s4 + $0xf8] sm:$0xff] %v339_v31  ;;  %v343_v33 = vld [vmem:[%s1293_s3 + $0x210] sm:$0xff] }
  0x2a   : > { %342 = vst [vmem:[%s1298_s4 + $0x100] sm:$0xff] %v341_v32  ;;  %v345_v34 = vld [vmem:[%s1293_s3 + $0x220] sm:$0xff]  ;;  %v347_v35 = vld [vmem:[%s1293_s3 + $0x230] sm:$0xff]  ;;  %344 = vst [vmem:[%s1298_s4 + $0x108] sm:$0xff] %v343_v33 }
  0x2b   : > { %346 = vst [vmem:[%s1298_s4 + $0x110] sm:$0xff] %v345_v34  ;;  %348 = vst [vmem:[%s1298_s4 + $0x118] sm:$0xff] %v347_v35  ;;  %v349_v36 = vld [vmem:[%s1293_s3 + $0x240] sm:$0xff]  ;;  %v351_v37 = vld [vmem:[%s1293_s3 + $0x250] sm:$0xff] }
  0x2c   : > { %v353_v38 = vld [vmem:[%s1293_s3 + $0x260] sm:$0xff]  ;;  %350 = vst [vmem:[%s1298_s4 + $0x120] sm:$0xff] %v349_v36  ;;  %352 = vst [vmem:[%s1298_s4 + $0x128] sm:$0xff] %v351_v37  ;;  %v355_v39 = vld [vmem:[%s1293_s3 + $0x270] sm:$0xff] }
  0x2d   : > { %354 = vst [vmem:[%s1298_s4 + $0x130] sm:$0xff] %v353_v38  ;;  %v357_v40 = vld [vmem:[%s1293_s3 + $0x280] sm:$0xff]  ;;  %v359_v41 = vld [vmem:[%s1293_s3 + $0x290] sm:$0xff]  ;;  %356 = vst [vmem:[%s1298_s4 + $0x138] sm:$0xff] %v355_v39 }
  0x2e   : > { %358 = vst [vmem:[%s1298_s4 + $0x140] sm:$0xff] %v357_v40  ;;  %360 = vst [vmem:[%s1298_s4 + $0x148] sm:$0xff] %v359_v41  ;;  %v361_v42 = vld [vmem:[%s1293_s3 + $0x2a0] sm:$0xff]  ;;  %v363_v43 = vld [vmem:[%s1293_s3 + $0x2b0] sm:$0xff] }
  0x2f   : > { %v365_v44 = vld [vmem:[%s1293_s3 + $0x2c0] sm:$0xff]  ;;  %362 = vst [vmem:[%s1298_s4 + $0x150] sm:$0xff] %v361_v42  ;;  %364 = vst [vmem:[%s1298_s4 + $0x158] sm:$0xff] %v363_v43  ;;  %v367_v45 = vld [vmem:[%s1293_s3 + $0x2d0] sm:$0xff] }
  0x30   : > { %366 = vst [vmem:[%s1298_s4 + $0x160] sm:$0xff] %v365_v44  ;;  %v369_v46 = vld [vmem:[%s1293_s3 + $0x2e0] sm:$0xff]  ;;  %v371_v47 = vld [vmem:[%s1293_s3 + $0x2f0] sm:$0xff]  ;;  %368 = vst [vmem:[%s1298_s4 + $0x168] sm:$0xff] %v367_v45 }
  0x31   : > { %370 = vst [vmem:[%s1298_s4 + $0x170] sm:$0xff] %v369_v46  ;;  %372 = vst [vmem:[%s1298_s4 + $0x178] sm:$0xff] %v371_v47 }
  0x32 PF: > { %p965_p7 = scmp.ge.s32.totalorder %s1214_s15, 1  ;;  %p377_p8 = scmp.lt.s32.totalorder %s1214_s15, 13 }
  0x34   : > { %p378_p9 = pnand %p965_p7, %p377_p8 }
  0x35   : > { %s384_s5 = sand.u32 (!%p378_p9), 1, %s1190_s9   ;;  %s418_s6 = smul.u32 (!%p378_p9), 3, %s1198_s11 }
  0x36   : > { %381 = sbr.rel (%p378_p9) target bundleno = 362 (0x16a), region = 62  ;;  %s967_s8 = sshll.u32 (!%p378_p9), %s1202_s12, 1 }
  0x37   : > { %s1026_s7 = smul.u32 (!%p378_p9), 384, %s384_s5  ;;  %p421_p10 = scmp.lt.s32.totalorder (!%p378_p9), %s418_s6, 17 }
  0x38   : > { %p433_p11 = scmp.lt.s32.totalorder (!%p378_p9), %s967_s8, 3  ;;  %p969_p12 = scmp.ne.s32.totalorder (!%p378_p9), %s1198_s11, 0 }
  0x39   : > { %s1408_s9 = scalar_lea.vmem (!%p378_p9), [#allocation3], %s1026_s7 }
  0x3d   : > { %s1501_s6 = smov (!%p421_p10, %s418_s6), 17  ;;  %s1503_s8 = smov (!%p433_p11, %s967_s8), 3 }
  0x3e   : > { %s966_s18 = sshll.u32 %s1501_s6, 2  ;;  %s968_s23 = sshll.u32 %s1503_s8, 3  ;;  %v1216_v48 = vmov (!%p969_p12), 0.0  }
  0x3f   : > { %s1401_s21 = scalar_lea.vmem %s1485_s0, %s966_s18  ;;  %s1406_s26 = scalar_lea.vmem %s1487_s2, %s968_s23  ;;  %445 = vst [vmem:[#allocation2] sm:$0xff] (!%p969_p12), %v1216_v48  ;;  %446 = vst [vmem:[#allocation2 + $0x8] sm:$0xff] (!%p969_p12), %v1216_v48 }
  0x40   : > { %444 = sbr.rel (%p969_p12) target bundleno = 71 (0x47), region = 70 }
  0x47 PF: > { %v1085_v49 = vld [vmem:[%s1408_s9 + $0x4] ss:$8 sps:$4 sm:$0xff]   ;;  %v1087_v50 = vld [vmem:[%s1408_s9] ss:$8 sps:$4 sm:$0xff]   ;;  %v1217_v51 = vmov 0   ;;  %v449_v18 = vld [vmem:[%s1401_s21] sm:$0xff] }
  0x48   : > { %823 = vmatprep.mubr.bf16.mxu1 %v1217_v51  ;;  %750 = vmatprep.subr.bf16.mxu0 %v1085_v49  ;;  %v1088_v52 = vld [vmem:[%s1408_s9 + $0x14] ss:$8 sps:$4 sm:$0xff]   ;;  %v1090_v53 = vld [vmem:[%s1408_s9 + $0x10] ss:$8 sps:$4 sm:$0xff]   ;;  %v1091_v54 = vld [vmem:[%s1408_s9 + $0x24] ss:$8 sps:$4 sm:$0xff]   ;;  %v971_v19 = vcombine.high %v449_v18, %v449_v18  ;;  %v970_v37 = vcombine.low %v449_v18, %v449_v18 }
  0x49   : > { %751 = vmatpush1.bf16.msra.mxu0 %v1087_v50  ;;  %v1093_v55 = vld [vmem:[%s1408_s9 + $0x20] ss:$8 sps:$4 sm:$0xff]   ;;  %v1094_v56 = vld [vmem:[%s1408_s9 + $0x34] ss:$8 sps:$4 sm:$0xff]   ;;  %v1096_v57 = vld [vmem:[%s1408_s9 + $0x30] ss:$8 sps:$4 sm:$0xff]  }
  0x4a   : > { %752 = vmatprep.subr.bf16.mxu0 %v1088_v52  ;;  %v1109_v58 = vld [vmem:[%s1408_s9 + $0x104] ss:$8 sps:$4 sm:$0xff]   ;;  %v1111_v59 = vld [vmem:[%s1408_s9 + $0x100] ss:$8 sps:$4 sm:$0xff]   ;;  %v1115_v61 = vld [vmem:[%s1408_s9 + $0x114] ss:$8 sps:$4 sm:$0xff]   ;;  %782 = vmatprep.mubr.bf16.mxu0 %v971_v19 }
  0x4b   : > { %v1097_v60 = vld [vmem:[%s1408_s9 + $0x44] ss:$8 sps:$4 sm:$0xff]   ;;  %791 = vmatprep.subr.bf16.mxu1 %v1109_v58  ;;  %v1117_v62 = vld [vmem:[%s1408_s9 + $0x110] ss:$8 sps:$4 sm:$0xff]   ;;  %v1099_v63 = vld [vmem:[%s1408_s9 + $0x40] ss:$8 sps:$4 sm:$0xff]  }
  0x4c   : > { %792 = vmatpush1.bf16.msra.mxu1 %v1111_v59  ;;  %v1100_v0 = vld [vmem:[%s1408_s9 + $0x54] ss:$8 sps:$4 sm:$0xff]   ;;  %v1121_v1 = vld [vmem:[%s1408_s9 + $0x124] ss:$8 sps:$4 sm:$0xff]   ;;  %v1123_v2 = vld [vmem:[%s1408_s9 + $0x120] ss:$8 sps:$4 sm:$0xff]  }
  0x4d   : > { %753 = vmatpush1.bf16.msra.mxu0 %v1090_v53  ;;  %793 = vmatprep.subr.bf16.mxu1 %v1115_v61  ;;  %v1102_v3 = vld [vmem:[%s1408_s9 + $0x50] ss:$8 sps:$4 sm:$0xff]   ;;  %v1127_v4 = vld [vmem:[%s1408_s9 + $0x134] ss:$8 sps:$4 sm:$0xff]   ;;  %v1103_v5 = vld [vmem:[%s1408_s9 + $0x64] ss:$8 sps:$4 sm:$0xff]  }
  0x4e   : > { %754 = vmatprep.subr.bf16.mxu0 %v1091_v54  ;;  %v1129_v6 = vld [vmem:[%s1408_s9 + $0x130] ss:$8 sps:$4 sm:$0xff]   ;;  %v1105_v7 = vld [vmem:[%s1408_s9 + $0x60] ss:$8 sps:$4 sm:$0xff]   ;;  %v1133_v8 = vld [vmem:[%s1408_s9 + $0x144] ss:$8 sps:$4 sm:$0xff]  }
  0x4f   : > { %v1106_v9 = vld [vmem:[%s1408_s9 + $0x74] ss:$8 sps:$4 sm:$0xff]   ;;  %v1135_v10 = vld [vmem:[%s1408_s9 + $0x140] ss:$8 sps:$4 sm:$0xff]   ;;  %v1108_v11 = vld [vmem:[%s1408_s9 + $0x70] ss:$8 sps:$4 sm:$0xff]  }
  0x50   : > { %794 = vmatpush1.bf16.msra.mxu1 %v1117_v62  ;;  %v1139_v12 = vld [vmem:[%s1408_s9 + $0x154] ss:$8 sps:$4 sm:$0xff]   ;;  %v1112_v13 = vld [vmem:[%s1408_s9 + $0x84] ss:$8 sps:$4 sm:$0xff]   ;;  %v1141_v14 = vld [vmem:[%s1408_s9 + $0x150] ss:$8 sps:$4 sm:$0xff]  }
  0x51   : > { %755 = vmatpush1.bf16.msra.mxu0 %v1093_v55  ;;  %795 = vmatprep.subr.bf16.mxu1 %v1121_v1  ;;  %v1114_v15 = vld [vmem:[%s1408_s9 + $0x80] ss:$8 sps:$4 sm:$0xff]   ;;  %v1145_v16 = vld [vmem:[%s1408_s9 + $0x164] ss:$8 sps:$4 sm:$0xff]   ;;  %v1118_v17 = vld [vmem:[%s1408_s9 + $0x94] ss:$8 sps:$4 sm:$0xff]  }
  0x52   : > { %756 = vmatprep.subr.bf16.mxu0 %v1094_v56  ;;  %v1147_v20 = vld [vmem:[%s1408_s9 + $0x160] ss:$8 sps:$4 sm:$0xff]   ;;  %v1120_v21 = vld [vmem:[%s1408_s9 + $0x90] ss:$8 sps:$4 sm:$0xff]   ;;  %v1151_v22 = vld [vmem:[%s1408_s9 + $0x174] ss:$8 sps:$4 sm:$0xff]  }
  0x53   : > { %v1124_v23 = vld [vmem:[%s1408_s9 + $0xa4] ss:$8 sps:$4 sm:$0xff]   ;;  %v1153_v24 = vld [vmem:[%s1408_s9 + $0x170] ss:$8 sps:$4 sm:$0xff]   ;;  %v1126_v25 = vld [vmem:[%s1408_s9 + $0xa0] ss:$8 sps:$4 sm:$0xff]  }
  0x54   : > { %796 = vmatpush1.bf16.msra.mxu1 %v1123_v2  ;;  %v1130_v26 = vld [vmem:[%s1408_s9 + $0xb4] ss:$8 sps:$4 sm:$0xff]   ;;  %v1157_v27 = vld [vmem:[%s1401_s21 + $0x8] ss:$0 sps:$4 sm:$0xff]   ;;  %v1136_v29 = vld [vmem:[%s1408_s9 + $0xc4] ss:$8 sps:$4 sm:$0xff]  }
  0x55   : > { %757 = vmatpush1.bf16.msra.mxu0 %v1096_v57  ;;  %797 = vmatprep.subr.bf16.mxu1 %v1127_v4  ;;  %v1132_v28 = vld [vmem:[%s1408_s9 + $0xb0] ss:$8 sps:$4 sm:$0xff]   ;;  %v1138_v30 = vld [vmem:[%s1408_s9 + $0xc0] ss:$8 sps:$4 sm:$0xff]   ;;  %v1142_v31 = vld [vmem:[%s1408_s9 + $0xd4] ss:$8 sps:$4 sm:$0xff]  }
  0x56   : > { %758 = vmatprep.subr.bf16.mxu0 %v1097_v60  ;;  %v1144_v32 = vld [vmem:[%s1408_s9 + $0xd0] ss:$8 sps:$4 sm:$0xff]   ;;  %v1148_v33 = vld [vmem:[%s1408_s9 + $0xe4] ss:$8 sps:$4 sm:$0xff]   ;;  %v1150_v34 = vld [vmem:[%s1408_s9 + $0xe0] ss:$8 sps:$4 sm:$0xff]  }
  0x57   : > { %v1154_v35 = vld [vmem:[%s1408_s9 + $0xf4] ss:$8 sps:$4 sm:$0xff]   ;;  %v1156_v36 = vld [vmem:[%s1408_s9 + $0xf0] ss:$8 sps:$4 sm:$0xff]   ;;  %p1021_p13 = scmp.ne.s32.totalorder %s1198_s11, 5 }
  0x58   : > { %798 = vmatpush1.bf16.msra.mxu1 %v1129_v6  ;;  %v447_v42 = vld [vmem:[#allocation2] sm:$0xff]  ;;  %v448_v45 = vld [vmem:[#allocation2 + $0x8] sm:$0xff] }
  0x59   : > { %759 = vmatpush1.bf16.msra.mxu0 %v1099_v63  ;;  %799 = vmatprep.subr.bf16.mxu1 %v1133_v8 }
  0x5a   : > { %760 = vmatprep.subr.bf16.mxu0 %v1100_v0 }
  0x5c   : > { %800 = vmatpush1.bf16.msra.mxu1 %v1135_v10 }
  0x5d   : > { %761 = vmatpush1.bf16.msra.mxu0 %v1102_v3  ;;  %801 = vmatprep.subr.bf16.mxu1 %v1139_v12 }
  0x5e   : > { %762 = vmatprep.subr.bf16.mxu0 %v1103_v5 }
  0x60   : > { %802 = vmatpush1.bf16.msra.mxu1 %v1141_v14 }
  0x61   : > { %763 = vmatpush1.bf16.msra.mxu0 %v1105_v7  ;;  %803 = vmatprep.subr.bf16.mxu1 %v1145_v16 }
  0x62   : > { %764 = vmatprep.subr.bf16.mxu0 %v1106_v9 }
  0x64   : > { %804 = vmatpush1.bf16.msra.mxu1 %v1147_v20 }
  0x65   : > { %765 = vmatpush1.bf16.msra.mxu0 %v1108_v11  ;;  %805 = vmatprep.subr.bf16.mxu1 %v1151_v22 }
  0x66   : > { %766 = vmatprep.subr.bf16.mxu0 %v1112_v13 }
  0x68   : > { %806 = vmatpush1.bf16.msra.mxu1 %v1153_v24 }
  0x69   : > { %767 = vmatpush1.bf16.msra.mxu0 %v1114_v15 }
  0x6a   : > { %768 = vmatprep.subr.bf16.mxu0 %v1118_v17 }
  0x6b   : > { %824 = vmatmul.mubr.bf16.vlgmr.msra.gmra.mrb[0].mxu1 %v1157_v27 }
  0x6d   : > { %769 = vmatpush1.bf16.msra.mxu0 %v1120_v21 }
  0x6e   : > { %770 = vmatprep.subr.bf16.mxu0 %v1124_v23 }
  0x71   : > { %771 = vmatpush1.bf16.msra.mxu0 %v1126_v25 }
  0x72   : > { %772 = vmatprep.subr.bf16.mxu0 %v1130_v26 }
  0x75   : > { %773 = vmatpush1.bf16.msra.mxu0 %v1132_v28 }
  0x76   : > { %774 = vmatprep.subr.bf16.mxu0 %v1136_v29 }
  0x79   : > { %775 = vmatpush1.bf16.msra.mxu0 %v1138_v30 }
  0x7a   : > { %776 = vmatprep.subr.bf16.mxu0 %v1142_v31 }
  0x7d   : > { %777 = vmatpush1.bf16.msra.mxu0 %v1144_v32 }
  0x7e   : > { %778 = vmatprep.subr.bf16.mxu0 %v1148_v33 }
  0x81   : > { %779 = vmatpush1.bf16.msra.mxu0 %v1150_v34 }
  0x82   : > { %780 = vmatprep.subr.bf16.mxu0 %v1154_v35 }
  0x85   : > { %781 = vmatpush1.bf16.msra.mxu0 %v1156_v36 }
  0x88   : > { %783 = vmatmul.mubr.bf16.vlgmr.msra.gmra.mrb[0].mxu0 %v970_v37 }
 0x13e   : > { %v825_v38 = vpop.f32.mrb[0].mxu1 }
 0x13f   : > { %v827_v39 = vpop.f32.mrb[1].mxu1 }
 0x140   : > { %v829_v40 = vpop.f32.mrb[2].mxu1 }
 0x141   : > { %v830_v41 = vpop.f32.mrb[3].mxu1 }
 0x15b   : > { %v784_v43 = vpop.f32.mrb[0].mxu0  ;;  %839 = sbr.rel (%p1021_p13) target bundleno = 362 (0x16a), region = 74 }
 0x15c   : > { %v826_v44 = vadd.f32 %v825_v38, %v784_v43  ;;  %v786_v46 = vpop.f32.mrb[1].mxu0 }
 0x15d   : > { %v828_v47 = vadd.f32 %v827_v39, %v786_v46  ;;  %v788_v48 = vpop.f32.mrb[2].mxu0 }
 0x15e   : > { %v832_v49 = vadd.f32 %v826_v44, %v447_v42  ;;  %v789_v50 = vpop.f32.mrb[3].mxu0 }
 0x15f   : > { %v833_v51 = vadd.f32 %v828_v47, %v448_v45 }
 0x160   : > { %834 = vst [vmem:[#allocation2] sm:$0xff] %v832_v49 }
 0x161   : > { %835 = vst [vmem:[#allocation2 + $0x8] sm:$0xff] %v833_v51 }
 0x167   : > { %v840_v52 = vld [vmem:[#allocation2] sm:$0xff] }
 0x168   : > { %v841_v53 = vld [vmem:[#allocation2 + $0x8] sm:$0xff]  ;;  %842 = vst [vmem:[%s1406_s26] sm:$0xff] %v840_v52 }
 0x169   : > { %843 = vst [vmem:[%s1406_s26 + $0x8] sm:$0xff] %v841_v53 }
 0x16a PF: > { %s12_s15 = sadd.s32 1, %s1214_s15   ;;  %s1488_s9 = smov %s1194_s10 }
 0x16b   : > { %p9_p0 = scmp.ge.s32.totalorder %s12_s15, 14   ;;  %s1489_s10 = smov %s1284_s22 }
 0x16c   : > { %s1490_s11 = smov %s1206_s13  ;;  %s1491_s12 = smov %s1210_s14 }
 0x16d   : > { %s1492_s13 = smov %s1495_s16  ;;  %s1493_s14 = smov %s1499_s17 }
 0x16e   :  { %11 = sbr.rel (!%p9_p0) target bundleno = 4 (0x4), region = 112 }

// kernel: resnet_simclr_forward.113
= control target key start
LH: loop header
LB: loop body
LE: loop exit
PB: predicated region body
PF: predicated region fallthrough
CT: control target
= control target key end

     0   :  { %s944_s9 = smov 0   ;;  %s946_s10 = smov 0   ;;  %s1120_s0 = inlined_call_operand.vmem [shape: bf16[8,256], index: 0, kind: input, shape index: {}]   ;;  %s1121_s1 = inlined_call_operand.vmem [shape: bf16[256,512], index: 1, kind: input, shape index: {}]   ;;  %s1122_s2 = inlined_call_operand.vmem [shape: f32[8,512], index: 2, kind: output, shape index: {}]  }
   0x1   :  { %s948_s11 = smov 0   ;;  %s950_s12 = smov 0  }
   0x2   :  { %s952_s13 = smov 0  }
   0x3 LB: > { %s27_s14 = sadd.s32 1, %s923_s12  ;;  %p75_p1 = scmp.ne.s32.totalorder %s915_s10, %s911_s9  ;;  %s927_s13 = sphi %s952_s13, %s12_s13   ;;  %s923_s12 = sphi %s950_s12, %s1126_s12   ;;  %s919_s11 = sphi %s948_s11, %s1125_s11   ;;  %s915_s10 = sphi %s946_s10, %s1124_s10   ;;  %s911_s9 = sphi %s944_s9, %s1123_s9  }
   0x4   : > { %p29_p0 = scmp.ge.s32.totalorder %s27_s14, 2  ;;  %p76_p2 = scmp.eq.s32.totalorder %s927_s13, 0 }
   0x5   : > { %s68_s16 = sadd.s32 1, %s915_s10  ;;  %p754_p5 = scmp.ge.s32.totalorder %s927_s13, 2 }
   0x6   : > { %s1128_s14 = smov (%p29_p0, %s27_s14), 0  ;;  %p77_p3 = por %p76_p2, %p75_p1 }
   0x7   : > { %s64_s15 = ssub.s32 %s923_s12, %s1128_s14  ;;  %142 = sbr.rel (%p754_p5) target bundleno = 34 (0x22), region = 20 }
   0x8   : > { %p66_p4 = scmp.eq.s32.totalorder %s64_s15, 0 }
   0xa   : > { %s979_s17 = scalar_select %p66_p4, %s915_s10, %s68_s16  }
   0xe   : > { %145 = sbr.rel (!%p77_p3) target bundleno = 34 (0x22), region = 24  ;;  %s147_s18 = sand.u32 (%p77_p3), 1, %s915_s10  }
   0xf   : > { %s798_s19 = sshll.u32 (%p77_p3), %s923_s12, 3  ;;  %s755_s20 = sshll.u32 (%p77_p3), %s147_s18, 8 }
  0x10   : > { %s987_s23 = scalar_lea.vmem (%p77_p3), %s1121_s1, %s798_s19  ;;  %s992_s24 = scalar_lea.vmem (%p77_p3), [#allocation3], %s755_s20 }
  0x11   : > { %v245_v0 = vld [vmem:[%s987_s23] sm:$0xff] (%p77_p3)  ;;  %v247_v1 = vld [vmem:[%s987_s23 + $0x10] sm:$0xff] (%p77_p3) }
  0x12   : > { %v249_v2 = vld [vmem:[%s987_s23 + $0x20] sm:$0xff] (%p77_p3)  ;;  %246 = vst [vmem:[%s992_s24] sm:$0xff] (%p77_p3), %v245_v0  ;;  %248 = vst [vmem:[%s992_s24 + $0x8] sm:$0xff] (%p77_p3), %v247_v1  ;;  %v251_v3 = vld [vmem:[%s987_s23 + $0x30] sm:$0xff] (%p77_p3) }
  0x13   : > { %250 = vst [vmem:[%s992_s24 + $0x10] sm:$0xff] (%p77_p3), %v249_v2  ;;  %v253_v4 = vld [vmem:[%s987_s23 + $0x40] sm:$0xff] (%p77_p3)  ;;  %v255_v5 = vld [vmem:[%s987_s23 + $0x50] sm:$0xff] (%p77_p3)  ;;  %252 = vst [vmem:[%s992_s24 + $0x18] sm:$0xff] (%p77_p3), %v251_v3 }
  0x14   : > { %254 = vst [vmem:[%s992_s24 + $0x20] sm:$0xff] (%p77_p3), %v253_v4  ;;  %256 = vst [vmem:[%s992_s24 + $0x28] sm:$0xff] (%p77_p3), %v255_v5  ;;  %v257_v6 = vld [vmem:[%s987_s23 + $0x60] sm:$0xff] (%p77_p3)  ;;  %v259_v7 = vld [vmem:[%s987_s23 + $0x70] sm:$0xff] (%p77_p3) }
  0x15   : > { %v261_v8 = vld [vmem:[%s987_s23 + $0x80] sm:$0xff]  ;;  %258 = vst [vmem:[%s992_s24 + $0x30] sm:$0xff] %v257_v6  ;;  %260 = vst [vmem:[%s992_s24 + $0x38] sm:$0xff] %v259_v7  ;;  %v263_v9 = vld [vmem:[%s987_s23 + $0x90] sm:$0xff] }
  0x16   : > { %262 = vst [vmem:[%s992_s24 + $0x40] sm:$0xff] %v261_v8  ;;  %v265_v10 = vld [vmem:[%s987_s23 + $0xa0] sm:$0xff]  ;;  %v267_v11 = vld [vmem:[%s987_s23 + $0xb0] sm:$0xff]  ;;  %264 = vst [vmem:[%s992_s24 + $0x48] sm:$0xff] %v263_v9 }
  0x17   : > { %266 = vst [vmem:[%s992_s24 + $0x50] sm:$0xff] %v265_v10  ;;  %268 = vst [vmem:[%s992_s24 + $0x58] sm:$0xff] %v267_v11  ;;  %v269_v12 = vld [vmem:[%s987_s23 + $0xc0] sm:$0xff]  ;;  %v271_v13 = vld [vmem:[%s987_s23 + $0xd0] sm:$0xff] }
  0x18   : > { %v273_v14 = vld [vmem:[%s987_s23 + $0xe0] sm:$0xff]  ;;  %270 = vst [vmem:[%s992_s24 + $0x60] sm:$0xff] %v269_v12  ;;  %272 = vst [vmem:[%s992_s24 + $0x68] sm:$0xff] %v271_v13  ;;  %v275_v15 = vld [vmem:[%s987_s23 + $0xf0] sm:$0xff] }
  0x19   : > { %274 = vst [vmem:[%s992_s24 + $0x70] sm:$0xff] %v273_v14  ;;  %v277_v16 = vld [vmem:[%s987_s23 + $0x100] sm:$0xff]  ;;  %v279_v17 = vld [vmem:[%s987_s23 + $0x110] sm:$0xff]  ;;  %276 = vst [vmem:[%s992_s24 + $0x78] sm:$0xff] %v275_v15 }
  0x1a   : > { %278 = vst [vmem:[%s992_s24 + $0x80] sm:$0xff] %v277_v16  ;;  %280 = vst [vmem:[%s992_s24 + $0x88] sm:$0xff] %v279_v17  ;;  %v281_v18 = vld [vmem:[%s987_s23 + $0x120] sm:$0xff]  ;;  %v283_v19 = vld [vmem:[%s987_s23 + $0x130] sm:$0xff] }
  0x1b   : > { %v285_v20 = vld [vmem:[%s987_s23 + $0x140] sm:$0xff]  ;;  %282 = vst [vmem:[%s992_s24 + $0x90] sm:$0xff] %v281_v18  ;;  %284 = vst [vmem:[%s992_s24 + $0x98] sm:$0xff] %v283_v19  ;;  %v287_v21 = vld [vmem:[%s987_s23 + $0x150] sm:$0xff] }
  0x1c   : > { %286 = vst [vmem:[%s992_s24 + $0xa0] sm:$0xff] %v285_v20  ;;  %v289_v22 = vld [vmem:[%s987_s23 + $0x160] sm:$0xff]  ;;  %v291_v23 = vld [vmem:[%s987_s23 + $0x170] sm:$0xff]  ;;  %288 = vst [vmem:[%s992_s24 + $0xa8] sm:$0xff] %v287_v21 }
  0x1d   : > { %290 = vst [vmem:[%s992_s24 + $0xb0] sm:$0xff] %v289_v22  ;;  %292 = vst [vmem:[%s992_s24 + $0xb8] sm:$0xff] %v291_v23  ;;  %v293_v24 = vld [vmem:[%s987_s23 + $0x180] sm:$0xff]  ;;  %v295_v25 = vld [vmem:[%s987_s23 + $0x190] sm:$0xff] }
  0x1e   : > { %v297_v26 = vld [vmem:[%s987_s23 + $0x1a0] sm:$0xff]  ;;  %294 = vst [vmem:[%s992_s24 + $0xc0] sm:$0xff] %v293_v24  ;;  %296 = vst [vmem:[%s992_s24 + $0xc8] sm:$0xff] %v295_v25  ;;  %v299_v27 = vld [vmem:[%s987_s23 + $0x1b0] sm:$0xff] }
  0x1f   : > { %298 = vst [vmem:[%s992_s24 + $0xd0] sm:$0xff] %v297_v26  ;;  %v301_v28 = vld [vmem:[%s987_s23 + $0x1c0] sm:$0xff]  ;;  %v303_v29 = vld [vmem:[%s987_s23 + $0x1d0] sm:$0xff]  ;;  %300 = vst [vmem:[%s992_s24 + $0xd8] sm:$0xff] %v299_v27 }
  0x20   : > { %302 = vst [vmem:[%s992_s24 + $0xe0] sm:$0xff] %v301_v28  ;;  %304 = vst [vmem:[%s992_s24 + $0xe8] sm:$0xff] %v303_v29  ;;  %v305_v30 = vld [vmem:[%s987_s23 + $0x1e0] sm:$0xff]  ;;  %v307_v31 = vld [vmem:[%s987_s23 + $0x1f0] sm:$0xff] }
  0x21   : > { %306 = vst [vmem:[%s992_s24 + $0xf0] sm:$0xff] %v305_v30  ;;  %308 = vst [vmem:[%s992_s24 + $0xf8] sm:$0xff] %v307_v31 }
  0x22 PF: > { %p758_p6 = scmp.ge.s32.totalorder %s927_s13, 1  ;;  %p313_p7 = scmp.lt.s32.totalorder %s927_s13, 3 }
  0x24   : > { %p314_p8 = pnand %p758_p6, %p313_p7 }
  0x25   : > { %s320_s25 = sand.u32 (!%p314_p8), 1, %s911_s9   ;;  %v1061_v32 = vld [vmem:[%s1120_s0] sm:$0xff] (!%p314_p8)  ;;  %s760_s30 = sshll.u32 (!%p314_p8), %s919_s11, 1 }
  0x26   : > { %317 = sbr.rel (%p314_p8) target bundleno = 320 (0x140), region = 62  ;;  %s759_s28 = sshll.u32 (!%p314_p8), %s320_s25, 8  ;;  %v763_v33 = vcombine.high (!%p314_p8), %v1061_v32, %v1061_v32  ;;  %v762_v2 = vcombine.low (!%p314_p8), %v1061_v32, %v1061_v32 }
  0x27   : > { %s1065_s29 = scalar_lea.vmem (!%p314_p8), [#allocation3], %s759_s28  ;;  %p369_p9 = scmp.lt.s32.totalorder (!%p314_p8), %s760_s30, 3 }
  0x28   : > { %v839_v34 = vld [vmem:[%s1065_s29 + $0x4] ss:$8 sps:$4 sm:$0xff] (!%p314_p8)   ;;  %616 = vmatprep.mubr.bf16.mxu0 (!%p314_p8), %v763_v33  ;;  %v841_v35 = vld [vmem:[%s1065_s29] ss:$8 sps:$4 sm:$0xff] (!%p314_p8)   ;;  %v842_v36 = vld [vmem:[%s1065_s29 + $0x14] ss:$8 sps:$4 sm:$0xff] (!%p314_p8)  }
  0x29   : > { %584 = vmatprep.subr.bf16.mxu0 (!%p314_p8), %v839_v34  ;;  %v844_v37 = vld [vmem:[%s1065_s29 + $0x10] ss:$8 sps:$4 sm:$0xff] (!%p314_p8)   ;;  %v845_v38 = vld [vmem:[%s1065_s29 + $0x24] ss:$8 sps:$4 sm:$0xff] (!%p314_p8)   ;;  %v847_v39 = vld [vmem:[%s1065_s29 + $0x20] ss:$8 sps:$4 sm:$0xff] (!%p314_p8)  }
  0x2a   : > { %585 = vmatpush1.bf16.msra.mxu0 (!%p314_p8), %v841_v35  ;;  %v848_v40 = vld [vmem:[%s1065_s29 + $0x34] ss:$8 sps:$4 sm:$0xff] (!%p314_p8)   ;;  %v850_v41 = vld [vmem:[%s1065_s29 + $0x30] ss:$8 sps:$4 sm:$0xff] (!%p314_p8)   ;;  %v851_v42 = vld [vmem:[%s1065_s29 + $0x44] ss:$8 sps:$4 sm:$0xff] (!%p314_p8)  }
  0x2b   : > { %586 = vmatprep.subr.bf16.mxu0 (!%p314_p8), %v842_v36  ;;  %v853_v43 = vld [vmem:[%s1065_s29 + $0x40] ss:$8 sps:$4 sm:$0xff] (!%p314_p8)   ;;  %v854_v44 = vld [vmem:[%s1065_s29 + $0x54] ss:$8 sps:$4 sm:$0xff] (!%p314_p8)   ;;  %v856_v45 = vld [vmem:[%s1065_s29 + $0x50] ss:$8 sps:$4 sm:$0xff] (!%p314_p8)  }
  0x2c   : > { %v857_v46 = vld [vmem:[%s1065_s29 + $0x64] ss:$8 sps:$4 sm:$0xff] (!%p314_p8)   ;;  %v859_v47 = vld [vmem:[%s1065_s29 + $0x60] ss:$8 sps:$4 sm:$0xff] (!%p314_p8)   ;;  %v860_v48 = vld [vmem:[%s1065_s29 + $0x74] ss:$8 sps:$4 sm:$0xff] (!%p314_p8)  }
  0x2d   : > { %v862_v49 = vld [vmem:[%s1065_s29 + $0x70] ss:$8 sps:$4 sm:$0xff]   ;;  %v863_v50 = vld [vmem:[%s1065_s29 + $0x84] ss:$8 sps:$4 sm:$0xff]   ;;  %v865_v51 = vld [vmem:[%s1065_s29 + $0x80] ss:$8 sps:$4 sm:$0xff]  }
  0x2e   : > { %587 = vmatpush1.bf16.msra.mxu0 %v844_v37  ;;  %v866_v52 = vld [vmem:[%s1065_s29 + $0x94] ss:$8 sps:$4 sm:$0xff]   ;;  %v868_v53 = vld [vmem:[%s1065_s29 + $0x90] ss:$8 sps:$4 sm:$0xff]   ;;  %v869_v54 = vld [vmem:[%s1065_s29 + $0xa4] ss:$8 sps:$4 sm:$0xff]  }
  0x2f   : > { %588 = vmatprep.subr.bf16.mxu0 %v845_v38  ;;  %v871_v55 = vld [vmem:[%s1065_s29 + $0xa0] ss:$8 sps:$4 sm:$0xff]   ;;  %v872_v56 = vld [vmem:[%s1065_s29 + $0xb4] ss:$8 sps:$4 sm:$0xff]   ;;  %v874_v57 = vld [vmem:[%s1065_s29 + $0xb0] ss:$8 sps:$4 sm:$0xff]  }
  0x30   : > { %v875_v58 = vld [vmem:[%s1065_s29 + $0xc4] ss:$8 sps:$4 sm:$0xff]   ;;  %v877_v59 = vld [vmem:[%s1065_s29 + $0xc0] ss:$8 sps:$4 sm:$0xff]   ;;  %v878_v60 = vld [vmem:[%s1065_s29 + $0xd4] ss:$8 sps:$4 sm:$0xff]  }
  0x31   : > { %v880_v61 = vld [vmem:[%s1065_s29 + $0xd0] ss:$8 sps:$4 sm:$0xff]   ;;  %v881_v62 = vld [vmem:[%s1065_s29 + $0xe4] ss:$8 sps:$4 sm:$0xff]   ;;  %v883_v63 = vld [vmem:[%s1065_s29 + $0xe0] ss:$8 sps:$4 sm:$0xff]  }
  0x32   : > { %589 = vmatpush1.bf16.msra.mxu0 %v847_v39  ;;  %v884_v0 = vld [vmem:[%s1065_s29 + $0xf4] ss:$8 sps:$4 sm:$0xff]   ;;  %v886_v1 = vld [vmem:[%s1065_s29 + $0xf0] ss:$8 sps:$4 sm:$0xff]   ;;  %s1130_s30 = smov (!%p369_p9, %s760_s30), 3 }
  0x33   : > { %590 = vmatprep.subr.bf16.mxu0 %v848_v40  ;;  %s761_s3 = sshll.u32 %s1130_s30, 3 }
  0x34   : > { %s374_s6 = scalar_lea.vmem %s1122_s2, %s761_s3 }
  0x36   : > { %591 = vmatpush1.bf16.msra.mxu0 %v850_v41 }
  0x37   : > { %592 = vmatprep.subr.bf16.mxu0 %v851_v42 }
  0x3a   : > { %593 = vmatpush1.bf16.msra.mxu0 %v853_v43 }
  0x3b   : > { %594 = vmatprep.subr.bf16.mxu0 %v854_v44 }
  0x3e   : > { %595 = vmatpush1.bf16.msra.mxu0 %v856_v45 }
  0x3f   : > { %596 = vmatprep.subr.bf16.mxu0 %v857_v46 }
  0x42   : > { %597 = vmatpush1.bf16.msra.mxu0 %v859_v47 }
  0x43   : > { %598 = vmatprep.subr.bf16.mxu0 %v860_v48 }
  0x46   : > { %599 = vmatpush1.bf16.msra.mxu0 %v862_v49 }
  0x47   : > { %600 = vmatprep.subr.bf16.mxu0 %v863_v50 }
  0x4a   : > { %601 = vmatpush1.bf16.msra.mxu0 %v865_v51 }
  0x4b   : > { %602 = vmatprep.subr.bf16.mxu0 %v866_v52 }
  0x4e   : > { %603 = vmatpush1.bf16.msra.mxu0 %v868_v53 }
  0x4f   : > { %604 = vmatprep.subr.bf16.mxu0 %v869_v54 }
  0x52   : > { %605 = vmatpush1.bf16.msra.mxu0 %v871_v55 }
  0x53   : > { %606 = vmatprep.subr.bf16.mxu0 %v872_v56 }
  0x56   : > { %607 = vmatpush1.bf16.msra.mxu0 %v874_v57 }
  0x57   : > { %608 = vmatprep.subr.bf16.mxu0 %v875_v58 }
  0x5a   : > { %609 = vmatpush1.bf16.msra.mxu0 %v877_v59 }
  0x5b   : > { %610 = vmatprep.subr.bf16.mxu0 %v878_v60 }
  0x5e   : > { %611 = vmatpush1.bf16.msra.mxu0 %v880_v61 }
  0x5f   : > { %612 = vmatprep.subr.bf16.mxu0 %v881_v62 }
  0x62   : > { %613 = vmatpush1.bf16.msra.mxu0 %v883_v63 }
  0x63   : > { %614 = vmatprep.subr.bf16.mxu0 %v884_v0 }
  0x66   : > { %615 = vmatpush1.bf16.msra.mxu0 %v886_v1 }
  0x69   : > { %617 = vmatmul.mubr.bf16.vlgmr.msra.gmra.mrb[0].mxu0 %v762_v2 }
 0x13c   : > { %v618_v3 = vpop.f32.mrb[0].mxu0 }
 0x13d   : > { %634 = vst [vmem:[%s374_s6] sm:$0xff] %v618_v3  ;;  %v620_v4 = vpop.f32.mrb[1].mxu0 }
 0x13e   : > { %635 = vst [vmem:[%s374_s6 + $0x8] sm:$0xff] %v620_v4  ;;  %v622_v5 = vpop.f32.mrb[2].mxu0 }
 0x13f   : > { %v623_v6 = vpop.f32.mrb[3].mxu0 }
 0x140 PF: > { %s12_s13 = sadd.s32 1, %s927_s13   ;;  %s1123_s9 = smov %s915_s10 }
 0x141   : > { %p9_p10 = scmp.ge.s32.totalorder %s12_s13, 4   ;;  %s1124_s10 = smov %s979_s17 }
 0x142   : > { %s1125_s11 = smov %s923_s12  ;;  %s1126_s12 = smov %s1128_s14 }
 0x143   :  { %11 = sbr.rel (!%p9_p10) target bundleno = 3 (0x3), region = 112 }

// kernel: resnet_simclr_forward.110
= control target key start
LH: loop header
LB: loop body
LE: loop exit
PB: predicated region body
PF: predicated region fallthrough
CT: control target
= control target key end

     0   :  { %v105_v3 = vmov 1983009808   ;;  %v84_v5 = vlaneseq  ;;  %vm70_vm0 = vcmask 1040384   ;;  %s135_s0 = inlined_call_operand.vmem [shape: f32[8,512], index: 0, kind: input, shape index: {}]   ;;  %s136_s1 = inlined_call_operand.vmem [shape: f32[2,512], index: 1, kind: output, shape index: {}]  }
   0x1   :  { %v13_v0 = vld [vmem:[%s135_s0] sm:$0xff]  ;;  %v14_v1 = vld [vmem:[%s135_s0 + $0x8] sm:$0xff]  ;;  %v15_v2 = vld [vmem:[%s135_s0 + $0x10] sm:$0xff]  ;;  %v82_v4 = vunpack.c.l.s4 %v105_v3 }
   0x2   :  { %v16_v6 = vld [vmem:[%s135_s0 + $0x18] sm:$0xff]  ;;  %v17_v7 = vrot.slane %v13_v0, 4  ;;  %v23_v8 = vrot.slane %v14_v1, 4  ;;  %v29_v9 = vrot.slane %v15_v2, 4  ;;  %v41_v10 = vmul.f32 %v13_v0, %v13_v0 }
   0x3   :  { %v35_v11 = vrot.slane %v16_v6, 4  ;;  %v42_v12 = vmul.f32 %v14_v1, %v14_v1  ;;  %v43_v13 = vmul.f32 %v15_v2, %v15_v2  ;;  %v44_v14 = vmul.f32 %v16_v6, %v16_v6 }
   0x4   :  { %v18_v15 = vadd.f32 %v17_v7, %v13_v0  ;;  %v24_v16 = vadd.f32 %v23_v8, %v14_v1  ;;  %v30_v17 = vadd.f32 %v29_v9, %v15_v2  ;;  %v45_v18 = vrot.slane %v41_v10, 4 }
   0x5   :  { %v36_v19 = vadd.f32 %v35_v11, %v16_v6  ;;  %v51_v20 = vrot.slane %v42_v12, 4  ;;  %v57_v21 = vrot.slane %v43_v13, 4  ;;  %v63_v22 = vrot.slane %v44_v14, 4 }
   0x6   :  { %v19_v23 = vrot.slane %v18_v15, 2  ;;  %v25_v24 = vrot.slane %v24_v16, 2  ;;  %v31_v25 = vrot.slane %v30_v17, 2  ;;  %v46_v26 = vadd.f32 %v45_v18, %v41_v10 }
   0x7   :  { %v37_v27 = vrot.slane %v36_v19, 2  ;;  %v52_v28 = vadd.f32 %v51_v20, %v42_v12  ;;  %v58_v29 = vadd.f32 %v57_v21, %v43_v13  ;;  %v64_v30 = vadd.f32 %v63_v22, %v44_v14 }
   0x8   :  { %v20_v31 = vadd.f32 %v19_v23, %v18_v15  ;;  %v26_v32 = vadd.f32 %v25_v24, %v24_v16  ;;  %v32_v33 = vadd.f32 %v31_v25, %v30_v17  ;;  %v47_v34 = vrot.slane %v46_v26, 2 }
   0x9   :  { %v38_v35 = vadd.f32 %v37_v27, %v36_v19  ;;  %v53_v36 = vrot.slane %v52_v28, 2  ;;  %v59_v37 = vrot.slane %v58_v29, 2  ;;  %v65_v38 = vrot.slane %v64_v30, 2 }
   0xa   :  { %v21_v39 = vrot.slane %v20_v31, 1  ;;  %v27_v40 = vrot.slane %v26_v32, 1  ;;  %v33_v41 = vrot.slane %v32_v33, 1  ;;  %v48_v42 = vadd.f32 %v47_v34, %v46_v26 }
   0xb   :  { %v39_v43 = vrot.slane %v38_v35, 1  ;;  %v54_v44 = vadd.f32 %v53_v36, %v52_v28  ;;  %v60_v45 = vadd.f32 %v59_v37, %v58_v29  ;;  %v66_v46 = vadd.f32 %v65_v38, %v64_v30 }
   0xc   :  { %v22_v47 = vadd.f32 %v21_v39, %v20_v31  ;;  %v28_v48 = vadd.f32 %v27_v40, %v26_v32  ;;  %v34_v49 = vadd.f32 %v33_v41, %v32_v33  ;;  %v49_v50 = vrot.slane %v48_v42, 1 }
   0xd   :  { %v40_v51 = vadd.f32 %v39_v43, %v38_v35  ;;  %v55_v52 = vrot.slane %v54_v44, 1  ;;  %v61_v53 = vrot.slane %v60_v45, 1  ;;  %v67_v54 = vrot.slane %v66_v46, 1 }
   0xe   :  { %v50_v55 = vadd.f32 %v49_v50, %v48_v42  ;;  %v83_v56 = vunpack.c.0.s8 %v82_v4  ;;  %v85_v57 = vshrl.u32 %v84_v5, 7 }
   0xf   :  { %v56_v58 = vadd.f32 %v55_v52, %v54_v44  ;;  %v62_v59 = vadd.f32 %v61_v53, %v60_v45  ;;  %v68_v60 = vadd.f32 %v67_v54, %v66_v46 }
  0x10   :  { %v71_v61 = vsel %vm70_vm0, %v22_v47, %v50_v55  ;;  %v86_v62 = vsub.s32 %v83_v56, %v85_v57 }
  0x11   :  { %v72_v63 = vsel %vm70_vm0, %v28_v48, %v56_v58  ;;  %v73_v0 = vsel %vm70_vm0, %v34_v49, %v62_v59  ;;  %v74_v1 = vsel %vm70_vm0, %v40_v51, %v68_v60 }
  0x12   :  { %v79_v2 = vcombine.low %v71_v61, %v72_v63  ;;  %v80_v3 = vcombine.low %v73_v0, %v74_v1 }
  0x14   :  { %v87_v6 = vrot.slane %v79_v2, %v86_v62  ;;  %v94_v7 = vrot.slane %v80_v3, %v86_v62 }
  0x16   :  { %v95_v8 = vcombine.low %v87_v6, %v94_v7 }
  0x18   :  { %98 = vst [vmem:[%s136_s1] sm:$0xff] %v95_v8 }

// kernel: resnet_simclr_forward.111
= control target key start
LH: loop header
LB: loop body
LE: loop exit
PB: predicated region body
PF: predicated region fallthrough
CT: control target
= control target key end

     0   :  { %v20_v0 = vlaneseq  ;;  %s132_s1 = inlined_call_operand.vmem [shape: f32[1,512], index: 1, kind: input, shape index: {}]   ;;  %s133_s2 = inlined_call_operand.vmem [shape: f32[1,512], index: 2, kind: input, shape index: {}]   ;;  %s134_s0 = inlined_call_operand.vmem [shape: f32[8,512], index: 0, kind: input, shape index: {}]   ;;  %s135_s3 = inlined_call_operand.vmem [shape: f32[8,512], index: 3, kind: output, shape index: {}]  }
   0x1   :  { %v18_v2 = vld [vmem:[%s132_s1] sm:$0xf]  ;;  %v15_v9 = vld [vmem:[%s134_s0 + $0x8] sm:$0xff]  ;;  %v16_v14 = vld [vmem:[%s134_s0 + $0x10] sm:$0xff] }
   0x2   :  { %v21_v1 = vshrl.u32 %v20_v0, 7  ;;  %v44_v3 = vld [vmem:[%s133_s2] sm:$0xf]  ;;  %v17_v15 = vld [vmem:[%s134_s0 + $0x18] sm:$0xff] }
   0x3   :  { %v14_v8 = vld [vmem:[%s134_s0] sm:$0xff] }
   0x4   :  { %v22_v4 = vsub.s32 0, %v21_v1  ;;  %v26_v5 = vsub.s32 1, %v21_v1  ;;  %v30_v6 = vsub.s32 2, %v21_v1  ;;  %v34_v7 = vsub.s32 3, %v21_v1 }
   0x6   :  { %v23_v10 = vrot.slane %v18_v2, %v22_v4  ;;  %v49_v11 = vrot.slane %v44_v3, %v22_v4  ;;  %v27_v12 = vrot.slane %v18_v2, %v26_v5  ;;  %v53_v13 = vrot.slane %v44_v3, %v26_v5 }
   0x7   :  { %v31_v16 = vrot.slane %v18_v2, %v30_v6  ;;  %v57_v17 = vrot.slane %v44_v3, %v30_v6  ;;  %v35_v18 = vrot.slane %v18_v2, %v34_v7  ;;  %v61_v19 = vrot.slane %v44_v3, %v34_v7 }
   0x8   :  { %v40_v20 = vmul.f32 %v23_v10, %v14_v8  ;;  %v41_v21 = vmul.f32 %v27_v12, %v15_v9 }
   0x9   :  { %v42_v22 = vmul.f32 %v31_v16, %v16_v14  ;;  %v43_v23 = vmul.f32 %v35_v18, %v17_v15 }
   0xa   :  { %v66_v24 = vadd.f32 %v49_v11, %v40_v20  ;;  %v67_v25 = vadd.f32 %v53_v13, %v41_v21 }
   0xb   :  { %v68_v26 = vadd.f32 %v57_v17, %v42_v22  ;;  %v69_v27 = vadd.f32 %v61_v19, %v43_v23 }
   0xc   :  { %v70_v28 = vmax.f32 %v66_v24, 0.0  ;;  %v71_v29 = vmax.f32 %v67_v25, 0.0 }
   0xd   :  { %v72_v30 = vmax.f32 %v68_v26, 0.0  ;;  %v73_v31 = vmax.f32 %v69_v27, 0.0 }
   0xe   :  { %74 = vst [vmem:[%s135_s3] sm:$0xff] %v70_v28  ;;  %75 = vst [vmem:[%s135_s3 + $0x8] sm:$0xff] %v71_v29 }
   0xf   :  { %76 = vst [vmem:[%s135_s3 + $0x10] sm:$0xff] %v72_v30  ;;  %77 = vst [vmem:[%s135_s3 + $0x18] sm:$0xff] %v73_v31 }

// kernel: resnet_simclr_forward.112
= control target key start
LH: loop header
LB: loop body
LE: loop exit
PB: predicated region body
PF: predicated region fallthrough
CT: control target
= control target key end

     0   :  { %s1437_s9 = smov 0   ;;  %s1439_s10 = smov 0   ;;  %s1737_s0 = inlined_call_operand.vmem [shape: bf16[8,4608], index: 0, kind: input, shape index: {}]   ;;  %s1738_s1 = inlined_call_operand.vmem [shape: bf16[4608,512], index: 1, kind: input, shape index: {}]   ;;  %s1739_s2 = inlined_call_operand.vmem [shape: f32[8,512], index: 2, kind: output, shape index: {}]  }
   0x1   :  { %s1441_s11 = smov 0   ;;  %s1443_s12 = smov 0  }
   0x2   :  { %s1445_s13 = smov 0   ;;  %s1447_s14 = smov 0  }
   0x3   :  { %s1449_s15 = smov 0  }
   0x4 LB: > { %s24_s16 = sadd.s32 1, %s1411_s13  ;;  %s27_s17 = sadd.s32 1, %s1415_s14  ;;  %s1419_s15 = sphi %s1449_s15, %s12_s15   ;;  %s1415_s14 = sphi %s1447_s14, %s1745_s14   ;;  %s1411_s13 = sphi %s1445_s13, %s1744_s13   ;;  %s1407_s12 = sphi %s1443_s12, %s1743_s12   ;;  %s1403_s11 = sphi %s1441_s11, %s1742_s11   ;;  %s1399_s10 = sphi %s1439_s10, %s1741_s10   ;;  %s1395_s9 = sphi %s1437_s9, %s1740_s9  }
   0x5   : > { %p25_p0 = scmp.ge.s32.totalorder %s24_s16, 9  ;;  %p75_p1 = scmp.ne.s32.totalorder %s1399_s10, %s1395_s9 }
   0x6   : > { %p76_p2 = scmp.eq.s32.totalorder %s1419_s15, 0  ;;  %s68_s21 = sadd.s32 1, %s1399_s10 }
   0x7   : > { %s1747_s16 = smov (%p25_p0, %s24_s16), 0  ;;  %s1749_s17 = smov (!%p25_p0, %s27_s17), %s1415_s14 }
   0x8   : > { %p77_p3 = por %p76_p2, %p75_p1  ;;  %p29_p4 = scmp.ge.s32.totalorder %s1749_s17, 2 }
   0x9   : > { %s63_s18 = ssub.s32 %s1411_s13, %s1747_s16  ;;  %p1123_p6 = scmp.ge.s32.totalorder %s1419_s15, 18 }
   0xa   : > { %s1751_s17 = smov (%p29_p4, %s1749_s17), 0 }
   0xb   : > { %s64_s19 = ssub.s32 %s1415_s14, %s1751_s17  ;;  %129 = sbr.rel (%p1123_p6) target bundleno = 57 (0x39), region = 16 }
   0xc   : > { %s65_s20 = sor.u32 %s64_s19, %s63_s18 }
   0xd   : > { %p66_p5 = scmp.eq.s32.totalorder %s65_s20, 0 }
   0xf   : > { %s1488_s22 = scalar_select %p66_p5, %s1399_s10, %s68_s21  }
  0x12   : > { %145 = sbr.rel (!%p77_p3) target bundleno = 57 (0x39), region = 24  ;;  %s147_s23 = sand.u32 (%p77_p3), 1, %s1399_s10  }
  0x13   : > { %s1126_s24 = sshll.u32 (%p77_p3), %s1415_s14, 1  ;;  %s1124_s25 = sshll.u32 (%p77_p3), %s147_s23, 9 }
  0x14   : > { %s1207_s26 = sshll.u32 (%p77_p3), %s1411_s13, 8  ;;  %s1502_s4 = scalar_lea.vmem (%p77_p3), [#allocation3], %s1124_s25 }
  0x15   : > { %s153_s27 = sadd.s32 (%p77_p3), %s1207_s26, %s1126_s24 }
  0x16   : > { %s1128_s28 = sshll.u32 (%p77_p3), %s153_s27, 2 }
  0x17   : > { %s1497_s3 = scalar_lea.vmem (%p77_p3), %s1738_s1, %s1128_s28 }
  0x18   : > { %v309_v0 = vld [vmem:[%s1497_s3] sm:$0xff] (%p77_p3)  ;;  %v311_v1 = vld [vmem:[%s1497_s3 + $0x10] sm:$0xff] (%p77_p3) }
  0x19   : > { %v313_v2 = vld [vmem:[%s1497_s3 + $0x20] sm:$0xff]  ;;  %310 = vst [vmem:[%s1502_s4] sm:$0xff] %v309_v0  ;;  %312 = vst [vmem:[%s1502_s4 + $0x8] sm:$0xff] %v311_v1  ;;  %v315_v3 = vld [vmem:[%s1497_s3 + $0x30] sm:$0xff] }
  0x1a   : > { %314 = vst [vmem:[%s1502_s4 + $0x10] sm:$0xff] %v313_v2  ;;  %v317_v4 = vld [vmem:[%s1497_s3 + $0x40] sm:$0xff]  ;;  %v319_v5 = vld [vmem:[%s1497_s3 + $0x50] sm:$0xff]  ;;  %316 = vst [vmem:[%s1502_s4 + $0x18] sm:$0xff] %v315_v3 }
  0x1b   : > { %318 = vst [vmem:[%s1502_s4 + $0x20] sm:$0xff] %v317_v4  ;;  %320 = vst [vmem:[%s1502_s4 + $0x28] sm:$0xff] %v319_v5  ;;  %v321_v6 = vld [vmem:[%s1497_s3 + $0x60] sm:$0xff]  ;;  %v323_v7 = vld [vmem:[%s1497_s3 + $0x70] sm:$0xff] }
  0x1c   : > { %v325_v8 = vld [vmem:[%s1497_s3 + $0x80] sm:$0xff]  ;;  %322 = vst [vmem:[%s1502_s4 + $0x30] sm:$0xff] %v321_v6  ;;  %324 = vst [vmem:[%s1502_s4 + $0x38] sm:$0xff] %v323_v7  ;;  %v327_v9 = vld [vmem:[%s1497_s3 + $0x90] sm:$0xff] }
  0x1d   : > { %326 = vst [vmem:[%s1502_s4 + $0x40] sm:$0xff] %v325_v8  ;;  %v329_v10 = vld [vmem:[%s1497_s3 + $0xa0] sm:$0xff]  ;;  %v331_v11 = vld [vmem:[%s1497_s3 + $0xb0] sm:$0xff]  ;;  %328 = vst [vmem:[%s1502_s4 + $0x48] sm:$0xff] %v327_v9 }
  0x1e   : > { %330 = vst [vmem:[%s1502_s4 + $0x50] sm:$0xff] %v329_v10  ;;  %332 = vst [vmem:[%s1502_s4 + $0x58] sm:$0xff] %v331_v11  ;;  %v333_v12 = vld [vmem:[%s1497_s3 + $0xc0] sm:$0xff]  ;;  %v335_v13 = vld [vmem:[%s1497_s3 + $0xd0] sm:$0xff] }
  0x1f   : > { %v337_v14 = vld [vmem:[%s1497_s3 + $0xe0] sm:$0xff]  ;;  %334 = vst [vmem:[%s1502_s4 + $0x60] sm:$0xff] %v333_v12  ;;  %336 = vst [vmem:[%s1502_s4 + $0x68] sm:$0xff] %v335_v13  ;;  %v339_v15 = vld [vmem:[%s1497_s3 + $0xf0] sm:$0xff] }
  0x20   : > { %338 = vst [vmem:[%s1502_s4 + $0x70] sm:$0xff] %v337_v14  ;;  %v341_v16 = vld [vmem:[%s1497_s3 + $0x100] sm:$0xff]  ;;  %v343_v17 = vld [vmem:[%s1497_s3 + $0x110] sm:$0xff]  ;;  %340 = vst [vmem:[%s1502_s4 + $0x78] sm:$0xff] %v339_v15 }
  0x21   : > { %342 = vst [vmem:[%s1502_s4 + $0x80] sm:$0xff] %v341_v16  ;;  %344 = vst [vmem:[%s1502_s4 + $0x88] sm:$0xff] %v343_v17  ;;  %v345_v18 = vld [vmem:[%s1497_s3 + $0x120] sm:$0xff]  ;;  %v347_v19 = vld [vmem:[%s1497_s3 + $0x130] sm:$0xff] }
  0x22   : > { %v349_v20 = vld [vmem:[%s1497_s3 + $0x140] sm:$0xff]  ;;  %346 = vst [vmem:[%s1502_s4 + $0x90] sm:$0xff] %v345_v18  ;;  %348 = vst [vmem:[%s1502_s4 + $0x98] sm:$0xff] %v347_v19  ;;  %v351_v21 = vld [vmem:[%s1497_s3 + $0x150] sm:$0xff] }
  0x23   : > { %350 = vst [vmem:[%s1502_s4 + $0xa0] sm:$0xff] %v349_v20  ;;  %v353_v22 = vld [vmem:[%s1497_s3 + $0x160] sm:$0xff]  ;;  %v355_v23 = vld [vmem:[%s1497_s3 + $0x170] sm:$0xff]  ;;  %352 = vst [vmem:[%s1502_s4 + $0xa8] sm:$0xff] %v351_v21 }
  0x24   : > { %354 = vst [vmem:[%s1502_s4 + $0xb0] sm:$0xff] %v353_v22  ;;  %356 = vst [vmem:[%s1502_s4 + $0xb8] sm:$0xff] %v355_v23  ;;  %v357_v24 = vld [vmem:[%s1497_s3 + $0x180] sm:$0xff]  ;;  %v359_v25 = vld [vmem:[%s1497_s3 + $0x190] sm:$0xff] }
  0x25   : > { %v361_v26 = vld [vmem:[%s1497_s3 + $0x1a0] sm:$0xff]  ;;  %358 = vst [vmem:[%s1502_s4 + $0xc0] sm:$0xff] %v357_v24  ;;  %360 = vst [vmem:[%s1502_s4 + $0xc8] sm:$0xff] %v359_v25  ;;  %v363_v27 = vld [vmem:[%s1497_s3 + $0x1b0] sm:$0xff] }
  0x26   : > { %362 = vst [vmem:[%s1502_s4 + $0xd0] sm:$0xff] %v361_v26  ;;  %v365_v28 = vld [vmem:[%s1497_s3 + $0x1c0] sm:$0xff]  ;;  %v367_v29 = vld [vmem:[%s1497_s3 + $0x1d0] sm:$0xff]  ;;  %364 = vst [vmem:[%s1502_s4 + $0xd8] sm:$0xff] %v363_v27 }
  0x27   : > { %366 = vst [vmem:[%s1502_s4 + $0xe0] sm:$0xff] %v365_v28  ;;  %368 = vst [vmem:[%s1502_s4 + $0xe8] sm:$0xff] %v367_v29  ;;  %v369_v30 = vld [vmem:[%s1497_s3 + $0x1e0] sm:$0xff]  ;;  %v371_v31 = vld [vmem:[%s1497_s3 + $0x1f0] sm:$0xff] }
  0x28   : > { %v373_v32 = vld [vmem:[%s1497_s3 + $0x200] sm:$0xff]  ;;  %370 = vst [vmem:[%s1502_s4 + $0xf0] sm:$0xff] %v369_v30  ;;  %372 = vst [vmem:[%s1502_s4 + $0xf8] sm:$0xff] %v371_v31  ;;  %v375_v33 = vld [vmem:[%s1497_s3 + $0x210] sm:$0xff] }
  0x29   : > { %374 = vst [vmem:[%s1502_s4 + $0x100] sm:$0xff] %v373_v32  ;;  %v377_v34 = vld [vmem:[%s1497_s3 + $0x220] sm:$0xff]  ;;  %v379_v35 = vld [vmem:[%s1497_s3 + $0x230] sm:$0xff]  ;;  %376 = vst [vmem:[%s1502_s4 + $0x108] sm:$0xff] %v375_v33 }
  0x2a   : > { %378 = vst [vmem:[%s1502_s4 + $0x110] sm:$0xff] %v377_v34  ;;  %380 = vst [vmem:[%s1502_s4 + $0x118] sm:$0xff] %v379_v35  ;;  %v381_v36 = vld [vmem:[%s1497_s3 + $0x240] sm:$0xff]  ;;  %v383_v37 = vld [vmem:[%s1497_s3 + $0x250] sm:$0xff] }
  0x2b   : > { %v385_v38 = vld [vmem:[%s1497_s3 + $0x260] sm:$0xff]  ;;  %382 = vst [vmem:[%s1502_s4 + $0x120] sm:$0xff] %v381_v36  ;;  %384 = vst [vmem:[%s1502_s4 + $0x128] sm:$0xff] %v383_v37  ;;  %v387_v39 = vld [vmem:[%s1497_s3 + $0x270] sm:$0xff] }
  0x2c   : > { %386 = vst [vmem:[%s1502_s4 + $0x130] sm:$0xff] %v385_v38  ;;  %v389_v40 = vld [vmem:[%s1497_s3 + $0x280] sm:$0xff]  ;;  %v391_v41 = vld [vmem:[%s1497_s3 + $0x290] sm:$0xff]  ;;  %388 = vst [vmem:[%s1502_s4 + $0x138] sm:$0xff] %v387_v39 }
  0x2d   : > { %390 = vst [vmem:[%s1502_s4 + $0x140] sm:$0xff] %v389_v40  ;;  %392 = vst [vmem:[%s1502_s4 + $0x148] sm:$0xff] %v391_v41  ;;  %v393_v42 = vld [vmem:[%s1497_s3 + $0x2a0] sm:$0xff]  ;;  %v395_v43 = vld [vmem:[%s1497_s3 + $0x2b0] sm:$0xff] }
  0x2e   : > { %v397_v44 = vld [vmem:[%s1497_s3 + $0x2c0] sm:$0xff]  ;;  %394 = vst [vmem:[%s1502_s4 + $0x150] sm:$0xff] %v393_v42  ;;  %396 = vst [vmem:[%s1502_s4 + $0x158] sm:$0xff] %v395_v43  ;;  %v399_v45 = vld [vmem:[%s1497_s3 + $0x2d0] sm:$0xff] }
  0x2f   : > { %398 = vst [vmem:[%s1502_s4 + $0x160] sm:$0xff] %v397_v44  ;;  %v401_v46 = vld [vmem:[%s1497_s3 + $0x2e0] sm:$0xff]  ;;  %v403_v47 = vld [vmem:[%s1497_s3 + $0x2f0] sm:$0xff]  ;;  %400 = vst [vmem:[%s1502_s4 + $0x168] sm:$0xff] %v399_v45 }
  0x30   : > { %402 = vst [vmem:[%s1502_s4 + $0x170] sm:$0xff] %v401_v46  ;;  %404 = vst [vmem:[%s1502_s4 + $0x178] sm:$0xff] %v403_v47  ;;  %v405_v48 = vld [vmem:[%s1497_s3 + $0x300] sm:$0xff]  ;;  %v407_v49 = vld [vmem:[%s1497_s3 + $0x310] sm:$0xff] }
  0x31   : > { %v409_v50 = vld [vmem:[%s1497_s3 + $0x320] sm:$0xff]  ;;  %406 = vst [vmem:[%s1502_s4 + $0x180] sm:$0xff] %v405_v48  ;;  %408 = vst [vmem:[%s1502_s4 + $0x188] sm:$0xff] %v407_v49  ;;  %v411_v51 = vld [vmem:[%s1497_s3 + $0x330] sm:$0xff] }
  0x32   : > { %410 = vst [vmem:[%s1502_s4 + $0x190] sm:$0xff] %v409_v50  ;;  %v413_v52 = vld [vmem:[%s1497_s3 + $0x340] sm:$0xff]  ;;  %v415_v53 = vld [vmem:[%s1497_s3 + $0x350] sm:$0xff]  ;;  %412 = vst [vmem:[%s1502_s4 + $0x198] sm:$0xff] %v411_v51 }
  0x33   : > { %414 = vst [vmem:[%s1502_s4 + $0x1a0] sm:$0xff] %v413_v52  ;;  %416 = vst [vmem:[%s1502_s4 + $0x1a8] sm:$0xff] %v415_v53  ;;  %v417_v54 = vld [vmem:[%s1497_s3 + $0x360] sm:$0xff]  ;;  %v419_v55 = vld [vmem:[%s1497_s3 + $0x370] sm:$0xff] }
  0x34   : > { %v421_v56 = vld [vmem:[%s1497_s3 + $0x380] sm:$0xff]  ;;  %418 = vst [vmem:[%s1502_s4 + $0x1b0] sm:$0xff] %v417_v54  ;;  %420 = vst [vmem:[%s1502_s4 + $0x1b8] sm:$0xff] %v419_v55  ;;  %v423_v57 = vld [vmem:[%s1497_s3 + $0x390] sm:$0xff] }
  0x35   : > { %422 = vst [vmem:[%s1502_s4 + $0x1c0] sm:$0xff] %v421_v56  ;;  %v425_v58 = vld [vmem:[%s1497_s3 + $0x3a0] sm:$0xff]  ;;  %v427_v59 = vld [vmem:[%s1497_s3 + $0x3b0] sm:$0xff]  ;;  %424 = vst [vmem:[%s1502_s4 + $0x1c8] sm:$0xff] %v423_v57 }
  0x36   : > { %426 = vst [vmem:[%s1502_s4 + $0x1d0] sm:$0xff] %v425_v58  ;;  %428 = vst [vmem:[%s1502_s4 + $0x1d8] sm:$0xff] %v427_v59  ;;  %v429_v60 = vld [vmem:[%s1497_s3 + $0x3c0] sm:$0xff]  ;;  %v431_v61 = vld [vmem:[%s1497_s3 + $0x3d0] sm:$0xff] }
  0x37   : > { %v433_v62 = vld [vmem:[%s1497_s3 + $0x3e0] sm:$0xff]  ;;  %430 = vst [vmem:[%s1502_s4 + $0x1e0] sm:$0xff] %v429_v60  ;;  %432 = vst [vmem:[%s1502_s4 + $0x1e8] sm:$0xff] %v431_v61  ;;  %v435_v63 = vld [vmem:[%s1497_s3 + $0x3f0] sm:$0xff] }
  0x38   : > { %434 = vst [vmem:[%s1502_s4 + $0x1f0] sm:$0xff] %v433_v62  ;;  %436 = vst [vmem:[%s1502_s4 + $0x1f8] sm:$0xff] %v435_v63 }
  0x39 PF: > { %p1129_p7 = scmp.ge.s32.totalorder %s1419_s15, 1  ;;  %p441_p8 = scmp.lt.s32.totalorder %s1419_s15, 19 }
  0x3b   : > { %p442_p9 = pnand %p1129_p7, %p441_p8 }
  0x3c   : > { %s448_s5 = sand.u32 (!%p442_p9), 1, %s1395_s9   ;;  %s1131_s6 = sshll.u32 (!%p442_p9), %s1403_s11, 2 }
  0x3d   : > { %445 = sbr.rel (%p442_p9) target bundleno = 370 (0x172), region = 62  ;;  %s1130_s7 = sshll.u32 (!%p442_p9), %s448_s5, 9 }
  0x3e   : > { %p485_p10 = scmp.lt.s32.totalorder (!%p442_p9), %s1131_s6, 35  ;;  %s1133_s8 = sshll.u32 (!%p442_p9), %s1407_s12, 1 }
  0x3f   : > { %p497_p11 = scmp.lt.s32.totalorder (!%p442_p9), %s1133_s8, 3  ;;  %s1644_s9 = scalar_lea.vmem (!%p442_p9), [#allocation3], %s1130_s7 }
  0x40   : > { %p1135_p12 = scmp.ne.s32.totalorder (!%p442_p9), %s1403_s11, 0 }
  0x44   : > { %s1753_s6 = smov (!%p485_p10, %s1131_s6), 35  ;;  %s1755_s8 = smov (!%p497_p11, %s1133_s8), 3 }
  0x45   : > { %s1132_s18 = sshll.u32 %s1753_s6, 2  ;;  %s1134_s23 = sshll.u32 %s1755_s8, 3  ;;  %v1421_v0 = vmov (!%p1135_p12), 0.0  }
  0x46   : > { %s1637_s21 = scalar_lea.vmem %s1737_s0, %s1132_s18  ;;  %s1642_s26 = scalar_lea.vmem %s1739_s2, %s1134_s23  ;;  %508 = vst [vmem:[#allocation2] sm:$0xff] (!%p1135_p12), %v1421_v0  ;;  %509 = vst [vmem:[#allocation2 + $0x8] sm:$0xff] (!%p1135_p12), %v1421_v0 }
  0x47   : > { %507 = sbr.rel (%p1135_p12) target bundleno = 78 (0x4e), region = 70 }
  0x4e PF: > { %v1265_v1 = vld [vmem:[%s1644_s9 + $0x4] ss:$8 sps:$4 sm:$0xff]   ;;  %v1269_v3 = vld [vmem:[%s1644_s9] ss:$8 sps:$4 sm:$0xff]   ;;  %v1271_v5 = vld [vmem:[%s1644_s9 + $0x14] ss:$8 sps:$4 sm:$0xff]  }
  0x4f   : > { %v1267_v2 = vld [vmem:[%s1644_s9 + $0x104] ss:$8 sps:$4 sm:$0xff]   ;;  %912 = vmatprep.subr.bf16.mxu0 %v1265_v1  ;;  %v1270_v4 = vld [vmem:[%s1644_s9 + $0x100] ss:$8 sps:$4 sm:$0xff]   ;;  %v1273_v6 = vld [vmem:[%s1644_s9 + $0x114] ss:$8 sps:$4 sm:$0xff]  }
  0x50   : > { %953 = vmatprep.subr.bf16.mxu1 %v1267_v2  ;;  %913 = vmatpush1.bf16.msra.mxu0 %v1269_v3  ;;  %v1275_v7 = vld [vmem:[%s1644_s9 + $0x10] ss:$8 sps:$4 sm:$0xff]   ;;  %v1277_v9 = vld [vmem:[%s1644_s9 + $0x24] ss:$8 sps:$4 sm:$0xff]   ;;  %v1281_v11 = vld [vmem:[%s1644_s9 + $0x20] ss:$8 sps:$4 sm:$0xff]  }
  0x51   : > { %954 = vmatpush1.bf16.msra.mxu1 %v1270_v4  ;;  %914 = vmatprep.subr.bf16.mxu0 %v1271_v5  ;;  %v1276_v8 = vld [vmem:[%s1644_s9 + $0x110] ss:$8 sps:$4 sm:$0xff]   ;;  %v1279_v10 = vld [vmem:[%s1644_s9 + $0x124] ss:$8 sps:$4 sm:$0xff]   ;;  %v1282_v12 = vld [vmem:[%s1644_s9 + $0x120] ss:$8 sps:$4 sm:$0xff]  }
  0x52   : > { %955 = vmatprep.subr.bf16.mxu1 %v1273_v6  ;;  %v1283_v13 = vld [vmem:[%s1644_s9 + $0x34] ss:$8 sps:$4 sm:$0xff]   ;;  %v1287_v15 = vld [vmem:[%s1644_s9 + $0x30] ss:$8 sps:$4 sm:$0xff]   ;;  %v1289_v17 = vld [vmem:[%s1644_s9 + $0x44] ss:$8 sps:$4 sm:$0xff]  }
  0x53   : > { %v1285_v14 = vld [vmem:[%s1644_s9 + $0x134] ss:$8 sps:$4 sm:$0xff]   ;;  %v1288_v16 = vld [vmem:[%s1644_s9 + $0x130] ss:$8 sps:$4 sm:$0xff]   ;;  %v1291_v18 = vld [vmem:[%s1644_s9 + $0x144] ss:$8 sps:$4 sm:$0xff]  }
  0x54   : > { %915 = vmatpush1.bf16.msra.mxu0 %v1275_v7  ;;  %v1293_v19 = vld [vmem:[%s1644_s9 + $0x40] ss:$8 sps:$4 sm:$0xff]   ;;  %v1295_v21 = vld [vmem:[%s1644_s9 + $0x54] ss:$8 sps:$4 sm:$0xff]   ;;  %v1299_v23 = vld [vmem:[%s1644_s9 + $0x50] ss:$8 sps:$4 sm:$0xff]  }
  0x55   : > { %956 = vmatpush1.bf16.msra.mxu1 %v1276_v8  ;;  %916 = vmatprep.subr.bf16.mxu0 %v1277_v9  ;;  %v1294_v20 = vld [vmem:[%s1644_s9 + $0x140] ss:$8 sps:$4 sm:$0xff]   ;;  %v1297_v22 = vld [vmem:[%s1644_s9 + $0x154] ss:$8 sps:$4 sm:$0xff]   ;;  %v1300_v24 = vld [vmem:[%s1644_s9 + $0x150] ss:$8 sps:$4 sm:$0xff]  }
  0x56   : > { %957 = vmatprep.subr.bf16.mxu1 %v1279_v10  ;;  %v1301_v25 = vld [vmem:[%s1644_s9 + $0x64] ss:$8 sps:$4 sm:$0xff]   ;;  %v1305_v27 = vld [vmem:[%s1644_s9 + $0x60] ss:$8 sps:$4 sm:$0xff]   ;;  %v1307_v29 = vld [vmem:[%s1644_s9 + $0x74] ss:$8 sps:$4 sm:$0xff]  }
  0x57   : > { %v1303_v26 = vld [vmem:[%s1644_s9 + $0x164] ss:$8 sps:$4 sm:$0xff]   ;;  %v1306_v28 = vld [vmem:[%s1644_s9 + $0x160] ss:$8 sps:$4 sm:$0xff]   ;;  %v1309_v30 = vld [vmem:[%s1644_s9 + $0x174] ss:$8 sps:$4 sm:$0xff]  }
  0x58   : > { %917 = vmatpush1.bf16.msra.mxu0 %v1281_v11  ;;  %v1311_v31 = vld [vmem:[%s1644_s9 + $0x70] ss:$8 sps:$4 sm:$0xff]   ;;  %v1313_v33 = vld [vmem:[%s1644_s9 + $0x84] ss:$8 sps:$4 sm:$0xff]   ;;  %v1317_v35 = vld [vmem:[%s1644_s9 + $0x80] ss:$8 sps:$4 sm:$0xff]  }
  0x59   : > { %958 = vmatpush1.bf16.msra.mxu1 %v1282_v12  ;;  %918 = vmatprep.subr.bf16.mxu0 %v1283_v13  ;;  %v1312_v32 = vld [vmem:[%s1644_s9 + $0x170] ss:$8 sps:$4 sm:$0xff]   ;;  %v1315_v34 = vld [vmem:[%s1644_s9 + $0x184] ss:$8 sps:$4 sm:$0xff]   ;;  %v1318_v36 = vld [vmem:[%s1644_s9 + $0x180] ss:$8 sps:$4 sm:$0xff]  }
  0x5a   : > { %959 = vmatprep.subr.bf16.mxu1 %v1285_v14  ;;  %v1319_v37 = vld [vmem:[%s1644_s9 + $0x94] ss:$8 sps:$4 sm:$0xff]   ;;  %v1323_v39 = vld [vmem:[%s1644_s9 + $0x90] ss:$8 sps:$4 sm:$0xff]   ;;  %v1325_v41 = vld [vmem:[%s1644_s9 + $0xa4] ss:$8 sps:$4 sm:$0xff]  }
  0x5b   : > { %v1321_v38 = vld [vmem:[%s1644_s9 + $0x194] ss:$8 sps:$4 sm:$0xff]   ;;  %v1324_v40 = vld [vmem:[%s1644_s9 + $0x190] ss:$8 sps:$4 sm:$0xff]   ;;  %v1327_v42 = vld [vmem:[%s1644_s9 + $0x1a4] ss:$8 sps:$4 sm:$0xff]  }
  0x5c   : > { %919 = vmatpush1.bf16.msra.mxu0 %v1287_v15  ;;  %v1329_v43 = vld [vmem:[%s1644_s9 + $0xa0] ss:$8 sps:$4 sm:$0xff]   ;;  %v1331_v45 = vld [vmem:[%s1644_s9 + $0xb4] ss:$8 sps:$4 sm:$0xff]   ;;  %v1335_v50 = vld [vmem:[%s1644_s9 + $0xb0] ss:$8 sps:$4 sm:$0xff]  }
  0x5d   : > { %960 = vmatpush1.bf16.msra.mxu1 %v1288_v16  ;;  %920 = vmatprep.subr.bf16.mxu0 %v1289_v17  ;;  %v1330_v44 = vld [vmem:[%s1644_s9 + $0x1a0] ss:$8 sps:$4 sm:$0xff]   ;;  %v1333_v46 = vld [vmem:[%s1644_s9 + $0x1b4] ss:$8 sps:$4 sm:$0xff]   ;;  %v1336_v51 = vld [vmem:[%s1644_s9 + $0x1b0] ss:$8 sps:$4 sm:$0xff]  }
  0x5e   : > { %961 = vmatprep.subr.bf16.mxu1 %v1291_v18  ;;  %v512_v47 = vld [vmem:[%s1637_s21] sm:$0xff]  ;;  %v513_v49 = vld [vmem:[%s1637_s21 + $0x8] sm:$0xff]  ;;  %v1337_v53 = vld [vmem:[%s1644_s9 + $0xc4] ss:$8 sps:$4 sm:$0xff]   ;;  %p1204_p13 = scmp.ne.s32.totalorder %s1403_s11, 8 }
  0x5f   : > { %v1137_v48 = vcombine.high %v512_v47, %v512_v47  ;;  %v1139_v52 = vcombine.high %v513_v49, %v513_v49  ;;  %v1339_v54 = vld [vmem:[%s1644_s9 + $0x1c4] ss:$8 sps:$4 sm:$0xff]   ;;  %v1341_v55 = vld [vmem:[%s1644_s9 + $0xc0] ss:$8 sps:$4 sm:$0xff]   ;;  %v1343_v57 = vld [vmem:[%s1644_s9 + $0xd4] ss:$8 sps:$4 sm:$0xff]   ;;  %v1136_v5 = vcombine.low %v512_v47, %v512_v47  ;;  %v1138_v6 = vcombine.low %v513_v49, %v513_v49 }
  0x60   : > { %921 = vmatpush1.bf16.msra.mxu0 %v1293_v19  ;;  %v1342_v56 = vld [vmem:[%s1644_s9 + $0x1c0] ss:$8 sps:$4 sm:$0xff]   ;;  %v1345_v58 = vld [vmem:[%s1644_s9 + $0x1d4] ss:$8 sps:$4 sm:$0xff]   ;;  %v1347_v59 = vld [vmem:[%s1644_s9 + $0xd0] ss:$8 sps:$4 sm:$0xff]  }
  0x61   : > { %962 = vmatpush1.bf16.msra.mxu1 %v1294_v20  ;;  %922 = vmatprep.subr.bf16.mxu0 %v1295_v21  ;;  %v1348_v60 = vld [vmem:[%s1644_s9 + $0x1d0] ss:$8 sps:$4 sm:$0xff]   ;;  %v1349_v61 = vld [vmem:[%s1644_s9 + $0xe4] ss:$8 sps:$4 sm:$0xff]   ;;  %v1353_v63 = vld [vmem:[%s1644_s9 + $0xe0] ss:$8 sps:$4 sm:$0xff]  }
  0x62   : > { %963 = vmatprep.subr.bf16.mxu1 %v1297_v22  ;;  %944 = vmatprep.mubr.bf16.mxu0 %v1137_v48  ;;  %v1351_v62 = vld [vmem:[%s1644_s9 + $0x1e4] ss:$8 sps:$4 sm:$0xff]   ;;  %v1354_v0 = vld [vmem:[%s1644_s9 + $0x1e0] ss:$8 sps:$4 sm:$0xff]   ;;  %v1355_v1 = vld [vmem:[%s1644_s9 + $0xf4] ss:$8 sps:$4 sm:$0xff]  }
  0x63   : > { %985 = vmatprep.mubr.bf16.mxu1 %v1139_v52  ;;  %v1357_v2 = vld [vmem:[%s1644_s9 + $0x1f4] ss:$8 sps:$4 sm:$0xff]   ;;  %v1359_v3 = vld [vmem:[%s1644_s9 + $0xf0] ss:$8 sps:$4 sm:$0xff]  }
  0x64   : > { %923 = vmatpush1.bf16.msra.mxu0 %v1299_v23  ;;  %v1360_v4 = vld [vmem:[%s1644_s9 + $0x1f0] ss:$8 sps:$4 sm:$0xff]  }
  0x65   : > { %964 = vmatpush1.bf16.msra.mxu1 %v1300_v24  ;;  %924 = vmatprep.subr.bf16.mxu0 %v1301_v25  ;;  %v510_v8 = vld [vmem:[#allocation2] sm:$0xff]  ;;  %v511_v12 = vld [vmem:[#allocation2 + $0x8] sm:$0xff] }
  0x66   : > { %965 = vmatprep.subr.bf16.mxu1 %v1303_v26 }
  0x68   : > { %925 = vmatpush1.bf16.msra.mxu0 %v1305_v27 }
  0x69   : > { %966 = vmatpush1.bf16.msra.mxu1 %v1306_v28  ;;  %926 = vmatprep.subr.bf16.mxu0 %v1307_v29 }
  0x6a   : > { %967 = vmatprep.subr.bf16.mxu1 %v1309_v30 }
  0x6c   : > { %927 = vmatpush1.bf16.msra.mxu0 %v1311_v31 }
  0x6d   : > { %968 = vmatpush1.bf16.msra.mxu1 %v1312_v32  ;;  %928 = vmatprep.subr.bf16.mxu0 %v1313_v33 }
  0x6e   : > { %969 = vmatprep.subr.bf16.mxu1 %v1315_v34 }
  0x70   : > { %929 = vmatpush1.bf16.msra.mxu0 %v1317_v35 }
  0x71   : > { %970 = vmatpush1.bf16.msra.mxu1 %v1318_v36  ;;  %930 = vmatprep.subr.bf16.mxu0 %v1319_v37 }
  0x72   : > { %971 = vmatprep.subr.bf16.mxu1 %v1321_v38 }
  0x74   : > { %931 = vmatpush1.bf16.msra.mxu0 %v1323_v39 }
  0x75   : > { %972 = vmatpush1.bf16.msra.mxu1 %v1324_v40  ;;  %932 = vmatprep.subr.bf16.mxu0 %v1325_v41 }
  0x76   : > { %973 = vmatprep.subr.bf16.mxu1 %v1327_v42 }
  0x78   : > { %933 = vmatpush1.bf16.msra.mxu0 %v1329_v43 }
  0x79   : > { %974 = vmatpush1.bf16.msra.mxu1 %v1330_v44  ;;  %934 = vmatprep.subr.bf16.mxu0 %v1331_v45 }
  0x7a   : > { %975 = vmatprep.subr.bf16.mxu1 %v1333_v46 }
  0x7c   : > { %935 = vmatpush1.bf16.msra.mxu0 %v1335_v50 }
  0x7d   : > { %976 = vmatpush1.bf16.msra.mxu1 %v1336_v51  ;;  %936 = vmatprep.subr.bf16.mxu0 %v1337_v53 }
  0x7e   : > { %977 = vmatprep.subr.bf16.mxu1 %v1339_v54 }
  0x80   : > { %937 = vmatpush1.bf16.msra.mxu0 %v1341_v55 }
  0x81   : > { %978 = vmatpush1.bf16.msra.mxu1 %v1342_v56  ;;  %938 = vmatprep.subr.bf16.mxu0 %v1343_v57 }
  0x82   : > { %979 = vmatprep.subr.bf16.mxu1 %v1345_v58 }
  0x84   : > { %939 = vmatpush1.bf16.msra.mxu0 %v1347_v59 }
  0x85   : > { %980 = vmatpush1.bf16.msra.mxu1 %v1348_v60  ;;  %940 = vmatprep.subr.bf16.mxu0 %v1349_v61 }
  0x86   : > { %981 = vmatprep.subr.bf16.mxu1 %v1351_v62 }
  0x88   : > { %941 = vmatpush1.bf16.msra.mxu0 %v1353_v63 }
  0x89   : > { %982 = vmatpush1.bf16.msra.mxu1 %v1354_v0  ;;  %942 = vmatprep.subr.bf16.mxu0 %v1355_v1 }
  0x8a   : > { %983 = vmatprep.subr.bf16.mxu1 %v1357_v2 }
  0x8c   : > { %943 = vmatpush1.bf16.msra.mxu0 %v1359_v3 }
  0x8d   : > { %984 = vmatpush1.bf16.msra.mxu1 %v1360_v4 }
  0x8f   : > { %945 = vmatmul.mubr.bf16.vlgmr.msra.gmra.mrb[0].mxu0 %v1136_v5 }
  0x90   : > { %986 = vmatmul.mubr.bf16.vlgmr.msra.gmra.mrb[0].mxu1 %v1138_v6 }
 0x162   : > { %v946_v7 = vpop.f32.mrb[0].mxu0 }
 0x163   : > { %v987_v9 = vpop.f32.mrb[0].mxu1  ;;  %v948_v11 = vpop.f32.mrb[1].mxu0  ;;  %1001 = sbr.rel (%p1204_p13) target bundleno = 370 (0x172), region = 74 }
 0x164   : > { %v988_v10 = vadd.f32 %v987_v9, %v946_v7  ;;  %v989_v13 = vpop.f32.mrb[1].mxu1  ;;  %v950_v15 = vpop.f32.mrb[2].mxu0 }
 0x165   : > { %v990_v14 = vadd.f32 %v989_v13, %v948_v11  ;;  %v991_v16 = vpop.f32.mrb[2].mxu1  ;;  %v951_v18 = vpop.f32.mrb[3].mxu0 }
 0x166   : > { %v994_v17 = vadd.f32 %v988_v10, %v510_v8  ;;  %v992_v19 = vpop.f32.mrb[3].mxu1 }
 0x167   : > { %v995_v20 = vadd.f32 %v990_v14, %v511_v12 }
 0x168   : > { %996 = vst [vmem:[#allocation2] sm:$0xff] %v994_v17 }
 0x169   : > { %997 = vst [vmem:[#allocation2 + $0x8] sm:$0xff] %v995_v20 }
 0x16f   : > { %v1002_v21 = vld [vmem:[#allocation2] sm:$0xff] }
 0x170   : > { %v1003_v22 = vld [vmem:[#allocation2 + $0x8] sm:$0xff]  ;;  %1004 = vst [vmem:[%s1642_s26] sm:$0xff] %v1002_v21 }
 0x171   : > { %1005 = vst [vmem:[%s1642_s26 + $0x8] sm:$0xff] %v1003_v22 }
 0x172 PF: > { %s12_s15 = sadd.s32 1, %s1419_s15   ;;  %s1740_s9 = smov %s1399_s10 }
 0x173   : > { %p9_p0 = scmp.ge.s32.totalorder %s12_s15, 20   ;;  %s1741_s10 = smov %s1488_s22 }
 0x174   : > { %s1742_s11 = smov %s1411_s13  ;;  %s1743_s12 = smov %s1415_s14 }
 0x175   : > { %s1744_s13 = smov %s1747_s16  ;;  %s1745_s14 = smov %s1751_s17 }
 0x176   :  { %11 = sbr.rel (!%p9_p0) target bundleno = 4 (0x4), region = 112 }

// kernel: resnet_simclr_forward.115
= control target key start
LH: loop header
LB: loop body
LE: loop exit
PB: predicated region body
PF: predicated region fallthrough
CT: control target
= control target key end

     0   :  { %v20_v0 = vlaneseq  ;;  %s128_s1 = inlined_call_operand.vmem [shape: f32[1,512], index: 1, kind: input, shape index: {}]   ;;  %s129_s2 = inlined_call_operand.vmem [shape: f32[1,512], index: 2, kind: input, shape index: {}]   ;;  %s130_s0 = inlined_call_operand.vmem [shape: f32[8,512], index: 0, kind: input, shape index: {}]   ;;  %s131_s3 = inlined_call_operand.vmem [shape: f32[8,512], index: 3, kind: output, shape index: {}]  }
   0x1   :  { %v18_v2 = vld [vmem:[%s128_s1] sm:$0xf]  ;;  %v15_v9 = vld [vmem:[%s130_s0 + $0x8] sm:$0xff]  ;;  %v16_v14 = vld [vmem:[%s130_s0 + $0x10] sm:$0xff] }
   0x2   :  { %v21_v1 = vshrl.u32 %v20_v0, 7  ;;  %v44_v3 = vld [vmem:[%s129_s2] sm:$0xf]  ;;  %v17_v15 = vld [vmem:[%s130_s0 + $0x18] sm:$0xff] }
   0x3   :  { %v14_v8 = vld [vmem:[%s130_s0] sm:$0xff] }
   0x4   :  { %v22_v4 = vsub.s32 0, %v21_v1  ;;  %v26_v5 = vsub.s32 1, %v21_v1  ;;  %v30_v6 = vsub.s32 2, %v21_v1  ;;  %v34_v7 = vsub.s32 3, %v21_v1 }
   0x6   :  { %v23_v10 = vrot.slane %v18_v2, %v22_v4  ;;  %v49_v11 = vrot.slane %v44_v3, %v22_v4  ;;  %v27_v12 = vrot.slane %v18_v2, %v26_v5  ;;  %v53_v13 = vrot.slane %v44_v3, %v26_v5 }
   0x7   :  { %v31_v16 = vrot.slane %v18_v2, %v30_v6  ;;  %v57_v17 = vrot.slane %v44_v3, %v30_v6  ;;  %v35_v18 = vrot.slane %v18_v2, %v34_v7  ;;  %v61_v19 = vrot.slane %v44_v3, %v34_v7 }
   0x8   :  { %v40_v20 = vmul.f32 %v23_v10, %v14_v8  ;;  %v41_v21 = vmul.f32 %v27_v12, %v15_v9 }
   0x9   :  { %v42_v22 = vmul.f32 %v31_v16, %v16_v14  ;;  %v43_v23 = vmul.f32 %v35_v18, %v17_v15 }
   0xa   :  { %v66_v24 = vadd.f32 %v49_v11, %v40_v20  ;;  %v67_v25 = vadd.f32 %v53_v13, %v41_v21 }
   0xb   :  { %v68_v26 = vadd.f32 %v57_v17, %v42_v22  ;;  %v69_v27 = vadd.f32 %v61_v19, %v43_v23 }
   0xc   :  { %70 = vst [vmem:[%s131_s3] sm:$0xff] %v66_v24  ;;  %71 = vst [vmem:[%s131_s3 + $0x8] sm:$0xff] %v67_v25 }
   0xd   :  { %72 = vst [vmem:[%s131_s3 + $0x10] sm:$0xff] %v68_v26  ;;  %73 = vst [vmem:[%s131_s3 + $0x18] sm:$0xff] %v69_v27 }

// kernel: resnet_simclr_forward.117
= control target key start
LH: loop header
LB: loop body
LE: loop exit
PB: predicated region body
PF: predicated region fallthrough
CT: control target
= control target key end

     0   :  { %v23_v0 = vlaneseq  ;;  %s160_s1 = inlined_call_operand.vmem [shape: f32[1,512], index: 1, kind: input, shape index: {}]   ;;  %s161_s2 = inlined_call_operand.vmem [shape: f32[1,512], index: 2, kind: input, shape index: {}]   ;;  %s162_s0 = inlined_call_operand.vmem [shape: f32[8,512], index: 0, kind: input, shape index: {}]   ;;  %s163_s3 = inlined_call_operand.vmem [shape: f32[8,512], index: 3, kind: input, shape index: {}]   ;;  %s164_s4 = inlined_call_operand.vmem [shape: f32[8,512], index: 4, kind: output, shape index: {}]  }
   0x1   :  { %v21_v2 = vld [vmem:[%s160_s1] sm:$0xf]  ;;  %v18_v9 = vld [vmem:[%s162_s0 + $0x8] sm:$0xff]  ;;  %v19_v14 = vld [vmem:[%s162_s0 + $0x10] sm:$0xff] }
   0x2   :  { %v24_v1 = vshrl.u32 %v23_v0, 7  ;;  %v47_v3 = vld [vmem:[%s161_s2] sm:$0xf]  ;;  %v20_v15 = vld [vmem:[%s162_s0 + $0x18] sm:$0xff]  ;;  %v74_v23 = vld [vmem:[%s163_s3 + $0x8] sm:$0xff] }
   0x3   :  { %v17_v8 = vld [vmem:[%s162_s0] sm:$0xff]  ;;  %v75_v28 = vld [vmem:[%s163_s3 + $0x10] sm:$0xff]  ;;  %v76_v29 = vld [vmem:[%s163_s3 + $0x18] sm:$0xff] }
   0x4   :  { %v25_v4 = vsub.s32 0, %v24_v1  ;;  %v29_v5 = vsub.s32 1, %v24_v1  ;;  %v33_v6 = vsub.s32 2, %v24_v1  ;;  %v37_v7 = vsub.s32 3, %v24_v1  ;;  %v73_v22 = vld [vmem:[%s163_s3] sm:$0xff] }
   0x6   :  { %v26_v10 = vrot.slane %v21_v2, %v25_v4  ;;  %v52_v11 = vrot.slane %v47_v3, %v25_v4  ;;  %v30_v12 = vrot.slane %v21_v2, %v29_v5  ;;  %v56_v13 = vrot.slane %v47_v3, %v29_v5 }
   0x7   :  { %v34_v16 = vrot.slane %v21_v2, %v33_v6  ;;  %v60_v17 = vrot.slane %v47_v3, %v33_v6  ;;  %v38_v18 = vrot.slane %v21_v2, %v37_v7  ;;  %v64_v19 = vrot.slane %v47_v3, %v37_v7 }
   0x8   :  { %v43_v20 = vmul.f32 %v26_v10, %v17_v8  ;;  %v44_v21 = vmul.f32 %v30_v12, %v18_v9 }
   0x9   :  { %v45_v24 = vmul.f32 %v34_v16, %v19_v14  ;;  %v46_v25 = vmul.f32 %v38_v18, %v20_v15 }
   0xa   :  { %v69_v26 = vadd.f32 %v52_v11, %v43_v20  ;;  %v70_v27 = vadd.f32 %v56_v13, %v44_v21 }
   0xb   :  { %v71_v30 = vadd.f32 %v60_v17, %v45_v24  ;;  %v72_v31 = vadd.f32 %v64_v19, %v46_v25 }
   0xc   :  { %v77_v32 = vadd.f32 %v73_v22, %v69_v26  ;;  %v78_v33 = vadd.f32 %v74_v23, %v70_v27 }
   0xd   :  { %v79_v34 = vadd.f32 %v75_v28, %v71_v30  ;;  %v80_v35 = vadd.f32 %v76_v29, %v72_v31 }
   0xe   :  { %v81_v36 = vmax.f32 %v77_v32, 0.0  ;;  %v82_v37 = vmax.f32 %v78_v33, 0.0 }
   0xf   :  { %v83_v38 = vmax.f32 %v79_v34, 0.0  ;;  %v84_v39 = vmax.f32 %v80_v35, 0.0 }
  0x10   :  { %85 = vst [vmem:[%s164_s4] sm:$0xff] %v81_v36  ;;  %86 = vst [vmem:[%s164_s4 + $0x8] sm:$0xff] %v82_v37 }
  0x11   :  { %87 = vst [vmem:[%s164_s4 + $0x10] sm:$0xff] %v83_v38  ;;  %88 = vst [vmem:[%s164_s4 + $0x18] sm:$0xff] %v84_v39 }

// kernel: resnet_simclr_forward.124
= control target key start
LH: loop header
LB: loop body
LE: loop exit
PB: predicated region body
PF: predicated region fallthrough
CT: control target
= control target key end

     0   :  { %s46_s0 = inlined_call_operand.vmem [shape: f32[2,1,512], index: 0, kind: input, shape index: {}]   ;;  %s47_s1 = inlined_call_operand.vmem [shape: f32[2,512], index: 1, kind: output, shape index: {}]  }
   0x1   :  { %v29_v0 = vld [vmem:[%s46_s0] sm:$0xff]  }
   0x2   :  { %28 = vst.sshfl [vmem:[%s47_s1] sm:$0xff pattern:$0x75316420] %v29_v0 }

// kernel: resnet_simclr_forward.125
= control target key start
LH: loop header
LB: loop body
LE: loop exit
PB: predicated region body
PF: predicated region fallthrough
CT: control target
= control target key end

     0   :  { %s2327_s1 = inlined_call_operand.vmem [shape: bf16[512,512], index: 1, kind: input, shape index: {}]   ;;  %s2328_s0 = inlined_call_operand.vmem [shape: bf16[8,512], index: 0, kind: input, shape index: {}]   ;;  %s2329_s3 = inlined_call_operand.vmem [shape: bf16[512,128], index: 3, kind: input, shape index: {}]   ;;  %s2330_s2 = inlined_call_operand.vmem [shape: f32[1,512], index: 2, kind: input, shape index: {}]   ;;  %s2331_s4 = inlined_call_operand.vmem [shape: f32[1,128], index: 4, kind: input, shape index: {}]   ;;  %s2332_s5 = inlined_call_operand.vmem [shape: f32[8,128], index: 5, kind: output, shape index: {}]  }
   0x1   :  { %v1568_v0 = vld [vmem:[%s2327_s1 + $0x4] ss:$16 sps:$4 sm:$0xff]   ;;  %v1570_v1 = vld [vmem:[%s2327_s1 + $0xc] ss:$16 sps:$4 sm:$0xff]   ;;  %v1572_v2 = vld [vmem:[%s2327_s1] ss:$16 sps:$4 sm:$0xff]  }
   0x2   :  { %827 = vmatprep.subr.bf16.mxu0 %v1568_v0  ;;  %v1573_v3 = vld [vmem:[%s2327_s1 + $0x8] ss:$16 sps:$4 sm:$0xff]   ;;  %909 = vmatprep.subr.bf16.mxu1 %v1570_v1  ;;  %v1574_v4 = vld [vmem:[%s2327_s1 + $0x24] ss:$16 sps:$4 sm:$0xff]   ;;  %v1576_v5 = vld [vmem:[%s2327_s1 + $0x2c] ss:$16 sps:$4 sm:$0xff]  }
   0x3   :  { %828 = vmatpush1.bf16.msra.mxu0 %v1572_v2  ;;  %910 = vmatpush1.bf16.msra.mxu1 %v1573_v3  ;;  %v1578_v6 = vld [vmem:[%s2327_s1 + $0x20] ss:$16 sps:$4 sm:$0xff]   ;;  %v1579_v7 = vld [vmem:[%s2327_s1 + $0x28] ss:$16 sps:$4 sm:$0xff]   ;;  %v1580_v8 = vld [vmem:[%s2327_s1 + $0x44] ss:$16 sps:$4 sm:$0xff]  }
   0x4   :  { %829 = vmatprep.subr.bf16.mxu0 %v1574_v4  ;;  %911 = vmatprep.subr.bf16.mxu1 %v1576_v5  ;;  %v1582_v9 = vld [vmem:[%s2327_s1 + $0x4c] ss:$16 sps:$4 sm:$0xff]   ;;  %v1584_v10 = vld [vmem:[%s2327_s1 + $0x40] ss:$16 sps:$4 sm:$0xff]   ;;  %v1585_v11 = vld [vmem:[%s2327_s1 + $0x48] ss:$16 sps:$4 sm:$0xff]  }
   0x5   :  { %v1586_v12 = vld [vmem:[%s2327_s1 + $0x64] ss:$16 sps:$4 sm:$0xff]   ;;  %v1588_v13 = vld [vmem:[%s2327_s1 + $0x6c] ss:$16 sps:$4 sm:$0xff]   ;;  %v1590_v14 = vld [vmem:[%s2327_s1 + $0x60] ss:$16 sps:$4 sm:$0xff]  }
   0x6   :  { %v1591_v15 = vld [vmem:[%s2327_s1 + $0x68] ss:$16 sps:$4 sm:$0xff]   ;;  %v1592_v16 = vld [vmem:[%s2327_s1 + $0x84] ss:$16 sps:$4 sm:$0xff]   ;;  %v1594_v17 = vld [vmem:[%s2327_s1 + $0x8c] ss:$16 sps:$4 sm:$0xff]  }
   0x7   :  { %830 = vmatpush1.bf16.msra.mxu0 %v1578_v6  ;;  %912 = vmatpush1.bf16.msra.mxu1 %v1579_v7  ;;  %v1596_v18 = vld [vmem:[%s2327_s1 + $0x80] ss:$16 sps:$4 sm:$0xff]   ;;  %v1597_v19 = vld [vmem:[%s2327_s1 + $0x88] ss:$16 sps:$4 sm:$0xff]   ;;  %v1598_v20 = vld [vmem:[%s2327_s1 + $0xa4] ss:$16 sps:$4 sm:$0xff]  }
   0x8   :  { %831 = vmatprep.subr.bf16.mxu0 %v1580_v8  ;;  %913 = vmatprep.subr.bf16.mxu1 %v1582_v9  ;;  %v1600_v21 = vld [vmem:[%s2327_s1 + $0xac] ss:$16 sps:$4 sm:$0xff]   ;;  %v1602_v22 = vld [vmem:[%s2327_s1 + $0xa0] ss:$16 sps:$4 sm:$0xff]   ;;  %v1603_v23 = vld [vmem:[%s2327_s1 + $0xa8] ss:$16 sps:$4 sm:$0xff]  }
   0x9   :  { %v1604_v24 = vld [vmem:[%s2327_s1 + $0xc4] ss:$16 sps:$4 sm:$0xff]   ;;  %v1606_v25 = vld [vmem:[%s2327_s1 + $0xcc] ss:$16 sps:$4 sm:$0xff]   ;;  %v1608_v26 = vld [vmem:[%s2327_s1 + $0xc0] ss:$16 sps:$4 sm:$0xff]  }
   0xa   :  { %v1609_v27 = vld [vmem:[%s2327_s1 + $0xc8] ss:$16 sps:$4 sm:$0xff]   ;;  %v1610_v28 = vld [vmem:[%s2327_s1 + $0xe4] ss:$16 sps:$4 sm:$0xff]   ;;  %v1612_v29 = vld [vmem:[%s2327_s1 + $0xec] ss:$16 sps:$4 sm:$0xff]  }
   0xb   :  { %832 = vmatpush1.bf16.msra.mxu0 %v1584_v10  ;;  %914 = vmatpush1.bf16.msra.mxu1 %v1585_v11  ;;  %v1614_v30 = vld [vmem:[%s2327_s1 + $0xe0] ss:$16 sps:$4 sm:$0xff]   ;;  %v1615_v31 = vld [vmem:[%s2327_s1 + $0xe8] ss:$16 sps:$4 sm:$0xff]   ;;  %v1616_v32 = vld [vmem:[%s2327_s1 + $0x104] ss:$16 sps:$4 sm:$0xff]  }
   0xc   :  { %833 = vmatprep.subr.bf16.mxu0 %v1586_v12  ;;  %915 = vmatprep.subr.bf16.mxu1 %v1588_v13  ;;  %v1618_v33 = vld [vmem:[%s2327_s1 + $0x10c] ss:$16 sps:$4 sm:$0xff]   ;;  %v1620_v34 = vld [vmem:[%s2327_s1 + $0x100] ss:$16 sps:$4 sm:$0xff]   ;;  %v1621_v35 = vld [vmem:[%s2327_s1 + $0x108] ss:$16 sps:$4 sm:$0xff]  }
   0xd   :  { %v1622_v36 = vld [vmem:[%s2327_s1 + $0x124] ss:$16 sps:$4 sm:$0xff]   ;;  %v1624_v37 = vld [vmem:[%s2327_s1 + $0x12c] ss:$16 sps:$4 sm:$0xff]   ;;  %v1626_v38 = vld [vmem:[%s2327_s1 + $0x120] ss:$16 sps:$4 sm:$0xff]  }
   0xe   :  { %v1627_v39 = vld [vmem:[%s2327_s1 + $0x128] ss:$16 sps:$4 sm:$0xff]   ;;  %v1628_v40 = vld [vmem:[%s2327_s1 + $0x144] ss:$16 sps:$4 sm:$0xff]   ;;  %v1630_v41 = vld [vmem:[%s2327_s1 + $0x14c] ss:$16 sps:$4 sm:$0xff]  }
   0xf   :  { %834 = vmatpush1.bf16.msra.mxu0 %v1590_v14  ;;  %916 = vmatpush1.bf16.msra.mxu1 %v1591_v15  ;;  %v1632_v42 = vld [vmem:[%s2327_s1 + $0x140] ss:$16 sps:$4 sm:$0xff]   ;;  %v1633_v43 = vld [vmem:[%s2327_s1 + $0x148] ss:$16 sps:$4 sm:$0xff]   ;;  %v1634_v44 = vld [vmem:[%s2327_s1 + $0x164] ss:$16 sps:$4 sm:$0xff]  }
  0x10   :  { %835 = vmatprep.subr.bf16.mxu0 %v1592_v16  ;;  %917 = vmatprep.subr.bf16.mxu1 %v1594_v17  ;;  %v1636_v45 = vld [vmem:[%s2327_s1 + $0x16c] ss:$16 sps:$4 sm:$0xff]   ;;  %v21_v46 = vld [vmem:[%s2328_s0] sm:$0xff]  ;;  %v1639_v49 = vld [vmem:[%s2327_s1 + $0x168] ss:$16 sps:$4 sm:$0xff]  }
  0x11   :  { %v1348_v47 = vcombine.high %v21_v46, %v21_v46  ;;  %v1638_v48 = vld [vmem:[%s2327_s1 + $0x160] ss:$16 sps:$4 sm:$0xff]   ;;  %v1640_v50 = vld [vmem:[%s2327_s1 + $0x184] ss:$16 sps:$4 sm:$0xff]   ;;  %v1642_v51 = vld [vmem:[%s2327_s1 + $0x18c] ss:$16 sps:$4 sm:$0xff]   ;;  %v1347_v5 = vcombine.low %v21_v46, %v21_v46 }
  0x12   :  { %v1644_v52 = vld [vmem:[%s2327_s1 + $0x180] ss:$16 sps:$4 sm:$0xff]   ;;  %v1645_v53 = vld [vmem:[%s2327_s1 + $0x188] ss:$16 sps:$4 sm:$0xff]   ;;  %v1646_v54 = vld [vmem:[%s2327_s1 + $0x1a4] ss:$16 sps:$4 sm:$0xff]  }
  0x13   :  { %836 = vmatpush1.bf16.msra.mxu0 %v1596_v18  ;;  %918 = vmatpush1.bf16.msra.mxu1 %v1597_v19  ;;  %v1648_v55 = vld [vmem:[%s2327_s1 + $0x1ac] ss:$16 sps:$4 sm:$0xff]   ;;  %v1650_v56 = vld [vmem:[%s2327_s1 + $0x1a0] ss:$16 sps:$4 sm:$0xff]   ;;  %v1651_v57 = vld [vmem:[%s2327_s1 + $0x1a8] ss:$16 sps:$4 sm:$0xff]  }
  0x14   :  { %837 = vmatprep.subr.bf16.mxu0 %v1598_v20  ;;  %919 = vmatprep.subr.bf16.mxu1 %v1600_v21  ;;  %v1652_v58 = vld [vmem:[%s2327_s1 + $0x1c4] ss:$16 sps:$4 sm:$0xff]   ;;  %v1654_v59 = vld [vmem:[%s2327_s1 + $0x1cc] ss:$16 sps:$4 sm:$0xff]   ;;  %v1656_v60 = vld [vmem:[%s2327_s1 + $0x1c0] ss:$16 sps:$4 sm:$0xff]  }
  0x15   :  { %859 = vmatprep.mubr.bf16.mxu0 %v1348_v47  ;;  %941 = vmatprep.mubr.bf16.mxu1 %v1348_v47  ;;  %v1657_v61 = vld [vmem:[%s2327_s1 + $0x1c8] ss:$16 sps:$4 sm:$0xff]   ;;  %v1658_v62 = vld [vmem:[%s2327_s1 + $0x1e4] ss:$16 sps:$4 sm:$0xff]   ;;  %v1660_v63 = vld [vmem:[%s2327_s1 + $0x1ec] ss:$16 sps:$4 sm:$0xff]  }
  0x16   :  { %v1662_v0 = vld [vmem:[%s2327_s1 + $0x1e0] ss:$16 sps:$4 sm:$0xff]   ;;  %v1663_v1 = vld [vmem:[%s2327_s1 + $0x1e8] ss:$16 sps:$4 sm:$0xff]   ;;  %v1669_v2 = vld [vmem:[%s2327_s1 + $0x204] ss:$16 sps:$4 sm:$0xff]  }
  0x17   :  { %838 = vmatpush1.bf16.msra.mxu0 %v1602_v22  ;;  %920 = vmatpush1.bf16.msra.mxu1 %v1603_v23  ;;  %v1672_v3 = vld [vmem:[%s2327_s1 + $0x20c] ss:$16 sps:$4 sm:$0xff]   ;;  %v1667_v6 = vld [vmem:[%s2327_s1 + $0x200] ss:$16 sps:$4 sm:$0xff]   ;;  %v1670_v7 = vld [vmem:[%s2327_s1 + $0x208] ss:$16 sps:$4 sm:$0xff]  }
  0x18   :  { %839 = vmatprep.subr.bf16.mxu0 %v1604_v24  ;;  %921 = vmatprep.subr.bf16.mxu1 %v1606_v25  ;;  %v2030_v4 = vld [vmem:[%s2328_s0 + $0x8] sm:$0xff]  ;;  %v1675_v8 = vld [vmem:[%s2327_s1 + $0x224] ss:$16 sps:$4 sm:$0xff]   ;;  %v1673_v11 = vld [vmem:[%s2327_s1 + $0x220] ss:$16 sps:$4 sm:$0xff]  }
  0x19   :  { %v1678_v9 = vld [vmem:[%s2327_s1 + $0x22c] ss:$16 sps:$4 sm:$0xff]   ;;  %v1350_v10 = vcombine.high %v2030_v4, %v2030_v4  ;;  %v1676_v12 = vld [vmem:[%s2327_s1 + $0x228] ss:$16 sps:$4 sm:$0xff]   ;;  %v1681_v13 = vld [vmem:[%s2327_s1 + $0x244] ss:$16 sps:$4 sm:$0xff]  }
  0x1a   :  { %v1684_v14 = vld [vmem:[%s2327_s1 + $0x24c] ss:$16 sps:$4 sm:$0xff]   ;;  %v1679_v15 = vld [vmem:[%s2327_s1 + $0x240] ss:$16 sps:$4 sm:$0xff]   ;;  %v1682_v16 = vld [vmem:[%s2327_s1 + $0x248] ss:$16 sps:$4 sm:$0xff]  }
  0x1b   :  { %840 = vmatpush1.bf16.msra.mxu0 %v1608_v26  ;;  %922 = vmatpush1.bf16.msra.mxu1 %v1609_v27  ;;  %v1687_v17 = vld [vmem:[%s2327_s1 + $0x264] ss:$16 sps:$4 sm:$0xff]   ;;  %v1690_v18 = vld [vmem:[%s2327_s1 + $0x26c] ss:$16 sps:$4 sm:$0xff]   ;;  %v1685_v19 = vld [vmem:[%s2327_s1 + $0x260] ss:$16 sps:$4 sm:$0xff]  }
  0x1c   :  { %841 = vmatprep.subr.bf16.mxu0 %v1610_v28  ;;  %923 = vmatprep.subr.bf16.mxu1 %v1612_v29  ;;  %v1688_v20 = vld [vmem:[%s2327_s1 + $0x268] ss:$16 sps:$4 sm:$0xff]   ;;  %v1693_v21 = vld [vmem:[%s2327_s1 + $0x284] ss:$16 sps:$4 sm:$0xff]   ;;  %v1696_v22 = vld [vmem:[%s2327_s1 + $0x28c] ss:$16 sps:$4 sm:$0xff]  }
  0x1d   :  { %v1691_v23 = vld [vmem:[%s2327_s1 + $0x280] ss:$16 sps:$4 sm:$0xff]   ;;  %v1694_v24 = vld [vmem:[%s2327_s1 + $0x288] ss:$16 sps:$4 sm:$0xff]   ;;  %v1699_v25 = vld [vmem:[%s2327_s1 + $0x2a4] ss:$16 sps:$4 sm:$0xff]  }
  0x1e   :  { %v1702_v26 = vld [vmem:[%s2327_s1 + $0x2ac] ss:$16 sps:$4 sm:$0xff]   ;;  %v1697_v27 = vld [vmem:[%s2327_s1 + $0x2a0] ss:$16 sps:$4 sm:$0xff]   ;;  %v1700_v28 = vld [vmem:[%s2327_s1 + $0x2a8] ss:$16 sps:$4 sm:$0xff]  }
  0x1f   :  { %842 = vmatpush1.bf16.msra.mxu0 %v1614_v30  ;;  %924 = vmatpush1.bf16.msra.mxu1 %v1615_v31  ;;  %v1705_v29 = vld [vmem:[%s2327_s1 + $0x2c4] ss:$16 sps:$4 sm:$0xff]   ;;  %v1708_v30 = vld [vmem:[%s2327_s1 + $0x2cc] ss:$16 sps:$4 sm:$0xff]   ;;  %v1703_v31 = vld [vmem:[%s2327_s1 + $0x2c0] ss:$16 sps:$4 sm:$0xff]  }
  0x20   :  { %843 = vmatprep.subr.bf16.mxu0 %v1616_v32  ;;  %925 = vmatprep.subr.bf16.mxu1 %v1618_v33  ;;  %v1706_v32 = vld [vmem:[%s2327_s1 + $0x2c8] ss:$16 sps:$4 sm:$0xff]   ;;  %v1711_v33 = vld [vmem:[%s2327_s1 + $0x2e4] ss:$16 sps:$4 sm:$0xff]   ;;  %v1732_v46 = vld [vmem:[%s2327_s1 + $0x34c] ss:$16 sps:$4 sm:$0xff]  }
  0x21   :  { %v1727_v47 = vld [vmem:[%s2327_s1 + $0x340] ss:$16 sps:$4 sm:$0xff]  }
  0x23   :  { %844 = vmatpush1.bf16.msra.mxu0 %v1620_v34  ;;  %926 = vmatpush1.bf16.msra.mxu1 %v1621_v35  ;;  %v1714_v34 = vld [vmem:[%s2327_s1 + $0x2ec] ss:$16 sps:$4 sm:$0xff]   ;;  %v1709_v35 = vld [vmem:[%s2327_s1 + $0x2e0] ss:$16 sps:$4 sm:$0xff]  }
  0x24   :  { %845 = vmatprep.subr.bf16.mxu0 %v1622_v36  ;;  %927 = vmatprep.subr.bf16.mxu1 %v1624_v37  ;;  %v1712_v36 = vld [vmem:[%s2327_s1 + $0x2e8] ss:$16 sps:$4 sm:$0xff]   ;;  %v1717_v37 = vld [vmem:[%s2327_s1 + $0x304] ss:$16 sps:$4 sm:$0xff]  }
  0x27   :  { %846 = vmatpush1.bf16.msra.mxu0 %v1626_v38  ;;  %928 = vmatpush1.bf16.msra.mxu1 %v1627_v39  ;;  %v1720_v38 = vld [vmem:[%s2327_s1 + $0x30c] ss:$16 sps:$4 sm:$0xff]   ;;  %v1715_v39 = vld [vmem:[%s2327_s1 + $0x300] ss:$16 sps:$4 sm:$0xff]  }
  0x28   :  { %847 = vmatprep.subr.bf16.mxu0 %v1628_v40  ;;  %929 = vmatprep.subr.bf16.mxu1 %v1630_v41  ;;  %v1718_v40 = vld [vmem:[%s2327_s1 + $0x308] ss:$16 sps:$4 sm:$0xff]   ;;  %v1723_v41 = vld [vmem:[%s2327_s1 + $0x324] ss:$16 sps:$4 sm:$0xff]  }
  0x2b   :  { %848 = vmatpush1.bf16.msra.mxu0 %v1632_v42  ;;  %930 = vmatpush1.bf16.msra.mxu1 %v1633_v43  ;;  %v1726_v42 = vld [vmem:[%s2327_s1 + $0x32c] ss:$16 sps:$4 sm:$0xff]   ;;  %v1721_v43 = vld [vmem:[%s2327_s1 + $0x320] ss:$16 sps:$4 sm:$0xff]  }
  0x2c   :  { %849 = vmatprep.subr.bf16.mxu0 %v1634_v44  ;;  %931 = vmatprep.subr.bf16.mxu1 %v1636_v45  ;;  %v1724_v44 = vld [vmem:[%s2327_s1 + $0x328] ss:$16 sps:$4 sm:$0xff]   ;;  %v1729_v45 = vld [vmem:[%s2327_s1 + $0x344] ss:$16 sps:$4 sm:$0xff]  }
  0x2f   :  { %850 = vmatpush1.bf16.msra.mxu0 %v1638_v48  ;;  %932 = vmatpush1.bf16.msra.mxu1 %v1639_v49  ;;  %v1730_v48 = vld [vmem:[%s2327_s1 + $0x348] ss:$16 sps:$4 sm:$0xff]   ;;  %v1735_v49 = vld [vmem:[%s2327_s1 + $0x364] ss:$16 sps:$4 sm:$0xff]  }
  0x30   :  { %851 = vmatprep.subr.bf16.mxu0 %v1640_v50  ;;  %933 = vmatprep.subr.bf16.mxu1 %v1642_v51  ;;  %v1738_v50 = vld [vmem:[%s2327_s1 + $0x36c] ss:$16 sps:$4 sm:$0xff]   ;;  %v1733_v51 = vld [vmem:[%s2327_s1 + $0x360] ss:$16 sps:$4 sm:$0xff]  }
  0x33   :  { %852 = vmatpush1.bf16.msra.mxu0 %v1644_v52  ;;  %934 = vmatpush1.bf16.msra.mxu1 %v1645_v53  ;;  %v1736_v52 = vld [vmem:[%s2327_s1 + $0x368] ss:$16 sps:$4 sm:$0xff]   ;;  %v1741_v53 = vld [vmem:[%s2327_s1 + $0x384] ss:$16 sps:$4 sm:$0xff]  }
  0x34   :  { %853 = vmatprep.subr.bf16.mxu0 %v1646_v54  ;;  %935 = vmatprep.subr.bf16.mxu1 %v1648_v55  ;;  %v1744_v54 = vld [vmem:[%s2327_s1 + $0x38c] ss:$16 sps:$4 sm:$0xff]   ;;  %v1739_v55 = vld [vmem:[%s2327_s1 + $0x380] ss:$16 sps:$4 sm:$0xff]  }
  0x37   :  { %854 = vmatpush1.bf16.msra.mxu0 %v1650_v56  ;;  %936 = vmatpush1.bf16.msra.mxu1 %v1651_v57  ;;  %v1742_v56 = vld [vmem:[%s2327_s1 + $0x388] ss:$16 sps:$4 sm:$0xff]   ;;  %v1747_v57 = vld [vmem:[%s2327_s1 + $0x3a4] ss:$16 sps:$4 sm:$0xff]  }
  0x38   :  { %855 = vmatprep.subr.bf16.mxu0 %v1652_v58  ;;  %937 = vmatprep.subr.bf16.mxu1 %v1654_v59  ;;  %v1750_v58 = vld [vmem:[%s2327_s1 + $0x3ac] ss:$16 sps:$4 sm:$0xff]   ;;  %v1745_v59 = vld [vmem:[%s2327_s1 + $0x3a0] ss:$16 sps:$4 sm:$0xff]  }
  0x3b   :  { %856 = vmatpush1.bf16.msra.mxu0 %v1656_v60  ;;  %938 = vmatpush1.bf16.msra.mxu1 %v1657_v61  ;;  %v1748_v60 = vld [vmem:[%s2327_s1 + $0x3a8] ss:$16 sps:$4 sm:$0xff]   ;;  %v1753_v61 = vld [vmem:[%s2327_s1 + $0x3c4] ss:$16 sps:$4 sm:$0xff]  }
  0x3c   :  { %857 = vmatprep.subr.bf16.mxu0 %v1658_v62  ;;  %939 = vmatprep.subr.bf16.mxu1 %v1660_v63  ;;  %v1756_v62 = vld [vmem:[%s2327_s1 + $0x3cc] ss:$16 sps:$4 sm:$0xff]   ;;  %v1751_v63 = vld [vmem:[%s2327_s1 + $0x3c0] ss:$16 sps:$4 sm:$0xff]  }
  0x3f   :  { %858 = vmatpush1.bf16.msra.mxu0 %v1662_v0  ;;  %940 = vmatpush1.bf16.msra.mxu1 %v1663_v1  ;;  %v1754_v0 = vld [vmem:[%s2327_s1 + $0x3c8] ss:$16 sps:$4 sm:$0xff]   ;;  %v1759_v1 = vld [vmem:[%s2327_s1 + $0x3e4] ss:$16 sps:$4 sm:$0xff]  }
  0x40   :  { %868 = vmatprep.subr.bf16.mxu0 %v1669_v2  ;;  %950 = vmatprep.subr.bf16.mxu1 %v1672_v3  ;;  %v1762_v2 = vld [vmem:[%s2327_s1 + $0x3ec] ss:$16 sps:$4 sm:$0xff]   ;;  %v1757_v3 = vld [vmem:[%s2327_s1 + $0x3e0] ss:$16 sps:$4 sm:$0xff]  }
  0x42   :  { %860 = vmatmul.mubr.bf16.vlgmr.msra.gmra.mrb[0].mxu0 %v1347_v5  ;;  %942 = vmatmul.mubr.bf16.vlgmr.msra.gmra.mrb[0].mxu1 %v1347_v5  ;;  %v1760_v5 = vld [vmem:[%s2327_s1 + $0x3e8] ss:$16 sps:$4 sm:$0xff]  }
  0x43   :  { %869 = vmatpush1.bf16.msra.mxu0 %v1667_v6  ;;  %951 = vmatpush1.bf16.msra.mxu1 %v1670_v7  ;;  %v1764_v6 = vld [vmem:[%s2329_s3 + $0x40] sm:$0xff]  }
  0x44   :  { %870 = vmatprep.subr.bf16.mxu0 %v1675_v8  ;;  %952 = vmatprep.subr.bf16.mxu1 %v1678_v9  ;;  %v1765_v7 = vld [vmem:[%s2329_s3 + $0xc0] sm:$0xff]   ;;  %v1349_v8 = vcombine.low %v2030_v4, %v2030_v4  ;;  %v1769_v4 = vld [vmem:[%s2329_s3 + $0xc8] sm:$0xff]  }
  0x45   :  { %900 = vmatprep.mubr.bf16.mxu0 %v1350_v10  ;;  %982 = vmatprep.mubr.bf16.mxu1 %v1350_v10  ;;  %v1766_v9 = vld [vmem:[%s2329_s3] sm:$0xff]  }
  0x46   :  { %v1767_v10 = vld [vmem:[%s2329_s3 + $0x80] sm:$0xff]  }
  0x47   :  { %871 = vmatpush1.bf16.msra.mxu0 %v1673_v11  ;;  %953 = vmatpush1.bf16.msra.mxu1 %v1676_v12  ;;  %v1768_v11 = vld [vmem:[%s2329_s3 + $0x48] sm:$0xff]  }
  0x48   :  { %872 = vmatprep.subr.bf16.mxu0 %v1681_v13  ;;  %954 = vmatprep.subr.bf16.mxu1 %v1684_v14  ;;  %v1770_v12 = vld [vmem:[%s2329_s3 + $0x8] sm:$0xff]   ;;  %v1772_v14 = vld [vmem:[%s2329_s3 + $0x50] sm:$0xff]  }
  0x49   :  { %v1771_v13 = vld [vmem:[%s2329_s3 + $0x88] sm:$0xff]  }
  0x4b   :  { %873 = vmatpush1.bf16.msra.mxu0 %v1679_v15  ;;  %955 = vmatpush1.bf16.msra.mxu1 %v1682_v16  ;;  %v1773_v15 = vld [vmem:[%s2329_s3 + $0xd0] sm:$0xff]  }
  0x4c   :  { %874 = vmatprep.subr.bf16.mxu0 %v1687_v17  ;;  %956 = vmatprep.subr.bf16.mxu1 %v1690_v18  ;;  %v1774_v16 = vld [vmem:[%s2329_s3 + $0x10] sm:$0xff]   ;;  %v1776_v18 = vld [vmem:[%s2329_s3 + $0x58] sm:$0xff]  }
  0x4d   :  { %v1775_v17 = vld [vmem:[%s2329_s3 + $0x90] sm:$0xff]  }
  0x4f   :  { %875 = vmatpush1.bf16.msra.mxu0 %v1685_v19  ;;  %957 = vmatpush1.bf16.msra.mxu1 %v1688_v20  ;;  %v1777_v19 = vld [vmem:[%s2329_s3 + $0xd8] sm:$0xff]  }
  0x50   :  { %876 = vmatprep.subr.bf16.mxu0 %v1693_v21  ;;  %958 = vmatprep.subr.bf16.mxu1 %v1696_v22  ;;  %v1778_v20 = vld [vmem:[%s2329_s3 + $0x18] sm:$0xff]   ;;  %v1780_v22 = vld [vmem:[%s2329_s3 + $0x60] sm:$0xff]  }
  0x51   :  { %v1779_v21 = vld [vmem:[%s2329_s3 + $0x98] sm:$0xff]  }
  0x53   :  { %877 = vmatpush1.bf16.msra.mxu0 %v1691_v23  ;;  %959 = vmatpush1.bf16.msra.mxu1 %v1694_v24  ;;  %v1781_v23 = vld [vmem:[%s2329_s3 + $0xe0] sm:$0xff]  }
  0x54   :  { %878 = vmatprep.subr.bf16.mxu0 %v1699_v25  ;;  %960 = vmatprep.subr.bf16.mxu1 %v1702_v26  ;;  %v1782_v24 = vld [vmem:[%s2329_s3 + $0x20] sm:$0xff]   ;;  %v1784_v26 = vld [vmem:[%s2329_s3 + $0x68] sm:$0xff]  }
  0x55   :  { %v1783_v25 = vld [vmem:[%s2329_s3 + $0xa0] sm:$0xff]  }
  0x57   :  { %879 = vmatpush1.bf16.msra.mxu0 %v1697_v27  ;;  %961 = vmatpush1.bf16.msra.mxu1 %v1700_v28  ;;  %v1785_v27 = vld [vmem:[%s2329_s3 + $0xe8] sm:$0xff]  }
  0x58   :  { %880 = vmatprep.subr.bf16.mxu0 %v1705_v29  ;;  %962 = vmatprep.subr.bf16.mxu1 %v1708_v30  ;;  %v1786_v28 = vld [vmem:[%s2329_s3 + $0x28] sm:$0xff]   ;;  %v1788_v30 = vld [vmem:[%s2329_s3 + $0x70] sm:$0xff]  }
  0x59   :  { %v1787_v29 = vld [vmem:[%s2329_s3 + $0xa8] sm:$0xff]  }
  0x5b   :  { %881 = vmatpush1.bf16.msra.mxu0 %v1703_v31  ;;  %963 = vmatpush1.bf16.msra.mxu1 %v1706_v32  ;;  %v1789_v31 = vld [vmem:[%s2329_s3 + $0xf0] sm:$0xff]  }
  0x5c   :  { %882 = vmatprep.subr.bf16.mxu0 %v1711_v33  ;;  %964 = vmatprep.subr.bf16.mxu1 %v1714_v34  ;;  %v1790_v32 = vld [vmem:[%s2329_s3 + $0x30] sm:$0xff]   ;;  %v1792_v34 = vld [vmem:[%s2329_s3 + $0x78] sm:$0xff]  }
  0x5d   :  { %v1791_v33 = vld [vmem:[%s2329_s3 + $0xb0] sm:$0xff]  }
  0x5f   :  { %883 = vmatpush1.bf16.msra.mxu0 %v1709_v35  ;;  %965 = vmatpush1.bf16.msra.mxu1 %v1712_v36  ;;  %v1793_v35 = vld [vmem:[%s2329_s3 + $0xf8] sm:$0xff]  }
  0x60   :  { %884 = vmatprep.subr.bf16.mxu0 %v1717_v37  ;;  %966 = vmatprep.subr.bf16.mxu1 %v1720_v38  ;;  %v1794_v36 = vld [vmem:[%s2329_s3 + $0x38] sm:$0xff]   ;;  %v153_v38 = vlaneseq }
  0x61   :  { %v1795_v37 = vld [vmem:[%s2329_s3 + $0xb8] sm:$0xff]  }
  0x63   :  { %885 = vmatpush1.bf16.msra.mxu0 %v1715_v39  ;;  %967 = vmatpush1.bf16.msra.mxu1 %v1718_v40  ;;  %v154_v39 = vshrl.u32 %v153_v38, 7 }
  0x64   :  { %886 = vmatprep.subr.bf16.mxu0 %v1723_v41  ;;  %968 = vmatprep.subr.bf16.mxu1 %v1726_v42  ;;  %v151_v42 = vld [vmem:[%s2330_s2] sm:$0xf] }
  0x65   :  { %v155_v40 = vsub.s32 0, %v154_v39  ;;  %v163_v41 = vsub.s32 2, %v154_v39 }
  0x67   :  { %887 = vmatpush1.bf16.msra.mxu0 %v1721_v43  ;;  %969 = vmatpush1.bf16.msra.mxu1 %v1724_v44  ;;  %v159_v43 = vsub.s32 1, %v154_v39  ;;  %v167_v44 = vsub.s32 3, %v154_v39 }
  0x68   :  { %888 = vmatprep.subr.bf16.mxu0 %v1729_v45  ;;  %970 = vmatprep.subr.bf16.mxu1 %v1732_v46  ;;  %v156_v45 = vrot.slane %v151_v42, %v155_v40  ;;  %v164_v46 = vrot.slane %v151_v42, %v163_v41 }
  0x6b   :  { %889 = vmatpush1.bf16.msra.mxu0 %v1727_v47  ;;  %971 = vmatpush1.bf16.msra.mxu1 %v1730_v48  ;;  %v160_v47 = vrot.slane %v151_v42, %v159_v43  ;;  %v168_v48 = vrot.slane %v151_v42, %v167_v44 }
  0x6c   :  { %890 = vmatprep.subr.bf16.mxu0 %v1735_v49  ;;  %972 = vmatprep.subr.bf16.mxu1 %v1738_v50 }
  0x6f   :  { %891 = vmatpush1.bf16.msra.mxu0 %v1733_v51  ;;  %973 = vmatpush1.bf16.msra.mxu1 %v1736_v52 }
  0x70   :  { %892 = vmatprep.subr.bf16.mxu0 %v1741_v53  ;;  %974 = vmatprep.subr.bf16.mxu1 %v1744_v54 }
  0x73   :  { %893 = vmatpush1.bf16.msra.mxu0 %v1739_v55  ;;  %975 = vmatpush1.bf16.msra.mxu1 %v1742_v56 }
  0x74   :  { %894 = vmatprep.subr.bf16.mxu0 %v1747_v57  ;;  %976 = vmatprep.subr.bf16.mxu1 %v1750_v58 }
  0x77   :  { %895 = vmatpush1.bf16.msra.mxu0 %v1745_v59  ;;  %977 = vmatpush1.bf16.msra.mxu1 %v1748_v60 }
  0x78   :  { %896 = vmatprep.subr.bf16.mxu0 %v1753_v61  ;;  %978 = vmatprep.subr.bf16.mxu1 %v1756_v62 }
  0x7b   :  { %897 = vmatpush1.bf16.msra.mxu0 %v1751_v63  ;;  %979 = vmatpush1.bf16.msra.mxu1 %v1754_v0 }
  0x7c   :  { %898 = vmatprep.subr.bf16.mxu0 %v1759_v1  ;;  %980 = vmatprep.subr.bf16.mxu1 %v1762_v2 }
  0x7f   :  { %899 = vmatpush1.bf16.msra.mxu0 %v1757_v3  ;;  %981 = vmatpush1.bf16.msra.mxu1 %v1760_v5 }
  0x80   :  { %1512 = vmatprep.subr.bf16.mxu0 %v1764_v6  ;;  %1534 = vmatprep.subr.bf16.mxu1 %v1765_v7 }
  0x82   :  { %901 = vmatmul.mubr.bf16.vlgmr.msra.gmra.mrb[0].mxu0 %v1349_v8  ;;  %983 = vmatmul.mubr.bf16.vlgmr.msra.gmra.mrb[0].mxu1 %v1349_v8  ;;  %v1479_v8 = vld [vmem:[%s2331_s4] ss:$0 sm:$0xff] }
  0x83   :  { %1513 = vmatpush3.bf16.msra.mxu0 %v1766_v9  ;;  %1535 = vmatpush3.bf16.msra.mxu1 %v1767_v10 }
  0x84   :  { %1514 = vmatprep.subr.bf16.mxu0 %v1768_v11  ;;  %1536 = vmatprep.subr.bf16.mxu1 %v1769_v4 }
  0x87   :  { %1515 = vmatpush3.bf16.msra.mxu0 %v1770_v12  ;;  %1537 = vmatpush3.bf16.msra.mxu1 %v1771_v13 }
  0x88   :  { %1516 = vmatprep.subr.bf16.mxu0 %v1772_v14  ;;  %1538 = vmatprep.subr.bf16.mxu1 %v1773_v15 }
  0x8b   :  { %1517 = vmatpush3.bf16.msra.mxu0 %v1774_v16  ;;  %1539 = vmatpush3.bf16.msra.mxu1 %v1775_v17 }
  0x8c   :  { %1518 = vmatprep.subr.bf16.mxu0 %v1776_v18  ;;  %1540 = vmatprep.subr.bf16.mxu1 %v1777_v19 }
  0x8f   :  { %1519 = vmatpush3.bf16.msra.mxu0 %v1778_v20  ;;  %1541 = vmatpush3.bf16.msra.mxu1 %v1779_v21 }
  0x90   :  { %1520 = vmatprep.subr.bf16.mxu0 %v1780_v22  ;;  %1542 = vmatprep.subr.bf16.mxu1 %v1781_v23 }
  0x93   :  { %1521 = vmatpush3.bf16.msra.mxu0 %v1782_v24  ;;  %1543 = vmatpush3.bf16.msra.mxu1 %v1783_v25 }
  0x94   :  { %1522 = vmatprep.subr.bf16.mxu0 %v1784_v26  ;;  %1544 = vmatprep.subr.bf16.mxu1 %v1785_v27 }
  0x97   :  { %1523 = vmatpush3.bf16.msra.mxu0 %v1786_v28  ;;  %1545 = vmatpush3.bf16.msra.mxu1 %v1787_v29 }
  0x98   :  { %1524 = vmatprep.subr.bf16.mxu0 %v1788_v30  ;;  %1546 = vmatprep.subr.bf16.mxu1 %v1789_v31 }
  0x9b   :  { %1525 = vmatpush3.bf16.msra.mxu0 %v1790_v32  ;;  %1547 = vmatpush3.bf16.msra.mxu1 %v1791_v33 }
  0x9c   :  { %1526 = vmatprep.subr.bf16.mxu0 %v1792_v34  ;;  %1548 = vmatprep.subr.bf16.mxu1 %v1793_v35 }
  0x9f   :  { %1527 = vmatpush3.bf16.msra.mxu0 %v1794_v36  ;;  %1549 = vmatpush3.bf16.msra.mxu1 %v1795_v37 }
 0x155   :  { %v902_v49 = vpop.f32.mrb[0].mxu0  ;;  %v984_v50 = vpop.f32.mrb[0].mxu1 }
 0x156   :  { %v1556_v51 = vadd.f32 %v902_v49, %v156_v45  ;;  %v1558_v52 = vadd.f32 %v984_v50, %v164_v46  ;;  %v904_v53 = vpop.f32.mrb[1].mxu0  ;;  %v986_v54 = vpop.f32.mrb[1].mxu1 }
 0x157   :  { %v1557_v55 = vadd.f32 %v904_v53, %v160_v47  ;;  %v1559_v56 = vadd.f32 %v986_v54, %v168_v48  ;;  %v906_v57 = vpop.f32.mrb[2].mxu0  ;;  %v988_v58 = vpop.f32.mrb[2].mxu1 }
 0x158   :  { %v991_v59 = vmax.f32 %v1556_v51, 0.0  ;;  %v993_v60 = vmax.f32 %v1558_v52, 0.0  ;;  %v907_v61 = vpop.f32.mrb[3].mxu0  ;;  %v989_v62 = vpop.f32.mrb[3].mxu1 }
 0x159   :  { %v992_v63 = vmax.f32 %v1557_v55, 0.0  ;;  %v994_v0 = vmax.f32 %v1559_v56, 0.0 }
 0x15a   :  { %v995_v3 = vpack.c.bf16 %v991_v59, %v991_v59  ;;  %v997_v5 = vpack.c.bf16 %v993_v60, %v993_v60 }
 0x15b   :  { %v996_v1 = vpack.c.bf16 %v992_v63, %v992_v63  ;;  %v998_v2 = vpack.c.bf16 %v994_v0, %v994_v0 }
 0x15d   :  { %1294 = vmatprep.mubr.bf16.mxu0 %v996_v1  ;;  %1334 = vmatprep.mubr.bf16.mxu1 %v998_v2 }
 0x15e   :  { %1295 = vmatmul.mubr.bf16.vlgmr.msra.gmra.mrb[4].mxu0 %v995_v3  ;;  %1335 = vmatmul.mubr.bf16.vlgmr.msra.gmra.mrb[4].mxu1 %v997_v5 }
 0x231   :  { %v1528_v6 = vpop.f32.mrb[4].mxu0  ;;  %v1550_v7 = vpop.f32.mrb[4].mxu1 }
 0x232   :  { %v1529_v9 = vpop.f32.mrb[5].mxu0  ;;  %v1551_v10 = vpop.f32.mrb[5].mxu1 }
 0x233   :  { %v1530_v11 = vadd.f32 %v1529_v9, %v1528_v6  ;;  %v1552_v4 = vadd.f32 %v1551_v10, %v1550_v7  ;;  %v1531_v12 = vpop.f32.mrb[6].mxu0  ;;  %v1553_v13 = vpop.f32.mrb[6].mxu1 }
 0x234   :  { %v1532_v14 = vpop.f32.mrb[7].mxu0  ;;  %v1554_v15 = vpop.f32.mrb[7].mxu1 }
 0x235   :  { %v1297_v16 = vadd.f32 %v1530_v11, %v1479_v8 }
 0x237   :  { %v1337_v17 = vadd.f32 %v1552_v4, %v1297_v16 }
 0x239   :  { %1342 = vst [vmem:[%s2332_s5] sm:$0xff] %v1337_v17 }

</bundles_post_ra>
